<compile_context>
chip_gen: v5e
topology: v5e:2x2
jax: 0.10.0
libtpu: 0.0.40
codegen_flags: <defaults>
</compile_context>

<pallas_src>
import jax
import jax.numpy as jnp
from jax.experimental import pallas as pl
from jax.experimental.pallas import tpu as pltpu

BF16 = jnp.bfloat16
F32 = jnp.float32

VMEM_LIMIT = 48 * 1024 * 1024  # above 16/32 MiB defaults, below v7x's 64 MiB physical


# ----------------------------------------------------------------------------
# helpers: interpolation matrices, BatchNorm folding, tile picking
# ----------------------------------------------------------------------------
def _interp_matrix(n_in, n_out):
    """Row-interpolation matrix for bilinear upsample, align_corners=True."""
    if n_in == 1:
        return jnp.ones((n_out, 1), F32)
    src = jnp.arange(n_out, dtype=F32) * (n_in - 1) / (n_out - 1)
    i0 = jnp.clip(jnp.floor(src).astype(jnp.int32), 0, n_in - 2)
    frac = src - i0.astype(F32)
    rows = jnp.arange(n_out)
    m = jnp.zeros((n_out, n_in), F32)
    m = m.at[rows, i0].add(1.0 - frac)
    m = m.at[rows, i0 + 1].add(frac)
    return m


def _fold_bn_1x1(w_oihw, b, gamma, beta, mean, var, eps=1e-5):
    scale = gamma / jnp.sqrt(var + eps)
    w = w_oihw[:, :, 0, 0] * scale[:, None]              # (O, I), channel-major
    b_eff = (b - mean) * scale + beta                    # (O,)
    return w, b_eff


def _fold_bn_3x3(w_oihw, b, gamma, beta, mean, var, eps=1e-5):
    scale = gamma / jnp.sqrt(var + eps)
    w_hwio = jnp.transpose(w_oihw, (2, 3, 1, 0)) * scale[None, None, None, :]
    b_eff = (b - mean) * scale + beta
    return w_hwio, b_eff


def _pick_row_tile(h2, w2, cap_px=2048, max_rows=32):
    """Row tile for the fused gate kernel: TR | H2, TR*W2 lane-dense-ish and
    small enough for VMEM on every generation."""
    if h2 * w2 <= cap_px and h2 <= max_rows:
        return h2                                        # whole image per step
    best = h2                                            # legal fallback
    for tr in range(1, h2):
        if h2 % tr:
            continue
        if tr * w2 > cap_px or tr > max_rows:
            continue
        if tr % 8 == 0 and (tr * w2) % 128 == 0:         # (8,128) tiling rules
            best = tr
    return best


# ----------------------------------------------------------------------------
# Kernel A: fused bilinear x2 upsample + attention gate + channel concat
# ----------------------------------------------------------------------------
def _fused_up_gate_concat_kernel(x_ref, a_ref, bt_ref, s_ref, wg_ref, ws_ref,
                                 bgs_ref, wo_ref, bo_ref, o_ref, xs_ref):
    # x_ref : (1, C0, H, W) f32     -- small pre-upsample feature map (whole)
    # a_ref : (TR, H) bf16          -- height-interp rows for this tile
    # bt_ref: (W, W2) bf16          -- width-interp matrix (already transposed)
    # s_ref : (1, C1, TR*W2) f32    -- skip connection pixel tile (lane-merged)
    # o_ref : (1, C0+Cout, TR*W2) bf16 -- fused concat output tile
    # xs_ref: (C0, TR*W2) bf16 VMEM scratch -- upsampled x tile, pixels in lanes
    c0 = x_ref.shape[1]
    h_in = x_ref.shape[2]
    tr = a_ref.shape[0]
    w2 = bt_ref.shape[1]
    cout = wg_ref.shape[0]

    x3 = x_ref[0].astype(BF16)                 # (C0, H, W)  (matches ref q(x))
    a = a_ref[...].astype(F32)                 # (TR, H)
    bt = bt_ref[...]                           # (W, W2) bf16

    # Separable bilinear upsample, one output row at a time, all channels at
    # once:  row_t = sum_h A[t,h] * x[:,h,:]  (VPU),  then  row_t @ Bt  (MXU).
    for t in range(tr):
        row = a[t:t + 1, 0:1] * x3[:, 0, :]
        for h in range(1, h_in):
            row = row + a[t:t + 1, h:h + 1] * x3[:, h, :]
        up = jnp.dot(row.astype(BF16), bt, preferred_element_type=F32)
        xs_ref[:, t * w2:(t + 1) * w2] = up.astype(BF16)

    xg = xs_ref[...]                           # (C0, PT) bf16
    ss = s_ref[0].astype(BF16)                 # (C1, PT) bf16

    z = (jnp.dot(wg_ref[...], xg, preferred_element_type=F32)
         + jnp.dot(ws_ref[...], ss, preferred_element_type=F32)
         + bgs_ref[...])
    act = jnp.maximum(z, 0.0)
    logits = (jnp.dot(wo_ref[...], act.astype(BF16), preferred_element_type=F32)
              + bo_ref[...])
    att = jax.nn.sigmoid(logits)

    # fused concat: upsampled x -> channels [0, C0), gate output -> [C0, C0+Cout)
    o_ref[0, 0:c0, :] = xg
    o_ref[0, c0:c0 + cout, :] = att.astype(BF16)


def fused_upsample_gate_concat(x, s_flat, a_mat, bt_mat, wg, ws, bgs, wo, bo, tr):
    # x: (N, C0, H, W) f32 ; s_flat: (N, C1, H2*W2) f32 ; weights channel-major
    n, c0, h_in, w_in = x.shape
    c1 = s_flat.shape[1]
    cout = wg.shape[0]
    h2 = a_mat.shape[0]
    w2 = bt_mat.shape[1]
    p = h2 * w2
    pt = tr * w2
    return pl.pallas_call(
        _fused_up_gate_concat_kernel,
        out_shape=jax.ShapeDtypeStruct((n, c0 + cout, p), BF16),
        grid_spec=pltpu.PrefetchScalarGridSpec(
            num_scalar_prefetch=0,
            grid=(n, h2 // tr),
            in_specs=[
                pl.BlockSpec((1, c0, h_in, w_in), lambda b, r: (b, 0, 0, 0)),
                pl.BlockSpec((tr, h_in), lambda b, r: (r, 0)),
                pl.BlockSpec((w_in, w2), lambda b, r: (0, 0)),
                pl.BlockSpec((1, c1, pt), lambda b, r: (b, 0, r)),
                pl.BlockSpec((cout, c0), lambda b, r: (0, 0)),
                pl.BlockSpec((cout, c1), lambda b, r: (0, 0)),
                pl.BlockSpec((cout, 1), lambda b, r: (0, 0)),
                pl.BlockSpec((cout, cout), lambda b, r: (0, 0)),
                pl.BlockSpec((cout, 1), lambda b, r: (0, 0)),
            ],
            out_specs=pl.BlockSpec((1, c0 + cout, pt), lambda b, r: (b, 0, r)),
            scratch_shapes=[pltpu.VMEM((c0, pt), BF16)],
        ),
        compiler_params=pltpu.CompilerParams(
            dimension_semantics=("parallel", "parallel"),
            vmem_limit_bytes=VMEM_LIMIT),
    )(x, a_mat, bt_mat, s_flat, wg, ws, bgs, wo, bo)


# ----------------------------------------------------------------------------
# Kernel B: conv_block -- two 3x3 convs as nine-tap accumulated matmuls,
# padding built in-kernel, BN folded, ReLU fused, bf16 output.
# ----------------------------------------------------------------------------
def conv_block(xcat_flat, w1m, b1, w2m, b2, mask, h2, w2):
    # xcat_flat: (N, Ccat, H2*W2) bf16 (packed row-major pixels)
    # w1m: (9, Cout, Ccat) bf16 ; w2m: (9, Cout, Cout) bf16 ; b*: (Cout, 1) f32
    # mask: (1, L) f32 -- 1 on data columns of the padded-width layout, 0 on junk
    n, ccat, p = xcat_flat.shape
    cout = w1m.shape[1]
    wp = w2 + 2                       # padded row width
    lv = h2 * wp                      # flat length: all rows at padded width
    lpad = lv + 2 * wp + 2            # padded scratch length (top/bottom rows)
    taps = [(dy, dx) for dy in range(3) for dx in range(3)]

    def kernel(x_ref, w1_ref, b1_ref, w2_ref, b2_ref, m_ref, o_ref,
               xpad_ref, hpad_ref):
        # --- build zero-bordered padded-width input layout in VMEM: data pixel
        #     (i, j) lands at flat (i+1)*Wp + (j+1); only borders are zeroed.
        xpad_ref[:, 0:wp + 1] = jnp.zeros((ccat, wp + 1), BF16)
        for i in range(h2):
            base = (i + 1) * wp + 1
            xpad_ref[:, base:base + w2] = x_ref[0, :, i * w2:(i + 1) * w2]
            xpad_ref[:, base + w2:base + w2 + 2] = jnp.zeros((ccat, 2), BF16)
        xpad_ref[:, (h2 + 1) * wp + 1:lpad] = jnp.zeros((ccat, wp + 1), BF16)

        # --- conv1: nine tap matmuls accumulated in f32 (no im2col scratch)
        acc = jnp.dot(w1_ref[0], xpad_ref[:, 0:lv], preferred_element_type=F32)
        for t, (dy, dx) in enumerate(taps):
            if t == 0:
                continue
            off = dy * wp + dx
            acc = acc + jnp.dot(w1_ref[t], xpad_ref[:, off:off + lv],
                                preferred_element_type=F32)
        h = jnp.where(m_ref[...] > 0.5,
                      jnp.maximum(acc + b1_ref[...], 0.0), 0.0).astype(BF16)

        # --- repack conv1 output with zero borders for conv2 (the masked junk
        #     columns of h double as the inter-row zero padding)
        hpad_ref[:, 0:wp + 1] = jnp.zeros((cout, wp + 1), BF16)
        hpad_ref[:, wp + 1:wp + 1 + lv] = h
        hpad_ref[:, wp + 1 + lv:lpad] = jnp.zeros((cout, wp + 1), BF16)

        # --- conv2: nine tap matmuls from the repacked scratch
        acc2 = jnp.dot(w2_ref[0], hpad_ref[:, 0:lv], preferred_element_type=F32)
        for t, (dy, dx) in enumerate(taps):
            if t == 0:
                continue
            off = dy * wp + dx
            acc2 = acc2 + jnp.dot(w2_ref[t], hpad_ref[:, off:off + lv],
                                  preferred_element_type=F32)
        o_ref[0] = jnp.maximum(acc2 + b2_ref[...], 0.0).astype(BF16)

    out_flat = pl.pallas_call(
        kernel,
        out_shape=jax.ShapeDtypeStruct((n, cout, lv), BF16),
        grid_spec=pltpu.PrefetchScalarGridSpec(
            num_scalar_prefetch=0,
            grid=(n,),
            in_specs=[
                pl.BlockSpec((1, ccat, p), lambda b: (b, 0, 0)),
                pl.BlockSpec((9, cout, ccat), lambda b: (0, 0, 0)),
                pl.BlockSpec((cout, 1), lambda b: (0, 0)),
                pl.BlockSpec((9, cout, cout), lambda b: (0, 0, 0)),
                pl.BlockSpec((cout, 1), lambda b: (0, 0)),
                pl.BlockSpec((1, lv), lambda b: (0, 0)),
            ],
            out_specs=pl.BlockSpec((1, cout, lv), lambda b: (b, 0, 0)),
            scratch_shapes=[
                pltpu.VMEM((ccat, lpad), BF16),
                pltpu.VMEM((cout, lpad), BF16),
            ],
        ),
        compiler_params=pltpu.CompilerParams(
            dimension_semantics=("parallel",),
            vmem_limit_bytes=VMEM_LIMIT),
    )(xcat_flat, w1m, b1, w2m, b2, mask)

    # drop the 2 junk columns per flattened row and restore NCHW
    return out_flat.reshape(n, cout, h2, wp)[:, :, :, :w2]


# ----------------------------------------------------------------------------
# decoder block forward (glue: free reshapes + two kernel calls, NCHW layout)
# ----------------------------------------------------------------------------
@jax.jit
def decoder_block_forward(x, s, p):
    # x: (N, C0, H, W), s: (N, C1, 2H, 2W) -- NCHW like PyTorch
    n, c0, h_in, w_in = x.shape
    c1 = s.shape[1]
    cout = p['wg'].shape[0]
    h2, w2 = 2 * h_in, 2 * w_in
    pix = h2 * w2

    a_mat = _interp_matrix(h_in, h2)                       # (H2, H)
    b_mat = _interp_matrix(w_in, w2)                       # (W2, W)
    tr = _pick_row_tile(h2, w2)

    xcat = fused_upsample_gate_concat(
        x, s.reshape(n, c1, pix),
        a_mat.astype(BF16), b_mat.T.astype(BF16),
        p['wg'].astype(BF16), p['ws'].astype(BF16), p['bgs'],
        p['wo'].astype(BF16), p['bo'], tr)                 # (N, C0+Cout, P) bf16

    ccat = c0 + cout
    w1m = jnp.transpose(p['w1_hwio'], (0, 1, 3, 2)).reshape(9, cout, ccat)
    w2m = jnp.transpose(p['w2_hwio'], (0, 1, 3, 2)).reshape(9, cout, cout)
    wp = w2 + 2
    lv = h2 * wp
    cols = jnp.arange(lv, dtype=jnp.int32) % wp
    mask = (cols < w2).astype(F32)[None, :]

    y = conv_block(xcat, w1m.astype(BF16), p['b1'].reshape(cout, 1),
                   w2m.astype(BF16), p['b2'].reshape(cout, 1), mask, h2, w2)
    return y                                               # (N, Cout, H2, W2) bf16


# ----------------------------------------------------------------------------
# deterministic synthetic parameters (shapes follow the PyTorch __init__)
# ----------------------------------------------------------------------------
def init_params(key, in_c, out_c, eps=1e-5):
    c0, c1 = in_c
    keys = iter(jax.random.split(key, 40))

    def nrm(shape, scale=0.1):
        return scale * jax.random.normal(next(keys), shape, F32)

    def bn(c):
        gamma = 1.0 + 0.1 * jax.random.normal(next(keys), (c,), F32)
        beta = 0.1 * jax.random.normal(next(keys), (c,), F32)
        mean = 0.1 * jax.random.normal(next(keys), (c,), F32)
        var = 1.0 + 0.5 * jax.random.uniform(next(keys), (c,), F32)
        return gamma, beta, mean, var

    p = {}
    # attention_gate.Wg : Conv2d(c0, out_c, 1) + BN  (folded, inference mode)
    wg_w, wg_b = nrm((out_c, c0, 1, 1)), nrm((out_c,))
    p['wg'], bg = _fold_bn_1x1(wg_w, wg_b, *bn(out_c), eps=eps)
    # attention_gate.Ws : Conv2d(c1, out_c, 1) + BN
    ws_w, ws_b = nrm((out_c, c1, 1, 1)), nrm((out_c,))
    p['ws'], bs = _fold_bn_1x1(ws_w, ws_b, *bn(out_c), eps=eps)
    p['bgs'] = (bg + bs).reshape(out_c, 1)                 # combined bias
    # attention_gate.output : Conv2d(out_c, out_c, 1) (no BN) + Sigmoid
    wo_w, wo_b = nrm((out_c, out_c, 1, 1)), nrm((out_c,))
    p['wo'] = wo_w[:, :, 0, 0]
    p['bo'] = wo_b.reshape(out_c, 1)
    # conv_block(c0 + out_c, out_c): two Conv3x3 + BN + ReLU
    cin = c0 + out_c
    w1, b1 = nrm((out_c, cin, 3, 3)), nrm((out_c,))
    p['w1_hwio'], p['b1'] = _fold_bn_3x3(w1, b1, *bn(out_c), eps=eps)
    w2, b2 = nrm((out_c, out_c, 3, 3)), nrm((out_c,))
    p['w2_hwio'], p['b2'] = _fold_bn_3x3(w2, b2, *bn(out_c), eps=eps)
    return p


# ----------------------------------------------------------------------------
# pure-JAX reference (same bf16 operand rounding points as the kernels)
# ----------------------------------------------------------------------------
@jax.jit
def reference_forward(x, s, p):
    def q(a):
        return a.astype(BF16).astype(F32)

    n, c0, h_in, w_in = x.shape
    h2, w2 = 2 * h_in, 2 * w_in
    a_mat = _interp_matrix(h_in, h2)
    b_mat = _interp_matrix(w_in, w2)

    # separable bilinear upsample
    t = jnp.einsum('ih,nchw->nciw', q(a_mat), q(x))
    x_up = q(jnp.einsum('nciw,jw->ncij', q(t), q(b_mat)))

    # attention gate (1x1 convs with folded BN)
    z = (jnp.einsum('oc,ncij->noij', q(p['wg']), x_up)
         + jnp.einsum('oc,ncij->noij', q(p['ws']), q(s))
         + p['bgs'].reshape(1, -1, 1, 1))
    a = jnp.maximum(z, 0.0)
    logits = (jnp.einsum('oc,ncij->noij', q(p['wo']), q(a))
              + p['bo'].reshape(1, -1, 1, 1))
    att = q(jax.nn.sigmoid(logits))

    xcat = jnp.concatenate([x_up, att], axis=1)

    def conv3(xn, w_hwio, bias):
        y = jax.lax.conv_general_dilated(
            xn, q(w_hwio), (1, 1), 'SAME',
            dimension_numbers=('NCHW', 'HWIO', 'NCHW'),
            preferred_element_type=F32)
        return jnp.maximum(y + bias.reshape(1, -1, 1, 1), 0.0)

    h = q(conv3(xcat, p['w1_hwio'], p['b1']))
    return q(conv3(h, p['w2_hwio'], p['b2']))


if __name__ == "__main__":
    key = jax.random.PRNGKey(0)
    in_c = (8, 4)      # (channels of x from deeper layer, channels of skip s)
    out_c = 8
    N, H, W = 2, 8, 8  # x is upsampled to 16x16; s is already 16x16

    k_x, k_s, k_p = jax.random.split(key, 3)
    x = jax.random.normal(k_x, (N, in_c[0], H, W), F32)
    s = jax.random.normal(k_s, (N, in_c[1], 2 * H, 2 * W), F32)
    params = init_params(k_p, in_c, out_c)

    y = jax.block_until_ready(decoder_block_forward(x, s, params))
    assert y.shape == (N, out_c, 2 * H, 2 * W), y.shape

    y_ref = jax.block_until_ready(reference_forward(x, s, params))
    max_err = float(jnp.max(jnp.abs(y.astype(F32) - y_ref)))
    assert jnp.allclose(y.astype(F32), y_ref, atol=2e-2, rtol=2e-2), max_err

    print("KERNEL_OK")
</pallas_src>

<mosaic_0001>
module attributes {stable_mosaic.version = 11 : i64} {
  func.func @kernel(%arg0: i32, %arg1: memref<1x16x256xbf16, #tpu.memory_space<vmem>>, %arg2: memref<9x8x16xbf16, #tpu.memory_space<vmem>>, %arg3: memref<8x1xf32, #tpu.memory_space<vmem>>, %arg4: memref<9x8x8xbf16, #tpu.memory_space<vmem>>, %arg5: memref<8x1xf32, #tpu.memory_space<vmem>>, %arg6: memref<1x288xf32, #tpu.memory_space<vmem>>, %arg7: memref<1x8x288xbf16, #tpu.memory_space<vmem>>, %arg8: memref<16x326xbf16, #tpu.memory_space<vmem>>, %arg9: memref<8x326xbf16, #tpu.memory_space<vmem>>) attributes {dimension_semantics = [#tpu.dimension_semantics<parallel>], iteration_bounds = array<i64: 2>, scalar_prefetch = 0 : i64, scratch_operands = 2 : i64, tpu.core_type = #tpu.core_type<tc>, window_params = [{transform_indices = @transform_0, window_bounds = array<i64: 1, 16, 256>}, {pipeline_mode = #tpu.pipeline_mode<synchronous>, transform_indices = @transform_1, window_bounds = array<i64: 9, 8, 16>}, {pipeline_mode = #tpu.pipeline_mode<synchronous>, transform_indices = @transform_2, window_bounds = array<i64: 8, 1>}, {pipeline_mode = #tpu.pipeline_mode<synchronous>, transform_indices = @transform_3, window_bounds = array<i64: 9, 8, 8>}, {pipeline_mode = #tpu.pipeline_mode<synchronous>, transform_indices = @transform_4, window_bounds = array<i64: 8, 1>}, {pipeline_mode = #tpu.pipeline_mode<synchronous>, transform_indices = @transform_5, window_bounds = array<i64: 1, 288>}, {transform_indices = @transform_6, window_bounds = array<i64: 1, 8, 288>}]} {
    %cst = arith.constant 0.000000e+00 : bf16
    %0 = vector.broadcast %cst : bf16 to vector<16x19xbf16>
    %c0 = arith.constant 0 : index
    %c0_0 = arith.constant 0 : index
    %1 = vector.load %arg8[%c0, %c0_0] : memref<16x326xbf16, #tpu.memory_space<vmem>>, vector<16x19xbf16>
    tpu.vector_store %arg8[%c0, %c0_0], %0 {strides = array<i32>} : memref<16x326xbf16, #tpu.memory_space<vmem>>, vector<16x19xbf16>,
    %c0_1 = arith.constant 0 : index
    %c0_2 = arith.constant 0 : index
    %c0_3 = arith.constant 0 : index
    %2 = vector.load %arg1[%c0_1, %c0_2, %c0_3] : memref<1x16x256xbf16, #tpu.memory_space<vmem>>, vector<1x16x16xbf16>
    %3 = vector.shape_cast %2 : vector<1x16x16xbf16> to vector<16x16xbf16>
    %c0_4 = arith.constant 0 : index
    %c19 = arith.constant 19 : index
    %4 = vector.load %arg8[%c0_4, %c19] : memref<16x326xbf16, #tpu.memory_space<vmem>>, vector<16x16xbf16>
    tpu.vector_store %arg8[%c0_4, %c19], %3 {strides = array<i32>} : memref<16x326xbf16, #tpu.memory_space<vmem>>, vector<16x16xbf16>,
    %cst_5 = arith.constant 0.000000e+00 : bf16
    %5 = vector.broadcast %cst_5 : bf16 to vector<16x2xbf16>
    %c0_6 = arith.constant 0 : index
    %c35 = arith.constant 35 : index
    %6 = vector.load %arg8[%c0_6, %c35] : memref<16x326xbf16, #tpu.memory_space<vmem>>, vector<16x2xbf16>
    tpu.vector_store %arg8[%c0_6, %c35], %5 {strides = array<i32>} : memref<16x326xbf16, #tpu.memory_space<vmem>>, vector<16x2xbf16>,
    %c0_7 = arith.constant 0 : index
    %c0_8 = arith.constant 0 : index
    %c16 = arith.constant 16 : index
    %7 = vector.load %arg1[%c0_7, %c0_8, %c16] : memref<1x16x256xbf16, #tpu.memory_space<vmem>>, vector<1x16x16xbf16>
    %8 = vector.shape_cast %7 : vector<1x16x16xbf16> to vector<16x16xbf16>
    %c0_9 = arith.constant 0 : index
    %c37 = arith.constant 37 : index
    %9 = vector.load %arg8[%c0_9, %c37] : memref<16x326xbf16, #tpu.memory_space<vmem>>, vector<16x16xbf16>
    tpu.vector_store %arg8[%c0_9, %c37], %8 {strides = array<i32>} : memref<16x326xbf16, #tpu.memory_space<vmem>>, vector<16x16xbf16>,
    %cst_10 = arith.constant 0.000000e+00 : bf16
    %10 = vector.broadcast %cst_10 : bf16 to vector<16x2xbf16>
    %c0_11 = arith.constant 0 : index
    %c53 = arith.constant 53 : index
    %11 = vector.load %arg8[%c0_11, %c53] : memref<16x326xbf16, #tpu.memory_space<vmem>>, vector<16x2xbf16>
    tpu.vector_store %arg8[%c0_11, %c53], %10 {strides = array<i32>} : memref<16x326xbf16, #tpu.memory_space<vmem>>, vector<16x2xbf16>,
    %c0_12 = arith.constant 0 : index
    %c0_13 = arith.constant 0 : index
    %c32 = arith.constant 32 : index
    %12 = vector.load %arg1[%c0_12, %c0_13, %c32] : memref<1x16x256xbf16, #tpu.memory_space<vmem>>, vector<1x16x16xbf16>
    %13 = vector.shape_cast %12 : vector<1x16x16xbf16> to vector<16x16xbf16>
    %c0_14 = arith.constant 0 : index
    %c55 = arith.constant 55 : index
    %14 = vector.load %arg8[%c0_14, %c55] : memref<16x326xbf16, #tpu.memory_space<vmem>>, vector<16x16xbf16>
    tpu.vector_store %arg8[%c0_14, %c55], %13 {strides = array<i32>} : memref<16x326xbf16, #tpu.memory_space<vmem>>, vector<16x16xbf16>,
    %cst_15 = arith.constant 0.000000e+00 : bf16
    %15 = vector.broadcast %cst_15 : bf16 to vector<16x2xbf16>
    %c0_16 = arith.constant 0 : index
    %c71 = arith.constant 71 : index
    %16 = vector.load %arg8[%c0_16, %c71] : memref<16x326xbf16, #tpu.memory_space<vmem>>, vector<16x2xbf16>
    tpu.vector_store %arg8[%c0_16, %c71], %15 {strides = array<i32>} : memref<16x326xbf16, #tpu.memory_space<vmem>>, vector<16x2xbf16>,
    %c0_17 = arith.constant 0 : index
    %c0_18 = arith.constant 0 : index
    %c48 = arith.constant 48 : index
    %17 = vector.load %arg1[%c0_17, %c0_18, %c48] : memref<1x16x256xbf16, #tpu.memory_space<vmem>>, vector<1x16x16xbf16>
    %18 = vector.shape_cast %17 : vector<1x16x16xbf16> to vector<16x16xbf16>
    %c0_19 = arith.constant 0 : index
    %c73 = arith.constant 73 : index
    %19 = vector.load %arg8[%c0_19, %c73] : memref<16x326xbf16, #tpu.memory_space<vmem>>, vector<16x16xbf16>
    tpu.vector_store %arg8[%c0_19, %c73], %18 {strides = array<i32>} : memref<16x326xbf16, #tpu.memory_space<vmem>>, vector<16x16xbf16>,
    %cst_20 = arith.constant 0.000000e+00 : bf16
    %20 = vector.broadcast %cst_20 : bf16 to vector<16x2xbf16>
    %c0_21 = arith.constant 0 : index
    %c89 = arith.constant 89 : index
    %21 = vector.load %arg8[%c0_21, %c89] : memref<16x326xbf16, #tpu.memory_space<vmem>>, vector<16x2xbf16>
    tpu.vector_store %arg8[%c0_21, %c89], %20 {strides = array<i32>} : memref<16x326xbf16, #tpu.memory_space<vmem>>, vector<16x2xbf16>,
    %c0_22 = arith.constant 0 : index
    %c0_23 = arith.constant 0 : index
    %c64 = arith.constant 64 : index
    %22 = vector.load %arg1[%c0_22, %c0_23, %c64] : memref<1x16x256xbf16, #tpu.memory_space<vmem>>, vector<1x16x16xbf16>
    %23 = vector.shape_cast %22 : vector<1x16x16xbf16> to vector<16x16xbf16>
    %c0_24 = arith.constant 0 : index
    %c91 = arith.constant 91 : index
    %24 = vector.load %arg8[%c0_24, %c91] : memref<16x326xbf16, #tpu.memory_space<vmem>>, vector<16x16xbf16>
    tpu.vector_store %arg8[%c0_24, %c91], %23 {strides = array<i32>} : memref<16x326xbf16, #tpu.memory_space<vmem>>, vector<16x16xbf16>,
    %cst_25 = arith.constant 0.000000e+00 : bf16
    %25 = vector.broadcast %cst_25 : bf16 to vector<16x2xbf16>
    %c0_26 = arith.constant 0 : index
    %c107 = arith.constant 107 : index
    %26 = vector.load %arg8[%c0_26, %c107] : memref<16x326xbf16, #tpu.memory_space<vmem>>, vector<16x2xbf16>
    tpu.vector_store %arg8[%c0_26, %c107], %25 {strides = array<i32>} : memref<16x326xbf16, #tpu.memory_space<vmem>>, vector<16x2xbf16>,
    %c0_27 = arith.constant 0 : index
    %c0_28 = arith.constant 0 : index
    %c80 = arith.constant 80 : index
    %27 = vector.load %arg1[%c0_27, %c0_28, %c80] : memref<1x16x256xbf16, #tpu.memory_space<vmem>>, vector<1x16x16xbf16>
    %28 = vector.shape_cast %27 : vector<1x16x16xbf16> to vector<16x16xbf16>
    %c0_29 = arith.constant 0 : index
    %c109 = arith.constant 109 : index
    %29 = vector.load %arg8[%c0_29, %c109] : memref<16x326xbf16, #tpu.memory_space<vmem>>, vector<16x16xbf16>
    tpu.vector_store %arg8[%c0_29, %c109], %28 {strides = array<i32>} : memref<16x326xbf16, #tpu.memory_space<vmem>>, vector<16x16xbf16>,
    %cst_30 = arith.constant 0.000000e+00 : bf16
    %30 = vector.broadcast %cst_30 : bf16 to vector<16x2xbf16>
    %c0_31 = arith.constant 0 : index
    %c125 = arith.constant 125 : index
    %31 = vector.load %arg8[%c0_31, %c125] : memref<16x326xbf16, #tpu.memory_space<vmem>>, vector<16x2xbf16>
    tpu.vector_store %arg8[%c0_31, %c125], %30 {strides = array<i32>} : memref<16x326xbf16, #tpu.memory_space<vmem>>, vector<16x2xbf16>,
    %c0_32 = arith.constant 0 : index
    %c0_33 = arith.constant 0 : index
    %c96 = arith.constant 96 : index
    %32 = vector.load %arg1[%c0_32, %c0_33, %c96] : memref<1x16x256xbf16, #tpu.memory_space<vmem>>, vector<1x16x16xbf16>
    %33 = vector.shape_cast %32 : vector<1x16x16xbf16> to vector<16x16xbf16>
    %c0_34 = arith.constant 0 : index
    %c127 = arith.constant 127 : index
    %34 = vector.load %arg8[%c0_34, %c127] : memref<16x326xbf16, #tpu.memory_space<vmem>>, vector<16x16xbf16>
    tpu.vector_store %arg8[%c0_34, %c127], %33 {strides = array<i32>} : memref<16x326xbf16, #tpu.memory_space<vmem>>, vector<16x16xbf16>,
    %cst_35 = arith.constant 0.000000e+00 : bf16
    %35 = vector.broadcast %cst_35 : bf16 to vector<16x2xbf16>
    %c0_36 = arith.constant 0 : index
    %c143 = arith.constant 143 : index
    %36 = vector.load %arg8[%c0_36, %c143] : memref<16x326xbf16, #tpu.memory_space<vmem>>, vector<16x2xbf16>
    tpu.vector_store %arg8[%c0_36, %c143], %35 {strides = array<i32>} : memref<16x326xbf16, #tpu.memory_space<vmem>>, vector<16x2xbf16>,
    %c0_37 = arith.constant 0 : index
    %c0_38 = arith.constant 0 : index
    %c112 = arith.constant 112 : index
    %37 = vector.load %arg1[%c0_37, %c0_38, %c112] : memref<1x16x256xbf16, #tpu.memory_space<vmem>>, vector<1x16x16xbf16>
    %38 = vector.shape_cast %37 : vector<1x16x16xbf16> to vector<16x16xbf16>
    %c0_39 = arith.constant 0 : index
    %c145 = arith.constant 145 : index
    %39 = vector.load %arg8[%c0_39, %c145] : memref<16x326xbf16, #tpu.memory_space<vmem>>, vector<16x16xbf16>
    tpu.vector_store %arg8[%c0_39, %c145], %38 {strides = array<i32>} : memref<16x326xbf16, #tpu.memory_space<vmem>>, vector<16x16xbf16>,
    %cst_40 = arith.constant 0.000000e+00 : bf16
    %40 = vector.broadcast %cst_40 : bf16 to vector<16x2xbf16>
    %c0_41 = arith.constant 0 : index
    %c161 = arith.constant 161 : index
    %41 = vector.load %arg8[%c0_41, %c161] : memref<16x326xbf16, #tpu.memory_space<vmem>>, vector<16x2xbf16>
    tpu.vector_store %arg8[%c0_41, %c161], %40 {strides = array<i32>} : memref<16x326xbf16, #tpu.memory_space<vmem>>, vector<16x2xbf16>,
    %c0_42 = arith.constant 0 : index
    %c0_43 = arith.constant 0 : index
    %c128 = arith.constant 128 : index
    %42 = vector.load %arg1[%c0_42, %c0_43, %c128] : memref<1x16x256xbf16, #tpu.memory_space<vmem>>, vector<1x16x16xbf16>
    %43 = vector.shape_cast %42 : vector<1x16x16xbf16> to vector<16x16xbf16>
    %c0_44 = arith.constant 0 : index
    %c163 = arith.constant 163 : index
    %44 = vector.load %arg8[%c0_44, %c163] : memref<16x326xbf16, #tpu.memory_space<vmem>>, vector<16x16xbf16>
    tpu.vector_store %arg8[%c0_44, %c163], %43 {strides = array<i32>} : memref<16x326xbf16, #tpu.memory_space<vmem>>, vector<16x16xbf16>,
    %cst_45 = arith.constant 0.000000e+00 : bf16
    %45 = vector.broadcast %cst_45 : bf16 to vector<16x2xbf16>
    %c0_46 = arith.constant 0 : index
    %c179 = arith.constant 179 : index
    %46 = vector.load %arg8[%c0_46, %c179] : memref<16x326xbf16, #tpu.memory_space<vmem>>, vector<16x2xbf16>
    tpu.vector_store %arg8[%c0_46, %c179], %45 {strides = array<i32>} : memref<16x326xbf16, #tpu.memory_space<vmem>>, vector<16x2xbf16>,
    %c0_47 = arith.constant 0 : index
    %c0_48 = arith.constant 0 : index
    %c144 = arith.constant 144 : index
    %47 = vector.load %arg1[%c0_47, %c0_48, %c144] : memref<1x16x256xbf16, #tpu.memory_space<vmem>>, vector<1x16x16xbf16>
    %48 = vector.shape_cast %47 : vector<1x16x16xbf16> to vector<16x16xbf16>
    %c0_49 = arith.constant 0 : index
    %c181 = arith.constant 181 : index
    %49 = vector.load %arg8[%c0_49, %c181] : memref<16x326xbf16, #tpu.memory_space<vmem>>, vector<16x16xbf16>
    tpu.vector_store %arg8[%c0_49, %c181], %48 {strides = array<i32>} : memref<16x326xbf16, #tpu.memory_space<vmem>>, vector<16x16xbf16>,
    %cst_50 = arith.constant 0.000000e+00 : bf16
    %50 = vector.broadcast %cst_50 : bf16 to vector<16x2xbf16>
    %c0_51 = arith.constant 0 : index
    %c197 = arith.constant 197 : index
    %51 = vector.load %arg8[%c0_51, %c197] : memref<16x326xbf16, #tpu.memory_space<vmem>>, vector<16x2xbf16>
    tpu.vector_store %arg8[%c0_51, %c197], %50 {strides = array<i32>} : memref<16x326xbf16, #tpu.memory_space<vmem>>, vector<16x2xbf16>,
    %c0_52 = arith.constant 0 : index
    %c0_53 = arith.constant 0 : index
    %c160 = arith.constant 160 : index
    %52 = vector.load %arg1[%c0_52, %c0_53, %c160] : memref<1x16x256xbf16, #tpu.memory_space<vmem>>, vector<1x16x16xbf16>
    %53 = vector.shape_cast %52 : vector<1x16x16xbf16> to vector<16x16xbf16>
    %c0_54 = arith.constant 0 : index
    %c199 = arith.constant 199 : index
    %54 = vector.load %arg8[%c0_54, %c199] : memref<16x326xbf16, #tpu.memory_space<vmem>>, vector<16x16xbf16>
    tpu.vector_store %arg8[%c0_54, %c199], %53 {strides = array<i32>} : memref<16x326xbf16, #tpu.memory_space<vmem>>, vector<16x16xbf16>,
    %cst_55 = arith.constant 0.000000e+00 : bf16
    %55 = vector.broadcast %cst_55 : bf16 to vector<16x2xbf16>
    %c0_56 = arith.constant 0 : index
    %c215 = arith.constant 215 : index
    %56 = vector.load %arg8[%c0_56, %c215] : memref<16x326xbf16, #tpu.memory_space<vmem>>, vector<16x2xbf16>
    tpu.vector_store %arg8[%c0_56, %c215], %55 {strides = array<i32>} : memref<16x326xbf16, #tpu.memory_space<vmem>>, vector<16x2xbf16>,
    %c0_57 = arith.constant 0 : index
    %c0_58 = arith.constant 0 : index
    %c176 = arith.constant 176 : index
    %57 = vector.load %arg1[%c0_57, %c0_58, %c176] : memref<1x16x256xbf16, #tpu.memory_space<vmem>>, vector<1x16x16xbf16>
    %58 = vector.shape_cast %57 : vector<1x16x16xbf16> to vector<16x16xbf16>
    %c0_59 = arith.constant 0 : index
    %c217 = arith.constant 217 : index
    %59 = vector.load %arg8[%c0_59, %c217] : memref<16x326xbf16, #tpu.memory_space<vmem>>, vector<16x16xbf16>
    tpu.vector_store %arg8[%c0_59, %c217], %58 {strides = array<i32>} : memref<16x326xbf16, #tpu.memory_space<vmem>>, vector<16x16xbf16>,
    %cst_60 = arith.constant 0.000000e+00 : bf16
    %60 = vector.broadcast %cst_60 : bf16 to vector<16x2xbf16>
    %c0_61 = arith.constant 0 : index
    %c233 = arith.constant 233 : index
    %61 = vector.load %arg8[%c0_61, %c233] : memref<16x326xbf16, #tpu.memory_space<vmem>>, vector<16x2xbf16>
    tpu.vector_store %arg8[%c0_61, %c233], %60 {strides = array<i32>} : memref<16x326xbf16, #tpu.memory_space<vmem>>, vector<16x2xbf16>,
    %c0_62 = arith.constant 0 : index
    %c0_63 = arith.constant 0 : index
    %c192 = arith.constant 192 : index
    %62 = vector.load %arg1[%c0_62, %c0_63, %c192] : memref<1x16x256xbf16, #tpu.memory_space<vmem>>, vector<1x16x16xbf16>
    %63 = vector.shape_cast %62 : vector<1x16x16xbf16> to vector<16x16xbf16>
    %c0_64 = arith.constant 0 : index
    %c235 = arith.constant 235 : index
    %64 = vector.load %arg8[%c0_64, %c235] : memref<16x326xbf16, #tpu.memory_space<vmem>>, vector<16x16xbf16>
    tpu.vector_store %arg8[%c0_64, %c235], %63 {strides = array<i32>} : memref<16x326xbf16, #tpu.memory_space<vmem>>, vector<16x16xbf16>,
    %cst_65 = arith.constant 0.000000e+00 : bf16
    %65 = vector.broadcast %cst_65 : bf16 to vector<16x2xbf16>
    %c0_66 = arith.constant 0 : index
    %c251 = arith.constant 251 : index
    %66 = vector.load %arg8[%c0_66, %c251] : memref<16x326xbf16, #tpu.memory_space<vmem>>, vector<16x2xbf16>
    tpu.vector_store %arg8[%c0_66, %c251], %65 {strides = array<i32>} : memref<16x326xbf16, #tpu.memory_space<vmem>>, vector<16x2xbf16>,
    %c0_67 = arith.constant 0 : index
    %c0_68 = arith.constant 0 : index
    %c208 = arith.constant 208 : index
    %67 = vector.load %arg1[%c0_67, %c0_68, %c208] : memref<1x16x256xbf16, #tpu.memory_space<vmem>>, vector<1x16x16xbf16>
    %68 = vector.shape_cast %67 : vector<1x16x16xbf16> to vector<16x16xbf16>
    %c0_69 = arith.constant 0 : index
    %c253 = arith.constant 253 : index
    %69 = vector.load %arg8[%c0_69, %c253] : memref<16x326xbf16, #tpu.memory_space<vmem>>, vector<16x16xbf16>
    tpu.vector_store %arg8[%c0_69, %c253], %68 {strides = array<i32>} : memref<16x326xbf16, #tpu.memory_space<vmem>>, vector<16x16xbf16>,
    %cst_70 = arith.constant 0.000000e+00 : bf16
    %70 = vector.broadcast %cst_70 : bf16 to vector<16x2xbf16>
    %c0_71 = arith.constant 0 : index
    %c269 = arith.constant 269 : index
    %71 = vector.load %arg8[%c0_71, %c269] : memref<16x326xbf16, #tpu.memory_space<vmem>>, vector<16x2xbf16>
    tpu.vector_store %arg8[%c0_71, %c269], %70 {strides = array<i32>} : memref<16x326xbf16, #tpu.memory_space<vmem>>, vector<16x2xbf16>,
    %c0_72 = arith.constant 0 : index
    %c0_73 = arith.constant 0 : index
    %c224 = arith.constant 224 : index
    %72 = vector.load %arg1[%c0_72, %c0_73, %c224] : memref<1x16x256xbf16, #tpu.memory_space<vmem>>, vector<1x16x16xbf16>
    %73 = vector.shape_cast %72 : vector<1x16x16xbf16> to vector<16x16xbf16>
    %c0_74 = arith.constant 0 : index
    %c271 = arith.constant 271 : index
    %74 = vector.load %arg8[%c0_74, %c271] : memref<16x326xbf16, #tpu.memory_space<vmem>>, vector<16x16xbf16>
    tpu.vector_store %arg8[%c0_74, %c271], %73 {strides = array<i32>} : memref<16x326xbf16, #tpu.memory_space<vmem>>, vector<16x16xbf16>,
    %cst_75 = arith.constant 0.000000e+00 : bf16
    %75 = vector.broadcast %cst_75 : bf16 to vector<16x2xbf16>
    %c0_76 = arith.constant 0 : index
    %c287 = arith.constant 287 : index
    %76 = vector.load %arg8[%c0_76, %c287] : memref<16x326xbf16, #tpu.memory_space<vmem>>, vector<16x2xbf16>
    tpu.vector_store %arg8[%c0_76, %c287], %75 {strides = array<i32>} : memref<16x326xbf16, #tpu.memory_space<vmem>>, vector<16x2xbf16>,
    %c0_77 = arith.constant 0 : index
    %c0_78 = arith.constant 0 : index
    %c240 = arith.constant 240 : index
    %77 = vector.load %arg1[%c0_77, %c0_78, %c240] : memref<1x16x256xbf16, #tpu.memory_space<vmem>>, vector<1x16x16xbf16>
    %78 = vector.shape_cast %77 : vector<1x16x16xbf16> to vector<16x16xbf16>
    %c0_79 = arith.constant 0 : index
    %c289 = arith.constant 289 : index
    %79 = vector.load %arg8[%c0_79, %c289] : memref<16x326xbf16, #tpu.memory_space<vmem>>, vector<16x16xbf16>
    tpu.vector_store %arg8[%c0_79, %c289], %78 {strides = array<i32>} : memref<16x326xbf16, #tpu.memory_space<vmem>>, vector<16x16xbf16>,
    %cst_80 = arith.constant 0.000000e+00 : bf16
    %80 = vector.broadcast %cst_80 : bf16 to vector<16x2xbf16>
    %c0_81 = arith.constant 0 : index
    %c305 = arith.constant 305 : index
    %81 = vector.load %arg8[%c0_81, %c305] : memref<16x326xbf16, #tpu.memory_space<vmem>>, vector<16x2xbf16>
    tpu.vector_store %arg8[%c0_81, %c305], %80 {strides = array<i32>} : memref<16x326xbf16, #tpu.memory_space<vmem>>, vector<16x2xbf16>,
    %cst_82 = arith.constant 0.000000e+00 : bf16
    %82 = vector.broadcast %cst_82 : bf16 to vector<16x19xbf16>
    %c0_83 = arith.constant 0 : index
    %c307 = arith.constant 307 : index
    %83 = vector.load %arg8[%c0_83, %c307] : memref<16x326xbf16, #tpu.memory_space<vmem>>, vector<16x19xbf16>
    tpu.vector_store %arg8[%c0_83, %c307], %82 {strides = array<i32>} : memref<16x326xbf16, #tpu.memory_space<vmem>>, vector<16x19xbf16>,
    %c0_84 = arith.constant 0 : index
    %c0_85 = arith.constant 0 : index
    %c0_86 = arith.constant 0 : index
    %84 = vector.load %arg2[%c0_84, %c0_85, %c0_86] : memref<9x8x16xbf16, #tpu.memory_space<vmem>>, vector<1x8x16xbf16>
    %85 = vector.shape_cast %84 : vector<1x8x16xbf16> to vector<8x16xbf16>
    %c0_87 = arith.constant 0 : index
    %c0_88 = arith.constant 0 : index
    %86 = vector.load %arg8[%c0_87, %c0_88] : memref<16x326xbf16, #tpu.memory_space<vmem>>, vector<16x288xbf16>
    %cst_89 = arith.constant dense<0.000000e+00> : vector<8x288xf32>
    %87 = tpu.matmul %85, %86, %cst_89 {dimension_numbers = #tpu.dot_dimension_numbers<[1], [0], [0], [1], [0, 0, 1, 1], [], []>} : vector<8x16xbf16>, vector<16x288xbf16>, vector<8x288xf32> -> vector<8x288xf32>
    %c1 = arith.constant 1 : index
    %c0_90 = arith.constant 0 : index
    %c0_91 = arith.constant 0 : index
    %88 = vector.load %arg2[%c1, %c0_90, %c0_91] : memref<9x8x16xbf16, #tpu.memory_space<vmem>>, vector<1x8x16xbf16>
    %89 = vector.shape_cast %88 : vector<1x8x16xbf16> to vector<8x16xbf16>
    %c0_92 = arith.constant 0 : index
    %c1_93 = arith.constant 1 : index
    %90 = vector.load %arg8[%c0_92, %c1_93] : memref<16x326xbf16, #tpu.memory_space<vmem>>, vector<16x288xbf16>
    %cst_94 = arith.constant dense<0.000000e+00> : vector<8x288xf32>
    %91 = tpu.matmul %89, %90, %cst_94 {dimension_numbers = #tpu.dot_dimension_numbers<[1], [0], [0], [1], [0, 0, 1, 1], [], []>} : vector<8x16xbf16>, vector<16x288xbf16>, vector<8x288xf32> -> vector<8x288xf32>
    %92 = arith.addf %87, %91 : vector<8x288xf32>
    %c2 = arith.constant 2 : index
    %c0_95 = arith.constant 0 : index
    %c0_96 = arith.constant 0 : index
    %93 = vector.load %arg2[%c2, %c0_95, %c0_96] : memref<9x8x16xbf16, #tpu.memory_space<vmem>>, vector<1x8x16xbf16>
    %94 = vector.shape_cast %93 : vector<1x8x16xbf16> to vector<8x16xbf16>
    %c0_97 = arith.constant 0 : index
    %c2_98 = arith.constant 2 : index
    %95 = vector.load %arg8[%c0_97, %c2_98] : memref<16x326xbf16, #tpu.memory_space<vmem>>, vector<16x288xbf16>
    %cst_99 = arith.constant dense<0.000000e+00> : vector<8x288xf32>
    %96 = tpu.matmul %94, %95, %cst_99 {dimension_numbers = #tpu.dot_dimension_numbers<[1], [0], [0], [1], [0, 0, 1, 1], [], []>} : vector<8x16xbf16>, vector<16x288xbf16>, vector<8x288xf32> -> vector<8x288xf32>
    %97 = arith.addf %92, %96 : vector<8x288xf32>
    %c3 = arith.constant 3 : index
    %c0_100 = arith.constant 0 : index
    %c0_101 = arith.constant 0 : index
    %98 = vector.load %arg2[%c3, %c0_100, %c0_101] : memref<9x8x16xbf16, #tpu.memory_space<vmem>>, vector<1x8x16xbf16>
    %99 = vector.shape_cast %98 : vector<1x8x16xbf16> to vector<8x16xbf16>
    %c0_102 = arith.constant 0 : index
    %c18 = arith.constant 18 : index
    %100 = vector.load %arg8[%c0_102, %c18] : memref<16x326xbf16, #tpu.memory_space<vmem>>, vector<16x288xbf16>
    %cst_103 = arith.constant dense<0.000000e+00> : vector<8x288xf32>
    %101 = tpu.matmul %99, %100, %cst_103 {dimension_numbers = #tpu.dot_dimension_numbers<[1], [0], [0], [1], [0, 0, 1, 1], [], []>} : vector<8x16xbf16>, vector<16x288xbf16>, vector<8x288xf32> -> vector<8x288xf32>
    %102 = arith.addf %97, %101 : vector<8x288xf32>
    %c4 = arith.constant 4 : index
    %c0_104 = arith.constant 0 : index
    %c0_105 = arith.constant 0 : index
    %103 = vector.load %arg2[%c4, %c0_104, %c0_105] : memref<9x8x16xbf16, #tpu.memory_space<vmem>>, vector<1x8x16xbf16>
    %104 = vector.shape_cast %103 : vector<1x8x16xbf16> to vector<8x16xbf16>
    %c0_106 = arith.constant 0 : index
    %c19_107 = arith.constant 19 : index
    %105 = vector.load %arg8[%c0_106, %c19_107] : memref<16x326xbf16, #tpu.memory_space<vmem>>, vector<16x288xbf16>
    %cst_108 = arith.constant dense<0.000000e+00> : vector<8x288xf32>
    %106 = tpu.matmul %104, %105, %cst_108 {dimension_numbers = #tpu.dot_dimension_numbers<[1], [0], [0], [1], [0, 0, 1, 1], [], []>} : vector<8x16xbf16>, vector<16x288xbf16>, vector<8x288xf32> -> vector<8x288xf32>
    %107 = arith.addf %102, %106 : vector<8x288xf32>
    %c5 = arith.constant 5 : index
    %c0_109 = arith.constant 0 : index
    %c0_110 = arith.constant 0 : index
    %108 = vector.load %arg2[%c5, %c0_109, %c0_110] : memref<9x8x16xbf16, #tpu.memory_space<vmem>>, vector<1x8x16xbf16>
    %109 = vector.shape_cast %108 : vector<1x8x16xbf16> to vector<8x16xbf16>
    %c0_111 = arith.constant 0 : index
    %c20 = arith.constant 20 : index
    %110 = vector.load %arg8[%c0_111, %c20] : memref<16x326xbf16, #tpu.memory_space<vmem>>, vector<16x288xbf16>
    %cst_112 = arith.constant dense<0.000000e+00> : vector<8x288xf32>
    %111 = tpu.matmul %109, %110, %cst_112 {dimension_numbers = #tpu.dot_dimension_numbers<[1], [0], [0], [1], [0, 0, 1, 1], [], []>} : vector<8x16xbf16>, vector<16x288xbf16>, vector<8x288xf32> -> vector<8x288xf32>
    %112 = arith.addf %107, %111 : vector<8x288xf32>
    %c6 = arith.constant 6 : index
    %c0_113 = arith.constant 0 : index
    %c0_114 = arith.constant 0 : index
    %113 = vector.load %arg2[%c6, %c0_113, %c0_114] : memref<9x8x16xbf16, #tpu.memory_space<vmem>>, vector<1x8x16xbf16>
    %114 = vector.shape_cast %113 : vector<1x8x16xbf16> to vector<8x16xbf16>
    %c0_115 = arith.constant 0 : index
    %c36 = arith.constant 36 : index
    %115 = vector.load %arg8[%c0_115, %c36] : memref<16x326xbf16, #tpu.memory_space<vmem>>, vector<16x288xbf16>
    %cst_116 = arith.constant dense<0.000000e+00> : vector<8x288xf32>
    %116 = tpu.matmul %114, %115, %cst_116 {dimension_numbers = #tpu.dot_dimension_numbers<[1], [0], [0], [1], [0, 0, 1, 1], [], []>} : vector<8x16xbf16>, vector<16x288xbf16>, vector<8x288xf32> -> vector<8x288xf32>
    %117 = arith.addf %112, %116 : vector<8x288xf32>
    %c7 = arith.constant 7 : index
    %c0_117 = arith.constant 0 : index
    %c0_118 = arith.constant 0 : index
    %118 = vector.load %arg2[%c7, %c0_117, %c0_118] : memref<9x8x16xbf16, #tpu.memory_space<vmem>>, vector<1x8x16xbf16>
    %119 = vector.shape_cast %118 : vector<1x8x16xbf16> to vector<8x16xbf16>
    %c0_119 = arith.constant 0 : index
    %c37_120 = arith.constant 37 : index
    %120 = vector.load %arg8[%c0_119, %c37_120] : memref<16x326xbf16, #tpu.memory_space<vmem>>, vector<16x288xbf16>
    %cst_121 = arith.constant dense<0.000000e+00> : vector<8x288xf32>
    %121 = tpu.matmul %119, %120, %cst_121 {dimension_numbers = #tpu.dot_dimension_numbers<[1], [0], [0], [1], [0, 0, 1, 1], [], []>} : vector<8x16xbf16>, vector<16x288xbf16>, vector<8x288xf32> -> vector<8x288xf32>
    %122 = arith.addf %117, %121 : vector<8x288xf32>
    %c8 = arith.constant 8 : index
    %c0_122 = arith.constant 0 : index
    %c0_123 = arith.constant 0 : index
    %123 = vector.load %arg2[%c8, %c0_122, %c0_123] : memref<9x8x16xbf16, #tpu.memory_space<vmem>>, vector<1x8x16xbf16>
    %124 = vector.shape_cast %123 : vector<1x8x16xbf16> to vector<8x16xbf16>
    %c0_124 = arith.constant 0 : index
    %c38 = arith.constant 38 : index
    %125 = vector.load %arg8[%c0_124, %c38] : memref<16x326xbf16, #tpu.memory_space<vmem>>, vector<16x288xbf16>
    %cst_125 = arith.constant dense<0.000000e+00> : vector<8x288xf32>
    %126 = tpu.matmul %124, %125, %cst_125 {dimension_numbers = #tpu.dot_dimension_numbers<[1], [0], [0], [1], [0, 0, 1, 1], [], []>} : vector<8x16xbf16>, vector<16x288xbf16>, vector<8x288xf32> -> vector<8x288xf32>
    %127 = arith.addf %122, %126 : vector<8x288xf32>
    %c0_126 = arith.constant 0 : index
    %c0_127 = arith.constant 0 : index
    %128 = vector.load %arg6[%c0_126, %c0_127] : memref<1x288xf32, #tpu.memory_space<vmem>>, vector<1x288xf32>
    %cst_128 = arith.constant 5.000000e-01 : f32
    %129 = vector.broadcast %cst_128 : f32 to vector<1x288xf32>
    %130 = arith.cmpf ogt, %128, %129 : vector<1x288xf32>
    %c0_129 = arith.constant 0 : index
    %c0_130 = arith.constant 0 : index
    %131 = vector.load %arg3[%c0_129, %c0_130] : memref<8x1xf32, #tpu.memory_space<vmem>>, vector<8x1xf32>
    %132 = vector.broadcast %131 : vector<8x1xf32> to vector<8x288xf32>
    %133 = arith.addf %127, %132 : vector<8x288xf32>
    %cst_131 = arith.constant 0.000000e+00 : f32
    %134 = vector.broadcast %cst_131 : f32 to vector<8x288xf32>
    %135 = arith.maximumf %133, %134 : vector<8x288xf32>
    %cst_132 = arith.constant 0.000000e+00 : f32
    %136 = vector.shape_cast %130 : vector<1x288xi1> to vector<1x288xi1>
    %137 = vector.broadcast %136 : vector<1x288xi1> to vector<8x288xi1>
    %138 = vector.broadcast %cst_132 : f32 to vector<8x288xf32>
    %139 = arith.select %137, %135, %138 : vector<8x288xi1>, vector<8x288xf32>
    %140 = arith.truncf %139 : vector<8x288xf32> to vector<8x288xbf16>
    %cst_133 = arith.constant 0.000000e+00 : bf16
    %141 = vector.broadcast %cst_133 : bf16 to vector<8x19xbf16>
    %c0_134 = arith.constant 0 : index
    %c0_135 = arith.constant 0 : index
    %142 = vector.load %arg9[%c0_134, %c0_135] : memref<8x326xbf16, #tpu.memory_space<vmem>>, vector<8x19xbf16>
    tpu.vector_store %arg9[%c0_134, %c0_135], %141 {strides = array<i32>} : memref<8x326xbf16, #tpu.memory_space<vmem>>, vector<8x19xbf16>,
    %c0_136 = arith.constant 0 : index
    %c19_137 = arith.constant 19 : index
    %143 = vector.load %arg9[%c0_136, %c19_137] : memref<8x326xbf16, #tpu.memory_space<vmem>>, vector<8x288xbf16>
    tpu.vector_store %arg9[%c0_136, %c19_137], %140 {strides = array<i32>} : memref<8x326xbf16, #tpu.memory_space<vmem>>, vector<8x288xbf16>,
    %cst_138 = arith.constant 0.000000e+00 : bf16
    %144 = vector.broadcast %cst_138 : bf16 to vector<8x19xbf16>
    %c0_139 = arith.constant 0 : index
    %c307_140 = arith.constant 307 : index
    %145 = vector.load %arg9[%c0_139, %c307_140] : memref<8x326xbf16, #tpu.memory_space<vmem>>, vector<8x19xbf16>
    tpu.vector_store %arg9[%c0_139, %c307_140], %144 {strides = array<i32>} : memref<8x326xbf16, #tpu.memory_space<vmem>>, vector<8x19xbf16>,
    %c0_141 = arith.constant 0 : index
    %c0_142 = arith.constant 0 : index
    %c0_143 = arith.constant 0 : index
    %146 = vector.load %arg4[%c0_141, %c0_142, %c0_143] : memref<9x8x8xbf16, #tpu.memory_space<vmem>>, vector<1x8x8xbf16>
    %147 = vector.shape_cast %146 : vector<1x8x8xbf16> to vector<8x8xbf16>
    %c0_144 = arith.constant 0 : index
    %c0_145 = arith.constant 0 : index
    %148 = vector.load %arg9[%c0_144, %c0_145] : memref<8x326xbf16, #tpu.memory_space<vmem>>, vector<8x288xbf16>
    %cst_146 = arith.constant dense<0.000000e+00> : vector<8x288xf32>
    %149 = tpu.matmul %147, %148, %cst_146 {dimension_numbers = #tpu.dot_dimension_numbers<[1], [0], [0], [1], [0, 0, 1, 1], [], []>} : vector<8x8xbf16>, vector<8x288xbf16>, vector<8x288xf32> -> vector<8x288xf32>
    %c1_147 = arith.constant 1 : index
    %c0_148 = arith.constant 0 : index
    %c0_149 = arith.constant 0 : index
    %150 = vector.load %arg4[%c1_147, %c0_148, %c0_149] : memref<9x8x8xbf16, #tpu.memory_space<vmem>>, vector<1x8x8xbf16>
    %151 = vector.shape_cast %150 : vector<1x8x8xbf16> to vector<8x8xbf16>
    %c0_150 = arith.constant 0 : index
    %c1_151 = arith.constant 1 : index
    %152 = vector.load %arg9[%c0_150, %c1_151] : memref<8x326xbf16, #tpu.memory_space<vmem>>, vector<8x288xbf16>
    %cst_152 = arith.constant dense<0.000000e+00> : vector<8x288xf32>
    %153 = tpu.matmul %151, %152, %cst_152 {dimension_numbers = #tpu.dot_dimension_numbers<[1], [0], [0], [1], [0, 0, 1, 1], [], []>} : vector<8x8xbf16>, vector<8x288xbf16>, vector<8x288xf32> -> vector<8x288xf32>
    %154 = arith.addf %149, %153 : vector<8x288xf32>
    %c2_153 = arith.constant 2 : index
    %c0_154 = arith.constant 0 : index
    %c0_155 = arith.constant 0 : index
    %155 = vector.load %arg4[%c2_153, %c0_154, %c0_155] : memref<9x8x8xbf16, #tpu.memory_space<vmem>>, vector<1x8x8xbf16>
    %156 = vector.shape_cast %155 : vector<1x8x8xbf16> to vector<8x8xbf16>
    %c0_156 = arith.constant 0 : index
    %c2_157 = arith.constant 2 : index
    %157 = vector.load %arg9[%c0_156, %c2_157] : memref<8x326xbf16, #tpu.memory_space<vmem>>, vector<8x288xbf16>
    %cst_158 = arith.constant dense<0.000000e+00> : vector<8x288xf32>
    %158 = tpu.matmul %156, %157, %cst_158 {dimension_numbers = #tpu.dot_dimension_numbers<[1], [0], [0], [1], [0, 0, 1, 1], [], []>} : vector<8x8xbf16>, vector<8x288xbf16>, vector<8x288xf32> -> vector<8x288xf32>
    %159 = arith.addf %154, %158 : vector<8x288xf32>
    %c3_159 = arith.constant 3 : index
    %c0_160 = arith.constant 0 : index
    %c0_161 = arith.constant 0 : index
    %160 = vector.load %arg4[%c3_159, %c0_160, %c0_161] : memref<9x8x8xbf16, #tpu.memory_space<vmem>>, vector<1x8x8xbf16>
    %161 = vector.shape_cast %160 : vector<1x8x8xbf16> to vector<8x8xbf16>
    %c0_162 = arith.constant 0 : index
    %c18_163 = arith.constant 18 : index
    %162 = vector.load %arg9[%c0_162, %c18_163] : memref<8x326xbf16, #tpu.memory_space<vmem>>, vector<8x288xbf16>
    %cst_164 = arith.constant dense<0.000000e+00> : vector<8x288xf32>
    %163 = tpu.matmul %161, %162, %cst_164 {dimension_numbers = #tpu.dot_dimension_numbers<[1], [0], [0], [1], [0, 0, 1, 1], [], []>} : vector<8x8xbf16>, vector<8x288xbf16>, vector<8x288xf32> -> vector<8x288xf32>
    %164 = arith.addf %159, %163 : vector<8x288xf32>
    %c4_165 = arith.constant 4 : index
    %c0_166 = arith.constant 0 : index
    %c0_167 = arith.constant 0 : index
    %165 = vector.load %arg4[%c4_165, %c0_166, %c0_167] : memref<9x8x8xbf16, #tpu.memory_space<vmem>>, vector<1x8x8xbf16>
    %166 = vector.shape_cast %165 : vector<1x8x8xbf16> to vector<8x8xbf16>
    %c0_168 = arith.constant 0 : index
    %c19_169 = arith.constant 19 : index
    %167 = vector.load %arg9[%c0_168, %c19_169] : memref<8x326xbf16, #tpu.memory_space<vmem>>, vector<8x288xbf16>
    %cst_170 = arith.constant dense<0.000000e+00> : vector<8x288xf32>
    %168 = tpu.matmul %166, %167, %cst_170 {dimension_numbers = #tpu.dot_dimension_numbers<[1], [0], [0], [1], [0, 0, 1, 1], [], []>} : vector<8x8xbf16>, vector<8x288xbf16>, vector<8x288xf32> -> vector<8x288xf32>
    %169 = arith.addf %164, %168 : vector<8x288xf32>
    %c5_171 = arith.constant 5 : index
    %c0_172 = arith.constant 0 : index
    %c0_173 = arith.constant 0 : index
    %170 = vector.load %arg4[%c5_171, %c0_172, %c0_173] : memref<9x8x8xbf16, #tpu.memory_space<vmem>>, vector<1x8x8xbf16>
    %171 = vector.shape_cast %170 : vector<1x8x8xbf16> to vector<8x8xbf16>
    %c0_174 = arith.constant 0 : index
    %c20_175 = arith.constant 20 : index
    %172 = vector.load %arg9[%c0_174, %c20_175] : memref<8x326xbf16, #tpu.memory_space<vmem>>, vector<8x288xbf16>
    %cst_176 = arith.constant dense<0.000000e+00> : vector<8x288xf32>
    %173 = tpu.matmul %171, %172, %cst_176 {dimension_numbers = #tpu.dot_dimension_numbers<[1], [0], [0], [1], [0, 0, 1, 1], [], []>} : vector<8x8xbf16>, vector<8x288xbf16>, vector<8x288xf32> -> vector<8x288xf32>
    %174 = arith.addf %169, %173 : vector<8x288xf32>
    %c6_177 = arith.constant 6 : index
    %c0_178 = arith.constant 0 : index
    %c0_179 = arith.constant 0 : index
    %175 = vector.load %arg4[%c6_177, %c0_178, %c0_179] : memref<9x8x8xbf16, #tpu.memory_space<vmem>>, vector<1x8x8xbf16>
    %176 = vector.shape_cast %175 : vector<1x8x8xbf16> to vector<8x8xbf16>
    %c0_180 = arith.constant 0 : index
    %c36_181 = arith.constant 36 : index
    %177 = vector.load %arg9[%c0_180, %c36_181] : memref<8x326xbf16, #tpu.memory_space<vmem>>, vector<8x288xbf16>
    %cst_182 = arith.constant dense<0.000000e+00> : vector<8x288xf32>
    %178 = tpu.matmul %176, %177, %cst_182 {dimension_numbers = #tpu.dot_dimension_numbers<[1], [0], [0], [1], [0, 0, 1, 1], [], []>} : vector<8x8xbf16>, vector<8x288xbf16>, vector<8x288xf32> -> vector<8x288xf32>
    %179 = arith.addf %174, %178 : vector<8x288xf32>
    %c7_183 = arith.constant 7 : index
    %c0_184 = arith.constant 0 : index
    %c0_185 = arith.constant 0 : index
    %180 = vector.load %arg4[%c7_183, %c0_184, %c0_185] : memref<9x8x8xbf16, #tpu.memory_space<vmem>>, vector<1x8x8xbf16>
    %181 = vector.shape_cast %180 : vector<1x8x8xbf16> to vector<8x8xbf16>
    %c0_186 = arith.constant 0 : index
    %c37_187 = arith.constant 37 : index
    %182 = vector.load %arg9[%c0_186, %c37_187] : memref<8x326xbf16, #tpu.memory_space<vmem>>, vector<8x288xbf16>
    %cst_188 = arith.constant dense<0.000000e+00> : vector<8x288xf32>
    %183 = tpu.matmul %181, %182, %cst_188 {dimension_numbers = #tpu.dot_dimension_numbers<[1], [0], [0], [1], [0, 0, 1, 1], [], []>} : vector<8x8xbf16>, vector<8x288xbf16>, vector<8x288xf32> -> vector<8x288xf32>
    %184 = arith.addf %179, %183 : vector<8x288xf32>
    %c8_189 = arith.constant 8 : index
    %c0_190 = arith.constant 0 : index
    %c0_191 = arith.constant 0 : index
    %185 = vector.load %arg4[%c8_189, %c0_190, %c0_191] : memref<9x8x8xbf16, #tpu.memory_space<vmem>>, vector<1x8x8xbf16>
    %186 = vector.shape_cast %185 : vector<1x8x8xbf16> to vector<8x8xbf16>
    %c0_192 = arith.constant 0 : index
    %c38_193 = arith.constant 38 : index
    %187 = vector.load %arg9[%c0_192, %c38_193] : memref<8x326xbf16, #tpu.memory_space<vmem>>, vector<8x288xbf16>
    %cst_194 = arith.constant dense<0.000000e+00> : vector<8x288xf32>
    %188 = tpu.matmul %186, %187, %cst_194 {dimension_numbers = #tpu.dot_dimension_numbers<[1], [0], [0], [1], [0, 0, 1, 1], [], []>} : vector<8x8xbf16>, vector<8x288xbf16>, vector<8x288xf32> -> vector<8x288xf32>
    %189 = arith.addf %184, %188 : vector<8x288xf32>
    %c0_195 = arith.constant 0 : index
    %c0_196 = arith.constant 0 : index
    %190 = vector.load %arg5[%c0_195, %c0_196] : memref<8x1xf32, #tpu.memory_space<vmem>>, vector<8x1xf32>
    %191 = vector.broadcast %190 : vector<8x1xf32> to vector<8x288xf32>
    %192 = arith.addf %189, %191 : vector<8x288xf32>
    %cst_197 = arith.constant 0.000000e+00 : f32
    %193 = vector.broadcast %cst_197 : f32 to vector<8x288xf32>
    %194 = arith.maximumf %192, %193 : vector<8x288xf32>
    %195 = arith.truncf %194 : vector<8x288xf32> to vector<8x288xbf16>
    %c0_198 = arith.constant 0 : index
    %c0_199 = arith.constant 0 : index
    %c0_200 = arith.constant 0 : index
    %196 = vector.load %arg7[%c0_198, %c0_199, %c0_200] : memref<1x8x288xbf16, #tpu.memory_space<vmem>>, vector<1x8x288xbf16>
    %197 = vector.shape_cast %196 : vector<1x8x288xbf16> to vector<8x288xbf16>
    %198 = vector.shape_cast %195 : vector<8x288xbf16> to vector<1x8x288xbf16>
    tpu.vector_store %arg7[%c0_198, %c0_199, %c0_200], %198 {strides = array<i32>} : memref<1x8x288xbf16, #tpu.memory_space<vmem>>, vector<1x8x288xbf16>,
    return
  }
  func.func @transform_0(%arg0: i32) -> (i32, i32, i32) {
    %c0_i32 = arith.constant 0 : i32
    %c0_i32_0 = arith.constant 0 : i32
    %c0_i32_1 = arith.constant 0 : i32
    return %arg0, %c0_i32, %c0_i32_0 : i32, i32, i32
  }
  func.func @transform_1(%arg0: i32) -> (i32, i32, i32) {
    %c0_i32 = arith.constant 0 : i32
    %c0_i32_0 = arith.constant 0 : i32
    %c0_i32_1 = arith.constant 0 : i32
    %c0_i32_2 = arith.constant 0 : i32
    return %c0_i32, %c0_i32_0, %c0_i32_1 : i32, i32, i32
  }
  func.func @transform_2(%arg0: i32) -> (i32, i32) {
    %c0_i32 = arith.constant 0 : i32
    %c0_i32_0 = arith.constant 0 : i32
    %c0_i32_1 = arith.constant 0 : i32
    return %c0_i32, %c0_i32_0 : i32, i32
  }
  func.func @transform_3(%arg0: i32) -> (i32, i32, i32) {
    %c0_i32 = arith.constant 0 : i32
    %c0_i32_0 = arith.constant 0 : i32
    %c0_i32_1 = arith.constant 0 : i32
    %c0_i32_2 = arith.constant 0 : i32
    return %c0_i32, %c0_i32_0, %c0_i32_1 : i32, i32, i32
  }
  func.func @transform_4(%arg0: i32) -> (i32, i32) {
    %c0_i32 = arith.constant 0 : i32
    %c0_i32_0 = arith.constant 0 : i32
    %c0_i32_1 = arith.constant 0 : i32
    return %c0_i32, %c0_i32_0 : i32, i32
  }
  func.func @transform_5(%arg0: i32) -> (i32, i32) {
    %c0_i32 = arith.constant 0 : i32
    %c0_i32_0 = arith.constant 0 : i32
    %c0_i32_1 = arith.constant 0 : i32
    return %c0_i32, %c0_i32_0 : i32, i32
  }
  func.func @transform_6(%arg0: i32) -> (i32, i32, i32) {
    %c0_i32 = arith.constant 0 : i32
    %c0_i32_0 = arith.constant 0 : i32
    %c0_i32_1 = arith.constant 0 : i32
    return %arg0, %c0_i32, %c0_i32_0 : i32, i32, i32
  }
}

module attributes {stable_mosaic.version = 11 : i64} {
  func.func @_fused_up_gate_concat_kernel(%arg0: i32, %arg1: i32, %arg2: memref<1x8x8x8xf32, #tpu.memory_space<vmem>>, %arg3: memref<16x8xbf16, #tpu.memory_space<vmem>>, %arg4: memref<8x16xbf16, #tpu.memory_space<vmem>>, %arg5: memref<1x4x256xf32, #tpu.memory_space<vmem>>, %arg6: memref<8x8xbf16, #tpu.memory_space<vmem>>, %arg7: memref<8x4xbf16, #tpu.memory_space<vmem>>, %arg8: memref<8x1xf32, #tpu.memory_space<vmem>>, %arg9: memref<8x8xbf16, #tpu.memory_space<vmem>>, %arg10: memref<8x1xf32, #tpu.memory_space<vmem>>, %arg11: memref<1x16x256xbf16, #tpu.memory_space<vmem>>, %arg12: memref<8x256xbf16, #tpu.memory_space<vmem>>) attributes {dimension_semantics = [#tpu.dimension_semantics<parallel>, #tpu.dimension_semantics<parallel>], iteration_bounds = array<i64: 2, 1>, scalar_prefetch = 0 : i64, scratch_operands = 1 : i64, tpu.core_type = #tpu.core_type<tc>, window_params = [{transform_indices = @transform_0, window_bounds = array<i64: 1, 8, 8, 8>}, {transform_indices = @transform_1, window_bounds = array<i64: 16, 8>}, {pipeline_mode = #tpu.pipeline_mode<synchronous>, transform_indices = @transform_2, window_bounds = array<i64: 8, 16>}, {transform_indices = @transform_3, window_bounds = array<i64: 1, 4, 256>}, {pipeline_mode = #tpu.pipeline_mode<synchronous>, transform_indices = @transform_4, window_bounds = array<i64: 8, 8>}, {pipeline_mode = #tpu.pipeline_mode<synchronous>, transform_indices = @transform_5, window_bounds = array<i64: 8, 4>}, {pipeline_mode = #tpu.pipeline_mode<synchronous>, transform_indices = @transform_6, window_bounds = array<i64: 8, 1>}, {pipeline_mode = #tpu.pipeline_mode<synchronous>, transform_indices = @transform_7, window_bounds = array<i64: 8, 8>}, {pipeline_mode = #tpu.pipeline_mode<synchronous>, transform_indices = @transform_8, window_bounds = array<i64: 8, 1>}, {transform_indices = @transform_9, window_bounds = array<i64: 1, 16, 256>}]} {
    %c0 = arith.constant 0 : index
    %c0_0 = arith.constant 0 : index
    %c0_1 = arith.constant 0 : index
    %c0_2 = arith.constant 0 : index
    %0 = vector.load %arg2[%c0, %c0_0, %c0_1, %c0_2] : memref<1x8x8x8xf32, #tpu.memory_space<vmem>>, vector<1x8x8x8xf32>
    %1 = vector.shape_cast %0 : vector<1x8x8x8xf32> to vector<8x8x8xf32>
    %2 = arith.truncf %1 : vector<8x8x8xf32> to vector<8x8x8xbf16>
    %c0_3 = arith.constant 0 : index
    %c0_4 = arith.constant 0 : index
    %3 = vector.load %arg3[%c0_3, %c0_4] : memref<16x8xbf16, #tpu.memory_space<vmem>>, vector<16x8xbf16>
    %4 = arith.extf %3 : vector<16x8xbf16> to vector<16x8xf32>
    %c0_5 = arith.constant 0 : index
    %c0_6 = arith.constant 0 : index
    %5 = vector.load %arg4[%c0_5, %c0_6] : memref<8x16xbf16, #tpu.memory_space<vmem>>, vector<8x16xbf16>
    %6 = vector.extract_strided_slice %4 {offsets = [0, 0], sizes = [1, 1], strides = [1, 1]} : vector<16x8xf32> to vector<1x1xf32>
    %7 = vector.extract_strided_slice %2 {offsets = [0, 0, 0], sizes = [8, 1, 8], strides = [1, 1, 1]} : vector<8x8x8xbf16> to vector<8x1x8xbf16>
    %8 = vector.shape_cast %7 : vector<8x1x8xbf16> to vector<8x8xbf16>
    %9 = arith.extf %8 : vector<8x8xbf16> to vector<8x8xf32>
    %10 = vector.broadcast %6 : vector<1x1xf32> to vector<8x8xf32>
    %11 = arith.mulf %10, %9 : vector<8x8xf32>
    %12 = vector.extract_strided_slice %4 {offsets = [0, 1], sizes = [1, 1], strides = [1, 1]} : vector<16x8xf32> to vector<1x1xf32>
    %13 = vector.extract_strided_slice %2 {offsets = [0, 1, 0], sizes = [8, 1, 8], strides = [1, 1, 1]} : vector<8x8x8xbf16> to vector<8x1x8xbf16>
    %14 = vector.shape_cast %13 : vector<8x1x8xbf16> to vector<8x8xbf16>
    %15 = arith.extf %14 : vector<8x8xbf16> to vector<8x8xf32>
    %16 = vector.broadcast %12 : vector<1x1xf32> to vector<8x8xf32>
    %17 = arith.mulf %16, %15 : vector<8x8xf32>
    %18 = arith.addf %11, %17 : vector<8x8xf32>
    %19 = vector.extract_strided_slice %4 {offsets = [0, 2], sizes = [1, 1], strides = [1, 1]} : vector<16x8xf32> to vector<1x1xf32>
    %20 = vector.extract_strided_slice %2 {offsets = [0, 2, 0], sizes = [8, 1, 8], strides = [1, 1, 1]} : vector<8x8x8xbf16> to vector<8x1x8xbf16>
    %21 = vector.shape_cast %20 : vector<8x1x8xbf16> to vector<8x8xbf16>
    %22 = arith.extf %21 : vector<8x8xbf16> to vector<8x8xf32>
    %23 = vector.broadcast %19 : vector<1x1xf32> to vector<8x8xf32>
    %24 = arith.mulf %23, %22 : vector<8x8xf32>
    %25 = arith.addf %18, %24 : vector<8x8xf32>
    %26 = vector.extract_strided_slice %4 {offsets = [0, 3], sizes = [1, 1], strides = [1, 1]} : vector<16x8xf32> to vector<1x1xf32>
    %27 = vector.extract_strided_slice %2 {offsets = [0, 3, 0], sizes = [8, 1, 8], strides = [1, 1, 1]} : vector<8x8x8xbf16> to vector<8x1x8xbf16>
    %28 = vector.shape_cast %27 : vector<8x1x8xbf16> to vector<8x8xbf16>
    %29 = arith.extf %28 : vector<8x8xbf16> to vector<8x8xf32>
    %30 = vector.broadcast %26 : vector<1x1xf32> to vector<8x8xf32>
    %31 = arith.mulf %30, %29 : vector<8x8xf32>
    %32 = arith.addf %25, %31 : vector<8x8xf32>
    %33 = vector.extract_strided_slice %4 {offsets = [0, 4], sizes = [1, 1], strides = [1, 1]} : vector<16x8xf32> to vector<1x1xf32>
    %34 = vector.extract_strided_slice %2 {offsets = [0, 4, 0], sizes = [8, 1, 8], strides = [1, 1, 1]} : vector<8x8x8xbf16> to vector<8x1x8xbf16>
    %35 = vector.shape_cast %34 : vector<8x1x8xbf16> to vector<8x8xbf16>
    %36 = arith.extf %35 : vector<8x8xbf16> to vector<8x8xf32>
    %37 = vector.broadcast %33 : vector<1x1xf32> to vector<8x8xf32>
    %38 = arith.mulf %37, %36 : vector<8x8xf32>
    %39 = arith.addf %32, %38 : vector<8x8xf32>
    %40 = vector.extract_strided_slice %4 {offsets = [0, 5], sizes = [1, 1], strides = [1, 1]} : vector<16x8xf32> to vector<1x1xf32>
    %41 = vector.extract_strided_slice %2 {offsets = [0, 5, 0], sizes = [8, 1, 8], strides = [1, 1, 1]} : vector<8x8x8xbf16> to vector<8x1x8xbf16>
    %42 = vector.shape_cast %41 : vector<8x1x8xbf16> to vector<8x8xbf16>
    %43 = arith.extf %42 : vector<8x8xbf16> to vector<8x8xf32>
    %44 = vector.broadcast %40 : vector<1x1xf32> to vector<8x8xf32>
    %45 = arith.mulf %44, %43 : vector<8x8xf32>
    %46 = arith.addf %39, %45 : vector<8x8xf32>
    %47 = vector.extract_strided_slice %4 {offsets = [0, 6], sizes = [1, 1], strides = [1, 1]} : vector<16x8xf32> to vector<1x1xf32>
    %48 = vector.extract_strided_slice %2 {offsets = [0, 6, 0], sizes = [8, 1, 8], strides = [1, 1, 1]} : vector<8x8x8xbf16> to vector<8x1x8xbf16>
    %49 = vector.shape_cast %48 : vector<8x1x8xbf16> to vector<8x8xbf16>
    %50 = arith.extf %49 : vector<8x8xbf16> to vector<8x8xf32>
    %51 = vector.broadcast %47 : vector<1x1xf32> to vector<8x8xf32>
    %52 = arith.mulf %51, %50 : vector<8x8xf32>
    %53 = arith.addf %46, %52 : vector<8x8xf32>
    %54 = vector.extract_strided_slice %4 {offsets = [0, 7], sizes = [1, 1], strides = [1, 1]} : vector<16x8xf32> to vector<1x1xf32>
    %55 = vector.extract_strided_slice %2 {offsets = [0, 7, 0], sizes = [8, 1, 8], strides = [1, 1, 1]} : vector<8x8x8xbf16> to vector<8x1x8xbf16>
    %56 = vector.shape_cast %55 : vector<8x1x8xbf16> to vector<8x8xbf16>
    %57 = arith.extf %56 : vector<8x8xbf16> to vector<8x8xf32>
    %58 = vector.broadcast %54 : vector<1x1xf32> to vector<8x8xf32>
    %59 = arith.mulf %58, %57 : vector<8x8xf32>
    %60 = arith.addf %53, %59 : vector<8x8xf32>
    %61 = arith.truncf %60 : vector<8x8xf32> to vector<8x8xbf16>
    %cst = arith.constant dense<0.000000e+00> : vector<8x16xf32>
    %62 = tpu.matmul %61, %5, %cst {dimension_numbers = #tpu.dot_dimension_numbers<[1], [0], [0], [1], [0, 0, 1, 1], [], []>} : vector<8x8xbf16>, vector<8x16xbf16>, vector<8x16xf32> -> vector<8x16xf32>
    %63 = arith.truncf %62 : vector<8x16xf32> to vector<8x16xbf16>
    %c0_7 = arith.constant 0 : index
    %c0_8 = arith.constant 0 : index
    %64 = vector.load %arg12[%c0_7, %c0_8] : memref<8x256xbf16, #tpu.memory_space<vmem>>, vector<8x16xbf16>
    tpu.vector_store %arg12[%c0_7, %c0_8], %63 {strides = array<i32>} : memref<8x256xbf16, #tpu.memory_space<vmem>>, vector<8x16xbf16>,
    %65 = vector.extract_strided_slice %4 {offsets = [1, 0], sizes = [1, 1], strides = [1, 1]} : vector<16x8xf32> to vector<1x1xf32>
    %66 = vector.extract_strided_slice %2 {offsets = [0, 0, 0], sizes = [8, 1, 8], strides = [1, 1, 1]} : vector<8x8x8xbf16> to vector<8x1x8xbf16>
    %67 = vector.shape_cast %66 : vector<8x1x8xbf16> to vector<8x8xbf16>
    %68 = arith.extf %67 : vector<8x8xbf16> to vector<8x8xf32>
    %69 = vector.broadcast %65 : vector<1x1xf32> to vector<8x8xf32>
    %70 = arith.mulf %69, %68 : vector<8x8xf32>
    %71 = vector.extract_strided_slice %4 {offsets = [1, 1], sizes = [1, 1], strides = [1, 1]} : vector<16x8xf32> to vector<1x1xf32>
    %72 = vector.extract_strided_slice %2 {offsets = [0, 1, 0], sizes = [8, 1, 8], strides = [1, 1, 1]} : vector<8x8x8xbf16> to vector<8x1x8xbf16>
    %73 = vector.shape_cast %72 : vector<8x1x8xbf16> to vector<8x8xbf16>
    %74 = arith.extf %73 : vector<8x8xbf16> to vector<8x8xf32>
    %75 = vector.broadcast %71 : vector<1x1xf32> to vector<8x8xf32>
    %76 = arith.mulf %75, %74 : vector<8x8xf32>
    %77 = arith.addf %70, %76 : vector<8x8xf32>
    %78 = vector.extract_strided_slice %4 {offsets = [1, 2], sizes = [1, 1], strides = [1, 1]} : vector<16x8xf32> to vector<1x1xf32>
    %79 = vector.extract_strided_slice %2 {offsets = [0, 2, 0], sizes = [8, 1, 8], strides = [1, 1, 1]} : vector<8x8x8xbf16> to vector<8x1x8xbf16>
    %80 = vector.shape_cast %79 : vector<8x1x8xbf16> to vector<8x8xbf16>
    %81 = arith.extf %80 : vector<8x8xbf16> to vector<8x8xf32>
    %82 = vector.broadcast %78 : vector<1x1xf32> to vector<8x8xf32>
    %83 = arith.mulf %82, %81 : vector<8x8xf32>
    %84 = arith.addf %77, %83 : vector<8x8xf32>
    %85 = vector.extract_strided_slice %4 {offsets = [1, 3], sizes = [1, 1], strides = [1, 1]} : vector<16x8xf32> to vector<1x1xf32>
    %86 = vector.extract_strided_slice %2 {offsets = [0, 3, 0], sizes = [8, 1, 8], strides = [1, 1, 1]} : vector<8x8x8xbf16> to vector<8x1x8xbf16>
    %87 = vector.shape_cast %86 : vector<8x1x8xbf16> to vector<8x8xbf16>
    %88 = arith.extf %87 : vector<8x8xbf16> to vector<8x8xf32>
    %89 = vector.broadcast %85 : vector<1x1xf32> to vector<8x8xf32>
    %90 = arith.mulf %89, %88 : vector<8x8xf32>
    %91 = arith.addf %84, %90 : vector<8x8xf32>
    %92 = vector.extract_strided_slice %4 {offsets = [1, 4], sizes = [1, 1], strides = [1, 1]} : vector<16x8xf32> to vector<1x1xf32>
    %93 = vector.extract_strided_slice %2 {offsets = [0, 4, 0], sizes = [8, 1, 8], strides = [1, 1, 1]} : vector<8x8x8xbf16> to vector<8x1x8xbf16>
    %94 = vector.shape_cast %93 : vector<8x1x8xbf16> to vector<8x8xbf16>
    %95 = arith.extf %94 : vector<8x8xbf16> to vector<8x8xf32>
    %96 = vector.broadcast %92 : vector<1x1xf32> to vector<8x8xf32>
    %97 = arith.mulf %96, %95 : vector<8x8xf32>
    %98 = arith.addf %91, %97 : vector<8x8xf32>
    %99 = vector.extract_strided_slice %4 {offsets = [1, 5], sizes = [1, 1], strides = [1, 1]} : vector<16x8xf32> to vector<1x1xf32>
    %100 = vector.extract_strided_slice %2 {offsets = [0, 5, 0], sizes = [8, 1, 8], strides = [1, 1, 1]} : vector<8x8x8xbf16> to vector<8x1x8xbf16>
    %101 = vector.shape_cast %100 : vector<8x1x8xbf16> to vector<8x8xbf16>
    %102 = arith.extf %101 : vector<8x8xbf16> to vector<8x8xf32>
    %103 = vector.broadcast %99 : vector<1x1xf32> to vector<8x8xf32>
    %104 = arith.mulf %103, %102 : vector<8x8xf32>
    %105 = arith.addf %98, %104 : vector<8x8xf32>
    %106 = vector.extract_strided_slice %4 {offsets = [1, 6], sizes = [1, 1], strides = [1, 1]} : vector<16x8xf32> to vector<1x1xf32>
    %107 = vector.extract_strided_slice %2 {offsets = [0, 6, 0], sizes = [8, 1, 8], strides = [1, 1, 1]} : vector<8x8x8xbf16> to vector<8x1x8xbf16>
    %108 = vector.shape_cast %107 : vector<8x1x8xbf16> to vector<8x8xbf16>
    %109 = arith.extf %108 : vector<8x8xbf16> to vector<8x8xf32>
    %110 = vector.broadcast %106 : vector<1x1xf32> to vector<8x8xf32>
    %111 = arith.mulf %110, %109 : vector<8x8xf32>
    %112 = arith.addf %105, %111 : vector<8x8xf32>
    %113 = vector.extract_strided_slice %4 {offsets = [1, 7], sizes = [1, 1], strides = [1, 1]} : vector<16x8xf32> to vector<1x1xf32>
    %114 = vector.extract_strided_slice %2 {offsets = [0, 7, 0], sizes = [8, 1, 8], strides = [1, 1, 1]} : vector<8x8x8xbf16> to vector<8x1x8xbf16>
    %115 = vector.shape_cast %114 : vector<8x1x8xbf16> to vector<8x8xbf16>
    %116 = arith.extf %115 : vector<8x8xbf16> to vector<8x8xf32>
    %117 = vector.broadcast %113 : vector<1x1xf32> to vector<8x8xf32>
    %118 = arith.mulf %117, %116 : vector<8x8xf32>
    %119 = arith.addf %112, %118 : vector<8x8xf32>
    %120 = arith.truncf %119 : vector<8x8xf32> to vector<8x8xbf16>
    %cst_9 = arith.constant dense<0.000000e+00> : vector<8x16xf32>
    %121 = tpu.matmul %120, %5, %cst_9 {dimension_numbers = #tpu.dot_dimension_numbers<[1], [0], [0], [1], [0, 0, 1, 1], [], []>} : vector<8x8xbf16>, vector<8x16xbf16>, vector<8x16xf32> -> vector<8x16xf32>
    %122 = arith.truncf %121 : vector<8x16xf32> to vector<8x16xbf16>
    %c0_10 = arith.constant 0 : index
    %c16 = arith.constant 16 : index
    %123 = vector.load %arg12[%c0_10, %c16] : memref<8x256xbf16, #tpu.memory_space<vmem>>, vector<8x16xbf16>
    tpu.vector_store %arg12[%c0_10, %c16], %122 {strides = array<i32>} : memref<8x256xbf16, #tpu.memory_space<vmem>>, vector<8x16xbf16>,
    %124 = vector.extract_strided_slice %4 {offsets = [2, 0], sizes = [1, 1], strides = [1, 1]} : vector<16x8xf32> to vector<1x1xf32>
    %125 = vector.extract_strided_slice %2 {offsets = [0, 0, 0], sizes = [8, 1, 8], strides = [1, 1, 1]} : vector<8x8x8xbf16> to vector<8x1x8xbf16>
    %126 = vector.shape_cast %125 : vector<8x1x8xbf16> to vector<8x8xbf16>
    %127 = arith.extf %126 : vector<8x8xbf16> to vector<8x8xf32>
    %128 = vector.broadcast %124 : vector<1x1xf32> to vector<8x8xf32>
    %129 = arith.mulf %128, %127 : vector<8x8xf32>
    %130 = vector.extract_strided_slice %4 {offsets = [2, 1], sizes = [1, 1], strides = [1, 1]} : vector<16x8xf32> to vector<1x1xf32>
    %131 = vector.extract_strided_slice %2 {offsets = [0, 1, 0], sizes = [8, 1, 8], strides = [1, 1, 1]} : vector<8x8x8xbf16> to vector<8x1x8xbf16>
    %132 = vector.shape_cast %131 : vector<8x1x8xbf16> to vector<8x8xbf16>
    %133 = arith.extf %132 : vector<8x8xbf16> to vector<8x8xf32>
    %134 = vector.broadcast %130 : vector<1x1xf32> to vector<8x8xf32>
    %135 = arith.mulf %134, %133 : vector<8x8xf32>
    %136 = arith.addf %129, %135 : vector<8x8xf32>
    %137 = vector.extract_strided_slice %4 {offsets = [2, 2], sizes = [1, 1], strides = [1, 1]} : vector<16x8xf32> to vector<1x1xf32>
    %138 = vector.extract_strided_slice %2 {offsets = [0, 2, 0], sizes = [8, 1, 8], strides = [1, 1, 1]} : vector<8x8x8xbf16> to vector<8x1x8xbf16>
    %139 = vector.shape_cast %138 : vector<8x1x8xbf16> to vector<8x8xbf16>
    %140 = arith.extf %139 : vector<8x8xbf16> to vector<8x8xf32>
    %141 = vector.broadcast %137 : vector<1x1xf32> to vector<8x8xf32>
    %142 = arith.mulf %141, %140 : vector<8x8xf32>
    %143 = arith.addf %136, %142 : vector<8x8xf32>
    %144 = vector.extract_strided_slice %4 {offsets = [2, 3], sizes = [1, 1], strides = [1, 1]} : vector<16x8xf32> to vector<1x1xf32>
    %145 = vector.extract_strided_slice %2 {offsets = [0, 3, 0], sizes = [8, 1, 8], strides = [1, 1, 1]} : vector<8x8x8xbf16> to vector<8x1x8xbf16>
    %146 = vector.shape_cast %145 : vector<8x1x8xbf16> to vector<8x8xbf16>
    %147 = arith.extf %146 : vector<8x8xbf16> to vector<8x8xf32>
    %148 = vector.broadcast %144 : vector<1x1xf32> to vector<8x8xf32>
    %149 = arith.mulf %148, %147 : vector<8x8xf32>
    %150 = arith.addf %143, %149 : vector<8x8xf32>
    %151 = vector.extract_strided_slice %4 {offsets = [2, 4], sizes = [1, 1], strides = [1, 1]} : vector<16x8xf32> to vector<1x1xf32>
    %152 = vector.extract_strided_slice %2 {offsets = [0, 4, 0], sizes = [8, 1, 8], strides = [1, 1, 1]} : vector<8x8x8xbf16> to vector<8x1x8xbf16>
    %153 = vector.shape_cast %152 : vector<8x1x8xbf16> to vector<8x8xbf16>
    %154 = arith.extf %153 : vector<8x8xbf16> to vector<8x8xf32>
    %155 = vector.broadcast %151 : vector<1x1xf32> to vector<8x8xf32>
    %156 = arith.mulf %155, %154 : vector<8x8xf32>
    %157 = arith.addf %150, %156 : vector<8x8xf32>
    %158 = vector.extract_strided_slice %4 {offsets = [2, 5], sizes = [1, 1], strides = [1, 1]} : vector<16x8xf32> to vector<1x1xf32>
    %159 = vector.extract_strided_slice %2 {offsets = [0, 5, 0], sizes = [8, 1, 8], strides = [1, 1, 1]} : vector<8x8x8xbf16> to vector<8x1x8xbf16>
    %160 = vector.shape_cast %159 : vector<8x1x8xbf16> to vector<8x8xbf16>
    %161 = arith.extf %160 : vector<8x8xbf16> to vector<8x8xf32>
    %162 = vector.broadcast %158 : vector<1x1xf32> to vector<8x8xf32>
    %163 = arith.mulf %162, %161 : vector<8x8xf32>
    %164 = arith.addf %157, %163 : vector<8x8xf32>
    %165 = vector.extract_strided_slice %4 {offsets = [2, 6], sizes = [1, 1], strides = [1, 1]} : vector<16x8xf32> to vector<1x1xf32>
    %166 = vector.extract_strided_slice %2 {offsets = [0, 6, 0], sizes = [8, 1, 8], strides = [1, 1, 1]} : vector<8x8x8xbf16> to vector<8x1x8xbf16>
    %167 = vector.shape_cast %166 : vector<8x1x8xbf16> to vector<8x8xbf16>
    %168 = arith.extf %167 : vector<8x8xbf16> to vector<8x8xf32>
    %169 = vector.broadcast %165 : vector<1x1xf32> to vector<8x8xf32>
    %170 = arith.mulf %169, %168 : vector<8x8xf32>
    %171 = arith.addf %164, %170 : vector<8x8xf32>
    %172 = vector.extract_strided_slice %4 {offsets = [2, 7], sizes = [1, 1], strides = [1, 1]} : vector<16x8xf32> to vector<1x1xf32>
    %173 = vector.extract_strided_slice %2 {offsets = [0, 7, 0], sizes = [8, 1, 8], strides = [1, 1, 1]} : vector<8x8x8xbf16> to vector<8x1x8xbf16>
    %174 = vector.shape_cast %173 : vector<8x1x8xbf16> to vector<8x8xbf16>
    %175 = arith.extf %174 : vector<8x8xbf16> to vector<8x8xf32>
    %176 = vector.broadcast %172 : vector<1x1xf32> to vector<8x8xf32>
    %177 = arith.mulf %176, %175 : vector<8x8xf32>
    %178 = arith.addf %171, %177 : vector<8x8xf32>
    %179 = arith.truncf %178 : vector<8x8xf32> to vector<8x8xbf16>
    %cst_11 = arith.constant dense<0.000000e+00> : vector<8x16xf32>
    %180 = tpu.matmul %179, %5, %cst_11 {dimension_numbers = #tpu.dot_dimension_numbers<[1], [0], [0], [1], [0, 0, 1, 1], [], []>} : vector<8x8xbf16>, vector<8x16xbf16>, vector<8x16xf32> -> vector<8x16xf32>
    %181 = arith.truncf %180 : vector<8x16xf32> to vector<8x16xbf16>
    %c0_12 = arith.constant 0 : index
    %c32 = arith.constant 32 : index
    %182 = vector.load %arg12[%c0_12, %c32] : memref<8x256xbf16, #tpu.memory_space<vmem>>, vector<8x16xbf16>
    tpu.vector_store %arg12[%c0_12, %c32], %181 {strides = array<i32>} : memref<8x256xbf16, #tpu.memory_space<vmem>>, vector<8x16xbf16>,
    %183 = vector.extract_strided_slice %4 {offsets = [3, 0], sizes = [1, 1], strides = [1, 1]} : vector<16x8xf32> to vector<1x1xf32>
    %184 = vector.extract_strided_slice %2 {offsets = [0, 0, 0], sizes = [8, 1, 8], strides = [1, 1, 1]} : vector<8x8x8xbf16> to vector<8x1x8xbf16>
    %185 = vector.shape_cast %184 : vector<8x1x8xbf16> to vector<8x8xbf16>
    %186 = arith.extf %185 : vector<8x8xbf16> to vector<8x8xf32>
    %187 = vector.broadcast %183 : vector<1x1xf32> to vector<8x8xf32>
    %188 = arith.mulf %187, %186 : vector<8x8xf32>
    %189 = vector.extract_strided_slice %4 {offsets = [3, 1], sizes = [1, 1], strides = [1, 1]} : vector<16x8xf32> to vector<1x1xf32>
    %190 = vector.extract_strided_slice %2 {offsets = [0, 1, 0], sizes = [8, 1, 8], strides = [1, 1, 1]} : vector<8x8x8xbf16> to vector<8x1x8xbf16>
    %191 = vector.shape_cast %190 : vector<8x1x8xbf16> to vector<8x8xbf16>
    %192 = arith.extf %191 : vector<8x8xbf16> to vector<8x8xf32>
    %193 = vector.broadcast %189 : vector<1x1xf32> to vector<8x8xf32>
    %194 = arith.mulf %193, %192 : vector<8x8xf32>
    %195 = arith.addf %188, %194 : vector<8x8xf32>
    %196 = vector.extract_strided_slice %4 {offsets = [3, 2], sizes = [1, 1], strides = [1, 1]} : vector<16x8xf32> to vector<1x1xf32>
    %197 = vector.extract_strided_slice %2 {offsets = [0, 2, 0], sizes = [8, 1, 8], strides = [1, 1, 1]} : vector<8x8x8xbf16> to vector<8x1x8xbf16>
    %198 = vector.shape_cast %197 : vector<8x1x8xbf16> to vector<8x8xbf16>
    %199 = arith.extf %198 : vector<8x8xbf16> to vector<8x8xf32>
    %200 = vector.broadcast %196 : vector<1x1xf32> to vector<8x8xf32>
    %201 = arith.mulf %200, %199 : vector<8x8xf32>
    %202 = arith.addf %195, %201 : vector<8x8xf32>
    %203 = vector.extract_strided_slice %4 {offsets = [3, 3], sizes = [1, 1], strides = [1, 1]} : vector<16x8xf32> to vector<1x1xf32>
    %204 = vector.extract_strided_slice %2 {offsets = [0, 3, 0], sizes = [8, 1, 8], strides = [1, 1, 1]} : vector<8x8x8xbf16> to vector<8x1x8xbf16>
    %205 = vector.shape_cast %204 : vector<8x1x8xbf16> to vector<8x8xbf16>
    %206 = arith.extf %205 : vector<8x8xbf16> to vector<8x8xf32>
    %207 = vector.broadcast %203 : vector<1x1xf32> to vector<8x8xf32>
    %208 = arith.mulf %207, %206 : vector<8x8xf32>
    %209 = arith.addf %202, %208 : vector<8x8xf32>
    %210 = vector.extract_strided_slice %4 {offsets = [3, 4], sizes = [1, 1], strides = [1, 1]} : vector<16x8xf32> to vector<1x1xf32>
    %211 = vector.extract_strided_slice %2 {offsets = [0, 4, 0], sizes = [8, 1, 8], strides = [1, 1, 1]} : vector<8x8x8xbf16> to vector<8x1x8xbf16>
    %212 = vector.shape_cast %211 : vector<8x1x8xbf16> to vector<8x8xbf16>
    %213 = arith.extf %212 : vector<8x8xbf16> to vector<8x8xf32>
    %214 = vector.broadcast %210 : vector<1x1xf32> to vector<8x8xf32>
    %215 = arith.mulf %214, %213 : vector<8x8xf32>
    %216 = arith.addf %209, %215 : vector<8x8xf32>
    %217 = vector.extract_strided_slice %4 {offsets = [3, 5], sizes = [1, 1], strides = [1, 1]} : vector<16x8xf32> to vector<1x1xf32>
    %218 = vector.extract_strided_slice %2 {offsets = [0, 5, 0], sizes = [8, 1, 8], strides = [1, 1, 1]} : vector<8x8x8xbf16> to vector<8x1x8xbf16>
    %219 = vector.shape_cast %218 : vector<8x1x8xbf16> to vector<8x8xbf16>
    %220 = arith.extf %219 : vector<8x8xbf16> to vector<8x8xf32>
    %221 = vector.broadcast %217 : vector<1x1xf32> to vector<8x8xf32>
    %222 = arith.mulf %221, %220 : vector<8x8xf32>
    %223 = arith.addf %216, %222 : vector<8x8xf32>
    %224 = vector.extract_strided_slice %4 {offsets = [3, 6], sizes = [1, 1], strides = [1, 1]} : vector<16x8xf32> to vector<1x1xf32>
    %225 = vector.extract_strided_slice %2 {offsets = [0, 6, 0], sizes = [8, 1, 8], strides = [1, 1, 1]} : vector<8x8x8xbf16> to vector<8x1x8xbf16>
    %226 = vector.shape_cast %225 : vector<8x1x8xbf16> to vector<8x8xbf16>
    %227 = arith.extf %226 : vector<8x8xbf16> to vector<8x8xf32>
    %228 = vector.broadcast %224 : vector<1x1xf32> to vector<8x8xf32>
    %229 = arith.mulf %228, %227 : vector<8x8xf32>
    %230 = arith.addf %223, %229 : vector<8x8xf32>
    %231 = vector.extract_strided_slice %4 {offsets = [3, 7], sizes = [1, 1], strides = [1, 1]} : vector<16x8xf32> to vector<1x1xf32>
    %232 = vector.extract_strided_slice %2 {offsets = [0, 7, 0], sizes = [8, 1, 8], strides = [1, 1, 1]} : vector<8x8x8xbf16> to vector<8x1x8xbf16>
    %233 = vector.shape_cast %232 : vector<8x1x8xbf16> to vector<8x8xbf16>
    %234 = arith.extf %233 : vector<8x8xbf16> to vector<8x8xf32>
    %235 = vector.broadcast %231 : vector<1x1xf32> to vector<8x8xf32>
    %236 = arith.mulf %235, %234 : vector<8x8xf32>
    %237 = arith.addf %230, %236 : vector<8x8xf32>
    %238 = arith.truncf %237 : vector<8x8xf32> to vector<8x8xbf16>
    %cst_13 = arith.constant dense<0.000000e+00> : vector<8x16xf32>
    %239 = tpu.matmul %238, %5, %cst_13 {dimension_numbers = #tpu.dot_dimension_numbers<[1], [0], [0], [1], [0, 0, 1, 1], [], []>} : vector<8x8xbf16>, vector<8x16xbf16>, vector<8x16xf32> -> vector<8x16xf32>
    %240 = arith.truncf %239 : vector<8x16xf32> to vector<8x16xbf16>
    %c0_14 = arith.constant 0 : index
    %c48 = arith.constant 48 : index
    %241 = vector.load %arg12[%c0_14, %c48] : memref<8x256xbf16, #tpu.memory_space<vmem>>, vector<8x16xbf16>
    tpu.vector_store %arg12[%c0_14, %c48], %240 {strides = array<i32>} : memref<8x256xbf16, #tpu.memory_space<vmem>>, vector<8x16xbf16>,
    %242 = vector.extract_strided_slice %4 {offsets = [4, 0], sizes = [1, 1], strides = [1, 1]} : vector<16x8xf32> to vector<1x1xf32>
    %243 = vector.extract_strided_slice %2 {offsets = [0, 0, 0], sizes = [8, 1, 8], strides = [1, 1, 1]} : vector<8x8x8xbf16> to vector<8x1x8xbf16>
    %244 = vector.shape_cast %243 : vector<8x1x8xbf16> to vector<8x8xbf16>
    %245 = arith.extf %244 : vector<8x8xbf16> to vector<8x8xf32>
    %246 = vector.broadcast %242 : vector<1x1xf32> to vector<8x8xf32>
    %247 = arith.mulf %246, %245 : vector<8x8xf32>
    %248 = vector.extract_strided_slice %4 {offsets = [4, 1], sizes = [1, 1], strides = [1, 1]} : vector<16x8xf32> to vector<1x1xf32>
    %249 = vector.extract_strided_slice %2 {offsets = [0, 1, 0], sizes = [8, 1, 8], strides = [1, 1, 1]} : vector<8x8x8xbf16> to vector<8x1x8xbf16>
    %250 = vector.shape_cast %249 : vector<8x1x8xbf16> to vector<8x8xbf16>
    %251 = arith.extf %250 : vector<8x8xbf16> to vector<8x8xf32>
    %252 = vector.broadcast %248 : vector<1x1xf32> to vector<8x8xf32>
    %253 = arith.mulf %252, %251 : vector<8x8xf32>
    %254 = arith.addf %247, %253 : vector<8x8xf32>
    %255 = vector.extract_strided_slice %4 {offsets = [4, 2], sizes = [1, 1], strides = [1, 1]} : vector<16x8xf32> to vector<1x1xf32>
    %256 = vector.extract_strided_slice %2 {offsets = [0, 2, 0], sizes = [8, 1, 8], strides = [1, 1, 1]} : vector<8x8x8xbf16> to vector<8x1x8xbf16>
    %257 = vector.shape_cast %256 : vector<8x1x8xbf16> to vector<8x8xbf16>
    %258 = arith.extf %257 : vector<8x8xbf16> to vector<8x8xf32>
    %259 = vector.broadcast %255 : vector<1x1xf32> to vector<8x8xf32>
    %260 = arith.mulf %259, %258 : vector<8x8xf32>
    %261 = arith.addf %254, %260 : vector<8x8xf32>
    %262 = vector.extract_strided_slice %4 {offsets = [4, 3], sizes = [1, 1], strides = [1, 1]} : vector<16x8xf32> to vector<1x1xf32>
    %263 = vector.extract_strided_slice %2 {offsets = [0, 3, 0], sizes = [8, 1, 8], strides = [1, 1, 1]} : vector<8x8x8xbf16> to vector<8x1x8xbf16>
    %264 = vector.shape_cast %263 : vector<8x1x8xbf16> to vector<8x8xbf16>
    %265 = arith.extf %264 : vector<8x8xbf16> to vector<8x8xf32>
    %266 = vector.broadcast %262 : vector<1x1xf32> to vector<8x8xf32>
    %267 = arith.mulf %266, %265 : vector<8x8xf32>
    %268 = arith.addf %261, %267 : vector<8x8xf32>
    %269 = vector.extract_strided_slice %4 {offsets = [4, 4], sizes = [1, 1], strides = [1, 1]} : vector<16x8xf32> to vector<1x1xf32>
    %270 = vector.extract_strided_slice %2 {offsets = [0, 4, 0], sizes = [8, 1, 8], strides = [1, 1, 1]} : vector<8x8x8xbf16> to vector<8x1x8xbf16>
    %271 = vector.shape_cast %270 : vector<8x1x8xbf16> to vector<8x8xbf16>
    %272 = arith.extf %271 : vector<8x8xbf16> to vector<8x8xf32>
    %273 = vector.broadcast %269 : vector<1x1xf32> to vector<8x8xf32>
    %274 = arith.mulf %273, %272 : vector<8x8xf32>
    %275 = arith.addf %268, %274 : vector<8x8xf32>
    %276 = vector.extract_strided_slice %4 {offsets = [4, 5], sizes = [1, 1], strides = [1, 1]} : vector<16x8xf32> to vector<1x1xf32>
    %277 = vector.extract_strided_slice %2 {offsets = [0, 5, 0], sizes = [8, 1, 8], strides = [1, 1, 1]} : vector<8x8x8xbf16> to vector<8x1x8xbf16>
    %278 = vector.shape_cast %277 : vector<8x1x8xbf16> to vector<8x8xbf16>
    %279 = arith.extf %278 : vector<8x8xbf16> to vector<8x8xf32>
    %280 = vector.broadcast %276 : vector<1x1xf32> to vector<8x8xf32>
    %281 = arith.mulf %280, %279 : vector<8x8xf32>
    %282 = arith.addf %275, %281 : vector<8x8xf32>
    %283 = vector.extract_strided_slice %4 {offsets = [4, 6], sizes = [1, 1], strides = [1, 1]} : vector<16x8xf32> to vector<1x1xf32>
    %284 = vector.extract_strided_slice %2 {offsets = [0, 6, 0], sizes = [8, 1, 8], strides = [1, 1, 1]} : vector<8x8x8xbf16> to vector<8x1x8xbf16>
    %285 = vector.shape_cast %284 : vector<8x1x8xbf16> to vector<8x8xbf16>
    %286 = arith.extf %285 : vector<8x8xbf16> to vector<8x8xf32>
    %287 = vector.broadcast %283 : vector<1x1xf32> to vector<8x8xf32>
    %288 = arith.mulf %287, %286 : vector<8x8xf32>
    %289 = arith.addf %282, %288 : vector<8x8xf32>
    %290 = vector.extract_strided_slice %4 {offsets = [4, 7], sizes = [1, 1], strides = [1, 1]} : vector<16x8xf32> to vector<1x1xf32>
    %291 = vector.extract_strided_slice %2 {offsets = [0, 7, 0], sizes = [8, 1, 8], strides = [1, 1, 1]} : vector<8x8x8xbf16> to vector<8x1x8xbf16>
    %292 = vector.shape_cast %291 : vector<8x1x8xbf16> to vector<8x8xbf16>
    %293 = arith.extf %292 : vector<8x8xbf16> to vector<8x8xf32>
    %294 = vector.broadcast %290 : vector<1x1xf32> to vector<8x8xf32>
    %295 = arith.mulf %294, %293 : vector<8x8xf32>
    %296 = arith.addf %289, %295 : vector<8x8xf32>
    %297 = arith.truncf %296 : vector<8x8xf32> to vector<8x8xbf16>
    %cst_15 = arith.constant dense<0.000000e+00> : vector<8x16xf32>
    %298 = tpu.matmul %297, %5, %cst_15 {dimension_numbers = #tpu.dot_dimension_numbers<[1], [0], [0], [1], [0, 0, 1, 1], [], []>} : vector<8x8xbf16>, vector<8x16xbf16>, vector<8x16xf32> -> vector<8x16xf32>
    %299 = arith.truncf %298 : vector<8x16xf32> to vector<8x16xbf16>
    %c0_16 = arith.constant 0 : index
    %c64 = arith.constant 64 : index
    %300 = vector.load %arg12[%c0_16, %c64] : memref<8x256xbf16, #tpu.memory_space<vmem>>, vector<8x16xbf16>
    tpu.vector_store %arg12[%c0_16, %c64], %299 {strides = array<i32>} : memref<8x256xbf16, #tpu.memory_space<vmem>>, vector<8x16xbf16>,
    %301 = vector.extract_strided_slice %4 {offsets = [5, 0], sizes = [1, 1], strides = [1, 1]} : vector<16x8xf32> to vector<1x1xf32>
    %302 = vector.extract_strided_slice %2 {offsets = [0, 0, 0], sizes = [8, 1, 8], strides = [1, 1, 1]} : vector<8x8x8xbf16> to vector<8x1x8xbf16>
    %303 = vector.shape_cast %302 : vector<8x1x8xbf16> to vector<8x8xbf16>
    %304 = arith.extf %303 : vector<8x8xbf16> to vector<8x8xf32>
    %305 = vector.broadcast %301 : vector<1x1xf32> to vector<8x8xf32>
    %306 = arith.mulf %305, %304 : vector<8x8xf32>
    %307 = vector.extract_strided_slice %4 {offsets = [5, 1], sizes = [1, 1], strides = [1, 1]} : vector<16x8xf32> to vector<1x1xf32>
    %308 = vector.extract_strided_slice %2 {offsets = [0, 1, 0], sizes = [8, 1, 8], strides = [1, 1, 1]} : vector<8x8x8xbf16> to vector<8x1x8xbf16>
    %309 = vector.shape_cast %308 : vector<8x1x8xbf16> to vector<8x8xbf16>
    %310 = arith.extf %309 : vector<8x8xbf16> to vector<8x8xf32>
    %311 = vector.broadcast %307 : vector<1x1xf32> to vector<8x8xf32>
    %312 = arith.mulf %311, %310 : vector<8x8xf32>
    %313 = arith.addf %306, %312 : vector<8x8xf32>
    %314 = vector.extract_strided_slice %4 {offsets = [5, 2], sizes = [1, 1], strides = [1, 1]} : vector<16x8xf32> to vector<1x1xf32>
    %315 = vector.extract_strided_slice %2 {offsets = [0, 2, 0], sizes = [8, 1, 8], strides = [1, 1, 1]} : vector<8x8x8xbf16> to vector<8x1x8xbf16>
    %316 = vector.shape_cast %315 : vector<8x1x8xbf16> to vector<8x8xbf16>
    %317 = arith.extf %316 : vector<8x8xbf16> to vector<8x8xf32>
    %318 = vector.broadcast %314 : vector<1x1xf32> to vector<8x8xf32>
    %319 = arith.mulf %318, %317 : vector<8x8xf32>
    %320 = arith.addf %313, %319 : vector<8x8xf32>
    %321 = vector.extract_strided_slice %4 {offsets = [5, 3], sizes = [1, 1], strides = [1, 1]} : vector<16x8xf32> to vector<1x1xf32>
    %322 = vector.extract_strided_slice %2 {offsets = [0, 3, 0], sizes = [8, 1, 8], strides = [1, 1, 1]} : vector<8x8x8xbf16> to vector<8x1x8xbf16>
    %323 = vector.shape_cast %322 : vector<8x1x8xbf16> to vector<8x8xbf16>
    %324 = arith.extf %323 : vector<8x8xbf16> to vector<8x8xf32>
    %325 = vector.broadcast %321 : vector<1x1xf32> to vector<8x8xf32>
    %326 = arith.mulf %325, %324 : vector<8x8xf32>
    %327 = arith.addf %320, %326 : vector<8x8xf32>
    %328 = vector.extract_strided_slice %4 {offsets = [5, 4], sizes = [1, 1], strides = [1, 1]} : vector<16x8xf32> to vector<1x1xf32>
    %329 = vector.extract_strided_slice %2 {offsets = [0, 4, 0], sizes = [8, 1, 8], strides = [1, 1, 1]} : vector<8x8x8xbf16> to vector<8x1x8xbf16>
    %330 = vector.shape_cast %329 : vector<8x1x8xbf16> to vector<8x8xbf16>
    %331 = arith.extf %330 : vector<8x8xbf16> to vector<8x8xf32>
    %332 = vector.broadcast %328 : vector<1x1xf32> to vector<8x8xf32>
    %333 = arith.mulf %332, %331 : vector<8x8xf32>
    %334 = arith.addf %327, %333 : vector<8x8xf32>
    %335 = vector.extract_strided_slice %4 {offsets = [5, 5], sizes = [1, 1], strides = [1, 1]} : vector<16x8xf32> to vector<1x1xf32>
    %336 = vector.extract_strided_slice %2 {offsets = [0, 5, 0], sizes = [8, 1, 8], strides = [1, 1, 1]} : vector<8x8x8xbf16> to vector<8x1x8xbf16>
    %337 = vector.shape_cast %336 : vector<8x1x8xbf16> to vector<8x8xbf16>
    %338 = arith.extf %337 : vector<8x8xbf16> to vector<8x8xf32>
    %339 = vector.broadcast %335 : vector<1x1xf32> to vector<8x8xf32>
    %340 = arith.mulf %339, %338 : vector<8x8xf32>
    %341 = arith.addf %334, %340 : vector<8x8xf32>
    %342 = vector.extract_strided_slice %4 {offsets = [5, 6], sizes = [1, 1], strides = [1, 1]} : vector<16x8xf32> to vector<1x1xf32>
    %343 = vector.extract_strided_slice %2 {offsets = [0, 6, 0], sizes = [8, 1, 8], strides = [1, 1, 1]} : vector<8x8x8xbf16> to vector<8x1x8xbf16>
    %344 = vector.shape_cast %343 : vector<8x1x8xbf16> to vector<8x8xbf16>
    %345 = arith.extf %344 : vector<8x8xbf16> to vector<8x8xf32>
    %346 = vector.broadcast %342 : vector<1x1xf32> to vector<8x8xf32>
    %347 = arith.mulf %346, %345 : vector<8x8xf32>
    %348 = arith.addf %341, %347 : vector<8x8xf32>
    %349 = vector.extract_strided_slice %4 {offsets = [5, 7], sizes = [1, 1], strides = [1, 1]} : vector<16x8xf32> to vector<1x1xf32>
    %350 = vector.extract_strided_slice %2 {offsets = [0, 7, 0], sizes = [8, 1, 8], strides = [1, 1, 1]} : vector<8x8x8xbf16> to vector<8x1x8xbf16>
    %351 = vector.shape_cast %350 : vector<8x1x8xbf16> to vector<8x8xbf16>
    %352 = arith.extf %351 : vector<8x8xbf16> to vector<8x8xf32>
    %353 = vector.broadcast %349 : vector<1x1xf32> to vector<8x8xf32>
    %354 = arith.mulf %353, %352 : vector<8x8xf32>
    %355 = arith.addf %348, %354 : vector<8x8xf32>
    %356 = arith.truncf %355 : vector<8x8xf32> to vector<8x8xbf16>
    %cst_17 = arith.constant dense<0.000000e+00> : vector<8x16xf32>
    %357 = tpu.matmul %356, %5, %cst_17 {dimension_numbers = #tpu.dot_dimension_numbers<[1], [0], [0], [1], [0, 0, 1, 1], [], []>} : vector<8x8xbf16>, vector<8x16xbf16>, vector<8x16xf32> -> vector<8x16xf32>
    %358 = arith.truncf %357 : vector<8x16xf32> to vector<8x16xbf16>
    %c0_18 = arith.constant 0 : index
    %c80 = arith.constant 80 : index
    %359 = vector.load %arg12[%c0_18, %c80] : memref<8x256xbf16, #tpu.memory_space<vmem>>, vector<8x16xbf16>
    tpu.vector_store %arg12[%c0_18, %c80], %358 {strides = array<i32>} : memref<8x256xbf16, #tpu.memory_space<vmem>>, vector<8x16xbf16>,
    %360 = vector.extract_strided_slice %4 {offsets = [6, 0], sizes = [1, 1], strides = [1, 1]} : vector<16x8xf32> to vector<1x1xf32>
    %361 = vector.extract_strided_slice %2 {offsets = [0, 0, 0], sizes = [8, 1, 8], strides = [1, 1, 1]} : vector<8x8x8xbf16> to vector<8x1x8xbf16>
    %362 = vector.shape_cast %361 : vector<8x1x8xbf16> to vector<8x8xbf16>
    %363 = arith.extf %362 : vector<8x8xbf16> to vector<8x8xf32>
    %364 = vector.broadcast %360 : vector<1x1xf32> to vector<8x8xf32>
    %365 = arith.mulf %364, %363 : vector<8x8xf32>
    %366 = vector.extract_strided_slice %4 {offsets = [6, 1], sizes = [1, 1], strides = [1, 1]} : vector<16x8xf32> to vector<1x1xf32>
    %367 = vector.extract_strided_slice %2 {offsets = [0, 1, 0], sizes = [8, 1, 8], strides = [1, 1, 1]} : vector<8x8x8xbf16> to vector<8x1x8xbf16>
    %368 = vector.shape_cast %367 : vector<8x1x8xbf16> to vector<8x8xbf16>
    %369 = arith.extf %368 : vector<8x8xbf16> to vector<8x8xf32>
    %370 = vector.broadcast %366 : vector<1x1xf32> to vector<8x8xf32>
    %371 = arith.mulf %370, %369 : vector<8x8xf32>
    %372 = arith.addf %365, %371 : vector<8x8xf32>
    %373 = vector.extract_strided_slice %4 {offsets = [6, 2], sizes = [1, 1], strides = [1, 1]} : vector<16x8xf32> to vector<1x1xf32>
    %374 = vector.extract_strided_slice %2 {offsets = [0, 2, 0], sizes = [8, 1, 8], strides = [1, 1, 1]} : vector<8x8x8xbf16> to vector<8x1x8xbf16>
    %375 = vector.shape_cast %374 : vector<8x1x8xbf16> to vector<8x8xbf16>
    %376 = arith.extf %375 : vector<8x8xbf16> to vector<8x8xf32>
    %377 = vector.broadcast %373 : vector<1x1xf32> to vector<8x8xf32>
    %378 = arith.mulf %377, %376 : vector<8x8xf32>
    %379 = arith.addf %372, %378 : vector<8x8xf32>
    %380 = vector.extract_strided_slice %4 {offsets = [6, 3], sizes = [1, 1], strides = [1, 1]} : vector<16x8xf32> to vector<1x1xf32>
    %381 = vector.extract_strided_slice %2 {offsets = [0, 3, 0], sizes = [8, 1, 8], strides = [1, 1, 1]} : vector<8x8x8xbf16> to vector<8x1x8xbf16>
    %382 = vector.shape_cast %381 : vector<8x1x8xbf16> to vector<8x8xbf16>
    %383 = arith.extf %382 : vector<8x8xbf16> to vector<8x8xf32>
    %384 = vector.broadcast %380 : vector<1x1xf32> to vector<8x8xf32>
    %385 = arith.mulf %384, %383 : vector<8x8xf32>
    %386 = arith.addf %379, %385 : vector<8x8xf32>
    %387 = vector.extract_strided_slice %4 {offsets = [6, 4], sizes = [1, 1], strides = [1, 1]} : vector<16x8xf32> to vector<1x1xf32>
    %388 = vector.extract_strided_slice %2 {offsets = [0, 4, 0], sizes = [8, 1, 8], strides = [1, 1, 1]} : vector<8x8x8xbf16> to vector<8x1x8xbf16>
    %389 = vector.shape_cast %388 : vector<8x1x8xbf16> to vector<8x8xbf16>
    %390 = arith.extf %389 : vector<8x8xbf16> to vector<8x8xf32>
    %391 = vector.broadcast %387 : vector<1x1xf32> to vector<8x8xf32>
    %392 = arith.mulf %391, %390 : vector<8x8xf32>
    %393 = arith.addf %386, %392 : vector<8x8xf32>
    %394 = vector.extract_strided_slice %4 {offsets = [6, 5], sizes = [1, 1], strides = [1, 1]} : vector<16x8xf32> to vector<1x1xf32>
    %395 = vector.extract_strided_slice %2 {offsets = [0, 5, 0], sizes = [8, 1, 8], strides = [1, 1, 1]} : vector<8x8x8xbf16> to vector<8x1x8xbf16>
    %396 = vector.shape_cast %395 : vector<8x1x8xbf16> to vector<8x8xbf16>
    %397 = arith.extf %396 : vector<8x8xbf16> to vector<8x8xf32>
    %398 = vector.broadcast %394 : vector<1x1xf32> to vector<8x8xf32>
    %399 = arith.mulf %398, %397 : vector<8x8xf32>
    %400 = arith.addf %393, %399 : vector<8x8xf32>
    %401 = vector.extract_strided_slice %4 {offsets = [6, 6], sizes = [1, 1], strides = [1, 1]} : vector<16x8xf32> to vector<1x1xf32>
    %402 = vector.extract_strided_slice %2 {offsets = [0, 6, 0], sizes = [8, 1, 8], strides = [1, 1, 1]} : vector<8x8x8xbf16> to vector<8x1x8xbf16>
    %403 = vector.shape_cast %402 : vector<8x1x8xbf16> to vector<8x8xbf16>
    %404 = arith.extf %403 : vector<8x8xbf16> to vector<8x8xf32>
    %405 = vector.broadcast %401 : vector<1x1xf32> to vector<8x8xf32>
    %406 = arith.mulf %405, %404 : vector<8x8xf32>
    %407 = arith.addf %400, %406 : vector<8x8xf32>
    %408 = vector.extract_strided_slice %4 {offsets = [6, 7], sizes = [1, 1], strides = [1, 1]} : vector<16x8xf32> to vector<1x1xf32>
    %409 = vector.extract_strided_slice %2 {offsets = [0, 7, 0], sizes = [8, 1, 8], strides = [1, 1, 1]} : vector<8x8x8xbf16> to vector<8x1x8xbf16>
    %410 = vector.shape_cast %409 : vector<8x1x8xbf16> to vector<8x8xbf16>
    %411 = arith.extf %410 : vector<8x8xbf16> to vector<8x8xf32>
    %412 = vector.broadcast %408 : vector<1x1xf32> to vector<8x8xf32>
    %413 = arith.mulf %412, %411 : vector<8x8xf32>
    %414 = arith.addf %407, %413 : vector<8x8xf32>
    %415 = arith.truncf %414 : vector<8x8xf32> to vector<8x8xbf16>
    %cst_19 = arith.constant dense<0.000000e+00> : vector<8x16xf32>
    %416 = tpu.matmul %415, %5, %cst_19 {dimension_numbers = #tpu.dot_dimension_numbers<[1], [0], [0], [1], [0, 0, 1, 1], [], []>} : vector<8x8xbf16>, vector<8x16xbf16>, vector<8x16xf32> -> vector<8x16xf32>
    %417 = arith.truncf %416 : vector<8x16xf32> to vector<8x16xbf16>
    %c0_20 = arith.constant 0 : index
    %c96 = arith.constant 96 : index
    %418 = vector.load %arg12[%c0_20, %c96] : memref<8x256xbf16, #tpu.memory_space<vmem>>, vector<8x16xbf16>
    tpu.vector_store %arg12[%c0_20, %c96], %417 {strides = array<i32>} : memref<8x256xbf16, #tpu.memory_space<vmem>>, vector<8x16xbf16>,
    %419 = vector.extract_strided_slice %4 {offsets = [7, 0], sizes = [1, 1], strides = [1, 1]} : vector<16x8xf32> to vector<1x1xf32>
    %420 = vector.extract_strided_slice %2 {offsets = [0, 0, 0], sizes = [8, 1, 8], strides = [1, 1, 1]} : vector<8x8x8xbf16> to vector<8x1x8xbf16>
    %421 = vector.shape_cast %420 : vector<8x1x8xbf16> to vector<8x8xbf16>
    %422 = arith.extf %421 : vector<8x8xbf16> to vector<8x8xf32>
    %423 = vector.broadcast %419 : vector<1x1xf32> to vector<8x8xf32>
    %424 = arith.mulf %423, %422 : vector<8x8xf32>
    %425 = vector.extract_strided_slice %4 {offsets = [7, 1], sizes = [1, 1], strides = [1, 1]} : vector<16x8xf32> to vector<1x1xf32>
    %426 = vector.extract_strided_slice %2 {offsets = [0, 1, 0], sizes = [8, 1, 8], strides = [1, 1, 1]} : vector<8x8x8xbf16> to vector<8x1x8xbf16>
    %427 = vector.shape_cast %426 : vector<8x1x8xbf16> to vector<8x8xbf16>
    %428 = arith.extf %427 : vector<8x8xbf16> to vector<8x8xf32>
    %429 = vector.broadcast %425 : vector<1x1xf32> to vector<8x8xf32>
    %430 = arith.mulf %429, %428 : vector<8x8xf32>
    %431 = arith.addf %424, %430 : vector<8x8xf32>
    %432 = vector.extract_strided_slice %4 {offsets = [7, 2], sizes = [1, 1], strides = [1, 1]} : vector<16x8xf32> to vector<1x1xf32>
    %433 = vector.extract_strided_slice %2 {offsets = [0, 2, 0], sizes = [8, 1, 8], strides = [1, 1, 1]} : vector<8x8x8xbf16> to vector<8x1x8xbf16>
    %434 = vector.shape_cast %433 : vector<8x1x8xbf16> to vector<8x8xbf16>
    %435 = arith.extf %434 : vector<8x8xbf16> to vector<8x8xf32>
    %436 = vector.broadcast %432 : vector<1x1xf32> to vector<8x8xf32>
    %437 = arith.mulf %436, %435 : vector<8x8xf32>
    %438 = arith.addf %431, %437 : vector<8x8xf32>
    %439 = vector.extract_strided_slice %4 {offsets = [7, 3], sizes = [1, 1], strides = [1, 1]} : vector<16x8xf32> to vector<1x1xf32>
    %440 = vector.extract_strided_slice %2 {offsets = [0, 3, 0], sizes = [8, 1, 8], strides = [1, 1, 1]} : vector<8x8x8xbf16> to vector<8x1x8xbf16>
    %441 = vector.shape_cast %440 : vector<8x1x8xbf16> to vector<8x8xbf16>
    %442 = arith.extf %441 : vector<8x8xbf16> to vector<8x8xf32>
    %443 = vector.broadcast %439 : vector<1x1xf32> to vector<8x8xf32>
    %444 = arith.mulf %443, %442 : vector<8x8xf32>
    %445 = arith.addf %438, %444 : vector<8x8xf32>
    %446 = vector.extract_strided_slice %4 {offsets = [7, 4], sizes = [1, 1], strides = [1, 1]} : vector<16x8xf32> to vector<1x1xf32>
    %447 = vector.extract_strided_slice %2 {offsets = [0, 4, 0], sizes = [8, 1, 8], strides = [1, 1, 1]} : vector<8x8x8xbf16> to vector<8x1x8xbf16>
    %448 = vector.shape_cast %447 : vector<8x1x8xbf16> to vector<8x8xbf16>
    %449 = arith.extf %448 : vector<8x8xbf16> to vector<8x8xf32>
    %450 = vector.broadcast %446 : vector<1x1xf32> to vector<8x8xf32>
    %451 = arith.mulf %450, %449 : vector<8x8xf32>
    %452 = arith.addf %445, %451 : vector<8x8xf32>
    %453 = vector.extract_strided_slice %4 {offsets = [7, 5], sizes = [1, 1], strides = [1, 1]} : vector<16x8xf32> to vector<1x1xf32>
    %454 = vector.extract_strided_slice %2 {offsets = [0, 5, 0], sizes = [8, 1, 8], strides = [1, 1, 1]} : vector<8x8x8xbf16> to vector<8x1x8xbf16>
    %455 = vector.shape_cast %454 : vector<8x1x8xbf16> to vector<8x8xbf16>
    %456 = arith.extf %455 : vector<8x8xbf16> to vector<8x8xf32>
    %457 = vector.broadcast %453 : vector<1x1xf32> to vector<8x8xf32>
    %458 = arith.mulf %457, %456 : vector<8x8xf32>
    %459 = arith.addf %452, %458 : vector<8x8xf32>
    %460 = vector.extract_strided_slice %4 {offsets = [7, 6], sizes = [1, 1], strides = [1, 1]} : vector<16x8xf32> to vector<1x1xf32>
    %461 = vector.extract_strided_slice %2 {offsets = [0, 6, 0], sizes = [8, 1, 8], strides = [1, 1, 1]} : vector<8x8x8xbf16> to vector<8x1x8xbf16>
    %462 = vector.shape_cast %461 : vector<8x1x8xbf16> to vector<8x8xbf16>
    %463 = arith.extf %462 : vector<8x8xbf16> to vector<8x8xf32>
    %464 = vector.broadcast %460 : vector<1x1xf32> to vector<8x8xf32>
    %465 = arith.mulf %464, %463 : vector<8x8xf32>
    %466 = arith.addf %459, %465 : vector<8x8xf32>
    %467 = vector.extract_strided_slice %4 {offsets = [7, 7], sizes = [1, 1], strides = [1, 1]} : vector<16x8xf32> to vector<1x1xf32>
    %468 = vector.extract_strided_slice %2 {offsets = [0, 7, 0], sizes = [8, 1, 8], strides = [1, 1, 1]} : vector<8x8x8xbf16> to vector<8x1x8xbf16>
    %469 = vector.shape_cast %468 : vector<8x1x8xbf16> to vector<8x8xbf16>
    %470 = arith.extf %469 : vector<8x8xbf16> to vector<8x8xf32>
    %471 = vector.broadcast %467 : vector<1x1xf32> to vector<8x8xf32>
    %472 = arith.mulf %471, %470 : vector<8x8xf32>
    %473 = arith.addf %466, %472 : vector<8x8xf32>
    %474 = arith.truncf %473 : vector<8x8xf32> to vector<8x8xbf16>
    %cst_21 = arith.constant dense<0.000000e+00> : vector<8x16xf32>
    %475 = tpu.matmul %474, %5, %cst_21 {dimension_numbers = #tpu.dot_dimension_numbers<[1], [0], [0], [1], [0, 0, 1, 1], [], []>} : vector<8x8xbf16>, vector<8x16xbf16>, vector<8x16xf32> -> vector<8x16xf32>
    %476 = arith.truncf %475 : vector<8x16xf32> to vector<8x16xbf16>
    %c0_22 = arith.constant 0 : index
    %c112 = arith.constant 112 : index
    %477 = vector.load %arg12[%c0_22, %c112] : memref<8x256xbf16, #tpu.memory_space<vmem>>, vector<8x16xbf16>
    tpu.vector_store %arg12[%c0_22, %c112], %476 {strides = array<i32>} : memref<8x256xbf16, #tpu.memory_space<vmem>>, vector<8x16xbf16>,
    %478 = vector.extract_strided_slice %4 {offsets = [8, 0], sizes = [1, 1], strides = [1, 1]} : vector<16x8xf32> to vector<1x1xf32>
    %479 = vector.extract_strided_slice %2 {offsets = [0, 0, 0], sizes = [8, 1, 8], strides = [1, 1, 1]} : vector<8x8x8xbf16> to vector<8x1x8xbf16>
    %480 = vector.shape_cast %479 : vector<8x1x8xbf16> to vector<8x8xbf16>
    %481 = arith.extf %480 : vector<8x8xbf16> to vector<8x8xf32>
    %482 = vector.broadcast %478 : vector<1x1xf32> to vector<8x8xf32>
    %483 = arith.mulf %482, %481 : vector<8x8xf32>
    %484 = vector.extract_strided_slice %4 {offsets = [8, 1], sizes = [1, 1], strides = [1, 1]} : vector<16x8xf32> to vector<1x1xf32>
    %485 = vector.extract_strided_slice %2 {offsets = [0, 1, 0], sizes = [8, 1, 8], strides = [1, 1, 1]} : vector<8x8x8xbf16> to vector<8x1x8xbf16>
    %486 = vector.shape_cast %485 : vector<8x1x8xbf16> to vector<8x8xbf16>
    %487 = arith.extf %486 : vector<8x8xbf16> to vector<8x8xf32>
    %488 = vector.broadcast %484 : vector<1x1xf32> to vector<8x8xf32>
    %489 = arith.mulf %488, %487 : vector<8x8xf32>
    %490 = arith.addf %483, %489 : vector<8x8xf32>
    %491 = vector.extract_strided_slice %4 {offsets = [8, 2], sizes = [1, 1], strides = [1, 1]} : vector<16x8xf32> to vector<1x1xf32>
    %492 = vector.extract_strided_slice %2 {offsets = [0, 2, 0], sizes = [8, 1, 8], strides = [1, 1, 1]} : vector<8x8x8xbf16> to vector<8x1x8xbf16>
    %493 = vector.shape_cast %492 : vector<8x1x8xbf16> to vector<8x8xbf16>
    %494 = arith.extf %493 : vector<8x8xbf16> to vector<8x8xf32>
    %495 = vector.broadcast %491 : vector<1x1xf32> to vector<8x8xf32>
    %496 = arith.mulf %495, %494 : vector<8x8xf32>
    %497 = arith.addf %490, %496 : vector<8x8xf32>
    %498 = vector.extract_strided_slice %4 {offsets = [8, 3], sizes = [1, 1], strides = [1, 1]} : vector<16x8xf32> to vector<1x1xf32>
    %499 = vector.extract_strided_slice %2 {offsets = [0, 3, 0], sizes = [8, 1, 8], strides = [1, 1, 1]} : vector<8x8x8xbf16> to vector<8x1x8xbf16>
    %500 = vector.shape_cast %499 : vector<8x1x8xbf16> to vector<8x8xbf16>
    %501 = arith.extf %500 : vector<8x8xbf16> to vector<8x8xf32>
    %502 = vector.broadcast %498 : vector<1x1xf32> to vector<8x8xf32>
    %503 = arith.mulf %502, %501 : vector<8x8xf32>
    %504 = arith.addf %497, %503 : vector<8x8xf32>
    %505 = vector.extract_strided_slice %4 {offsets = [8, 4], sizes = [1, 1], strides = [1, 1]} : vector<16x8xf32> to vector<1x1xf32>
    %506 = vector.extract_strided_slice %2 {offsets = [0, 4, 0], sizes = [8, 1, 8], strides = [1, 1, 1]} : vector<8x8x8xbf16> to vector<8x1x8xbf16>
    %507 = vector.shape_cast %506 : vector<8x1x8xbf16> to vector<8x8xbf16>
    %508 = arith.extf %507 : vector<8x8xbf16> to vector<8x8xf32>
    %509 = vector.broadcast %505 : vector<1x1xf32> to vector<8x8xf32>
    %510 = arith.mulf %509, %508 : vector<8x8xf32>
    %511 = arith.addf %504, %510 : vector<8x8xf32>
    %512 = vector.extract_strided_slice %4 {offsets = [8, 5], sizes = [1, 1], strides = [1, 1]} : vector<16x8xf32> to vector<1x1xf32>
    %513 = vector.extract_strided_slice %2 {offsets = [0, 5, 0], sizes = [8, 1, 8], strides = [1, 1, 1]} : vector<8x8x8xbf16> to vector<8x1x8xbf16>
    %514 = vector.shape_cast %513 : vector<8x1x8xbf16> to vector<8x8xbf16>
    %515 = arith.extf %514 : vector<8x8xbf16> to vector<8x8xf32>
    %516 = vector.broadcast %512 : vector<1x1xf32> to vector<8x8xf32>
    %517 = arith.mulf %516, %515 : vector<8x8xf32>
    %518 = arith.addf %511, %517 : vector<8x8xf32>
    %519 = vector.extract_strided_slice %4 {offsets = [8, 6], sizes = [1, 1], strides = [1, 1]} : vector<16x8xf32> to vector<1x1xf32>
    %520 = vector.extract_strided_slice %2 {offsets = [0, 6, 0], sizes = [8, 1, 8], strides = [1, 1, 1]} : vector<8x8x8xbf16> to vector<8x1x8xbf16>
    %521 = vector.shape_cast %520 : vector<8x1x8xbf16> to vector<8x8xbf16>
    %522 = arith.extf %521 : vector<8x8xbf16> to vector<8x8xf32>
    %523 = vector.broadcast %519 : vector<1x1xf32> to vector<8x8xf32>
    %524 = arith.mulf %523, %522 : vector<8x8xf32>
    %525 = arith.addf %518, %524 : vector<8x8xf32>
    %526 = vector.extract_strided_slice %4 {offsets = [8, 7], sizes = [1, 1], strides = [1, 1]} : vector<16x8xf32> to vector<1x1xf32>
    %527 = vector.extract_strided_slice %2 {offsets = [0, 7, 0], sizes = [8, 1, 8], strides = [1, 1, 1]} : vector<8x8x8xbf16> to vector<8x1x8xbf16>
    %528 = vector.shape_cast %527 : vector<8x1x8xbf16> to vector<8x8xbf16>
    %529 = arith.extf %528 : vector<8x8xbf16> to vector<8x8xf32>
    %530 = vector.broadcast %526 : vector<1x1xf32> to vector<8x8xf32>
    %531 = arith.mulf %530, %529 : vector<8x8xf32>
    %532 = arith.addf %525, %531 : vector<8x8xf32>
    %533 = arith.truncf %532 : vector<8x8xf32> to vector<8x8xbf16>
    %cst_23 = arith.constant dense<0.000000e+00> : vector<8x16xf32>
    %534 = tpu.matmul %533, %5, %cst_23 {dimension_numbers = #tpu.dot_dimension_numbers<[1], [0], [0], [1], [0, 0, 1, 1], [], []>} : vector<8x8xbf16>, vector<8x16xbf16>, vector<8x16xf32> -> vector<8x16xf32>
    %535 = arith.truncf %534 : vector<8x16xf32> to vector<8x16xbf16>
    %c0_24 = arith.constant 0 : index
    %c128 = arith.constant 128 : index
    %536 = vector.load %arg12[%c0_24, %c128] : memref<8x256xbf16, #tpu.memory_space<vmem>>, vector<8x16xbf16>
    tpu.vector_store %arg12[%c0_24, %c128], %535 {strides = array<i32>} : memref<8x256xbf16, #tpu.memory_space<vmem>>, vector<8x16xbf16>,
    %537 = vector.extract_strided_slice %4 {offsets = [9, 0], sizes = [1, 1], strides = [1, 1]} : vector<16x8xf32> to vector<1x1xf32>
    %538 = vector.extract_strided_slice %2 {offsets = [0, 0, 0], sizes = [8, 1, 8], strides = [1, 1, 1]} : vector<8x8x8xbf16> to vector<8x1x8xbf16>
    %539 = vector.shape_cast %538 : vector<8x1x8xbf16> to vector<8x8xbf16>
    %540 = arith.extf %539 : vector<8x8xbf16> to vector<8x8xf32>
    %541 = vector.broadcast %537 : vector<1x1xf32> to vector<8x8xf32>
    %542 = arith.mulf %541, %540 : vector<8x8xf32>
    %543 = vector.extract_strided_slice %4 {offsets = [9, 1], sizes = [1, 1], strides = [1, 1]} : vector<16x8xf32> to vector<1x1xf32>
    %544 = vector.extract_strided_slice %2 {offsets = [0, 1, 0], sizes = [8, 1, 8], strides = [1, 1, 1]} : vector<8x8x8xbf16> to vector<8x1x8xbf16>
    %545 = vector.shape_cast %544 : vector<8x1x8xbf16> to vector<8x8xbf16>
    %546 = arith.extf %545 : vector<8x8xbf16> to vector<8x8xf32>
    %547 = vector.broadcast %543 : vector<1x1xf32> to vector<8x8xf32>
    %548 = arith.mulf %547, %546 : vector<8x8xf32>
    %549 = arith.addf %542, %548 : vector<8x8xf32>
    %550 = vector.extract_strided_slice %4 {offsets = [9, 2], sizes = [1, 1], strides = [1, 1]} : vector<16x8xf32> to vector<1x1xf32>
    %551 = vector.extract_strided_slice %2 {offsets = [0, 2, 0], sizes = [8, 1, 8], strides = [1, 1, 1]} : vector<8x8x8xbf16> to vector<8x1x8xbf16>
    %552 = vector.shape_cast %551 : vector<8x1x8xbf16> to vector<8x8xbf16>
    %553 = arith.extf %552 : vector<8x8xbf16> to vector<8x8xf32>
    %554 = vector.broadcast %550 : vector<1x1xf32> to vector<8x8xf32>
    %555 = arith.mulf %554, %553 : vector<8x8xf32>
    %556 = arith.addf %549, %555 : vector<8x8xf32>
    %557 = vector.extract_strided_slice %4 {offsets = [9, 3], sizes = [1, 1], strides = [1, 1]} : vector<16x8xf32> to vector<1x1xf32>
    %558 = vector.extract_strided_slice %2 {offsets = [0, 3, 0], sizes = [8, 1, 8], strides = [1, 1, 1]} : vector<8x8x8xbf16> to vector<8x1x8xbf16>
    %559 = vector.shape_cast %558 : vector<8x1x8xbf16> to vector<8x8xbf16>
    %560 = arith.extf %559 : vector<8x8xbf16> to vector<8x8xf32>
    %561 = vector.broadcast %557 : vector<1x1xf32> to vector<8x8xf32>
    %562 = arith.mulf %561, %560 : vector<8x8xf32>
    %563 = arith.addf %556, %562 : vector<8x8xf32>
    %564 = vector.extract_strided_slice %4 {offsets = [9, 4], sizes = [1, 1], strides = [1, 1]} : vector<16x8xf32> to vector<1x1xf32>
    %565 = vector.extract_strided_slice %2 {offsets = [0, 4, 0], sizes = [8, 1, 8], strides = [1, 1, 1]} : vector<8x8x8xbf16> to vector<8x1x8xbf16>
    %566 = vector.shape_cast %565 : vector<8x1x8xbf16> to vector<8x8xbf16>
    %567 = arith.extf %566 : vector<8x8xbf16> to vector<8x8xf32>
    %568 = vector.broadcast %564 : vector<1x1xf32> to vector<8x8xf32>
    %569 = arith.mulf %568, %567 : vector<8x8xf32>
    %570 = arith.addf %563, %569 : vector<8x8xf32>
    %571 = vector.extract_strided_slice %4 {offsets = [9, 5], sizes = [1, 1], strides = [1, 1]} : vector<16x8xf32> to vector<1x1xf32>
    %572 = vector.extract_strided_slice %2 {offsets = [0, 5, 0], sizes = [8, 1, 8], strides = [1, 1, 1]} : vector<8x8x8xbf16> to vector<8x1x8xbf16>
    %573 = vector.shape_cast %572 : vector<8x1x8xbf16> to vector<8x8xbf16>
    %574 = arith.extf %573 : vector<8x8xbf16> to vector<8x8xf32>
    %575 = vector.broadcast %571 : vector<1x1xf32> to vector<8x8xf32>
    %576 = arith.mulf %575, %574 : vector<8x8xf32>
    %577 = arith.addf %570, %576 : vector<8x8xf32>
    %578 = vector.extract_strided_slice %4 {offsets = [9, 6], sizes = [1, 1], strides = [1, 1]} : vector<16x8xf32> to vector<1x1xf32>
    %579 = vector.extract_strided_slice %2 {offsets = [0, 6, 0], sizes = [8, 1, 8], strides = [1, 1, 1]} : vector<8x8x8xbf16> to vector<8x1x8xbf16>
    %580 = vector.shape_cast %579 : vector<8x1x8xbf16> to vector<8x8xbf16>
    %581 = arith.extf %580 : vector<8x8xbf16> to vector<8x8xf32>
    %582 = vector.broadcast %578 : vector<1x1xf32> to vector<8x8xf32>
    %583 = arith.mulf %582, %581 : vector<8x8xf32>
    %584 = arith.addf %577, %583 : vector<8x8xf32>
    %585 = vector.extract_strided_slice %4 {offsets = [9, 7], sizes = [1, 1], strides = [1, 1]} : vector<16x8xf32> to vector<1x1xf32>
    %586 = vector.extract_strided_slice %2 {offsets = [0, 7, 0], sizes = [8, 1, 8], strides = [1, 1, 1]} : vector<8x8x8xbf16> to vector<8x1x8xbf16>
    %587 = vector.shape_cast %586 : vector<8x1x8xbf16> to vector<8x8xbf16>
    %588 = arith.extf %587 : vector<8x8xbf16> to vector<8x8xf32>
    %589 = vector.broadcast %585 : vector<1x1xf32> to vector<8x8xf32>
    %590 = arith.mulf %589, %588 : vector<8x8xf32>
    %591 = arith.addf %584, %590 : vector<8x8xf32>
    %592 = arith.truncf %591 : vector<8x8xf32> to vector<8x8xbf16>
    %cst_25 = arith.constant dense<0.000000e+00> : vector<8x16xf32>
    %593 = tpu.matmul %592, %5, %cst_25 {dimension_numbers = #tpu.dot_dimension_numbers<[1], [0], [0], [1], [0, 0, 1, 1], [], []>} : vector<8x8xbf16>, vector<8x16xbf16>, vector<8x16xf32> -> vector<8x16xf32>
    %594 = arith.truncf %593 : vector<8x16xf32> to vector<8x16xbf16>
    %c0_26 = arith.constant 0 : index
    %c144 = arith.constant 144 : index
    %595 = vector.load %arg12[%c0_26, %c144] : memref<8x256xbf16, #tpu.memory_space<vmem>>, vector<8x16xbf16>
    tpu.vector_store %arg12[%c0_26, %c144], %594 {strides = array<i32>} : memref<8x256xbf16, #tpu.memory_space<vmem>>, vector<8x16xbf16>,
    %596 = vector.extract_strided_slice %4 {offsets = [10, 0], sizes = [1, 1], strides = [1, 1]} : vector<16x8xf32> to vector<1x1xf32>
    %597 = vector.extract_strided_slice %2 {offsets = [0, 0, 0], sizes = [8, 1, 8], strides = [1, 1, 1]} : vector<8x8x8xbf16> to vector<8x1x8xbf16>
    %598 = vector.shape_cast %597 : vector<8x1x8xbf16> to vector<8x8xbf16>
    %599 = arith.extf %598 : vector<8x8xbf16> to vector<8x8xf32>
    %600 = vector.broadcast %596 : vector<1x1xf32> to vector<8x8xf32>
    %601 = arith.mulf %600, %599 : vector<8x8xf32>
    %602 = vector.extract_strided_slice %4 {offsets = [10, 1], sizes = [1, 1], strides = [1, 1]} : vector<16x8xf32> to vector<1x1xf32>
    %603 = vector.extract_strided_slice %2 {offsets = [0, 1, 0], sizes = [8, 1, 8], strides = [1, 1, 1]} : vector<8x8x8xbf16> to vector<8x1x8xbf16>
    %604 = vector.shape_cast %603 : vector<8x1x8xbf16> to vector<8x8xbf16>
    %605 = arith.extf %604 : vector<8x8xbf16> to vector<8x8xf32>
    %606 = vector.broadcast %602 : vector<1x1xf32> to vector<8x8xf32>
    %607 = arith.mulf %606, %605 : vector<8x8xf32>
    %608 = arith.addf %601, %607 : vector<8x8xf32>
    %609 = vector.extract_strided_slice %4 {offsets = [10, 2], sizes = [1, 1], strides = [1, 1]} : vector<16x8xf32> to vector<1x1xf32>
    %610 = vector.extract_strided_slice %2 {offsets = [0, 2, 0], sizes = [8, 1, 8], strides = [1, 1, 1]} : vector<8x8x8xbf16> to vector<8x1x8xbf16>
    %611 = vector.shape_cast %610 : vector<8x1x8xbf16> to vector<8x8xbf16>
    %612 = arith.extf %611 : vector<8x8xbf16> to vector<8x8xf32>
    %613 = vector.broadcast %609 : vector<1x1xf32> to vector<8x8xf32>
    %614 = arith.mulf %613, %612 : vector<8x8xf32>
    %615 = arith.addf %608, %614 : vector<8x8xf32>
    %616 = vector.extract_strided_slice %4 {offsets = [10, 3], sizes = [1, 1], strides = [1, 1]} : vector<16x8xf32> to vector<1x1xf32>
    %617 = vector.extract_strided_slice %2 {offsets = [0, 3, 0], sizes = [8, 1, 8], strides = [1, 1, 1]} : vector<8x8x8xbf16> to vector<8x1x8xbf16>
    %618 = vector.shape_cast %617 : vector<8x1x8xbf16> to vector<8x8xbf16>
    %619 = arith.extf %618 : vector<8x8xbf16> to vector<8x8xf32>
    %620 = vector.broadcast %616 : vector<1x1xf32> to vector<8x8xf32>
    %621 = arith.mulf %620, %619 : vector<8x8xf32>
    %622 = arith.addf %615, %621 : vector<8x8xf32>
    %623 = vector.extract_strided_slice %4 {offsets = [10, 4], sizes = [1, 1], strides = [1, 1]} : vector<16x8xf32> to vector<1x1xf32>
    %624 = vector.extract_strided_slice %2 {offsets = [0, 4, 0], sizes = [8, 1, 8], strides = [1, 1, 1]} : vector<8x8x8xbf16> to vector<8x1x8xbf16>
    %625 = vector.shape_cast %624 : vector<8x1x8xbf16> to vector<8x8xbf16>
    %626 = arith.extf %625 : vector<8x8xbf16> to vector<8x8xf32>
    %627 = vector.broadcast %623 : vector<1x1xf32> to vector<8x8xf32>
    %628 = arith.mulf %627, %626 : vector<8x8xf32>
    %629 = arith.addf %622, %628 : vector<8x8xf32>
    %630 = vector.extract_strided_slice %4 {offsets = [10, 5], sizes = [1, 1], strides = [1, 1]} : vector<16x8xf32> to vector<1x1xf32>
    %631 = vector.extract_strided_slice %2 {offsets = [0, 5, 0], sizes = [8, 1, 8], strides = [1, 1, 1]} : vector<8x8x8xbf16> to vector<8x1x8xbf16>
    %632 = vector.shape_cast %631 : vector<8x1x8xbf16> to vector<8x8xbf16>
    %633 = arith.extf %632 : vector<8x8xbf16> to vector<8x8xf32>
    %634 = vector.broadcast %630 : vector<1x1xf32> to vector<8x8xf32>
    %635 = arith.mulf %634, %633 : vector<8x8xf32>
    %636 = arith.addf %629, %635 : vector<8x8xf32>
    %637 = vector.extract_strided_slice %4 {offsets = [10, 6], sizes = [1, 1], strides = [1, 1]} : vector<16x8xf32> to vector<1x1xf32>
    %638 = vector.extract_strided_slice %2 {offsets = [0, 6, 0], sizes = [8, 1, 8], strides = [1, 1, 1]} : vector<8x8x8xbf16> to vector<8x1x8xbf16>
    %639 = vector.shape_cast %638 : vector<8x1x8xbf16> to vector<8x8xbf16>
    %640 = arith.extf %639 : vector<8x8xbf16> to vector<8x8xf32>
    %641 = vector.broadcast %637 : vector<1x1xf32> to vector<8x8xf32>
    %642 = arith.mulf %641, %640 : vector<8x8xf32>
    %643 = arith.addf %636, %642 : vector<8x8xf32>
    %644 = vector.extract_strided_slice %4 {offsets = [10, 7], sizes = [1, 1], strides = [1, 1]} : vector<16x8xf32> to vector<1x1xf32>
    %645 = vector.extract_strided_slice %2 {offsets = [0, 7, 0], sizes = [8, 1, 8], strides = [1, 1, 1]} : vector<8x8x8xbf16> to vector<8x1x8xbf16>
    %646 = vector.shape_cast %645 : vector<8x1x8xbf16> to vector<8x8xbf16>
    %647 = arith.extf %646 : vector<8x8xbf16> to vector<8x8xf32>
    %648 = vector.broadcast %644 : vector<1x1xf32> to vector<8x8xf32>
    %649 = arith.mulf %648, %647 : vector<8x8xf32>
    %650 = arith.addf %643, %649 : vector<8x8xf32>
    %651 = arith.truncf %650 : vector<8x8xf32> to vector<8x8xbf16>
    %cst_27 = arith.constant dense<0.000000e+00> : vector<8x16xf32>
    %652 = tpu.matmul %651, %5, %cst_27 {dimension_numbers = #tpu.dot_dimension_numbers<[1], [0], [0], [1], [0, 0, 1, 1], [], []>} : vector<8x8xbf16>, vector<8x16xbf16>, vector<8x16xf32> -> vector<8x16xf32>
    %653 = arith.truncf %652 : vector<8x16xf32> to vector<8x16xbf16>
    %c0_28 = arith.constant 0 : index
    %c160 = arith.constant 160 : index
    %654 = vector.load %arg12[%c0_28, %c160] : memref<8x256xbf16, #tpu.memory_space<vmem>>, vector<8x16xbf16>
    tpu.vector_store %arg12[%c0_28, %c160], %653 {strides = array<i32>} : memref<8x256xbf16, #tpu.memory_space<vmem>>, vector<8x16xbf16>,
    %655 = vector.extract_strided_slice %4 {offsets = [11, 0], sizes = [1, 1], strides = [1, 1]} : vector<16x8xf32> to vector<1x1xf32>
    %656 = vector.extract_strided_slice %2 {offsets = [0, 0, 0], sizes = [8, 1, 8], strides = [1, 1, 1]} : vector<8x8x8xbf16> to vector<8x1x8xbf16>
    %657 = vector.shape_cast %656 : vector<8x1x8xbf16> to vector<8x8xbf16>
    %658 = arith.extf %657 : vector<8x8xbf16> to vector<8x8xf32>
    %659 = vector.broadcast %655 : vector<1x1xf32> to vector<8x8xf32>
    %660 = arith.mulf %659, %658 : vector<8x8xf32>
    %661 = vector.extract_strided_slice %4 {offsets = [11, 1], sizes = [1, 1], strides = [1, 1]} : vector<16x8xf32> to vector<1x1xf32>
    %662 = vector.extract_strided_slice %2 {offsets = [0, 1, 0], sizes = [8, 1, 8], strides = [1, 1, 1]} : vector<8x8x8xbf16> to vector<8x1x8xbf16>
    %663 = vector.shape_cast %662 : vector<8x1x8xbf16> to vector<8x8xbf16>
    %664 = arith.extf %663 : vector<8x8xbf16> to vector<8x8xf32>
    %665 = vector.broadcast %661 : vector<1x1xf32> to vector<8x8xf32>
    %666 = arith.mulf %665, %664 : vector<8x8xf32>
    %667 = arith.addf %660, %666 : vector<8x8xf32>
    %668 = vector.extract_strided_slice %4 {offsets = [11, 2], sizes = [1, 1], strides = [1, 1]} : vector<16x8xf32> to vector<1x1xf32>
    %669 = vector.extract_strided_slice %2 {offsets = [0, 2, 0], sizes = [8, 1, 8], strides = [1, 1, 1]} : vector<8x8x8xbf16> to vector<8x1x8xbf16>
    %670 = vector.shape_cast %669 : vector<8x1x8xbf16> to vector<8x8xbf16>
    %671 = arith.extf %670 : vector<8x8xbf16> to vector<8x8xf32>
    %672 = vector.broadcast %668 : vector<1x1xf32> to vector<8x8xf32>
    %673 = arith.mulf %672, %671 : vector<8x8xf32>
    %674 = arith.addf %667, %673 : vector<8x8xf32>
    %675 = vector.extract_strided_slice %4 {offsets = [11, 3], sizes = [1, 1], strides = [1, 1]} : vector<16x8xf32> to vector<1x1xf32>
    %676 = vector.extract_strided_slice %2 {offsets = [0, 3, 0], sizes = [8, 1, 8], strides = [1, 1, 1]} : vector<8x8x8xbf16> to vector<8x1x8xbf16>
    %677 = vector.shape_cast %676 : vector<8x1x8xbf16> to vector<8x8xbf16>
    %678 = arith.extf %677 : vector<8x8xbf16> to vector<8x8xf32>
    %679 = vector.broadcast %675 : vector<1x1xf32> to vector<8x8xf32>
    %680 = arith.mulf %679, %678 : vector<8x8xf32>
    %681 = arith.addf %674, %680 : vector<8x8xf32>
    %682 = vector.extract_strided_slice %4 {offsets = [11, 4], sizes = [1, 1], strides = [1, 1]} : vector<16x8xf32> to vector<1x1xf32>
    %683 = vector.extract_strided_slice %2 {offsets = [0, 4, 0], sizes = [8, 1, 8], strides = [1, 1, 1]} : vector<8x8x8xbf16> to vector<8x1x8xbf16>
    %684 = vector.shape_cast %683 : vector<8x1x8xbf16> to vector<8x8xbf16>
    %685 = arith.extf %684 : vector<8x8xbf16> to vector<8x8xf32>
    %686 = vector.broadcast %682 : vector<1x1xf32> to vector<8x8xf32>
    %687 = arith.mulf %686, %685 : vector<8x8xf32>
    %688 = arith.addf %681, %687 : vector<8x8xf32>
    %689 = vector.extract_strided_slice %4 {offsets = [11, 5], sizes = [1, 1], strides = [1, 1]} : vector<16x8xf32> to vector<1x1xf32>
    %690 = vector.extract_strided_slice %2 {offsets = [0, 5, 0], sizes = [8, 1, 8], strides = [1, 1, 1]} : vector<8x8x8xbf16> to vector<8x1x8xbf16>
    %691 = vector.shape_cast %690 : vector<8x1x8xbf16> to vector<8x8xbf16>
    %692 = arith.extf %691 : vector<8x8xbf16> to vector<8x8xf32>
    %693 = vector.broadcast %689 : vector<1x1xf32> to vector<8x8xf32>
    %694 = arith.mulf %693, %692 : vector<8x8xf32>
    %695 = arith.addf %688, %694 : vector<8x8xf32>
    %696 = vector.extract_strided_slice %4 {offsets = [11, 6], sizes = [1, 1], strides = [1, 1]} : vector<16x8xf32> to vector<1x1xf32>
    %697 = vector.extract_strided_slice %2 {offsets = [0, 6, 0], sizes = [8, 1, 8], strides = [1, 1, 1]} : vector<8x8x8xbf16> to vector<8x1x8xbf16>
    %698 = vector.shape_cast %697 : vector<8x1x8xbf16> to vector<8x8xbf16>
    %699 = arith.extf %698 : vector<8x8xbf16> to vector<8x8xf32>
    %700 = vector.broadcast %696 : vector<1x1xf32> to vector<8x8xf32>
    %701 = arith.mulf %700, %699 : vector<8x8xf32>
    %702 = arith.addf %695, %701 : vector<8x8xf32>
    %703 = vector.extract_strided_slice %4 {offsets = [11, 7], sizes = [1, 1], strides = [1, 1]} : vector<16x8xf32> to vector<1x1xf32>
    %704 = vector.extract_strided_slice %2 {offsets = [0, 7, 0], sizes = [8, 1, 8], strides = [1, 1, 1]} : vector<8x8x8xbf16> to vector<8x1x8xbf16>
    %705 = vector.shape_cast %704 : vector<8x1x8xbf16> to vector<8x8xbf16>
    %706 = arith.extf %705 : vector<8x8xbf16> to vector<8x8xf32>
    %707 = vector.broadcast %703 : vector<1x1xf32> to vector<8x8xf32>
    %708 = arith.mulf %707, %706 : vector<8x8xf32>
    %709 = arith.addf %702, %708 : vector<8x8xf32>
    %710 = arith.truncf %709 : vector<8x8xf32> to vector<8x8xbf16>
    %cst_29 = arith.constant dense<0.000000e+00> : vector<8x16xf32>
    %711 = tpu.matmul %710, %5, %cst_29 {dimension_numbers = #tpu.dot_dimension_numbers<[1], [0], [0], [1], [0, 0, 1, 1], [], []>} : vector<8x8xbf16>, vector<8x16xbf16>, vector<8x16xf32> -> vector<8x16xf32>
    %712 = arith.truncf %711 : vector<8x16xf32> to vector<8x16xbf16>
    %c0_30 = arith.constant 0 : index
    %c176 = arith.constant 176 : index
    %713 = vector.load %arg12[%c0_30, %c176] : memref<8x256xbf16, #tpu.memory_space<vmem>>, vector<8x16xbf16>
    tpu.vector_store %arg12[%c0_30, %c176], %712 {strides = array<i32>} : memref<8x256xbf16, #tpu.memory_space<vmem>>, vector<8x16xbf16>,
    %714 = vector.extract_strided_slice %4 {offsets = [12, 0], sizes = [1, 1], strides = [1, 1]} : vector<16x8xf32> to vector<1x1xf32>
    %715 = vector.extract_strided_slice %2 {offsets = [0, 0, 0], sizes = [8, 1, 8], strides = [1, 1, 1]} : vector<8x8x8xbf16> to vector<8x1x8xbf16>
    %716 = vector.shape_cast %715 : vector<8x1x8xbf16> to vector<8x8xbf16>
    %717 = arith.extf %716 : vector<8x8xbf16> to vector<8x8xf32>
    %718 = vector.broadcast %714 : vector<1x1xf32> to vector<8x8xf32>
    %719 = arith.mulf %718, %717 : vector<8x8xf32>
    %720 = vector.extract_strided_slice %4 {offsets = [12, 1], sizes = [1, 1], strides = [1, 1]} : vector<16x8xf32> to vector<1x1xf32>
    %721 = vector.extract_strided_slice %2 {offsets = [0, 1, 0], sizes = [8, 1, 8], strides = [1, 1, 1]} : vector<8x8x8xbf16> to vector<8x1x8xbf16>
    %722 = vector.shape_cast %721 : vector<8x1x8xbf16> to vector<8x8xbf16>
    %723 = arith.extf %722 : vector<8x8xbf16> to vector<8x8xf32>
    %724 = vector.broadcast %720 : vector<1x1xf32> to vector<8x8xf32>
    %725 = arith.mulf %724, %723 : vector<8x8xf32>
    %726 = arith.addf %719, %725 : vector<8x8xf32>
    %727 = vector.extract_strided_slice %4 {offsets = [12, 2], sizes = [1, 1], strides = [1, 1]} : vector<16x8xf32> to vector<1x1xf32>
    %728 = vector.extract_strided_slice %2 {offsets = [0, 2, 0], sizes = [8, 1, 8], strides = [1, 1, 1]} : vector<8x8x8xbf16> to vector<8x1x8xbf16>
    %729 = vector.shape_cast %728 : vector<8x1x8xbf16> to vector<8x8xbf16>
    %730 = arith.extf %729 : vector<8x8xbf16> to vector<8x8xf32>
    %731 = vector.broadcast %727 : vector<1x1xf32> to vector<8x8xf32>
    %732 = arith.mulf %731, %730 : vector<8x8xf32>
    %733 = arith.addf %726, %732 : vector<8x8xf32>
    %734 = vector.extract_strided_slice %4 {offsets = [12, 3], sizes = [1, 1], strides = [1, 1]} : vector<16x8xf32> to vector<1x1xf32>
    %735 = vector.extract_strided_slice %2 {offsets = [0, 3, 0], sizes = [8, 1, 8], strides = [1, 1, 1]} : vector<8x8x8xbf16> to vector<8x1x8xbf16>
    %736 = vector.shape_cast %735 : vector<8x1x8xbf16> to vector<8x8xbf16>
    %737 = arith.extf %736 : vector<8x8xbf16> to vector<8x8xf32>
    %738 = vector.broadcast %734 : vector<1x1xf32> to vector<8x8xf32>
    %739 = arith.mulf %738, %737 : vector<8x8xf32>
    %740 = arith.addf %733, %739 : vector<8x8xf32>
    %741 = vector.extract_strided_slice %4 {offsets = [12, 4], sizes = [1, 1], strides = [1, 1]} : vector<16x8xf32> to vector<1x1xf32>
    %742 = vector.extract_strided_slice %2 {offsets = [0, 4, 0], sizes = [8, 1, 8], strides = [1, 1, 1]} : vector<8x8x8xbf16> to vector<8x1x8xbf16>
    %743 = vector.shape_cast %742 : vector<8x1x8xbf16> to vector<8x8xbf16>
    %744 = arith.extf %743 : vector<8x8xbf16> to vector<8x8xf32>
    %745 = vector.broadcast %741 : vector<1x1xf32> to vector<8x8xf32>
    %746 = arith.mulf %745, %744 : vector<8x8xf32>
    %747 = arith.addf %740, %746 : vector<8x8xf32>
    %748 = vector.extract_strided_slice %4 {offsets = [12, 5], sizes = [1, 1], strides = [1, 1]} : vector<16x8xf32> to vector<1x1xf32>
    %749 = vector.extract_strided_slice %2 {offsets = [0, 5, 0], sizes = [8, 1, 8], strides = [1, 1, 1]} : vector<8x8x8xbf16> to vector<8x1x8xbf16>
    %750 = vector.shape_cast %749 : vector<8x1x8xbf16> to vector<8x8xbf16>
    %751 = arith.extf %750 : vector<8x8xbf16> to vector<8x8xf32>
    %752 = vector.broadcast %748 : vector<1x1xf32> to vector<8x8xf32>
    %753 = arith.mulf %752, %751 : vector<8x8xf32>
    %754 = arith.addf %747, %753 : vector<8x8xf32>
    %755 = vector.extract_strided_slice %4 {offsets = [12, 6], sizes = [1, 1], strides = [1, 1]} : vector<16x8xf32> to vector<1x1xf32>
    %756 = vector.extract_strided_slice %2 {offsets = [0, 6, 0], sizes = [8, 1, 8], strides = [1, 1, 1]} : vector<8x8x8xbf16> to vector<8x1x8xbf16>
    %757 = vector.shape_cast %756 : vector<8x1x8xbf16> to vector<8x8xbf16>
    %758 = arith.extf %757 : vector<8x8xbf16> to vector<8x8xf32>
    %759 = vector.broadcast %755 : vector<1x1xf32> to vector<8x8xf32>
    %760 = arith.mulf %759, %758 : vector<8x8xf32>
    %761 = arith.addf %754, %760 : vector<8x8xf32>
    %762 = vector.extract_strided_slice %4 {offsets = [12, 7], sizes = [1, 1], strides = [1, 1]} : vector<16x8xf32> to vector<1x1xf32>
    %763 = vector.extract_strided_slice %2 {offsets = [0, 7, 0], sizes = [8, 1, 8], strides = [1, 1, 1]} : vector<8x8x8xbf16> to vector<8x1x8xbf16>
    %764 = vector.shape_cast %763 : vector<8x1x8xbf16> to vector<8x8xbf16>
    %765 = arith.extf %764 : vector<8x8xbf16> to vector<8x8xf32>
    %766 = vector.broadcast %762 : vector<1x1xf32> to vector<8x8xf32>
    %767 = arith.mulf %766, %765 : vector<8x8xf32>
    %768 = arith.addf %761, %767 : vector<8x8xf32>
    %769 = arith.truncf %768 : vector<8x8xf32> to vector<8x8xbf16>
    %cst_31 = arith.constant dense<0.000000e+00> : vector<8x16xf32>
    %770 = tpu.matmul %769, %5, %cst_31 {dimension_numbers = #tpu.dot_dimension_numbers<[1], [0], [0], [1], [0, 0, 1, 1], [], []>} : vector<8x8xbf16>, vector<8x16xbf16>, vector<8x16xf32> -> vector<8x16xf32>
    %771 = arith.truncf %770 : vector<8x16xf32> to vector<8x16xbf16>
    %c0_32 = arith.constant 0 : index
    %c192 = arith.constant 192 : index
    %772 = vector.load %arg12[%c0_32, %c192] : memref<8x256xbf16, #tpu.memory_space<vmem>>, vector<8x16xbf16>
    tpu.vector_store %arg12[%c0_32, %c192], %771 {strides = array<i32>} : memref<8x256xbf16, #tpu.memory_space<vmem>>, vector<8x16xbf16>,
    %773 = vector.extract_strided_slice %4 {offsets = [13, 0], sizes = [1, 1], strides = [1, 1]} : vector<16x8xf32> to vector<1x1xf32>
    %774 = vector.extract_strided_slice %2 {offsets = [0, 0, 0], sizes = [8, 1, 8], strides = [1, 1, 1]} : vector<8x8x8xbf16> to vector<8x1x8xbf16>
    %775 = vector.shape_cast %774 : vector<8x1x8xbf16> to vector<8x8xbf16>
    %776 = arith.extf %775 : vector<8x8xbf16> to vector<8x8xf32>
    %777 = vector.broadcast %773 : vector<1x1xf32> to vector<8x8xf32>
    %778 = arith.mulf %777, %776 : vector<8x8xf32>
    %779 = vector.extract_strided_slice %4 {offsets = [13, 1], sizes = [1, 1], strides = [1, 1]} : vector<16x8xf32> to vector<1x1xf32>
    %780 = vector.extract_strided_slice %2 {offsets = [0, 1, 0], sizes = [8, 1, 8], strides = [1, 1, 1]} : vector<8x8x8xbf16> to vector<8x1x8xbf16>
    %781 = vector.shape_cast %780 : vector<8x1x8xbf16> to vector<8x8xbf16>
    %782 = arith.extf %781 : vector<8x8xbf16> to vector<8x8xf32>
    %783 = vector.broadcast %779 : vector<1x1xf32> to vector<8x8xf32>
    %784 = arith.mulf %783, %782 : vector<8x8xf32>
    %785 = arith.addf %778, %784 : vector<8x8xf32>
    %786 = vector.extract_strided_slice %4 {offsets = [13, 2], sizes = [1, 1], strides = [1, 1]} : vector<16x8xf32> to vector<1x1xf32>
    %787 = vector.extract_strided_slice %2 {offsets = [0, 2, 0], sizes = [8, 1, 8], strides = [1, 1, 1]} : vector<8x8x8xbf16> to vector<8x1x8xbf16>
    %788 = vector.shape_cast %787 : vector<8x1x8xbf16> to vector<8x8xbf16>
    %789 = arith.extf %788 : vector<8x8xbf16> to vector<8x8xf32>
    %790 = vector.broadcast %786 : vector<1x1xf32> to vector<8x8xf32>
    %791 = arith.mulf %790, %789 : vector<8x8xf32>
    %792 = arith.addf %785, %791 : vector<8x8xf32>
    %793 = vector.extract_strided_slice %4 {offsets = [13, 3], sizes = [1, 1], strides = [1, 1]} : vector<16x8xf32> to vector<1x1xf32>
    %794 = vector.extract_strided_slice %2 {offsets = [0, 3, 0], sizes = [8, 1, 8], strides = [1, 1, 1]} : vector<8x8x8xbf16> to vector<8x1x8xbf16>
    %795 = vector.shape_cast %794 : vector<8x1x8xbf16> to vector<8x8xbf16>
    %796 = arith.extf %795 : vector<8x8xbf16> to vector<8x8xf32>
    %797 = vector.broadcast %793 : vector<1x1xf32> to vector<8x8xf32>
    %798 = arith.mulf %797, %796 : vector<8x8xf32>
    %799 = arith.addf %792, %798 : vector<8x8xf32>
    %800 = vector.extract_strided_slice %4 {offsets = [13, 4], sizes = [1, 1], strides = [1, 1]} : vector<16x8xf32> to vector<1x1xf32>
    %801 = vector.extract_strided_slice %2 {offsets = [0, 4, 0], sizes = [8, 1, 8], strides = [1, 1, 1]} : vector<8x8x8xbf16> to vector<8x1x8xbf16>
    %802 = vector.shape_cast %801 : vector<8x1x8xbf16> to vector<8x8xbf16>
    %803 = arith.extf %802 : vector<8x8xbf16> to vector<8x8xf32>
    %804 = vector.broadcast %800 : vector<1x1xf32> to vector<8x8xf32>
    %805 = arith.mulf %804, %803 : vector<8x8xf32>
    %806 = arith.addf %799, %805 : vector<8x8xf32>
    %807 = vector.extract_strided_slice %4 {offsets = [13, 5], sizes = [1, 1], strides = [1, 1]} : vector<16x8xf32> to vector<1x1xf32>
    %808 = vector.extract_strided_slice %2 {offsets = [0, 5, 0], sizes = [8, 1, 8], strides = [1, 1, 1]} : vector<8x8x8xbf16> to vector<8x1x8xbf16>
    %809 = vector.shape_cast %808 : vector<8x1x8xbf16> to vector<8x8xbf16>
    %810 = arith.extf %809 : vector<8x8xbf16> to vector<8x8xf32>
    %811 = vector.broadcast %807 : vector<1x1xf32> to vector<8x8xf32>
    %812 = arith.mulf %811, %810 : vector<8x8xf32>
    %813 = arith.addf %806, %812 : vector<8x8xf32>
    %814 = vector.extract_strided_slice %4 {offsets = [13, 6], sizes = [1, 1], strides = [1, 1]} : vector<16x8xf32> to vector<1x1xf32>
    %815 = vector.extract_strided_slice %2 {offsets = [0, 6, 0], sizes = [8, 1, 8], strides = [1, 1, 1]} : vector<8x8x8xbf16> to vector<8x1x8xbf16>
    %816 = vector.shape_cast %815 : vector<8x1x8xbf16> to vector<8x8xbf16>
    %817 = arith.extf %816 : vector<8x8xbf16> to vector<8x8xf32>
    %818 = vector.broadcast %814 : vector<1x1xf32> to vector<8x8xf32>
    %819 = arith.mulf %818, %817 : vector<8x8xf32>
    %820 = arith.addf %813, %819 : vector<8x8xf32>
    %821 = vector.extract_strided_slice %4 {offsets = [13, 7], sizes = [1, 1], strides = [1, 1]} : vector<16x8xf32> to vector<1x1xf32>
    %822 = vector.extract_strided_slice %2 {offsets = [0, 7, 0], sizes = [8, 1, 8], strides = [1, 1, 1]} : vector<8x8x8xbf16> to vector<8x1x8xbf16>
    %823 = vector.shape_cast %822 : vector<8x1x8xbf16> to vector<8x8xbf16>
    %824 = arith.extf %823 : vector<8x8xbf16> to vector<8x8xf32>
    %825 = vector.broadcast %821 : vector<1x1xf32> to vector<8x8xf32>
    %826 = arith.mulf %825, %824 : vector<8x8xf32>
    %827 = arith.addf %820, %826 : vector<8x8xf32>
    %828 = arith.truncf %827 : vector<8x8xf32> to vector<8x8xbf16>
    %cst_33 = arith.constant dense<0.000000e+00> : vector<8x16xf32>
    %829 = tpu.matmul %828, %5, %cst_33 {dimension_numbers = #tpu.dot_dimension_numbers<[1], [0], [0], [1], [0, 0, 1, 1], [], []>} : vector<8x8xbf16>, vector<8x16xbf16>, vector<8x16xf32> -> vector<8x16xf32>
    %830 = arith.truncf %829 : vector<8x16xf32> to vector<8x16xbf16>
    %c0_34 = arith.constant 0 : index
    %c208 = arith.constant 208 : index
    %831 = vector.load %arg12[%c0_34, %c208] : memref<8x256xbf16, #tpu.memory_space<vmem>>, vector<8x16xbf16>
    tpu.vector_store %arg12[%c0_34, %c208], %830 {strides = array<i32>} : memref<8x256xbf16, #tpu.memory_space<vmem>>, vector<8x16xbf16>,
    %832 = vector.extract_strided_slice %4 {offsets = [14, 0], sizes = [1, 1], strides = [1, 1]} : vector<16x8xf32> to vector<1x1xf32>
    %833 = vector.extract_strided_slice %2 {offsets = [0, 0, 0], sizes = [8, 1, 8], strides = [1, 1, 1]} : vector<8x8x8xbf16> to vector<8x1x8xbf16>
    %834 = vector.shape_cast %833 : vector<8x1x8xbf16> to vector<8x8xbf16>
    %835 = arith.extf %834 : vector<8x8xbf16> to vector<8x8xf32>
    %836 = vector.broadcast %832 : vector<1x1xf32> to vector<8x8xf32>
    %837 = arith.mulf %836, %835 : vector<8x8xf32>
    %838 = vector.extract_strided_slice %4 {offsets = [14, 1], sizes = [1, 1], strides = [1, 1]} : vector<16x8xf32> to vector<1x1xf32>
    %839 = vector.extract_strided_slice %2 {offsets = [0, 1, 0], sizes = [8, 1, 8], strides = [1, 1, 1]} : vector<8x8x8xbf16> to vector<8x1x8xbf16>
    %840 = vector.shape_cast %839 : vector<8x1x8xbf16> to vector<8x8xbf16>
    %841 = arith.extf %840 : vector<8x8xbf16> to vector<8x8xf32>
    %842 = vector.broadcast %838 : vector<1x1xf32> to vector<8x8xf32>
    %843 = arith.mulf %842, %841 : vector<8x8xf32>
    %844 = arith.addf %837, %843 : vector<8x8xf32>
    %845 = vector.extract_strided_slice %4 {offsets = [14, 2], sizes = [1, 1], strides = [1, 1]} : vector<16x8xf32> to vector<1x1xf32>
    %846 = vector.extract_strided_slice %2 {offsets = [0, 2, 0], sizes = [8, 1, 8], strides = [1, 1, 1]} : vector<8x8x8xbf16> to vector<8x1x8xbf16>
    %847 = vector.shape_cast %846 : vector<8x1x8xbf16> to vector<8x8xbf16>
    %848 = arith.extf %847 : vector<8x8xbf16> to vector<8x8xf32>
    %849 = vector.broadcast %845 : vector<1x1xf32> to vector<8x8xf32>
    %850 = arith.mulf %849, %848 : vector<8x8xf32>
    %851 = arith.addf %844, %850 : vector<8x8xf32>
    %852 = vector.extract_strided_slice %4 {offsets = [14, 3], sizes = [1, 1], strides = [1, 1]} : vector<16x8xf32> to vector<1x1xf32>
    %853 = vector.extract_strided_slice %2 {offsets = [0, 3, 0], sizes = [8, 1, 8], strides = [1, 1, 1]} : vector<8x8x8xbf16> to vector<8x1x8xbf16>
    %854 = vector.shape_cast %853 : vector<8x1x8xbf16> to vector<8x8xbf16>
    %855 = arith.extf %854 : vector<8x8xbf16> to vector<8x8xf32>
    %856 = vector.broadcast %852 : vector<1x1xf32> to vector<8x8xf32>
    %857 = arith.mulf %856, %855 : vector<8x8xf32>
    %858 = arith.addf %851, %857 : vector<8x8xf32>
    %859 = vector.extract_strided_slice %4 {offsets = [14, 4], sizes = [1, 1], strides = [1, 1]} : vector<16x8xf32> to vector<1x1xf32>
    %860 = vector.extract_strided_slice %2 {offsets = [0, 4, 0], sizes = [8, 1, 8], strides = [1, 1, 1]} : vector<8x8x8xbf16> to vector<8x1x8xbf16>
    %861 = vector.shape_cast %860 : vector<8x1x8xbf16> to vector<8x8xbf16>
    %862 = arith.extf %861 : vector<8x8xbf16> to vector<8x8xf32>
    %863 = vector.broadcast %859 : vector<1x1xf32> to vector<8x8xf32>
    %864 = arith.mulf %863, %862 : vector<8x8xf32>
    %865 = arith.addf %858, %864 : vector<8x8xf32>
    %866 = vector.extract_strided_slice %4 {offsets = [14, 5], sizes = [1, 1], strides = [1, 1]} : vector<16x8xf32> to vector<1x1xf32>
    %867 = vector.extract_strided_slice %2 {offsets = [0, 5, 0], sizes = [8, 1, 8], strides = [1, 1, 1]} : vector<8x8x8xbf16> to vector<8x1x8xbf16>
    %868 = vector.shape_cast %867 : vector<8x1x8xbf16> to vector<8x8xbf16>
    %869 = arith.extf %868 : vector<8x8xbf16> to vector<8x8xf32>
    %870 = vector.broadcast %866 : vector<1x1xf32> to vector<8x8xf32>
    %871 = arith.mulf %870, %869 : vector<8x8xf32>
    %872 = arith.addf %865, %871 : vector<8x8xf32>
    %873 = vector.extract_strided_slice %4 {offsets = [14, 6], sizes = [1, 1], strides = [1, 1]} : vector<16x8xf32> to vector<1x1xf32>
    %874 = vector.extract_strided_slice %2 {offsets = [0, 6, 0], sizes = [8, 1, 8], strides = [1, 1, 1]} : vector<8x8x8xbf16> to vector<8x1x8xbf16>
    %875 = vector.shape_cast %874 : vector<8x1x8xbf16> to vector<8x8xbf16>
    %876 = arith.extf %875 : vector<8x8xbf16> to vector<8x8xf32>
    %877 = vector.broadcast %873 : vector<1x1xf32> to vector<8x8xf32>
    %878 = arith.mulf %877, %876 : vector<8x8xf32>
    %879 = arith.addf %872, %878 : vector<8x8xf32>
    %880 = vector.extract_strided_slice %4 {offsets = [14, 7], sizes = [1, 1], strides = [1, 1]} : vector<16x8xf32> to vector<1x1xf32>
    %881 = vector.extract_strided_slice %2 {offsets = [0, 7, 0], sizes = [8, 1, 8], strides = [1, 1, 1]} : vector<8x8x8xbf16> to vector<8x1x8xbf16>
    %882 = vector.shape_cast %881 : vector<8x1x8xbf16> to vector<8x8xbf16>
    %883 = arith.extf %882 : vector<8x8xbf16> to vector<8x8xf32>
    %884 = vector.broadcast %880 : vector<1x1xf32> to vector<8x8xf32>
    %885 = arith.mulf %884, %883 : vector<8x8xf32>
    %886 = arith.addf %879, %885 : vector<8x8xf32>
    %887 = arith.truncf %886 : vector<8x8xf32> to vector<8x8xbf16>
    %cst_35 = arith.constant dense<0.000000e+00> : vector<8x16xf32>
    %888 = tpu.matmul %887, %5, %cst_35 {dimension_numbers = #tpu.dot_dimension_numbers<[1], [0], [0], [1], [0, 0, 1, 1], [], []>} : vector<8x8xbf16>, vector<8x16xbf16>, vector<8x16xf32> -> vector<8x16xf32>
    %889 = arith.truncf %888 : vector<8x16xf32> to vector<8x16xbf16>
    %c0_36 = arith.constant 0 : index
    %c224 = arith.constant 224 : index
    %890 = vector.load %arg12[%c0_36, %c224] : memref<8x256xbf16, #tpu.memory_space<vmem>>, vector<8x16xbf16>
    tpu.vector_store %arg12[%c0_36, %c224], %889 {strides = array<i32>} : memref<8x256xbf16, #tpu.memory_space<vmem>>, vector<8x16xbf16>,
    %891 = vector.extract_strided_slice %4 {offsets = [15, 0], sizes = [1, 1], strides = [1, 1]} : vector<16x8xf32> to vector<1x1xf32>
    %892 = vector.extract_strided_slice %2 {offsets = [0, 0, 0], sizes = [8, 1, 8], strides = [1, 1, 1]} : vector<8x8x8xbf16> to vector<8x1x8xbf16>
    %893 = vector.shape_cast %892 : vector<8x1x8xbf16> to vector<8x8xbf16>
    %894 = arith.extf %893 : vector<8x8xbf16> to vector<8x8xf32>
    %895 = vector.broadcast %891 : vector<1x1xf32> to vector<8x8xf32>
    %896 = arith.mulf %895, %894 : vector<8x8xf32>
    %897 = vector.extract_strided_slice %4 {offsets = [15, 1], sizes = [1, 1], strides = [1, 1]} : vector<16x8xf32> to vector<1x1xf32>
    %898 = vector.extract_strided_slice %2 {offsets = [0, 1, 0], sizes = [8, 1, 8], strides = [1, 1, 1]} : vector<8x8x8xbf16> to vector<8x1x8xbf16>
    %899 = vector.shape_cast %898 : vector<8x1x8xbf16> to vector<8x8xbf16>
    %900 = arith.extf %899 : vector<8x8xbf16> to vector<8x8xf32>
    %901 = vector.broadcast %897 : vector<1x1xf32> to vector<8x8xf32>
    %902 = arith.mulf %901, %900 : vector<8x8xf32>
    %903 = arith.addf %896, %902 : vector<8x8xf32>
    %904 = vector.extract_strided_slice %4 {offsets = [15, 2], sizes = [1, 1], strides = [1, 1]} : vector<16x8xf32> to vector<1x1xf32>
    %905 = vector.extract_strided_slice %2 {offsets = [0, 2, 0], sizes = [8, 1, 8], strides = [1, 1, 1]} : vector<8x8x8xbf16> to vector<8x1x8xbf16>
    %906 = vector.shape_cast %905 : vector<8x1x8xbf16> to vector<8x8xbf16>
    %907 = arith.extf %906 : vector<8x8xbf16> to vector<8x8xf32>
    %908 = vector.broadcast %904 : vector<1x1xf32> to vector<8x8xf32>
    %909 = arith.mulf %908, %907 : vector<8x8xf32>
    %910 = arith.addf %903, %909 : vector<8x8xf32>
    %911 = vector.extract_strided_slice %4 {offsets = [15, 3], sizes = [1, 1], strides = [1, 1]} : vector<16x8xf32> to vector<1x1xf32>
    %912 = vector.extract_strided_slice %2 {offsets = [0, 3, 0], sizes = [8, 1, 8], strides = [1, 1, 1]} : vector<8x8x8xbf16> to vector<8x1x8xbf16>
    %913 = vector.shape_cast %912 : vector<8x1x8xbf16> to vector<8x8xbf16>
    %914 = arith.extf %913 : vector<8x8xbf16> to vector<8x8xf32>
    %915 = vector.broadcast %911 : vector<1x1xf32> to vector<8x8xf32>
    %916 = arith.mulf %915, %914 : vector<8x8xf32>
    %917 = arith.addf %910, %916 : vector<8x8xf32>
    %918 = vector.extract_strided_slice %4 {offsets = [15, 4], sizes = [1, 1], strides = [1, 1]} : vector<16x8xf32> to vector<1x1xf32>
    %919 = vector.extract_strided_slice %2 {offsets = [0, 4, 0], sizes = [8, 1, 8], strides = [1, 1, 1]} : vector<8x8x8xbf16> to vector<8x1x8xbf16>
    %920 = vector.shape_cast %919 : vector<8x1x8xbf16> to vector<8x8xbf16>
    %921 = arith.extf %920 : vector<8x8xbf16> to vector<8x8xf32>
    %922 = vector.broadcast %918 : vector<1x1xf32> to vector<8x8xf32>
    %923 = arith.mulf %922, %921 : vector<8x8xf32>
    %924 = arith.addf %917, %923 : vector<8x8xf32>
    %925 = vector.extract_strided_slice %4 {offsets = [15, 5], sizes = [1, 1], strides = [1, 1]} : vector<16x8xf32> to vector<1x1xf32>
    %926 = vector.extract_strided_slice %2 {offsets = [0, 5, 0], sizes = [8, 1, 8], strides = [1, 1, 1]} : vector<8x8x8xbf16> to vector<8x1x8xbf16>
    %927 = vector.shape_cast %926 : vector<8x1x8xbf16> to vector<8x8xbf16>
    %928 = arith.extf %927 : vector<8x8xbf16> to vector<8x8xf32>
    %929 = vector.broadcast %925 : vector<1x1xf32> to vector<8x8xf32>
    %930 = arith.mulf %929, %928 : vector<8x8xf32>
    %931 = arith.addf %924, %930 : vector<8x8xf32>
    %932 = vector.extract_strided_slice %4 {offsets = [15, 6], sizes = [1, 1], strides = [1, 1]} : vector<16x8xf32> to vector<1x1xf32>
    %933 = vector.extract_strided_slice %2 {offsets = [0, 6, 0], sizes = [8, 1, 8], strides = [1, 1, 1]} : vector<8x8x8xbf16> to vector<8x1x8xbf16>
    %934 = vector.shape_cast %933 : vector<8x1x8xbf16> to vector<8x8xbf16>
    %935 = arith.extf %934 : vector<8x8xbf16> to vector<8x8xf32>
    %936 = vector.broadcast %932 : vector<1x1xf32> to vector<8x8xf32>
    %937 = arith.mulf %936, %935 : vector<8x8xf32>
    %938 = arith.addf %931, %937 : vector<8x8xf32>
    %939 = vector.extract_strided_slice %4 {offsets = [15, 7], sizes = [1, 1], strides = [1, 1]} : vector<16x8xf32> to vector<1x1xf32>
    %940 = vector.extract_strided_slice %2 {offsets = [0, 7, 0], sizes = [8, 1, 8], strides = [1, 1, 1]} : vector<8x8x8xbf16> to vector<8x1x8xbf16>
    %941 = vector.shape_cast %940 : vector<8x1x8xbf16> to vector<8x8xbf16>
    %942 = arith.extf %941 : vector<8x8xbf16> to vector<8x8xf32>
    %943 = vector.broadcast %939 : vector<1x1xf32> to vector<8x8xf32>
    %944 = arith.mulf %943, %942 : vector<8x8xf32>
    %945 = arith.addf %938, %944 : vector<8x8xf32>
    %946 = arith.truncf %945 : vector<8x8xf32> to vector<8x8xbf16>
    %cst_37 = arith.constant dense<0.000000e+00> : vector<8x16xf32>
    %947 = tpu.matmul %946, %5, %cst_37 {dimension_numbers = #tpu.dot_dimension_numbers<[1], [0], [0], [1], [0, 0, 1, 1], [], []>} : vector<8x8xbf16>, vector<8x16xbf16>, vector<8x16xf32> -> vector<8x16xf32>
    %948 = arith.truncf %947 : vector<8x16xf32> to vector<8x16xbf16>
    %c0_38 = arith.constant 0 : index
    %c240 = arith.constant 240 : index
    %949 = vector.load %arg12[%c0_38, %c240] : memref<8x256xbf16, #tpu.memory_space<vmem>>, vector<8x16xbf16>
    tpu.vector_store %arg12[%c0_38, %c240], %948 {strides = array<i32>} : memref<8x256xbf16, #tpu.memory_space<vmem>>, vector<8x16xbf16>,
    %c0_39 = arith.constant 0 : index
    %c0_40 = arith.constant 0 : index
    %950 = vector.load %arg12[%c0_39, %c0_40] : memref<8x256xbf16, #tpu.memory_space<vmem>>, vector<8x256xbf16>
    %c0_41 = arith.constant 0 : index
    %c0_42 = arith.constant 0 : index
    %c0_43 = arith.constant 0 : index
    %951 = vector.load %arg5[%c0_41, %c0_42, %c0_43] : memref<1x4x256xf32, #tpu.memory_space<vmem>>, vector<1x4x256xf32>
    %952 = vector.shape_cast %951 : vector<1x4x256xf32> to vector<4x256xf32>
    %953 = arith.truncf %952 : vector<4x256xf32> to vector<4x256xbf16>
    %c0_44 = arith.constant 0 : index
    %c0_45 = arith.constant 0 : index
    %954 = vector.load %arg6[%c0_44, %c0_45] : memref<8x8xbf16, #tpu.memory_space<vmem>>, vector<8x8xbf16>
    %cst_46 = arith.constant dense<0.000000e+00> : vector<8x256xf32>
    %955 = tpu.matmul %954, %950, %cst_46 {dimension_numbers = #tpu.dot_dimension_numbers<[1], [0], [0], [1], [0, 0, 1, 1], [], []>} : vector<8x8xbf16>, vector<8x256xbf16>, vector<8x256xf32> -> vector<8x256xf32>
    %c0_47 = arith.constant 0 : index
    %c0_48 = arith.constant 0 : index
    %956 = vector.load %arg7[%c0_47, %c0_48] : memref<8x4xbf16, #tpu.memory_space<vmem>>, vector<8x4xbf16>
    %cst_49 = arith.constant dense<0.000000e+00> : vector<8x256xf32>
    %957 = tpu.matmul %956, %953, %cst_49 {dimension_numbers = #tpu.dot_dimension_numbers<[1], [0], [0], [1], [0, 0, 1, 1], [], []>} : vector<8x4xbf16>, vector<4x256xbf16>, vector<8x256xf32> -> vector<8x256xf32>
    %958 = arith.addf %955, %957 : vector<8x256xf32>
    %c0_50 = arith.constant 0 : index
    %c0_51 = arith.constant 0 : index
    %959 = vector.load %arg8[%c0_50, %c0_51] : memref<8x1xf32, #tpu.memory_space<vmem>>, vector<8x1xf32>
    %960 = vector.broadcast %959 : vector<8x1xf32> to vector<8x256xf32>
    %961 = arith.addf %958, %960 : vector<8x256xf32>
    %cst_52 = arith.constant 0.000000e+00 : f32
    %962 = vector.broadcast %cst_52 : f32 to vector<8x256xf32>
    %963 = arith.maximumf %961, %962 : vector<8x256xf32>
    %c0_53 = arith.constant 0 : index
    %c0_54 = arith.constant 0 : index
    %964 = vector.load %arg9[%c0_53, %c0_54] : memref<8x8xbf16, #tpu.memory_space<vmem>>, vector<8x8xbf16>
    %965 = arith.truncf %963 : vector<8x256xf32> to vector<8x256xbf16>
    %cst_55 = arith.constant dense<0.000000e+00> : vector<8x256xf32>
    %966 = tpu.matmul %964, %965, %cst_55 {dimension_numbers = #tpu.dot_dimension_numbers<[1], [0], [0], [1], [0, 0, 1, 1], [], []>} : vector<8x8xbf16>, vector<8x256xbf16>, vector<8x256xf32> -> vector<8x256xf32>
    %c0_56 = arith.constant 0 : index
    %c0_57 = arith.constant 0 : index
    %967 = vector.load %arg10[%c0_56, %c0_57] : memref<8x1xf32, #tpu.memory_space<vmem>>, vector<8x1xf32>
    %968 = vector.broadcast %967 : vector<8x1xf32> to vector<8x256xf32>
    %969 = arith.addf %966, %968 : vector<8x256xf32>
    %970 = arith.negf %969 : vector<8x256xf32>
    %971 = math.exp %970 : vector<8x256xf32>
    %cst_58 = arith.constant 1.000000e+00 : f32
    %972 = vector.broadcast %cst_58 : f32 to vector<8x256xf32>
    %973 = arith.addf %972, %971 : vector<8x256xf32>
    %974 = arith.divf %972, %973 : vector<8x256xf32>
    %c0_59 = arith.constant 0 : index
    %c0_60 = arith.constant 0 : index
    %c0_61 = arith.constant 0 : index
    %975 = vector.load %arg11[%c0_59, %c0_60, %c0_61] : memref<1x16x256xbf16, #tpu.memory_space<vmem>>, vector<1x8x256xbf16>
    %976 = vector.shape_cast %975 : vector<1x8x256xbf16> to vector<8x256xbf16>
    %977 = vector.shape_cast %950 : vector<8x256xbf16> to vector<1x8x256xbf16>
    tpu.vector_store %arg11[%c0_59, %c0_60, %c0_61], %977 {strides = array<i32>} : memref<1x16x256xbf16, #tpu.memory_space<vmem>>, vector<1x8x256xbf16>,
    %978 = arith.truncf %974 : vector<8x256xf32> to vector<8x256xbf16>
    %c0_62 = arith.constant 0 : index
    %c8 = arith.constant 8 : index
    %c0_63 = arith.constant 0 : index
    %979 = vector.load %arg11[%c0_62, %c8, %c0_63] : memref<1x16x256xbf16, #tpu.memory_space<vmem>>, vector<1x8x256xbf16>
    %980 = vector.shape_cast %979 : vector<1x8x256xbf16> to vector<8x256xbf16>
    %981 = vector.shape_cast %978 : vector<8x256xbf16> to vector<1x8x256xbf16>
    tpu.vector_store %arg11[%c0_62, %c8, %c0_63], %981 {strides = array<i32>} : memref<1x16x256xbf16, #tpu.memory_space<vmem>>, vector<1x8x256xbf16>,
    return
  }
  func.func @transform_0(%arg0: i32, %arg1: i32) -> (i32, i32, i32, i32) {
    %c0_i32 = arith.constant 0 : i32
    %c0_i32_0 = arith.constant 0 : i32
    %c0_i32_1 = arith.constant 0 : i32
    %c0_i32_2 = arith.constant 0 : i32
    return %arg0, %c0_i32, %c0_i32_0, %c0_i32_1 : i32, i32, i32, i32
  }
  func.func @transform_1(%arg0: i32, %arg1: i32) -> (i32, i32) {
    %c0_i32 = arith.constant 0 : i32
    %c0_i32_0 = arith.constant 0 : i32
    return %arg1, %c0_i32 : i32, i32
  }
  func.func @transform_2(%arg0: i32, %arg1: i32) -> (i32, i32) {
    %c0_i32 = arith.constant 0 : i32
    %c0_i32_0 = arith.constant 0 : i32
    %c0_i32_1 = arith.constant 0 : i32
    return %c0_i32, %c0_i32_0 : i32, i32
  }
  func.func @transform_3(%arg0: i32, %arg1: i32) -> (i32, i32, i32) {
    %c0_i32 = arith.constant 0 : i32
    %c0_i32_0 = arith.constant 0 : i32
    return %arg0, %c0_i32, %arg1 : i32, i32, i32
  }
  func.func @transform_4(%arg0: i32, %arg1: i32) -> (i32, i32) {
    %c0_i32 = arith.constant 0 : i32
    %c0_i32_0 = arith.constant 0 : i32
    %c0_i32_1 = arith.constant 0 : i32
    return %c0_i32, %c0_i32_0 : i32, i32
  }
  func.func @transform_5(%arg0: i32, %arg1: i32) -> (i32, i32) {
    %c0_i32 = arith.constant 0 : i32
    %c0_i32_0 = arith.constant 0 : i32
    %c0_i32_1 = arith.constant 0 : i32
    return %c0_i32, %c0_i32_0 : i32, i32
  }
  func.func @transform_6(%arg0: i32, %arg1: i32) -> (i32, i32) {
    %c0_i32 = arith.constant 0 : i32
    %c0_i32_0 = arith.constant 0 : i32
    %c0_i32_1 = arith.constant 0 : i32
    return %c0_i32, %c0_i32_0 : i32, i32
  }
  func.func @transform_7(%arg0: i32, %arg1: i32) -> (i32, i32) {
    %c0_i32 = arith.constant 0 : i32
    %c0_i32_0 = arith.constant 0 : i32
    %c0_i32_1 = arith.constant 0 : i32
    return %c0_i32, %c0_i32_0 : i32, i32
  }
  func.func @transform_8(%arg0: i32, %arg1: i32) -> (i32, i32) {
    %c0_i32 = arith.constant 0 : i32
    %c0_i32_0 = arith.constant 0 : i32
    %c0_i32_1 = arith.constant 0 : i32
    return %c0_i32, %c0_i32_0 : i32, i32
  }
  func.func @transform_9(%arg0: i32, %arg1: i32) -> (i32, i32, i32) {
    %c0_i32 = arith.constant 0 : i32
    %c0_i32_0 = arith.constant 0 : i32
    return %arg0, %c0_i32, %arg1 : i32, i32, i32
  }
}

</mosaic_0001>

<bundles_post_ra>
// kernel: decoder_block_forward.3
= control target key start
LH: loop header
LB: loop body
LE: loop exit
PB: predicated region body
PF: predicated region fallthrough
CT: control target
= control target key end

     0   :  { %s1953_s21 = smov 0   ;;  %s2315_s0 = inlined_call_operand.vmem [shape: bf16[2,16,256], index: 0, kind: input, shape index: {}]   ;;  %s2316_s1 = inlined_call_operand.vmem [shape: bf16[9,8,16], index: 1, kind: input, shape index: {}]   ;;  %s2317_s2 = inlined_call_operand.vmem [shape: f32[8,1], index: 2, kind: input, shape index: {}]   ;;  %s2318_s3 = inlined_call_operand.vmem [shape: bf16[9,8,8], index: 3, kind: input, shape index: {}]   ;;  %s2319_s4 = inlined_call_operand.vmem [shape: f32[8,1], index: 4, kind: input, shape index: {}]   ;;  %s2320_s5 = inlined_call_operand.vmem [shape: f32[1,288], index: 5, kind: input, shape index: {}]   ;;  %s2321_s6 = inlined_call_operand.vmem [shape: bf16[2,8,288], index: 6, kind: output, shape index: {}]  }
   0x1 LB: > { %s1753_s22 = sadd.s32 4294967295, %s1891_s21   ;;  %p1757_p0 = scmp.ge.s32.totalorder %s1891_s21, 1  ;;  %s1891_s21 = sphi %s1953_s21, %s16_s21  }
   0x2   : > { %p212_p1 = scmp.lt.s32.totalorder %s1891_s21, 3 }
   0x4   : > { %p213_p2 = pnand %p1757_p0, %p212_p1 }
   0x5   : > { %p242_p3 = scmp.lt.s32.totalorder (!%p213_p2), %s1753_s22, 1  ;;  %s1893_s27 = smov (!%p213_p2), 21  }
   0x6   : > { %216 = sbr.rel (%p213_p2) target bundleno = 1062 (0x426), region = 44  ;;  %s1894_s28 = smov (!%p213_p2), 19  }
   0x7   : > { %s1895_s29 = smov (!%p213_p2), 23   ;;  %s1896_s30 = smov (!%p213_p2), 25  }
   0x8   : > { %s1897_s7 = smov (!%p213_p2), 27   ;;  %s1898_s8 = smov (!%p213_p2), 31  }
   0x9   : > { %s1899_s9 = smov (!%p213_p2), 29   ;;  %s1900_s10 = smov (!%p213_p2), 33  }
   0xa   : > { %s1901_s11 = smov (!%p213_p2), 35   ;;  %s1902_s12 = smov (!%p213_p2), 37  }
   0xb   : > { %s2325_s22 = smov (!%p242_p3, %s1753_s22), 1  ;;  %s1903_s13 = smov 39   ;;  %vm253_vm0 = vcmask 150528   ;;  %v1909_v32 = vmov 0   ;;  %vm266_vm1 = vcmask 281752   ;;  %vm269_vm2 = vcmask 298264  }
   0xc   : > { %s1845_s23 = sshll.u32 %s2325_s22, 4  ;;  %s1904_s14 = smov 41   ;;  %254 = vst.msk [vmem:[#allocation2] sm:$0xf] %vm253_vm0, %v1909_v32  ;;  %1883 = vset.pattern.permute.xlu2 %v1909_v32  ;;  %1884 = vset.pattern.permute.xlu0 %v1909_v32  ;;  %vm282_vm3 = vcmask 429352   ;;  %vm285_vm4 = vcmask 445864  }
   0xd   : > { %s1967_s26 = scalar_lea.vmem %s2315_s0, %s1845_s23  ;;  %s1905_s15 = smov 45   ;;  %255 = vst.msk [vmem:[#allocation2 + $0xc] sm:$0xf] %vm253_vm0, %v1909_v32  ;;  %vm298_vm5 = vcmask 576952   ;;  %vm301_vm6 = vcmask 593464   ;;  %vm314_vm7 = vcmask 724552  }
   0xe   : > { %v272_v0 = vld [vmem:[%s1967_s26] sm:$0xf]  ;;  %v273_v3 = vld [vmem:[%s1967_s26 + $0x8] sm:$0xf]  ;;  %v391_v15 = vld [vmem:[%s1967_s26 + $0x4] sm:$0xf] }
   0xf   : > { %v256_v1 = vld [vmem:[%s1967_s26] sm:$0xf]  ;;  %276 = vrot.lane.b32.xlu1 %v272_v0, %s1893_s27  ;;  %v257_v4 = vld [vmem:[%s1967_s26 + $0x8] sm:$0xf]  ;;  %v392_v17 = vld [vmem:[%s1967_s26 + $0xc] sm:$0xf] }
  0x10   : > { %260 = vrot.lane.b32.xlu0 %v256_v1, %s1894_s28  ;;  %v288_v2 = vld [vmem:[%s1967_s26] sm:$0xf]  ;;  %v289_v5 = vld [vmem:[%s1967_s26 + $0x8] sm:$0xf]  ;;  %v408_v18 = vld [vmem:[%s1967_s26 + $0xc] sm:$0xf] }
  0x11   : > { %292 = vrot.lane.b32.xlu2 %v288_v2, %s1895_s29  ;;  %v305_v6 = vld [vmem:[%s1967_s26 + $0x8] sm:$0xf]  ;;  %v304_v7 = vld [vmem:[%s1967_s26] sm:$0xf]  ;;  %v407_v19 = vld [vmem:[%s1967_s26 + $0x4] sm:$0xf] }
  0x12   : > { %v320_v8 = vld [vmem:[%s1967_s26] sm:$0xf]  ;;  %v321_v10 = vld [vmem:[%s1967_s26 + $0x8] sm:$0xf]  ;;  %v423_v20 = vld [vmem:[%s1967_s26 + $0x4] sm:$0xf] }
  0x13   : > { %v352_v9 = vld [vmem:[%s1967_s26] sm:$0xf]  ;;  %v353_v11 = vld [vmem:[%s1967_s26 + $0x8] sm:$0xf]  ;;  %v439_v21 = vld [vmem:[%s1967_s26 + $0x4] sm:$0xf] }
  0x14   : > { %v337_v12 = vld [vmem:[%s1967_s26 + $0x8] sm:$0xf]  ;;  %v336_v13 = vld [vmem:[%s1967_s26] sm:$0xf]  ;;  %v424_v22 = vld [vmem:[%s1967_s26 + $0xc] sm:$0xf] }
  0x15   : > { %v375_v14 = vld [vmem:[%s1967_s26] sm:$0xf]  ;;  %v376_v16 = vld [vmem:[%s1967_s26 + $0x8] sm:$0xf]  ;;  %v440_v23 = vld [vmem:[%s1967_s26 + $0xc] sm:$0xf] }
  0x16   : > { %v472_v24 = vld [vmem:[%s1967_s26 + $0xc] sm:$0xf]  ;;  %v471_v25 = vld [vmem:[%s1967_s26 + $0x4] sm:$0xf]  ;;  %s1906_s16 = smov 43   ;;  %s1907_s17 = smov 47  }
  0x17   : > { %278 = vrot.lane.b32.xlu1 %v273_v3, %s1893_s27  ;;  %v455_v26 = vld [vmem:[%s1967_s26 + $0x4] sm:$0xf]  ;;  %v456_v28 = vld [vmem:[%s1967_s26 + $0xc] sm:$0xf]  ;;  %s1908_s18 = smov 49   ;;  %vm317_vm8 = vcmask 741064  }
  0x18   : > { %262 = vrot.lane.b32.xlu0 %v257_v4, %s1894_s28  ;;  %v494_v27 = vld [vmem:[%s1967_s26 + $0x4] sm:$0xf]  ;;  %v495_v29 = vld [vmem:[%s1967_s26 + $0xc] sm:$0xf]  ;;  %1088 = vst.msk [vmem:[#allocation3] sm:$0xf] %vm253_vm0, %v1909_v32 }
  0x19   : > { %294 = vrot.lane.b32.xlu2 %v289_v5, %s1895_s29  ;;  %v511_v30 = vld [vmem:[%s1967_s26 + $0xc] sm:$0xf]  ;;  %v510_v31 = vld [vmem:[%s1967_s26 + $0x4] sm:$0xf]  ;;  %vm330_vm9 = vcmask 872152   ;;  %vm333_vm10 = vcmask 888664  }
  0x1a   : > { %vm346_vm11 = vcmask 1019752   ;;  %vm349_vm12 = vcmask 1036264   ;;  %vm367_vm13 = vcmask 1044472   ;;  %vm368_vm14 = vcmask 121860   ;;  %s1910_s19 = smov 127   ;;  %s1911_s20 = smov 126  }
  0x1b   : > { %vm362_vm15 = vcmask 252928   ;;  %vm369_vm0 = vmor %vm368_vm14, %vm367_vm13  ;;  %vm468_vm13 = vcmask 1019864   ;;  %vm486_vm14 = vcmask 1044456   ;;  %s1912_s23 = smov 110   ;;  %s1913_s24 = smov 109  }
  0x1c   : > { %s1914_s25 = smov 108   ;;  %s1915_s26 = smov 92   ;;  %v1804_v4 = vld [vmem:[%s2316_s1 + $0x20] sm:$0xf] }
  0x1d   : > { %s1916_s27 = smov 91   ;;  %s1917_s29 = smov 90  }
  0x1f   : > { %310 = vrot.lane.b32.xlu1 %v305_v6, %s1896_s30 }
  0x20   : > { %308 = vrot.lane.b32.xlu0 %v304_v7, %s1896_s30 }
  0x21   : > { %324 = vrot.lane.b32.xlu2 %v320_v8, %s1897_s7 }
  0x27   : > { %356 = vrot.lane.b32.xlu1 %v352_v9, %s1898_s8 }
  0x28   : > { %326 = vrot.lane.b32.xlu0 %v321_v10, %s1897_s7 }
  0x29   : > { %358 = vrot.lane.b32.xlu2 %v353_v11, %s1898_s8 }
  0x2f   : > { %342 = vrot.lane.b32.xlu1 %v337_v12, %s1899_s9 }
  0x30   : > { %340 = vrot.lane.b32.xlu0 %v336_v13, %s1899_s9 }
  0x31   : > { %379 = vrot.lane.b32.xlu2 %v375_v14, %s1900_s10 }
  0x37   : > { %395 = vrot.lane.b32.xlu1 %v391_v15, %s1901_s11 }
  0x38   : > { %381 = vrot.lane.b32.xlu0 %v376_v16, %s1900_s10 }
  0x39   : > { %397 = vrot.lane.b32.xlu2 %v392_v17, %s1901_s11 }
  0x3f   : > { %413 = vrot.lane.b32.xlu1 %v408_v18, %s1902_s12 }
  0x40   : > { %411 = vrot.lane.b32.xlu0 %v407_v19, %s1902_s12  ;;  %v529_v19 = vld [vmem:[%s2316_s1] sm:$0xf] }
  0x41   : > { %427 = vrot.lane.b32.xlu2 %v423_v20, %s1903_s13 }
  0x47   : > { %443 = vrot.lane.b32.xlu1 %v439_v21, %s1904_s14 }
  0x48   : > { %429 = vrot.lane.b32.xlu0 %v424_v22, %s1903_s13  ;;  %s1849_s13 = smul.u32 12, %s2325_s22 }
  0x49   : > { %445 = vrot.lane.b32.xlu2 %v440_v23, %s1904_s14 }
  0x4f   : > { %477 = vrot.lane.b32.xlu1 %v472_v24, %s1905_s15  ;;  %v1761_v24 = vld [vmem:[%s2316_s1 + $0x4] sm:$0xf] }
  0x50   : > { %475 = vrot.lane.b32.xlu0 %v471_v25, %s1905_s15 }
  0x51   : > { %459 = vrot.lane.b32.xlu2 %v455_v26, %s1906_s16 }
  0x57   : > { %498 = vrot.lane.b32.xlu1 %v494_v27, %s1907_s17 }
  0x58   : > { %461 = vrot.lane.b32.xlu0 %v456_v28, %s1906_s16 }
  0x59   : > { %500 = vrot.lane.b32.xlu2 %v495_v29, %s1907_s17 }
  0x5f   : > { %516 = vrot.lane.b32.xlu1 %v511_v30, %s1908_s18 }
  0x60   : > { %514 = vrot.lane.b32.xlu0 %v510_v31, %s1908_s18 }
  0x6b   : > { %v293_v33 = vpop.permute.xlu2 %292 }
  0x73   : > { %v295_v34 = vpop.permute.xlu2 %294 }
  0x7b   : > { %v325_v35 = vpop.permute.xlu2 %324 }
  0x81   : > { %v277_v36 = vpop.permute.xlu1 %276 }
  0x82   : > { %v261_v37 = vpop.permute.xlu0 %260 }
  0x83   : > { %267 = vst.msk [vmem:[#allocation2] sm:$0xf] %vm266_vm1, %v261_v37  ;;  %v359_v40 = vpop.permute.xlu2 %358 }
  0x84   : > { %270 = vst.msk [vmem:[#allocation2] sm:$0xf] %vm269_vm2, %v1909_v32  ;;  %v361_v50 = vrot.slane %v359_v40, 4 }
  0x85   : > { %283 = vst.msk [vmem:[#allocation2] sm:$0xf] %vm282_vm3, %v277_v36 }
  0x86   : > { %286 = vst.msk [vmem:[#allocation2] sm:$0xf] %vm285_vm4, %v1909_v32  ;;  %v364_v52 = vsel %vm362_vm15, %v361_v50, %v359_v40 }
  0x87   : > { %299 = vst.msk [vmem:[#allocation2] sm:$0xf] %vm298_vm5, %v293_v33 }
  0x88   : > { %302 = vst.msk [vmem:[#allocation2] sm:$0xf] %vm301_vm6, %v1909_v32 }
  0x89   : > { %v279_v38 = vpop.permute.xlu1 %278 }
  0x8a   : > { %v263_v39 = vpop.permute.xlu0 %262 }
  0x8b   : > { %268 = vst.msk [vmem:[#allocation2 + $0xc] sm:$0xf] %vm266_vm1, %v263_v39  ;;  %v380_v43 = vpop.permute.xlu2 %379  ;;  %vm372_vm1 = vcmask 134264  }
  0x8c   : > { %271 = vst.msk [vmem:[#allocation2 + $0xc] sm:$0xf] %vm269_vm2, %v1909_v32  ;;  %vm385_vm2 = vcmask 265352  }
  0x8d   : > { %284 = vst.msk [vmem:[#allocation2 + $0xc] sm:$0xf] %vm282_vm3, %v279_v38  ;;  %vm388_vm3 = vcmask 281864  }
  0x8e   : > { %287 = vst.msk [vmem:[#allocation2 + $0xc] sm:$0xf] %vm285_vm4, %v1909_v32  ;;  %vm401_vm4 = vcmask 412952  }
  0x8f   : > { %300 = vst.msk [vmem:[#allocation2 + $0xc] sm:$0xf] %vm298_vm5, %v295_v34  ;;  %vm404_vm5 = vcmask 429464  }
  0x90   : > { %303 = vst.msk [vmem:[#allocation2 + $0xc] sm:$0xf] %vm301_vm6, %v1909_v32  ;;  %vm417_vm6 = vcmask 560552  }
  0x91   : > { %v311_v41 = vpop.permute.xlu1 %310 }
  0x92   : > { %v309_v42 = vpop.permute.xlu0 %308  ;;  %316 = vst.msk [vmem:[#allocation2 + $0xc] sm:$0xf] %vm314_vm7, %v311_v41 }
  0x93   : > { %315 = vst.msk [vmem:[#allocation2] sm:$0xf] %vm314_vm7, %v309_v42  ;;  %v398_v46 = vpop.permute.xlu2 %397  ;;  %vm420_vm7 = vcmask 577064  }
  0x94   : > { %318 = vst.msk [vmem:[#allocation2] sm:$0xf] %vm317_vm8, %v1909_v32 }
  0x95   : > { %331 = vst.msk [vmem:[#allocation2] sm:$0xf] %vm330_vm9, %v325_v35  ;;  %v1780_v35 = vld [vmem:[%s2316_s1 + $0x8] sm:$0xf] }
  0x96   : > { %319 = vst.msk [vmem:[#allocation2 + $0xc] sm:$0xf] %vm317_vm8, %v1909_v32  ;;  %vm433_vm8 = vcmask 708152  }
  0x97   : > { %334 = vst.msk [vmem:[#allocation2] sm:$0xf] %vm333_vm10, %v1909_v32 }
  0x99   : > { %v357_v44 = vpop.permute.xlu1 %356 }
  0x9a   : > { %v327_v45 = vpop.permute.xlu0 %326  ;;  %v360_v47 = vrot.slane %v357_v44, 4 }
  0x9b   : > { %332 = vst.msk [vmem:[#allocation2 + $0xc] sm:$0xf] %vm330_vm9, %v327_v45  ;;  %v428_v53 = vpop.permute.xlu2 %427  ;;  %vm436_vm9 = vcmask 724664  }
  0x9c   : > { %335 = vst.msk [vmem:[#allocation2 + $0xc] sm:$0xf] %vm333_vm10, %v1909_v32  ;;  %v363_v51 = vsel %vm362_vm15, %v360_v47, %v357_v44  ;;  %vm449_vm10 = vcmask 855752   ;;  %vm487_vm15 = vcmask 105476  }
  0xa1   : > { %v343_v48 = vpop.permute.xlu1 %342 }
  0xa2   : > { %v341_v49 = vpop.permute.xlu0 %340  ;;  %348 = vst.msk [vmem:[#allocation2 + $0xc] sm:$0xf] %vm346_vm11, %v343_v48 }
  0xa3   : > { %351 = vst.msk [vmem:[#allocation2 + $0xc] sm:$0xf] %vm349_vm12, %v1909_v32  ;;  %v446_v61 = vpop.permute.xlu2 %445 }
  0xa4   : > { %347 = vst.msk [vmem:[#allocation2] sm:$0xf] %vm346_vm11, %v341_v49  ;;  %vm452_vm11 = vcmask 872264  }
  0xa5   : > { %350 = vst.msk [vmem:[#allocation2] sm:$0xf] %vm349_vm12, %v1909_v32  ;;  %vm465_vm12 = vcmask 1003352  }
  0xa6   : > { %370 = vst.msk [vmem:[#allocation2] sm:$0xff] %vm369_vm0, %v363_v51 }
  0xa7   : > { %373 = vst.msk [vmem:[#allocation2 + $0x4] sm:$0xf] %vm372_vm1, %v1909_v32 }
  0xa8   : > { %386 = vst.msk [vmem:[#allocation2 + $0x4] sm:$0xf] %vm385_vm2, %v380_v43 }
  0xa9   : > { %371 = vst.msk [vmem:[#allocation2 + $0xc] sm:$0xff] %vm369_vm0, %v364_v52  ;;  %v396_v54 = vpop.permute.xlu1 %395  ;;  %vm481_vm0 = vcmask 367616  }
  0xaa   : > { %v382_v55 = vpop.permute.xlu0 %381  ;;  %389 = vst.msk [vmem:[#allocation2 + $0x4] sm:$0xf] %vm388_vm3, %v1909_v32 }
  0xab   : > { %402 = vst.msk [vmem:[#allocation2 + $0x4] sm:$0xf] %vm401_vm4, %v396_v54  ;;  %v460_v0 = vpop.permute.xlu2 %459 }
  0xac   : > { %374 = vst.msk [vmem:[#allocation2 + $0x10] sm:$0xf] %vm372_vm1, %v1909_v32  ;;  %vm2050_vm1 = vmor %vm487_vm15, %vm486_vm14  ;;  %vm893_vm14 = vcmask 752640   ;;  %vm952_vm15 = vcmask 744448  }
  0xad   : > { %387 = vst.msk [vmem:[#allocation2 + $0x10] sm:$0xf] %vm385_vm2, %v382_v55  ;;  %v1764_v56 = vld [vmem:[#allocation2] sm:$0xf]  ;;  %vm491_vm2 = vcmask 117864  }
  0xae   : > { %390 = vst.msk [vmem:[#allocation2 + $0x10] sm:$0xf] %vm388_vm3, %v1909_v32  ;;  %vm504_vm3 = vcmask 248952   ;;  %v1792_v55 = vld [vmem:[%s2316_s1 + $0x14] sm:$0xf] }
  0xaf   : > { %403 = vst.msk [vmem:[#allocation2 + $0x10] sm:$0xf] %vm401_vm4, %v398_v46  ;;  %vm507_vm4 = vcmask 265464   ;;  %v1784_v46 = vld [vmem:[%s2316_s1 + $0xc] sm:$0xf] }
  0xb0   : > { %v1847_v57 = vld [vmem:[#allocation2 + $0x8] sm:$0xf0]  ;;  %406 = vst.msk [vmem:[#allocation2 + $0x10] sm:$0xf] %vm404_vm5, %v1909_v32 }
  0xb1   : > { %v2031_v58 = vor.u32 %v1847_v57, %v1764_v56  ;;  %v414_v59 = vpop.permute.xlu1 %413  ;;  %405 = vst.msk [vmem:[#allocation2 + $0x4] sm:$0xf] %vm404_vm5, %v1909_v32  ;;  %vm520_vm5 = vcmask 396552  }
  0xb2   : > { %v412_v60 = vpop.permute.xlu0 %411  ;;  %419 = vst.msk [vmem:[#allocation2 + $0x10] sm:$0xf] %vm417_vm6, %v414_v59 }
  0xb3   : > { %549 = vrot.lane.b32.xlu2 %v2031_v58, %s1910_s19  ;;  %617 = vmatpush.bf16.msra.mxu3 %v2031_v58  ;;  %418 = vst.msk [vmem:[#allocation2 + $0x4] sm:$0xf] %vm417_vm6, %v412_v60  ;;  %v501_v10 = vpop.permute.xlu2 %500  ;;  %vm523_vm6 = vcmask 413064  }
  0xb4   : > { %421 = vst.msk [vmem:[#allocation2 + $0x4] sm:$0xf] %vm420_vm7, %v1909_v32 }
  0xb5   : > { %434 = vst.msk [vmem:[#allocation2 + $0x4] sm:$0xf] %vm433_vm8, %v428_v53  ;;  %v1788_v53 = vld [vmem:[%s2316_s1 + $0x10] sm:$0xf] }
  0xb6   : > { %422 = vst.msk [vmem:[#allocation2 + $0x10] sm:$0xf] %vm420_vm7, %v1909_v32  ;;  %vm526_vm7 = vcmask 568728  }
  0xb7   : > { %437 = vst.msk [vmem:[#allocation2 + $0x4] sm:$0xf] %vm436_vm9, %v1909_v32 }
  0xb9   : > { %v444_v62 = vpop.permute.xlu1 %443 }
  0xba   : > { %v430_v63 = vpop.permute.xlu0 %429  ;;  %450 = vst.msk [vmem:[#allocation2 + $0x4] sm:$0xf] %vm449_vm10, %v444_v62 }
  0xbb   : > { %651 = vrot.lane.b32.xlu2 %v2031_v58, %s1911_s20  ;;  %435 = vst.msk [vmem:[#allocation2 + $0x10] sm:$0xf] %vm433_vm8, %v430_v63  ;;  %vm561_vm8 = vcmask 130048   ;;  %v1796_v63 = vld [vmem:[%s2316_s1 + $0x18] sm:$0xf] }
  0xbc   : > { %438 = vst.msk [vmem:[#allocation2 + $0x10] sm:$0xf] %vm436_vm9, %v1909_v32  ;;  %1777 = vmatmul.msk.bf16.vlgmr.msra.gmra.mxu3 %vm561_vm8, %v529_v19  ;;  %vm555_vm9 = vcmask 1039360  }
  0xbd   : > { %451 = vst.msk [vmem:[#allocation2 + $0x10] sm:$0xf] %vm449_vm10, %v446_v61  ;;  %vm657_vm10 = vcmask 1031168  }
  0xbe   : > { %453 = vst.msk [vmem:[#allocation2 + $0x4] sm:$0xf] %vm452_vm11, %v1909_v32 }
  0xbf   : > { %466 = vst.msk [vmem:[#allocation2 + $0x4] sm:$0xf] %vm465_vm12, %v460_v0 }
  0xc0   : > { %469 = vst.msk [vmem:[#allocation2 + $0x4] sm:$0xf] %vm468_vm13, %v1909_v32 }
  0xc1   : > { %v478_v1 = vpop.permute.xlu1 %477  ;;  %454 = vst.msk [vmem:[#allocation2 + $0x10] sm:$0xf] %vm452_vm11, %v1909_v32  ;;  %vm716_vm11 = vcmask 900096  }
  0xc2   : > { %v476_v2 = vpop.permute.xlu0 %475  ;;  %v480_v6 = vrot.slane %v478_v1, 4 }
  0xc3   : > { %v479_v3 = vrot.slane %v476_v2, 4  ;;  %710 = vrot.lane.b32.xlu2 %v2031_v58, %s1912_s23 }
  0xc4   : > { %v483_v9 = vsel %vm481_vm0, %v480_v6, %v478_v1 }
  0xc5   : > { %v482_v5 = vsel %vm481_vm0, %v479_v3, %v476_v2  ;;  %vm1011_vm0 = vcmask 736256   ;;  %v1800_v3 = vld [vmem:[%s2316_s1 + $0x1c] sm:$0xf] }
  0xc6   : > { %489 = vst.msk [vmem:[#allocation2 + $0x4] sm:$0xff] %vm2050_vm1, %v482_v5  ;;  %v1064_v5 = vld [vmem:[%s2317_s2] sm:$0xff] }
  0xc7   : > { %492 = vst.msk [vmem:[#allocation2 + $0x8] sm:$0xf] %vm491_vm2, %v1909_v32 }
  0xc9   : > { %v499_v7 = vpop.permute.xlu1 %498 }
  0xca   : > { %v462_v8 = vpop.permute.xlu0 %461  ;;  %505 = vst.msk [vmem:[#allocation2 + $0x8] sm:$0xf] %vm504_vm3, %v499_v7 }
  0xcb   : > { %769 = vrot.lane.b32.xlu2 %v2031_v58, %s1913_s24  ;;  %467 = vst.msk [vmem:[#allocation2 + $0x10] sm:$0xf] %vm465_vm12, %v462_v8  ;;  %vm775_vm12 = vcmask 891904  }
  0xcc   : > { %470 = vst.msk [vmem:[#allocation2 + $0x10] sm:$0xf] %vm468_vm13, %v1909_v32  ;;  %vm834_vm13 = vcmask 883712  }
  0xcd   : > { %490 = vst.msk [vmem:[#allocation2 + $0x10] sm:$0xff] %vm2050_vm1, %v483_v9  ;;  %v1846_v13 = vld [vmem:[#allocation2 + $0x4] sm:$0xf] }
  0xce   : > { %493 = vst.msk [vmem:[#allocation2 + $0x14] sm:$0xf] %vm491_vm2, %v1909_v32 }
  0xcf   : > { %506 = vst.msk [vmem:[#allocation2 + $0x14] sm:$0xf] %vm504_vm3, %v501_v10 }
  0xd0   : > { %509 = vst.msk [vmem:[#allocation2 + $0x14] sm:$0xf] %vm507_vm4, %v1909_v32 }
  0xd1   : > { %v517_v11 = vpop.permute.xlu1 %516  ;;  %508 = vst.msk [vmem:[#allocation2 + $0x8] sm:$0xf] %vm507_vm4, %v1909_v32 }
  0xd2   : > { %522 = vst.msk [vmem:[#allocation2 + $0x14] sm:$0xf] %vm520_vm5, %v517_v11  ;;  %v515_v12 = vpop.permute.xlu0 %514 }
  0xd3   : > { %828 = vrot.lane.b32.xlu2 %v2031_v58, %s1914_s25  ;;  %525 = vst.msk [vmem:[#allocation2 + $0x14] sm:$0xf] %vm523_vm6, %v1909_v32 }
  0xd4   : > { %v1766_v14 = vld [vmem:[#allocation2 + $0xc] sm:$0xf0]  ;;  %528 = vst.msk [vmem:[#allocation2 + $0x14] sm:$0xf] %vm526_vm7, %v1909_v32 }
  0xd5   : > { %v1769_v15 = vor.u32 %v1846_v13, %v1766_v14  ;;  %521 = vst.msk [vmem:[#allocation2 + $0x8] sm:$0xf] %vm520_vm5, %v515_v12  ;;  %vm1101_vm5 = vcmask 1043608  }
  0xd6   : > { %524 = vst.msk [vmem:[#allocation2 + $0x8] sm:$0xf] %vm523_vm6, %v1909_v32  ;;  %vm1102_vm6 = vcmask 1047556  }
  0xd7   : > { %527 = vst.msk [vmem:[#allocation2 + $0x8] sm:$0xf] %vm526_vm7, %v1909_v32  ;;  %551 = vrot.lane.b32.xlu0 %v1769_v15, %s1910_s19 }
  0xdb   : > { %887 = vrot.lane.b32.xlu2 %v2031_v58, %s1915_s26  ;;  %v1848_v16 = vld [vmem:[#allocation2 + $0x10] sm:$0xf0] }
  0xde   : > { %v1772_v17 = vld [vmem:[#allocation2 + $0x8] sm:$0xf] }
  0xdf   : > { %v1773_v18 = vor.u32 %v1848_v16, %v1772_v17  ;;  %653 = vrot.lane.b32.xlu0 %v1769_v15, %s1911_s20 }
  0xe1   : > { %553 = vrot.lane.b32.xlu1 %v1773_v18, %s1910_s19 }
  0xe3   : > { %946 = vrot.lane.b32.xlu2 %v2031_v58, %s1916_s27 }
  0xe7   : > { %712 = vrot.lane.b32.xlu0 %v1769_v15, %s1912_s23 }
  0xe9   : > { %655 = vrot.lane.b32.xlu1 %v1773_v18, %s1911_s20 }
  0xeb   : > { %1005 = vrot.lane.b32.xlu2 %v2031_v58, %s1917_s29 }
  0xef   : > { %771 = vrot.lane.b32.xlu0 %v1769_v15, %s1913_s24 }
  0xf1   : > { %714 = vrot.lane.b32.xlu1 %v1773_v18, %s1912_s23 }
  0xf3   : > { %1067 = vperm.xlu2 %1883, %v1064_v5  }
  0xf7   : > { %830 = vrot.lane.b32.xlu0 %v1769_v15, %s1914_s25 }
  0xf9   : > { %773 = vrot.lane.b32.xlu1 %v1773_v18, %s1913_s24 }
  0xff   : > { %889 = vrot.lane.b32.xlu0 %v1769_v15, %s1915_s26 }
 0x101   : > { %832 = vrot.lane.b32.xlu1 %v1773_v18, %s1914_s25 }
 0x107   : > { %948 = vrot.lane.b32.xlu0 %v1769_v15, %s1916_s27 }
 0x109   : > { %891 = vrot.lane.b32.xlu1 %v1773_v18, %s1915_s26 }
 0x10d   : > { %v550_v20 = vpop.permute.xlu2 %549 }
 0x10f   : > { %1007 = vrot.lane.b32.xlu0 %v1769_v15, %s1917_s29 }
 0x111   : > { %950 = vrot.lane.b32.xlu1 %v1773_v18, %s1916_s27 }
 0x115   : > { %v652_v23 = vpop.permute.xlu2 %651 }
 0x119   : > { %1009 = vrot.lane.b32.xlu1 %v1773_v18, %s1917_s29 }
 0x11d   : > { %v711_v29 = vpop.permute.xlu2 %710 }
 0x125   : > { %v770_v36 = vpop.permute.xlu2 %769 }
 0x12d   : > { %v829_v41 = vpop.permute.xlu2 %828 }
 0x135   : > { %v888_v50 = vpop.permute.xlu2 %887 }
 0x13d   : > { %v947_v57 = vpop.permute.xlu2 %946 }
 0x13f   : > { %v619_v6 = vpop.f32.mrf.mxu3 }
 0x145   : > { %v1006_v62 = vpop.permute.xlu2 %1005 }
 0x147   : > { %v621_v7 = vpop.f32.mrf.mxu3 }
 0x149   : > { %v552_v21 = vpop.permute.xlu0 %551 }
 0x14a   : > { %v556_v22 = vsel %vm555_vm9, %v550_v20, %v552_v21 }
 0x14b   : > { %572 = vmatpush.bf16.msra.mxu0 %v556_v22 }
 0x14e   : > { %1774 = vmatmul.msk.bf16.vlgmr.msra.gmra.mxu0 %vm561_vm8, %v1761_v24 }
 0x14f   : > { %630 = vmatpush.bf16.msrb.mxu0 %v1769_v15 }
 0x151   : > { %v654_v25 = vpop.permute.xlu0 %653 }
 0x152   : > { %v658_v26 = vsel %vm657_vm10, %v652_v23, %v654_v25 }
 0x153   : > { %v554_v27 = vpop.permute.xlu1 %553 }
 0x154   : > { %598 = vmatpush.bf16.msra.mxu2 %v554_v27  ;;  %v557_v28 = vsel %vm555_vm9, %v552_v21, %v554_v27 }
 0x155   : > { %585 = vmatpush.bf16.msra.mxu1 %v557_v28 }
 0x157   : > { %1776 = vmatmul.msk.bf16.vlgmr.msra.gmra.mxu2 %vm561_vm8, %v1761_v24 }
 0x158   : > { %673 = vmatpush.bf16.msrb.mxu2 %v658_v26  ;;  %1775 = vmatmul.msk.bf16.vlgmr.msra.gmra.mxu1 %vm561_vm8, %v1761_v24 }
 0x159   : > { %643 = vmatpush.bf16.msrb.mxu1 %v1773_v18  ;;  %v713_v30 = vpop.permute.xlu0 %712 }
 0x15a   : > { %v717_v31 = vsel %vm716_vm11, %v711_v29, %v713_v30 }
 0x15b   : > { %v656_v33 = vpop.permute.xlu1 %655 }
 0x15c   : > { %v659_v34 = vsel %vm657_vm10, %v654_v25, %v656_v33  ;;  %699 = vmatpush.bf16.msra.mxu0 %v656_v33 }
 0x15d   : > { %732 = vmatpush.bf16.msra.mxu1 %v717_v31  ;;  %686 = vmatpush.bf16.msrb.mxu3 %v659_v34 }
 0x15e   : > { %1778 = vmatmul.msk.bf16.vlgmr.msrb.gmra.mxu0 %vm561_vm8, %v529_v19 }
 0x160   : > { %1782 = vmatmul.msk.bf16.vlgmr.msrb.gmra.mxu3 %vm561_vm8, %v1780_v35 }
 0x161   : > { %v772_v37 = vpop.permute.xlu0 %771 }
 0x162   : > { %v776_v38 = vsel %vm775_vm12, %v770_v36, %v772_v37 }
 0x163   : > { %v715_v39 = vpop.permute.xlu1 %714  ;;  %791 = vmatpush.bf16.msrb.mxu0 %v776_v38 }
 0x164   : > { %v718_v40 = vsel %vm716_vm11, %v713_v30, %v715_v39  ;;  %758 = vmatpush.bf16.msra.mxu3 %v715_v39 }
 0x165   : > { %745 = vmatpush.bf16.msra.mxu2 %v718_v40 }
 0x167   : > { %1781 = vmatmul.msk.bf16.vlgmr.msrb.gmra.mxu2 %vm561_vm8, %v1780_v35 }
 0x168   : > { %1779 = vmatmul.msk.bf16.vlgmr.msrb.gmra.mxu1 %vm561_vm8, %v529_v19 }
 0x169   : > { %v831_v42 = vpop.permute.xlu0 %830 }
 0x16a   : > { %v835_v43 = vsel %vm834_vm13, %v829_v41, %v831_v42 }
 0x16b   : > { %v774_v44 = vpop.permute.xlu1 %773  ;;  %850 = vmatpush.bf16.msrb.mxu3 %v835_v43 }
 0x16c   : > { %v777_v45 = vsel %vm775_vm12, %v772_v37, %v774_v44  ;;  %817 = vmatpush.bf16.msrb.mxu2 %v774_v44 }
 0x16d   : > { %804 = vmatpush.bf16.msrb.mxu1 %v777_v45 }
 0x16e   : > { %1783 = vmatmul.msk.bf16.vlgmr.msra.gmra.mxu0 %vm561_vm8, %v1780_v35 }
 0x170   : > { %1787 = vmatmul.msk.bf16.vlgmr.msra.gmra.mxu3 %vm561_vm8, %v1784_v46 }
 0x171   : > { %v890_v49 = vpop.permute.xlu0 %889 }
 0x172   : > { %v894_v51 = vsel %vm893_vm14, %v888_v50, %v890_v49 }
 0x173   : > { %v833_v47 = vpop.permute.xlu1 %832 }
 0x174   : > { %v836_v48 = vsel %vm834_vm13, %v831_v42, %v833_v47 }
 0x175   : > { %863 = vmatpush.bf16.msra.mxu0 %v836_v48 }
 0x177   : > { %1786 = vmatmul.msk.bf16.vlgmr.msra.gmra.mxu2 %vm561_vm8, %v1784_v46 }
 0x178   : > { %909 = vmatpush.bf16.msra.mxu2 %v894_v51  ;;  %1785 = vmatmul.msk.bf16.vlgmr.msra.gmra.mxu1 %vm561_vm8, %v1784_v46 }
 0x179   : > { %876 = vmatpush.bf16.msra.mxu1 %v833_v47  ;;  %v949_v56 = vpop.permute.xlu0 %948 }
 0x17a   : > { %v953_v60 = vsel %vm952_vm15, %v947_v57, %v949_v56 }
 0x17b   : > { %v892_v52 = vpop.permute.xlu1 %891 }
 0x17c   : > { %v895_v54 = vsel %vm893_vm14, %v890_v49, %v892_v52 }
 0x17d   : > { %922 = vmatpush.bf16.msra.mxu3 %v895_v54 }
 0x17e   : > { %1789 = vmatmul.msk.bf16.vlgmr.msrb.gmra.mxu0 %vm561_vm8, %v1788_v53 }
 0x17f   : > { %935 = vmatpush.bf16.msrb.mxu0 %v892_v52 }
 0x180   : > { %1793 = vmatmul.msk.bf16.vlgmr.msrb.gmra.mxu3 %vm561_vm8, %v1792_v55 }
 0x181   : > { %v1008_v61 = vpop.permute.xlu0 %1007 }
 0x182   : > { %v1012_v0 = vsel %vm1011_vm0, %v1006_v62, %v1008_v61 }
 0x183   : > { %v951_v58 = vpop.permute.xlu1 %950 }
 0x184   : > { %994 = vmatpush.bf16.msrb.mxu3 %v951_v58  ;;  %v954_v59 = vsel %vm952_vm15, %v949_v56, %v951_v58 }
 0x187   : > { %1791 = vmatmul.msk.bf16.vlgmr.msrb.gmra.mxu2 %vm561_vm8, %v1788_v53 }
 0x188   : > { %981 = vmatpush.bf16.msrb.mxu2 %v954_v59  ;;  %1790 = vmatmul.msk.bf16.vlgmr.msrb.gmra.mxu1 %vm561_vm8, %v1788_v53 }
 0x189   : > { %968 = vmatpush.bf16.msrb.mxu1 %v953_v60 }
 0x18b   : > { %v1010_v1 = vpop.permute.xlu1 %1009 }
 0x18c   : > { %v1013_v2 = vsel %vm1011_vm0, %v1008_v61, %v1010_v1 }
 0x18e   : > { %1794 = vmatmul.msk.bf16.vlgmr.msra.gmra.mxu0 %vm561_vm8, %v1792_v55 }
 0x18f   : > { %1027 = vmatpush.bf16.msra.mxu0 %v1012_v0 }
 0x190   : > { %1798 = vmatmul.msk.bf16.vlgmr.msra.gmra.mxu3 %vm561_vm8, %v1796_v63 }
 0x197   : > { %1797 = vmatmul.msk.bf16.vlgmr.msra.gmra.mxu2 %vm561_vm8, %v1796_v63 }
 0x198   : > { %1795 = vmatmul.msk.bf16.vlgmr.msra.gmra.mxu1 %vm561_vm8, %v1792_v55  ;;  %1053 = vmatpush.bf16.msra.mxu2 %v1010_v1  ;;  %v1062_v1 = vld [vmem:[%s2320_s5] sm:$0x7] }
 0x199   : > { %1040 = vmatpush.bf16.msra.mxu1 %v1013_v2  ;;  %vm1063_vm1 = vcmp.gt.f32.partialorder %v1062_v1, 0.5 }
 0x19e   : > { %1799 = vmatmul.msk.bf16.vlgmr.msrb.gmra.mxu0 %vm561_vm8, %v1796_v63 }
 0x1a0   : > { %1803 = vmatmul.msk.bf16.vlgmr.msrb.gmra.mxu3 %vm561_vm8, %v1800_v3 }
 0x1a7   : > { %1802 = vmatmul.msk.bf16.vlgmr.msrb.gmra.mxu2 %vm561_vm8, %v1800_v3 }
 0x1a8   : > { %1801 = vmatmul.msk.bf16.vlgmr.msrb.gmra.mxu1 %vm561_vm8, %v1800_v3 }
 0x1ae   : > { %1805 = vmatmul.msk.bf16.vlgmr.msra.gmra.mxu0 %vm561_vm8, %v1804_v4 }
 0x1b7   : > { %1807 = vmatmul.msk.bf16.vlgmr.msra.gmra.mxu2 %vm561_vm8, %v1804_v4 }
 0x1b8   : > { %1806 = vmatmul.msk.bf16.vlgmr.msra.gmra.mxu1 %vm561_vm8, %v1804_v4  ;;  %vm1096_vm8 = vcmask 154624  }
 0x1cb   : > { %v574_v8 = vpop.f32.mrf.mxu0 }
 0x1cc   : > { %v620_v9 = vadd.f32 %v619_v6, %v574_v8  ;;  %v1068_v8 = vpop.permute.xlu2 %1067 }
 0x1d3   : > { %v576_v10 = vpop.f32.mrf.mxu0 }
 0x1d5   : > { %v587_v11 = vpop.f32.mrf.mxu1 }
 0x1da   : > { %v600_v12 = vpop.f32.mrf.mxu2 }
 0x1db   : > { %v632_v13 = vpop.f32.mrf.mxu0 }
 0x1dc   : > { %v633_v14 = vadd.f32 %v632_v13, %v587_v11  ;;  %v1076_v11 = vsel %vm1063_vm1, 1, %v1909_v32  ;;  %vm1103_vm1 = vmor %vm1102_vm6, %vm1101_vm5 }
 0x1dd   : > { %v589_v15 = vpop.f32.mrf.mxu1 }
 0x1e2   : > { %v602_v16 = vpop.f32.mrf.mxu2 }
 0x1e3   : > { %v688_v17 = vpop.f32.mrf.mxu3  ;;  %v634_v18 = vpop.f32.mrf.mxu0 }
 0x1e4   : > { %v706_v19 = vadd.f32 %v688_v17, %v633_v14  ;;  %v1077_v18 = vperm.slane %v1076_v11, 0 }
 0x1e5   : > { %v645_v20 = vpop.f32.mrf.mxu1 }
 0x1e6   : > { %v646_v21 = vadd.f32 %v645_v20, %v600_v12  ;;  %vm1080_vm2 = vcmp.eq.s32.totalorder %v1077_v18, 1 }
 0x1ea   : > { %v675_v22 = vpop.f32.mrf.mxu2 }
 0x1eb   : > { %v690_v23 = vpop.f32.mrf.mxu3  ;;  %v701_v24 = vpop.f32.mrf.mxu0  ;;  %v705_v55 = vadd.f32 %v675_v22, %v620_v9 }
 0x1ec   : > { %v707_v25 = vadd.f32 %v701_v24, %v646_v21 }
 0x1ed   : > { %v647_v26 = vpop.f32.mrf.mxu1 }
 0x1f2   : > { %v677_v27 = vpop.f32.mrf.mxu2 }
 0x1f3   : > { %v760_v28 = vpop.f32.mrf.mxu3  ;;  %v703_v29 = vpop.f32.mrf.mxu0  ;;  %v1079_v27 = vperm.slane %v1076_v11, 2 }
 0x1f4   : > { %v766_v7 = vadd.f32 %v760_v28, %v707_v25 }
 0x1f5   : > { %v734_v30 = vpop.f32.mrf.mxu1  ;;  %vm1082_vm4 = vcmp.eq.s32.totalorder %v1079_v27, 1  ;;  %v1819_v27 = vld [vmem:[%s2318_s3 + $0xc] sm:$0xf] }
 0x1f6   : > { %v764_v57 = vadd.f32 %v734_v30, %v705_v55 }
 0x1fa   : > { %v747_v31 = vpop.f32.mrf.mxu2 }
 0x1fb   : > { %v762_v33 = vpop.f32.mrf.mxu3  ;;  %v793_v34 = vpop.f32.mrf.mxu0  ;;  %v765_v63 = vadd.f32 %v747_v31, %v706_v19  ;;  %v1078_v19 = vperm.slane %v1076_v11, 1 }
 0x1fc   : > { %v823_v58 = vadd.f32 %v793_v34, %v764_v57 }
 0x1fd   : > { %v736_v35 = vpop.f32.mrf.mxu1  ;;  %vm1081_vm3 = vcmp.eq.s32.totalorder %v1078_v19, 1 }
 0x202   : > { %v749_v36 = vpop.f32.mrf.mxu2 }
 0x203   : > { %v852_v37 = vpop.f32.mrf.mxu3  ;;  %v795_v38 = vpop.f32.mrf.mxu0 }
 0x204   : > { %v882_v59 = vadd.f32 %v852_v37, %v823_v58 }
 0x205   : > { %v806_v39 = vpop.f32.mrf.mxu1 }
 0x206   : > { %v824_v3 = vadd.f32 %v806_v39, %v765_v63 }
 0x20a   : > { %v819_v40 = vpop.f32.mrf.mxu2 }
 0x20b   : > { %v854_v41 = vpop.f32.mrf.mxu3  ;;  %v865_v42 = vpop.f32.mrf.mxu0  ;;  %v825_v12 = vadd.f32 %v819_v40, %v766_v7 }
 0x20c   : > { %v883_v5 = vadd.f32 %v865_v42, %v824_v3 }
 0x20d   : > { %v808_v43 = vpop.f32.mrf.mxu1 }
 0x212   : > { %v821_v44 = vpop.f32.mrf.mxu2 }
 0x213   : > { %v924_v45 = vpop.f32.mrf.mxu3  ;;  %v867_v46 = vpop.f32.mrf.mxu0 }
 0x214   : > { %v942_v9 = vadd.f32 %v924_v45, %v883_v5 }
 0x215   : > { %v878_v47 = vpop.f32.mrf.mxu1 }
 0x216   : > { %v884_v16 = vadd.f32 %v878_v47, %v825_v12 }
 0x21a   : > { %v911_v48 = vpop.f32.mrf.mxu2 }
 0x21b   : > { %v926_v49 = vpop.f32.mrf.mxu3  ;;  %v937_v50 = vpop.f32.mrf.mxu0  ;;  %v941_v0 = vadd.f32 %v911_v48, %v882_v59 }
 0x21c   : > { %v943_v21 = vadd.f32 %v937_v50, %v884_v16 }
 0x21d   : > { %v880_v51 = vpop.f32.mrf.mxu1 }
 0x222   : > { %v913_v52 = vpop.f32.mrf.mxu2 }
 0x223   : > { %v996_v53 = vpop.f32.mrf.mxu3  ;;  %v939_v54 = vpop.f32.mrf.mxu0 }
 0x224   : > { %v1002_v24 = vadd.f32 %v996_v53, %v943_v21  ;;  %v1108_v53 = vld [vmem:[%s2318_s3] sm:$0xf] }
 0x225   : > { %v970_v56 = vpop.f32.mrf.mxu1 }
 0x226   : > { %v1000_v4 = vadd.f32 %v970_v56, %v941_v0 }
 0x22a   : > { %v983_v60 = vpop.f32.mrf.mxu2 }
 0x22b   : > { %v1029_v61 = vpop.f32.mrf.mxu0  ;;  %v998_v62 = vpop.f32.mrf.mxu3  ;;  %v1001_v14 = vadd.f32 %v983_v60, %v942_v9  ;;  %v1808_v60 = vld [vmem:[%s2318_s3 + $0x4] sm:$0xf] }
 0x22c   : > { %v1059_v6 = vadd.f32 %v1029_v61, %v1000_v4 }
 0x22d   : > { %v972_v2 = vpop.f32.mrf.mxu1 }
 0x22e   : > { %v1070_v15 = vadd.f32 %v1068_v8, %v1059_v6 }
 0x230   : > { %v1073_v22 = vmax.f32 %v1070_v15, 0.0 }
 0x232   : > { %v985_v10 = vpop.f32.mrf.mxu2  ;;  %v1083_v29 = vsel %vm1080_vm2, %v1073_v22, 0.0  ;;  %vm1105_vm2 = vcmask 412672  }
 0x233   : > { %v1031_v13 = vpop.f32.mrf.mxu0  ;;  %v1815_v10 = vld [vmem:[%s2318_s3 + $0x8] sm:$0xf] }
 0x235   : > { %v1042_v17 = vpop.f32.mrf.mxu1 }
 0x236   : > { %v1060_v20 = vadd.f32 %v1042_v17, %v1001_v14 }
 0x238   : > { %v1071_v23 = vadd.f32 %v1068_v8, %v1060_v20 }
 0x23a   : > { %v1074_v25 = vmax.f32 %v1071_v23, 0.0  ;;  %v1055_v26 = vpop.f32.mrf.mxu2 }
 0x23b   : > { %v1061_v28 = vadd.f32 %v1055_v26, %v1002_v24 }
 0x23c   : > { %v1084_v30 = vsel %vm1081_vm3, %v1074_v25, 0.0  ;;  %vm1133_vm3 = vcmask 1043456  }
 0x23d   : > { %v1072_v31 = vadd.f32 %v1068_v8, %v1061_v28  ;;  %v1044_v33 = vpop.f32.mrf.mxu1  ;;  %v1086_v34 = vpack.c.bf16 %v1084_v30, %v1083_v29 }
 0x23f   : > { %v1075_v35 = vmax.f32 %v1072_v31, 0.0  ;;  %1091 = vrot.lane.b32.xlu0 %v1086_v34, %s1894_s28 }
 0x241   : > { %v1085_v36 = vsel %vm1082_vm4, %v1075_v35, 0.0 }
 0x242   : > { %v1057_v37 = vpop.f32.mrf.mxu2  ;;  %v1087_v38 = vpack.c.bf16 %v1085_v36, %v1085_v36 }
 0x244   : > { %1093 = vrot.lane.b32.xlu1 %v1087_v38, %s1894_s28 }
 0x2b1   : > { %v1092_v39 = vpop.permute.xlu0 %1091 }
 0x2b2   : > { %v1095_v40 = vrot.slane %v1092_v39, 4 }
 0x2b4   : > { %v1097_v41 = vsel %vm1096_vm8, %v1095_v40, %v1092_v39 }
 0x2b5   : > { %1104 = vst.msk [vmem:[#allocation3] sm:$0xff] %vm1103_vm1, %v1097_v41 }
 0x2b6   : > { %v1094_v42 = vpop.permute.xlu1 %1093 }
 0x2b7   : > { %v1098_v43 = vsel %vm1096_vm8, %v1095_v40, %v1094_v42 }
 0x2b8   : > { %1106 = vst.msk [vmem:[#allocation3 + $0x8] sm:$0xf] %vm1105_vm2, %v1098_v43  ;;  %v1827_v43 = vld [vmem:[%s2318_s3 + $0x14] sm:$0xf] }
 0x2b9   : > { %1107 = vst.msk [vmem:[#allocation3 + $0x8] sm:$0xf] %vm526_vm7, %v1909_v32  ;;  %v1681_v32 = vld [vmem:[%s2319_s4] sm:$0xff]  ;;  %vm1129_vm7 = vcmask 64512  }
 0x2bc   : > { %v1109_v44 = vld [vmem:[#allocation3] sm:$0xff] }
 0x2bd   : > { %v1115_v45 = vunpack.c.l.b16 %v1109_v44  ;;  %v1116_v46 = vunpack.c.h.b16 %v1109_v44  ;;  %v1823_v44 = vld [vmem:[%s2318_s3 + $0x10] sm:$0xf] }
 0x2bf   : > { %v1118_v47 = vpack.c.b16 %v1115_v45, %v1115_v45  ;;  %v1119_v48 = vpack.c.b16 %v1116_v46, %v1116_v46 }
 0x2c0   : > { %v1110_v49 = vld [vmem:[#allocation3 + $0x8] sm:$0xf] }
 0x2c1   : > { %v1117_v50 = vunpack.c.l.b16 %v1110_v49  ;;  %1123 = vrot.lane.b32.xlu0 %v1119_v48, %s1910_s19  ;;  %1121 = vrot.lane.b32.xlu2 %v1118_v47, %s1910_s19  ;;  %v1186_v51 = vsel %vm1133_vm3, %v1118_v47, 0  ;;  %v1189_v59 = vsel %vm1133_vm3, %v1119_v48, 0 }
 0x2c2   : > { %1201 = vmatpush.bf16.msrb.mxu2 %v1186_v51 }
 0x2c3   : > { %v1120_v52 = vpack.c.b16 %v1117_v50, %v1117_v50 }
 0x2c5   : > { %1125 = vrot.lane.b32.xlu1 %v1120_v52, %s1910_s19  ;;  %1812 = vmatmul.msk.bf16.vlgmr.msrb.gmra.mxu2 %vm1129_vm7, %v1108_v53  ;;  %v1192_v0 = vsel %vm1133_vm3, %v1120_v52, 0  ;;  %s251_s19 = scalar_lea.vmem %s2321_s6, %s1849_s13 }
 0x2c9   : > { %1237 = vrot.lane.b32.xlu0 %v1119_v48, %s1911_s20  ;;  %1235 = vrot.lane.b32.xlu2 %v1118_v47, %s1911_s20 }
 0x2cd   : > { %1239 = vrot.lane.b32.xlu1 %v1120_v52, %s1911_s20 }
 0x2d1   : > { %1301 = vrot.lane.b32.xlu0 %v1119_v48, %s1912_s23  ;;  %1299 = vrot.lane.b32.xlu2 %v1118_v47, %s1912_s23 }
 0x2d5   : > { %1303 = vrot.lane.b32.xlu1 %v1120_v52, %s1912_s23 }
 0x2d9   : > { %1365 = vrot.lane.b32.xlu0 %v1119_v48, %s1913_s24  ;;  %1363 = vrot.lane.b32.xlu2 %v1118_v47, %s1913_s24 }
 0x2dd   : > { %1367 = vrot.lane.b32.xlu1 %v1120_v52, %s1913_s24 }
 0x2e1   : > { %1429 = vrot.lane.b32.xlu0 %v1119_v48, %s1914_s25  ;;  %1427 = vrot.lane.b32.xlu2 %v1118_v47, %s1914_s25 }
 0x2e5   : > { %1431 = vrot.lane.b32.xlu1 %v1120_v52, %s1914_s25 }
 0x2e9   : > { %1493 = vrot.lane.b32.xlu0 %v1119_v48, %s1915_s26  ;;  %1491 = vrot.lane.b32.xlu2 %v1118_v47, %s1915_s26 }
 0x2ed   : > { %1495 = vrot.lane.b32.xlu1 %v1120_v52, %s1915_s26 }
 0x2f1   : > { %1557 = vrot.lane.b32.xlu0 %v1119_v48, %s1916_s27  ;;  %1555 = vrot.lane.b32.xlu2 %v1118_v47, %s1916_s27 }
 0x2f5   : > { %1559 = vrot.lane.b32.xlu1 %v1120_v52, %s1916_s27 }
 0x2f9   : > { %1621 = vrot.lane.b32.xlu0 %v1119_v48, %s1917_s29  ;;  %1619 = vrot.lane.b32.xlu2 %v1118_v47, %s1917_s29 }
 0x2fd   : > { %1623 = vrot.lane.b32.xlu1 %v1120_v52, %s1917_s29 }
 0x301   : > { %1684 = vperm.xlu2 %1883, %v1681_v32  }
 0x31b   : > { %v1122_v54 = vpop.permute.xlu2 %1121 }
 0x323   : > { %v1236_v55 = vpop.permute.xlu2 %1235 }
 0x32b   : > { %v1300_v4 = vpop.permute.xlu2 %1299 }
 0x333   : > { %v1124_v56 = vpop.permute.xlu0 %1123  ;;  %v1364_v14 = vpop.permute.xlu2 %1363 }
 0x334   : > { %v1127_v57 = vsel %vm555_vm9, %v1122_v54, %v1124_v56 }
 0x335   : > { %v1135_v58 = vsel %vm1133_vm3, %v1127_v57, 0 }
 0x336   : > { %1150 = vmatpush.bf16.msra.mxu3 %v1135_v58 }
 0x337   : > { %v1126_v61 = vpop.permute.xlu1 %1125 }
 0x338   : > { %v1128_v62 = vsel %vm555_vm9, %v1124_v56, %v1126_v61  ;;  %v1141_v63 = vsel %vm1133_vm3, %v1126_v61, 0  ;;  %vm1696_vm9 = vcmask 257024  }
 0x339   : > { %v1138_v1 = vsel %vm1133_vm3, %v1128_v62, 0  ;;  %1809 = vmatmul.msk.bf16.vlgmr.msra.gmra.mxu3 %vm1129_vm7, %v1808_v60  ;;  %1176 = vmatpush.bf16.msrb.mxu1 %v1141_v63  ;;  %v1835_v62 = vld [vmem:[%s2318_s3 + $0x1c] sm:$0xf]  ;;  %v1839_v63 = vld [vmem:[%s2318_s3 + $0x20] sm:$0xf] }
 0x33a   : > { %1214 = vmatpush.bf16.msrb.mxu3 %v1189_v59  ;;  %1163 = vmatpush.bf16.msrb.mxu0 %v1138_v1 }
 0x33b   : > { %v1238_v2 = vpop.permute.xlu0 %1237  ;;  %v1428_v25 = vpop.permute.xlu2 %1427 }
 0x33c   : > { %v1241_v3 = vsel %vm657_vm10, %v1236_v55, %v1238_v2  ;;  %1811 = vmatmul.msk.bf16.vlgmr.msrb.gmra.mxu1 %vm1129_vm7, %v1808_v60 }
 0x33d   : > { %v1247_v5 = vsel %vm1133_vm3, %v1241_v3, 0  ;;  %1810 = vmatmul.msk.bf16.vlgmr.msrb.gmra.mxu0 %vm1129_vm7, %v1808_v60 }
 0x33e   : > { %1227 = vmatpush.bf16.msra.mxu0 %v1192_v0  ;;  %1262 = vmatpush.bf16.msra.mxu1 %v1247_v5 }
 0x33f   : > { %v1240_v6 = vpop.permute.xlu1 %1239 }
 0x340   : > { %v1242_v7 = vsel %vm657_vm10, %v1238_v2, %v1240_v6  ;;  %v1253_v8 = vsel %vm1133_vm3, %v1240_v6, 0 }
 0x341   : > { %v1250_v9 = vsel %vm1133_vm3, %v1242_v7, 0  ;;  %1288 = vmatpush.bf16.msra.mxu3 %v1253_v8 }
 0x342   : > { %1275 = vmatpush.bf16.msra.mxu2 %v1250_v9 }
 0x343   : > { %v1302_v11 = vpop.permute.xlu0 %1301  ;;  %v1492_v35 = vpop.permute.xlu2 %1491 }
 0x344   : > { %v1305_v12 = vsel %vm716_vm11, %v1300_v4, %v1302_v11 }
 0x345   : > { %v1311_v13 = vsel %vm1133_vm3, %v1305_v12, 0  ;;  %1817 = vmatmul.msk.bf16.vlgmr.msra.gmra.mxu2 %vm1129_vm7, %v1815_v10 }
 0x346   : > { %1326 = vmatpush.bf16.msrb.mxu0 %v1311_v13 }
 0x347   : > { %v1304_v15 = vpop.permute.xlu1 %1303 }
 0x348   : > { %v1306_v16 = vsel %vm716_vm11, %v1302_v11, %v1304_v15  ;;  %v1317_v17 = vsel %vm1133_vm3, %v1304_v15, 0  ;;  %v1203_v0 = vpop.f32.mrf.mxu2 }
 0x349   : > { %v1314_v18 = vsel %vm1133_vm3, %v1306_v16, 0  ;;  %1813 = vmatmul.msk.bf16.vlgmr.msrb.gmra.mxu3 %vm1129_vm7, %v1108_v53  ;;  %1352 = vmatpush.bf16.msrb.mxu2 %v1317_v17 }
 0x34a   : > { %1339 = vmatpush.bf16.msrb.mxu1 %v1314_v18 }
 0x34b   : > { %v1366_v19 = vpop.permute.xlu0 %1365  ;;  %v1556_v49 = vpop.permute.xlu2 %1555 }
 0x34c   : > { %v1369_v20 = vsel %vm775_vm12, %v1364_v14, %v1366_v19  ;;  %1816 = vmatmul.msk.bf16.vlgmr.msra.gmra.mxu1 %vm1129_vm7, %v1815_v10 }
 0x34d   : > { %v1375_v21 = vsel %vm1133_vm3, %v1369_v20, 0  ;;  %1814 = vmatmul.msk.bf16.vlgmr.msra.gmra.mxu0 %vm1129_vm7, %v1108_v53  ;;  %v1831_v53 = vld [vmem:[%s2318_s3 + $0x18] sm:$0xf] }
 0x34e   : > { %1390 = vmatpush.bf16.msrb.mxu3 %v1375_v21 }
 0x34f   : > { %v1368_v22 = vpop.permute.xlu1 %1367 }
 0x350   : > { %v1370_v23 = vsel %vm775_vm12, %v1366_v19, %v1368_v22  ;;  %v1381_v24 = vsel %vm1133_vm3, %v1368_v22, 0  ;;  %v1205_v1 = vpop.f32.mrf.mxu2 }
 0x351   : > { %v1378_v26 = vsel %vm1133_vm3, %v1370_v23, 0  ;;  %1416 = vmatpush.bf16.msra.mxu1 %v1381_v24 }
 0x352   : > { %1403 = vmatpush.bf16.msra.mxu0 %v1378_v26 }
 0x353   : > { %v1430_v28 = vpop.permute.xlu0 %1429  ;;  %v1620_v55 = vpop.permute.xlu2 %1619 }
 0x354   : > { %v1433_v29 = vsel %vm834_vm13, %v1428_v25, %v1430_v28 }
 0x355   : > { %v1439_v30 = vsel %vm1133_vm3, %v1433_v29, 0  ;;  %1822 = vmatmul.msk.bf16.vlgmr.msrb.gmra.mxu2 %vm1129_vm7, %v1819_v27 }
 0x356   : > { %1454 = vmatpush.bf16.msra.mxu2 %v1439_v30 }
 0x357   : > { %v1432_v31 = vpop.permute.xlu1 %1431 }
 0x358   : > { %v1434_v33 = vsel %vm834_vm13, %v1430_v28, %v1432_v31  ;;  %v1445_v36 = vsel %vm1133_vm3, %v1432_v31, 0 }
 0x359   : > { %v1442_v34 = vsel %vm1133_vm3, %v1434_v33, 0  ;;  %1818 = vmatmul.msk.bf16.vlgmr.msra.gmra.mxu3 %vm1129_vm7, %v1815_v10 }
 0x35a   : > { %1467 = vmatpush.bf16.msra.mxu3 %v1442_v34 }
 0x35b   : > { %v1494_v37 = vpop.permute.xlu0 %1493 }
 0x35c   : > { %v1497_v38 = vsel %vm893_vm14, %v1492_v35, %v1494_v37  ;;  %1821 = vmatmul.msk.bf16.vlgmr.msrb.gmra.mxu1 %vm1129_vm7, %v1819_v27 }
 0x35d   : > { %v1503_v39 = vsel %vm1133_vm3, %v1497_v38, 0  ;;  %1820 = vmatmul.msk.bf16.vlgmr.msrb.gmra.mxu0 %vm1129_vm7, %v1819_v27 }
 0x35e   : > { %1518 = vmatpush.bf16.msrb.mxu1 %v1503_v39  ;;  %1480 = vmatpush.bf16.msrb.mxu0 %v1445_v36 }
 0x35f   : > { %v1496_v40 = vpop.permute.xlu1 %1495 }
 0x360   : > { %v1498_v41 = vsel %vm893_vm14, %v1494_v37, %v1496_v40  ;;  %v1509_v45 = vsel %vm1133_vm3, %v1496_v40, 0 }
 0x361   : > { %v1506_v42 = vsel %vm1133_vm3, %v1498_v41, 0 }
 0x362   : > { %1531 = vmatpush.bf16.msrb.mxu2 %v1506_v42 }
 0x363   : > { %v1558_v46 = vpop.permute.xlu0 %1557 }
 0x364   : > { %v1561_v51 = vsel %vm952_vm15, %v1556_v49, %v1558_v46 }
 0x365   : > { %1828 = vmatmul.msk.bf16.vlgmr.msra.gmra.mxu2 %vm1129_vm7, %v1827_v43  ;;  %v1567_v32 = vsel %vm1133_vm3, %v1561_v51, 0 }
 0x367   : > { %v1560_v47 = vpop.permute.xlu1 %1559 }
 0x368   : > { %v1573_v48 = vsel %vm1133_vm3, %v1560_v47, 0  ;;  %v1562_v50 = vsel %vm952_vm15, %v1558_v46, %v1560_v47 }
 0x369   : > { %1824 = vmatmul.msk.bf16.vlgmr.msrb.gmra.mxu3 %vm1129_vm7, %v1823_v44  ;;  %1608 = vmatpush.bf16.msra.mxu2 %v1573_v48  ;;  %v1570_v52 = vsel %vm1133_vm3, %v1562_v50, 0 }
 0x36a   : > { %1544 = vmatpush.bf16.msrb.mxu3 %v1509_v45 }
 0x36b   : > { %v1622_v54 = vpop.permute.xlu0 %1621 }
 0x36c   : > { %1826 = vmatmul.msk.bf16.vlgmr.msra.gmra.mxu1 %vm1129_vm7, %v1823_v44  ;;  %v1625_v56 = vsel %vm1011_vm0, %v1620_v55, %v1622_v54 }
 0x36d   : > { %1595 = vmatpush.bf16.msra.mxu1 %v1570_v52  ;;  %1825 = vmatmul.msk.bf16.vlgmr.msra.gmra.mxu0 %vm1129_vm7, %v1823_v44  ;;  %v1631_v58 = vsel %vm1133_vm3, %v1625_v56, 0 }
 0x36e   : > { %1582 = vmatpush.bf16.msra.mxu0 %v1567_v32 }
 0x36f   : > { %v1624_v57 = vpop.permute.xlu1 %1623 }
 0x370   : > { %v1626_v59 = vsel %vm1011_vm0, %v1622_v54, %v1624_v57  ;;  %v1637_v60 = vsel %vm1133_vm3, %v1624_v57, 0 }
 0x371   : > { %v1634_v61 = vsel %vm1133_vm3, %v1626_v59, 0 }
 0x375   : > { %1833 = vmatmul.msk.bf16.vlgmr.msrb.gmra.mxu2 %vm1129_vm7, %v1831_v53 }
 0x379   : > { %1829 = vmatmul.msk.bf16.vlgmr.msra.gmra.mxu3 %vm1129_vm7, %v1827_v43 }
 0x37a   : > { %1646 = vmatpush.bf16.msra.mxu3 %v1631_v58 }
 0x37c   : > { %1832 = vmatmul.msk.bf16.vlgmr.msrb.gmra.mxu1 %vm1129_vm7, %v1831_v53 }
 0x37d   : > { %1830 = vmatmul.msk.bf16.vlgmr.msrb.gmra.mxu0 %vm1129_vm7, %v1827_v43  ;;  %1672 = vmatpush.bf16.msrb.mxu1 %v1637_v60 }
 0x37e   : > { %1659 = vmatpush.bf16.msrb.mxu0 %v1634_v61 }
 0x385   : > { %1838 = vmatmul.msk.bf16.vlgmr.msra.gmra.mxu2 %vm1129_vm7, %v1835_v62 }
 0x389   : > { %1834 = vmatmul.msk.bf16.vlgmr.msrb.gmra.mxu3 %vm1129_vm7, %v1831_v53 }
 0x38c   : > { %1837 = vmatmul.msk.bf16.vlgmr.msra.gmra.mxu1 %vm1129_vm7, %v1835_v62 }
 0x38d   : > { %1836 = vmatmul.msk.bf16.vlgmr.msra.gmra.mxu0 %vm1129_vm7, %v1835_v62 }
 0x399   : > { %1840 = vmatmul.msk.bf16.vlgmr.msra.gmra.mxu3 %vm1129_vm7, %v1839_v63 }
 0x39c   : > { %1842 = vmatmul.msk.bf16.vlgmr.msrb.gmra.mxu1 %vm1129_vm7, %v1839_v63 }
 0x39d   : > { %1841 = vmatmul.msk.bf16.vlgmr.msrb.gmra.mxu0 %vm1129_vm7, %v1839_v63 }
 0x3b9   : > { %v1178_v2 = vpop.f32.mrf.mxu1 }
 0x3ba   : > { %v1165_v3 = vpop.f32.mrf.mxu0 }
 0x3bc   : > { %v1152_v4 = vpop.f32.mrf.mxu3 }
 0x3bd   : > { %v1204_v5 = vadd.f32 %v1203_v0, %v1152_v4 }
 0x3c1   : > { %v1180_v6 = vpop.f32.mrf.mxu1 }
 0x3c2   : > { %v1167_v7 = vpop.f32.mrf.mxu0 }
 0x3c3   : > { %v1685_v7 = vpop.permute.xlu2 %1684 }
 0x3c4   : > { %v1154_v8 = vpop.f32.mrf.mxu3 }
 0x3c8   : > { %v1277_v9 = vpop.f32.mrf.mxu2 }
 0x3c9   : > { %v1264_v10 = vpop.f32.mrf.mxu1 }
 0x3ca   : > { %v1294_v11 = vadd.f32 %v1264_v10, %v1204_v5  ;;  %v1229_v12 = vpop.f32.mrf.mxu0 }
 0x3cb   : > { %v1230_v13 = vadd.f32 %v1229_v12, %v1178_v2 }
 0x3cc   : > { %v1216_v14 = vpop.f32.mrf.mxu3 }
 0x3cd   : > { %v1217_v15 = vadd.f32 %v1216_v14, %v1165_v3 }
 0x3cf   : > { %v1295_v16 = vadd.f32 %v1277_v9, %v1217_v15 }
 0x3d0   : > { %v1279_v17 = vpop.f32.mrf.mxu2 }
 0x3d1   : > { %v1266_v18 = vpop.f32.mrf.mxu1 }
 0x3d2   : > { %v1231_v19 = vpop.f32.mrf.mxu0 }
 0x3d4   : > { %v1218_v20 = vpop.f32.mrf.mxu3 }
 0x3d8   : > { %v1354_v21 = vpop.f32.mrf.mxu2 }
 0x3d9   : > { %v1341_v22 = vpop.f32.mrf.mxu1 }
 0x3da   : > { %v1328_v23 = vpop.f32.mrf.mxu0  ;;  %v1359_v52 = vadd.f32 %v1341_v22, %v1295_v16 }
 0x3db   : > { %v1358_v54 = vadd.f32 %v1328_v23, %v1294_v11 }
 0x3dc   : > { %v1290_v24 = vpop.f32.mrf.mxu3 }
 0x3dd   : > { %v1296_v48 = vadd.f32 %v1290_v24, %v1230_v13 }
 0x3df   : > { %v1360_v51 = vadd.f32 %v1354_v21, %v1296_v48 }
 0x3e0   : > { %v1356_v25 = vpop.f32.mrf.mxu2 }
 0x3e1   : > { %v1343_v26 = vpop.f32.mrf.mxu1 }
 0x3e2   : > { %v1330_v27 = vpop.f32.mrf.mxu0 }
 0x3e4   : > { %v1292_v28 = vpop.f32.mrf.mxu3 }
 0x3e8   : > { %v1456_v29 = vpop.f32.mrf.mxu2 }
 0x3e9   : > { %v1418_v30 = vpop.f32.mrf.mxu1 }
 0x3ea   : > { %v1405_v31 = vpop.f32.mrf.mxu0  ;;  %v1424_v32 = vadd.f32 %v1418_v30, %v1360_v51 }
 0x3eb   : > { %v1423_v55 = vadd.f32 %v1405_v31, %v1359_v52 }
 0x3ec   : > { %v1392_v33 = vpop.f32.mrf.mxu3 }
 0x3ed   : > { %v1422_v59 = vadd.f32 %v1392_v33, %v1358_v54 }
 0x3ef   : > { %v1486_v63 = vadd.f32 %v1456_v29, %v1422_v59 }
 0x3f0   : > { %v1458_v34 = vpop.f32.mrf.mxu2 }
 0x3f1   : > { %v1420_v35 = vpop.f32.mrf.mxu1 }
 0x3f2   : > { %v1407_v36 = vpop.f32.mrf.mxu0 }
 0x3f4   : > { %v1394_v37 = vpop.f32.mrf.mxu3 }
 0x3f8   : > { %v1533_v38 = vpop.f32.mrf.mxu2 }
 0x3f9   : > { %v1520_v39 = vpop.f32.mrf.mxu1 }
 0x3fa   : > { %v1482_v40 = vpop.f32.mrf.mxu0  ;;  %v1550_v2 = vadd.f32 %v1520_v39, %v1486_v63 }
 0x3fb   : > { %v1488_v57 = vadd.f32 %v1482_v40, %v1424_v32 }
 0x3fc   : > { %v1469_v41 = vpop.f32.mrf.mxu3 }
 0x3fd   : > { %v1487_v60 = vadd.f32 %v1469_v41, %v1423_v55 }
 0x3ff   : > { %v1551_v0 = vadd.f32 %v1533_v38, %v1487_v60 }
 0x400   : > { %v1535_v42 = vpop.f32.mrf.mxu2 }
 0x401   : > { %v1522_v43 = vpop.f32.mrf.mxu1 }
 0x402   : > { %v1484_v44 = vpop.f32.mrf.mxu0 }
 0x404   : > { %v1471_v45 = vpop.f32.mrf.mxu3 }
 0x408   : > { %v1610_v46 = vpop.f32.mrf.mxu2 }
 0x409   : > { %v1597_v47 = vpop.f32.mrf.mxu1 }
 0x40a   : > { %v1584_v49 = vpop.f32.mrf.mxu0  ;;  %v1615_v3 = vadd.f32 %v1597_v47, %v1551_v0 }
 0x40b   : > { %v1614_v8 = vadd.f32 %v1584_v49, %v1550_v2 }
 0x40c   : > { %v1546_v50 = vpop.f32.mrf.mxu3 }
 0x40d   : > { %v1552_v61 = vadd.f32 %v1546_v50, %v1488_v57 }
 0x40f   : > { %v1616_v1 = vadd.f32 %v1610_v46, %v1552_v61 }
 0x410   : > { %v1612_v53 = vpop.f32.mrf.mxu2 }
 0x411   : > { %v1599_v56 = vpop.f32.mrf.mxu1 }
 0x412   : > { %v1586_v58 = vpop.f32.mrf.mxu0 }
 0x414   : > { %v1548_v62 = vpop.f32.mrf.mxu3 }
 0x419   : > { %v1674_v4 = vpop.f32.mrf.mxu1 }
 0x41a   : > { %v1680_v5 = vadd.f32 %v1674_v4, %v1616_v1  ;;  %v1661_v6 = vpop.f32.mrf.mxu0 }
 0x41b   : > { %v1679_v9 = vadd.f32 %v1661_v6, %v1615_v3 }
 0x41c   : > { %v1689_v10 = vadd.f32 %v1685_v7, %v1680_v5  ;;  %v1648_v11 = vpop.f32.mrf.mxu3 }
 0x41d   : > { %v1688_v12 = vadd.f32 %v1685_v7, %v1679_v9  ;;  %v1678_v13 = vadd.f32 %v1648_v11, %v1614_v8 }
 0x41e   : > { %v1692_v14 = vmax.f32 %v1689_v10, 0.0 }
 0x41f   : > { %v1687_v15 = vadd.f32 %v1685_v7, %v1678_v13  ;;  %v1691_v17 = vmax.f32 %v1688_v12, 0.0 }
 0x420   : > { %v1694_v16 = vpack.c.bf16 %v1692_v14, %v1692_v14 }
 0x421   : > { %v1690_v18 = vmax.f32 %v1687_v15, 0.0  ;;  %v1676_v19 = vpop.f32.mrf.mxu1 }
 0x422   : > { %1697 = vst.msk [vmem:[%s251_s19 + $0x8] sm:$0xf] %vm1696_vm9, %v1694_v16  ;;  %v1663_v20 = vpop.f32.mrf.mxu0 }
 0x423   : > { %v1693_v21 = vpack.c.bf16 %v1691_v17, %v1690_v18 }
 0x424   : > { %v1650_v22 = vpop.f32.mrf.mxu3 }
 0x425   : > { %1695 = vst [vmem:[%s251_s19] sm:$0xff] %v1693_v21 }
 0x426 PF: > { %s16_s21 = sadd.s32 1, %s1891_s21  }
 0x427   : > { %p13_p4 = scmp.ge.s32.totalorder %s16_s21, 4  }
 0x429   :  { %15 = sbr.rel (!%p13_p4) target bundleno = 1 (0x1), region = 90 }

// kernel: decoder_block_forward.2
= control target key start
LH: loop header
LB: loop body
LE: loop exit
PB: predicated region body
PF: predicated region fallthrough
CT: control target
= control target key end

     0   :  { %s7661_s30 = smov 0   ;;  %s7663_s10 = smov 0   ;;  %s10497_s0 = inlined_call_operand.vmem [shape: f32[2,8,8,8], index: 0, kind: input, shape index: {}]   ;;  %s10498_s1 = inlined_call_operand.vmem [shape: bf16[16,8], index: 1, kind: input, shape index: {}]   ;;  %s10499_s2 = inlined_call_operand.vmem [shape: bf16[8,16], index: 2, kind: input, shape index: {}]   ;;  %s10500_s3 = inlined_call_operand.vmem [shape: f32[2,4,256], index: 3, kind: input, shape index: {}]   ;;  %s10501_s4 = inlined_call_operand.vmem [shape: bf16[8,8], index: 4, kind: input, shape index: {}]   ;;  %s10502_s5 = inlined_call_operand.vmem [shape: bf16[8,4], index: 5, kind: input, shape index: {}]   ;;  %s10503_s6 = inlined_call_operand.vmem [shape: f32[8,1], index: 6, kind: input, shape index: {}]   ;;  %s10504_s7 = inlined_call_operand.vmem [shape: bf16[8,8], index: 7, kind: input, shape index: {}]   ;;  %s10505_s8 = inlined_call_operand.vmem [shape: f32[8,1], index: 8, kind: input, shape index: {}]   ;;  %s10506_s9 = inlined_call_operand.vmem [shape: bf16[2,16,256], index: 9, kind: output, shape index: {}]  }
   0x1   :  { %s7665_s11 = smov 0  }
   0x2 LB: > { %s31_s12 = sadd.s32 1, %s7590_s10  ;;  %p6967_p0 = scmp.ge.s32.totalorder %s7594_s11, 1  ;;  %s7594_s11 = sphi %s7665_s11, %s19_s11   ;;  %s7590_s10 = sphi %s7663_s10, %s10970_s10   ;;  %s7586_s30 = sphi %s7661_s30, %s10969_s30  }
   0x3   : > { %p33_p1 = scmp.ge.s32.totalorder %s31_s12, 2  ;;  %p329_p2 = scmp.lt.s32.totalorder %s7594_s11, 3 }
   0x5   : > { %s10972_s12 = smov (%p33_p1, %s31_s12), 0  ;;  %p330_p3 = pnand %p6967_p0, %p329_p2 }
   0x7   : > { %333 = sbr.rel (%p330_p3) target bundleno = 1641 (0x669), region = 56 }
   0xc   : > { %v7004_v0 = vld [vmem:[%s10498_s1] sm:$0xff]   ;;  %s7596_s15 = smov 125   ;;  %s7597_s16 = smov 127   ;;  %vm821_vm0 = vcmask 1043456   ;;  %vm796_vm1 = vcmask 1041409   ;;  %vm799_vm2 = vcmask 1042434  }
   0xd   : > { %v7684_v1 = vunpack.c.l.bf16 %v7004_v0  ;;  %s7598_s17 = smov 123   ;;  %s7599_s18 = smov 124   ;;  %v7733_v13 = vunpack.c.h.bf16 %v7004_v0  ;;  %vm802_vm3 = vcmask 1043459   ;;  %vm805_vm4 = vcmask 1044484  }
   0xe   : > { %s7600_s19 = smov 126   ;;  %s7601_s20 = smov 122   ;;  %vm808_vm5 = vcmask 1045509   ;;  %vm811_vm6 = vcmask 1046534   ;;  %vm814_vm7 = vcmask 1047559   ;;  %vm817_vm8 = vcmask 64512  }
   0xf   : > { %v841_v2 = vrot.slane %v7684_v1, 1  ;;  %7007 = vpush %v7684_v1  ;;  %v1230_v4 = vrot.slane %v7684_v1, 2  ;;  %v1619_v5 = vrot.slane %v7684_v1, 3  ;;  %s7602_s21 = smov 121   ;;  %v2008_v7 = vrot.slane %v7684_v1, 4  ;;  %p383_p4 = scmp.lt.s32.totalorder %s7586_s30, 1 }
  0x10   : > { %v2397_v8 = vrot.slane %v7684_v1, 5  ;;  %v2786_v10 = vrot.slane %v7684_v1, 6  ;;  %v10512_v11 = vrot.slane %v7684_v1, 7  ;;  %v10511_v14 = vrot.slane %v7733_v13, 1 }
  0x11   : > { %v7312_v3 = vpack.i.bf16 %v841_v2, %v7684_v1  ;;  %v7337_v6 = vpack.i.bf16 %v1619_v5, %v1230_v4  ;;  %v10510_v16 = vrot.slane %v7733_v13, 2  ;;  %v10509_v17 = vrot.slane %v7733_v13, 3  ;;  %s10974_s30 = smov (!%p383_p4, %s7586_s30), 1 }
  0x12   : > { %v7372_v9 = vpack.i.bf16 %v2397_v8, %v2008_v7  ;;  %v7412_v12 = vpack.i.bf16 %v10512_v11, %v2786_v10  ;;  %v7442_v15 = vpack.i.bf16 %v10511_v14, %v7733_v13  ;;  %v10508_v20 = vrot.slane %v7733_v13, 4  ;;  %s7000_s22 = sshll.u32 %s10974_s30, 6 }
  0x13   : > { %7313 = vrot.lane.b32.xlu1 %v7312_v3, %s7596_s15  ;;  %7303 = vrot.lane.b32.xlu0 %v7312_v3, %s7597_s16  ;;  %v7477_v18 = vpack.i.bf16 %v10509_v17, %v10510_v16  ;;  %v10507_v21 = vrot.slane %v7733_v13, 5  ;;  %v7777_v28 = vrot.slane %v7733_v13, 6  ;;  %v7780_v29 = vrot.slane %v7733_v13, 7  ;;  %s387_s25 = scalar_lea.vmem %s10497_s0, %s7000_s22 }
  0x14   : > { %7323 = vrot.lane.b32.xlu2 %v7312_v3, %s7598_s17  ;;  %vm839_vm9 = vcmask 125952   ;;  %vm1228_vm10 = vcmask 257152   ;;  %vm1617_vm11 = vcmask 388352   ;;  %vm2006_vm12 = vcmask 519552  }
  0x15   : > { %v7517_v22 = vpack.i.bf16 %v10507_v21, %v10508_v20  ;;  %10601 = vst [vmem:[#allocation3_spill] sm:$0xff] %v7777_v28  ;;  %v7547_v35 = vpack.i.bf16 %v7780_v29, %v7777_v28  ;;  %vm2395_vm13 = vcmask 650752   ;;  %vm2784_vm14 = vcmask 781952  }
  0x16   : > { %10602 = vst [vmem:[#allocation4_spill] sm:$0xff] %v7780_v29  ;;  %vm3173_vm15 = vcmask 913152  }
  0x1b   : > { %7318 = vrot.lane.b32.xlu1 %v7312_v3, %s7599_s18  ;;  %7308 = vrot.lane.b32.xlu0 %v7312_v3, %s7600_s19 }
  0x1c   : > { %7328 = vrot.lane.b32.xlu2 %v7312_v3, %s7601_s20 }
  0x23   : > { %7338 = vrot.lane.b32.xlu1 %v7337_v6, %s7597_s16  ;;  %7333 = vrot.lane.b32.xlu0 %v7312_v3, %s7602_s21 }
  0x24   : > { %7343 = vrot.lane.b32.xlu2 %v7337_v6, %s7600_s19 }
  0x2b   : > { %7353 = vrot.lane.b32.xlu1 %v7337_v6, %s7599_s18  ;;  %7348 = vrot.lane.b32.xlu0 %v7337_v6, %s7596_s15 }
  0x2c   : > { %7358 = vrot.lane.b32.xlu2 %v7337_v6, %s7598_s17 }
  0x33   : > { %7368 = vrot.lane.b32.xlu1 %v7337_v6, %s7602_s21  ;;  %7363 = vrot.lane.b32.xlu0 %v7337_v6, %s7601_s20 }
  0x34   : > { %7373 = vrot.lane.b32.xlu2 %v7372_v9, %s7597_s16 }
  0x3b   : > { %7383 = vrot.lane.b32.xlu1 %v7372_v9, %s7596_s15  ;;  %7378 = vrot.lane.b32.xlu0 %v7372_v9, %s7600_s19 }
  0x3c   : > { %7388 = vrot.lane.b32.xlu2 %v7372_v9, %s7599_s18 }
  0x40   : > { %s7008_s26 = spop %7007 }
  0x43   : > { %7398 = vrot.lane.b32.xlu1 %v7372_v9, %s7601_s20  ;;  %7393 = vrot.lane.b32.xlu0 %v7372_v9, %s7598_s17 }
  0x44   : > { %7403 = vrot.lane.b32.xlu2 %v7372_v9, %s7602_s21 }
  0x4b   : > { %7413 = vrot.lane.b32.xlu1 %v7412_v12, %s7600_s19  ;;  %7408 = vrot.lane.b32.xlu0 %v7412_v12, %s7597_s16 }
  0x4c   : > { %7418 = vrot.lane.b32.xlu2 %v7412_v12, %s7596_s15 }
  0x53   : > { %7428 = vrot.lane.b32.xlu1 %v7412_v12, %s7598_s17  ;;  %7423 = vrot.lane.b32.xlu0 %v7412_v12, %s7599_s18 }
  0x54   : > { %7433 = vrot.lane.b32.xlu2 %v7412_v12, %s7601_s20 }
  0x5b   : > { %7443 = vrot.lane.b32.xlu1 %v7442_v15, %s7597_s16  ;;  %7438 = vrot.lane.b32.xlu0 %v7412_v12, %s7602_s21  ;;  %v415_v12 = vld [vmem:[%s387_s25] sm:$0xff] }
  0x5c   : > { %7448 = vrot.lane.b32.xlu2 %v7442_v15, %s7600_s19 }
  0x63   : > { %7458 = vrot.lane.b32.xlu1 %v7442_v15, %s7599_s18  ;;  %7453 = vrot.lane.b32.xlu0 %v7442_v15, %s7596_s15 }
  0x64   : > { %7463 = vrot.lane.b32.xlu2 %v7442_v15, %s7598_s17 }
  0x6b   : > { %7473 = vrot.lane.b32.xlu1 %v7442_v15, %s7602_s21  ;;  %7468 = vrot.lane.b32.xlu0 %v7442_v15, %s7601_s20 }
  0x6c   : > { %7478 = vrot.lane.b32.xlu2 %v7477_v18, %s7597_s16 }
  0x6e   : > { %v7324_v19 = vpop.permute.xlu2 %7323 }
  0x6f   : > { %v7325_v37 = vunpack.i.l.bf16 %v7324_v19  ;;  %v7326_v46 = vunpack.i.h.bf16 %v7324_v19  ;;  %v417_v19 = vld [vmem:[%s387_s25 + $0x10] sm:$0xff] }
  0x73   : > { %7488 = vrot.lane.b32.xlu1 %v7477_v18, %s7596_s15  ;;  %7483 = vrot.lane.b32.xlu0 %v7477_v18, %s7600_s19 }
  0x74   : > { %7493 = vrot.lane.b32.xlu2 %v7477_v18, %s7599_s18 }
  0x76   : > { %v7329_v23 = vpop.permute.xlu2 %7328 }
  0x77   : > { %v7330_v36 = vunpack.i.l.bf16 %v7329_v23  ;;  %v7331_v48 = vunpack.i.h.bf16 %v7329_v23 }
  0x7b   : > { %7503 = vrot.lane.b32.xlu1 %v7477_v18, %s7601_s20  ;;  %7498 = vrot.lane.b32.xlu0 %v7477_v18, %s7598_s17 }
  0x7c   : > { %7508 = vrot.lane.b32.xlu2 %v7477_v18, %s7602_s21  ;;  %v416_v18 = vld [vmem:[%s387_s25 + $0x8] sm:$0xff] }
  0x7e   : > { %v7772_v27 = vpop.permute.xlu2 %7343 }
  0x7f   : > { %v7345_v53 = vunpack.i.l.bf16 %v7772_v27  ;;  %v7346_v63 = vunpack.i.h.bf16 %v7772_v27 }
  0x83   : > { %7518 = vrot.lane.b32.xlu1 %v7517_v22, %s7600_s19  ;;  %7513 = vrot.lane.b32.xlu0 %v7517_v22, %s7597_s16 }
  0x84   : > { %7523 = vrot.lane.b32.xlu2 %v7517_v22, %s7596_s15 }
  0x85   : > { %v7314_v24 = vpop.permute.xlu1 %7313  ;;  %v7304_v25 = vpop.permute.xlu0 %7303 }
  0x86   : > { %v7305_v26 = vunpack.i.l.bf16 %v7304_v25  ;;  %v7315_v34 = vunpack.i.l.bf16 %v7314_v24  ;;  %v7787_v38 = vpop.permute.xlu2 %7358  ;;  %v7306_v42 = vunpack.i.h.bf16 %v7304_v25  ;;  %v7316_v44 = vunpack.i.h.bf16 %v7314_v24  ;;  %v419_v24 = vld [vmem:[%s387_s25 + $0x20] sm:$0xff]  ;;  %v420_v25 = vld [vmem:[%s387_s25 + $0x28] sm:$0xff] }
  0x87   : > { %v7360_v56 = vunpack.i.l.bf16 %v7787_v38 }
  0x88   : > { %7009 = vpush %v7305_v26  ;;  %v421_v26 = vld [vmem:[%s387_s25 + $0x30] sm:$0xff] }
  0x8b   : > { %7533 = vrot.lane.b32.xlu1 %v7517_v22, %s7598_s17  ;;  %7528 = vrot.lane.b32.xlu0 %v7517_v22, %s7599_s18 }
  0x8c   : > { %7538 = vrot.lane.b32.xlu2 %v7517_v22, %s7601_s20 }
  0x8d   : > { %v7319_v30 = vpop.permute.xlu1 %7318  ;;  %v7309_v31 = vpop.permute.xlu0 %7308 }
  0x8e   : > { %v7310_v32 = vunpack.i.l.bf16 %v7309_v31  ;;  %v7320_v33 = vunpack.i.l.bf16 %v7319_v30  ;;  %v7311_v43 = vunpack.i.h.bf16 %v7309_v31  ;;  %v7321_v45 = vunpack.i.h.bf16 %v7319_v30  ;;  %v7797_v52 = vpop.permute.xlu2 %7373  ;;  %v422_v30 = vld [vmem:[%s387_s25 + $0x38] sm:$0xff] }
  0x8f   : > { %v7375_v15 = vunpack.i.l.bf16 %v7797_v52  ;;  %v423_v31 = vpack.c.bf16 %v415_v12, %v415_v12 }
  0x90   : > { %7011 = vpush %v7310_v32 }
  0x91   : > { %7013 = vpush %v7315_v34  ;;  %v424_v34 = vpack.c.bf16 %v416_v18, %v416_v18 }
  0x92   : > { %7015 = vpush %v7320_v33 }
  0x93   : > { %7017 = vpush %v7325_v37  ;;  %7548 = vrot.lane.b32.xlu1 %v7547_v35, %s7597_s16  ;;  %7543 = vrot.lane.b32.xlu0 %v7517_v22, %s7602_s21  ;;  %v418_v22 = vld [vmem:[%s387_s25 + $0x18] sm:$0xff]  ;;  %v427_v37 = vpack.c.bf16 %v419_v24, %v419_v24 }
  0x94   : > { %7019 = vpush %v7330_v36  ;;  %7553 = vrot.lane.b32.xlu2 %v7547_v35, %s7600_s19  ;;  %v426_v36 = vpack.c.bf16 %v418_v22, %v418_v22 }
  0x95   : > { %v7339_v39 = vpop.permute.xlu1 %7338  ;;  %v7334_v40 = vpop.permute.xlu0 %7333 }
  0x96   : > { %v7335_v41 = vunpack.i.l.bf16 %v7334_v40  ;;  %v7336_v47 = vunpack.i.h.bf16 %v7334_v40  ;;  %v7340_v51 = vunpack.i.l.bf16 %v7339_v39  ;;  %v7813_v61 = vpop.permute.xlu2 %7388  ;;  %v7341_v62 = vunpack.i.h.bf16 %v7339_v39 }
  0x97   : > { %v7390_v32 = vunpack.i.l.bf16 %v7813_v61  ;;  %v429_v39 = vpack.c.bf16 %v421_v26, %v421_v26  ;;  %v7376_v40 = vunpack.i.h.bf16 %v7797_v52  ;;  %v7851_v52 = vunpack.c.l.bf16 %v426_v36 }
  0x98   : > { %7021 = vpush %v7335_v41  ;;  %v7391_v41 = vunpack.i.h.bf16 %v7813_v61 }
  0x99   : > { %7023 = vpush %v841_v2 }
  0x9a   : > { %7025 = vpush %v7306_v42  ;;  %v430_v42 = vpack.c.bf16 %v422_v30, %v422_v30 }
  0x9b   : > { %7027 = vpush %v7311_v43  ;;  %6035 = vrot.lane.b32.xlu1 %v7777_v28, %s7599_s18  ;;  %7558 = vrot.lane.b32.xlu0 %v7547_v35, %s7596_s15  ;;  %v425_v35 = vpack.c.bf16 %v417_v19, %v417_v19 }
  0x9c   : > { %7029 = vpush %v7316_v44  ;;  %6080 = vrot.lane.b32.xlu2 %v7777_v28, %s7598_s17 }
  0x9d   : > { %7031 = vpush %v7321_v45  ;;  %v7354_v49 = vpop.permute.xlu1 %7353  ;;  %v7349_v50 = vpop.permute.xlu0 %7348  ;;  %v7844_v45 = vunpack.c.l.bf16 %v423_v31 }
  0x9e   : > { %7033 = vpush %v7326_v46  ;;  %v7350_v54 = vunpack.i.l.bf16 %v7349_v50  ;;  %v7355_v55 = vunpack.i.l.bf16 %v7354_v49  ;;  %v7351_v0 = vunpack.i.h.bf16 %v7349_v50  ;;  %v7356_v2 = vunpack.i.h.bf16 %v7354_v49  ;;  %v7839_v33 = vpop.permute.xlu2 %7403 }
  0x9f   : > { %7035 = vpush %v7331_v48  ;;  %v7405_v44 = vunpack.i.l.bf16 %v7839_v33  ;;  %v446_v46 = vstv %s7008_s26  ;;  %v7847_v50 = vunpack.c.l.bf16 %v424_v34 }
  0xa0   : > { %7037 = vpush %v7336_v47  ;;  %v7406_v47 = vunpack.i.h.bf16 %v7839_v33  ;;  %v451_v61 = vmul.f32 %v446_v46, %v7851_v52 }
  0xa1   : > { %7039 = vpush %v1230_v4  ;;  %v7361_v4 = vunpack.i.h.bf16 %v7787_v38  ;;  %v428_v38 = vpack.c.bf16 %v420_v25, %v420_v25 }
  0xa2   : > { %7041 = vpush %v7340_v51  ;;  %v7849_v51 = vunpack.c.l.bf16 %v425_v35 }
  0xa3   : > { %7043 = vpush %v7345_v53  ;;  %6170 = vrot.lane.b32.xlu1 %v7777_v28, %s7602_s21  ;;  %6125 = vrot.lane.b32.xlu0 %v7777_v28, %s7601_s20  ;;  %v7853_v53 = vunpack.c.l.bf16 %v427_v37 }
  0xa4   : > { %7045 = vpush %v7350_v54  ;;  %6423 = vrot.lane.b32.xlu2 %v7780_v29, %s7599_s18  ;;  %v7855_v54 = vunpack.c.l.bf16 %v428_v38 }
  0xa5   : > { %7047 = vpush %v7355_v55  ;;  %v7369_v57 = vpop.permute.xlu1 %7368  ;;  %v7364_v58 = vpop.permute.xlu0 %7363  ;;  %v7857_v55 = vunpack.c.l.bf16 %v429_v39 }
  0xa6   : > { %7049 = vpush %v7360_v56  ;;  %v7365_v59 = vunpack.i.l.bf16 %v7364_v58  ;;  %v7370_v60 = vunpack.i.l.bf16 %v7369_v57  ;;  %v7366_v3 = vunpack.i.h.bf16 %v7364_v58  ;;  %v7859_v56 = vunpack.c.l.bf16 %v430_v42  ;;  %v7885_v36 = vpop.permute.xlu2 %7418 }
  0xa7   : > { %v449_v58 = vmul.f32 %v446_v46, %v7847_v50  ;;  %v454_v26 = vmul.f32 %v446_v46, %v7857_v55 }
  0xa8   : > { %7051 = vpush %v7365_v59  ;;  %v450_v59 = vmul.f32 %v446_v46, %v7849_v51  ;;  %v455_v35 = vmul.f32 %v446_v46, %v7859_v56 }
  0xa9   : > { %7053 = vpush %v7370_v60 }
  0xaa   : > { %7055 = vpush %v1619_v5  ;;  %v7371_v5 = vunpack.i.h.bf16 %v7369_v57  ;;  %v448_v57 = vmul.f32 %v446_v46, %v7844_v45 }
  0xab   : > { %7057 = vpush %v7341_v62  ;;  %6468 = vrot.lane.b32.xlu0 %v7780_v29, %s7598_s17  ;;  %6513 = vrot.lane.b32.xlu1 %v7780_v29, %s7601_s20  ;;  %v452_v62 = vmul.f32 %v446_v46, %v7853_v53 }
  0xac   : > { %7059 = vpush %v7346_v63  ;;  %6558 = vrot.lane.b32.xlu2 %v7780_v29, %s7602_s21  ;;  %v453_v63 = vmul.f32 %v446_v46, %v7855_v54 }
  0xad   : > { %7061 = vpush %v7351_v0  ;;  %v7827_v6 = vpop.permute.xlu1 %7383  ;;  %v7829_v9 = vpop.permute.xlu0 %7378 }
  0xae   : > { %7063 = vpush %v7356_v2  ;;  %v7380_v23 = vunpack.i.l.bf16 %v7829_v9  ;;  %v7385_v27 = vunpack.i.l.bf16 %v7827_v6  ;;  %v7381_v60 = vunpack.i.h.bf16 %v7829_v9  ;;  %v7386_v0 = vunpack.i.h.bf16 %v7827_v6 }
  0xaf   : > { %7065 = vpush %v7361_v4 }
  0xb0   : > { %7067 = vpush %v7366_v3 }
  0xb1   : > { %7069 = vpush %v7371_v5 }
  0xb2   : > { %7071 = vpush %v2008_v7 }
  0xb3   : > { %7073 = vpush %v7375_v15 }
  0xb4   : > { %7075 = vpush %v7380_v23 }
  0xb5   : > { %7077 = vpush %v7385_v27  ;;  %v7399_v7 = vpop.permute.xlu1 %7398  ;;  %v7394_v43 = vpop.permute.xlu0 %7393 }
  0xb6   : > { %7079 = vpush %v7390_v32  ;;  %v7395_v48 = vunpack.i.l.bf16 %v7394_v43  ;;  %v7400_v49 = vunpack.i.l.bf16 %v7399_v7  ;;  %v7396_v2 = vunpack.i.h.bf16 %v7394_v43  ;;  %v7401_v3 = vunpack.i.h.bf16 %v7399_v7 }
  0xb8   : > { %7081 = vpush %v7395_v48 }
  0xb9   : > { %7083 = vpush %v7400_v49  ;;  %s7010_s27 = spop %7009 }
  0xba   : > { %7085 = vpush %v7405_v44  ;;  %v459_v4 = vstv %s7010_s27 }
  0xbb   : > { %7087 = vpush %v2397_v8  ;;  %v461_v5 = vmul.f32 %v459_v4, %v7844_v45  ;;  %v462_v9 = vmul.f32 %v459_v4, %v7847_v50  ;;  %v463_v12 = vmul.f32 %v459_v4, %v7849_v51  ;;  %v464_v15 = vmul.f32 %v459_v4, %v7851_v52 }
  0xbc   : > { %7089 = vpush %v7376_v40  ;;  %v465_v18 = vmul.f32 %v459_v4, %v7853_v53  ;;  %v466_v19 = vmul.f32 %v459_v4, %v7855_v54  ;;  %v467_v6 = vmul.f32 %v459_v4, %v7857_v55  ;;  %v468_v22 = vmul.f32 %v459_v4, %v7859_v56 }
  0xbd   : > { %7091 = vpush %v7381_v60  ;;  %v477_v23 = vrot.slane %v461_v5, 1  ;;  %v478_v8 = vrot.slane %v462_v9, 1  ;;  %v479_v24 = vrot.slane %v463_v12, 1  ;;  %v480_v25 = vrot.slane %v464_v15, 1  ;;  %v7880_v32 = vpop.permute.xlu1 %7413  ;;  %v7882_v34 = vpop.permute.xlu0 %7408 }
  0xbe   : > { %7093 = vpush %v7386_v0  ;;  %v481_v27 = vrot.slane %v465_v18, 1  ;;  %v482_v30 = vrot.slane %v466_v19, 1  ;;  %v483_v31 = vrot.slane %v467_v6, 1  ;;  %v484_v37 = vrot.slane %v468_v22, 1 }
  0xbf   : > { %7095 = vpush %v7391_v41  ;;  %v493_v38 = vadd.f32 %v477_v23, %v448_v57  ;;  %v494_v39 = vadd.f32 %v478_v8, %v449_v58  ;;  %v7420_v40 = vunpack.i.l.bf16 %v7885_v36  ;;  %v495_v42 = vadd.f32 %v479_v24, %v450_v59 }
  0xc0   : > { %7097 = vpush %v7396_v2  ;;  %v496_v7 = vadd.f32 %v480_v25, %v451_v61  ;;  %v7410_v43 = vunpack.i.l.bf16 %v7882_v34  ;;  %v7415_v44 = vunpack.i.l.bf16 %v7880_v32  ;;  %v497_v48 = vadd.f32 %v481_v27, %v452_v62 }
  0xc1   : > { %7099 = vpush %v7401_v3  ;;  %s7012_s28 = spop %7011  ;;  %v498_v41 = vadd.f32 %v482_v30, %v453_v63  ;;  %v499_v49 = vadd.f32 %v483_v31, %v454_v26  ;;  %v500_v12 = vadd.f32 %v484_v37, %v455_v35 }
  0xc2   : > { %7101 = vpush %v7406_v47  ;;  %v504_v46 = vstv %s7012_s28  ;;  %s7892_s29 = spop %7013 }
  0xc3   : > { %7103 = vpush %v2786_v10  ;;  %v506_v57 = vmul.f32 %v504_v46, %v7844_v45  ;;  %v507_v58 = vmul.f32 %v504_v46, %v7847_v50  ;;  %v508_v59 = vmul.f32 %v504_v46, %v7849_v51  ;;  %v509_v60 = vmul.f32 %v504_v46, %v7851_v52  ;;  %s7016_s13 = spop %7015 }
  0xc4   : > { %7105 = vpush %v7410_v43  ;;  %v510_v61 = vmul.f32 %v504_v46, %v7853_v53  ;;  %v511_v33 = vmul.f32 %v504_v46, %v7855_v54  ;;  %v512_v47 = vmul.f32 %v504_v46, %v7857_v55  ;;  %v513_v62 = vmul.f32 %v504_v46, %v7859_v56  ;;  %s7018_s14 = spop %7017 }
  0xc5   : > { %7107 = vpush %v7415_v44  ;;  %v522_v10 = vrot.slane %v506_v57, 2  ;;  %v523_v63 = vrot.slane %v507_v58, 2  ;;  %v524_v0 = vrot.slane %v508_v59, 2  ;;  %v525_v2 = vrot.slane %v509_v60, 2  ;;  %s7020_s15 = spop %7019 }
  0xc6   : > { %v526_v3 = vrot.slane %v510_v61, 2  ;;  %v527_v4 = vrot.slane %v511_v33, 2  ;;  %v528_v5 = vrot.slane %v512_v47, 2  ;;  %v529_v9 = vrot.slane %v513_v62, 2  ;;  %7109 = vpush %v7420_v40 }
  0xc7   : > { %v538_v15 = vadd.f32 %v522_v10, %v493_v38  ;;  %v539_v18 = vadd.f32 %v523_v63, %v494_v39  ;;  %v540_v19 = vadd.f32 %v524_v0, %v495_v42  ;;  %v541_v6 = vadd.f32 %v525_v2, %v496_v7 }
  0xc8   : > { %v542_v22 = vadd.f32 %v526_v3, %v497_v48  ;;  %v543_v23 = vadd.f32 %v527_v4, %v498_v41  ;;  %v544_v8 = vadd.f32 %v528_v5, %v499_v49  ;;  %v7904_v24 = vadd.f32 %v529_v9, %v500_v12 }
  0xc9   : > { %v549_v25 = vstv %s7892_s29  ;;  %v594_v26 = vstv %s7016_s13  ;;  %v639_v27 = vstv %s7018_s14  ;;  %v7917_v48 = vstv %s7020_s15  ;;  %s7022_s16 = spop %7021 }
  0xca   : > { %v551_v30 = vmul.f32 %v549_v25, %v7844_v45  ;;  %v552_v31 = vmul.f32 %v549_v25, %v7847_v50  ;;  %v553_v40 = vmul.f32 %v549_v25, %v7849_v51  ;;  %v554_v35 = vmul.f32 %v549_v25, %v7851_v52  ;;  %s7024_s17 = spop %7023 }
  0xcb   : > { %v555_v37 = vmul.f32 %v549_v25, %v7853_v53  ;;  %v556_v38 = vmul.f32 %v549_v25, %v7855_v54  ;;  %v557_v39 = vmul.f32 %v549_v25, %v7857_v55  ;;  %v7915_v42 = vmul.f32 %v549_v25, %v7859_v56  ;;  %s7986_s18 = spop %7025 }
  0xcc   : > { %v567_v7 = vrot.slane %v551_v30, 3  ;;  %v568_v43 = vrot.slane %v552_v31, 3  ;;  %v569_v44 = vrot.slane %v553_v40, 3  ;;  %v570_v41 = vrot.slane %v554_v35, 3  ;;  %s7028_s19 = spop %7027 }
  0xcd   : > { %v571_v49 = vrot.slane %v555_v37, 3  ;;  %v572_v46 = vrot.slane %v556_v38, 3  ;;  %v573_v57 = vrot.slane %v557_v39, 3  ;;  %v596_v10 = vmul.f32 %v594_v26, %v7844_v45  ;;  %s7030_s20 = spop %7029 }
  0xce   : > { %v583_v59 = vadd.f32 %v567_v7, %v538_v15  ;;  %v584_v60 = vadd.f32 %v568_v43, %v539_v18  ;;  %v585_v61 = vadd.f32 %v569_v44, %v540_v19  ;;  %v586_v33 = vadd.f32 %v570_v41, %v541_v6  ;;  %s7032_s21 = spop %7031 }
  0xcf   : > { %v587_v47 = vadd.f32 %v571_v49, %v542_v22  ;;  %v588_v62 = vadd.f32 %v572_v46, %v543_v23  ;;  %v597_v63 = vmul.f32 %v594_v26, %v7847_v50  ;;  %v598_v0 = vmul.f32 %v594_v26, %v7849_v51  ;;  %s7034_s22 = spop %7033 }
  0xd0   : > { %v599_v2 = vmul.f32 %v594_v26, %v7851_v52  ;;  %v600_v3 = vmul.f32 %v594_v26, %v7853_v53  ;;  %v7925_v4 = vadd.f32 %v573_v57, %v544_v8  ;;  %v601_v5 = vmul.f32 %v594_v26, %v7855_v54  ;;  %s7036_s23 = spop %7035 }
  0xd1   : > { %v7929_v9 = vmul.f32 %v594_v26, %v7857_v55  ;;  %v7932_v12 = vmul.f32 %v594_v26, %v7859_v56  ;;  %v612_v15 = vrot.slane %v596_v10, 4  ;;  %v613_v18 = vrot.slane %v597_v63, 4  ;;  %s7038_s24 = spop %7037 }
  0xd2   : > { %v614_v19 = vrot.slane %v598_v0, 4  ;;  %v615_v6 = vrot.slane %v599_v2, 4  ;;  %v616_v22 = vrot.slane %v600_v3, 4  ;;  %v617_v23 = vrot.slane %v601_v5, 4  ;;  %v7954_v2 = vpop.permute.xlu0 %7423  ;;  %s7040_s25 = spop %7039 }
  0xd3   : > { %10603 = vst [vmem:[#allocation5_spill] sm:$0xff] %v7932_v12  ;;  %v628_v8 = vadd.f32 %v612_v15, %v583_v59  ;;  %v629_v31 = vadd.f32 %v613_v18, %v584_v60  ;;  %v641_v38 = vmul.f32 %v639_v27, %v7844_v45  ;;  %v642_v26 = vmul.f32 %v639_v27, %v7847_v50  ;;  %s7042_s26 = spop %7041 }
  0xd4   : > { %v630_v40 = vadd.f32 %v614_v19, %v585_v61  ;;  %v631_v35 = vadd.f32 %v615_v6, %v586_v33  ;;  %v632_v37 = vadd.f32 %v616_v22, %v587_v47  ;;  %v643_v39 = vmul.f32 %v639_v27, %v7849_v51  ;;  %s7044_s27 = spop %7043 }
  0xd5   : > { %v644_v7 = vmul.f32 %v639_v27, %v7851_v52  ;;  %v645_v43 = vmul.f32 %v639_v27, %v7853_v53  ;;  %v7942_v44 = vmul.f32 %v639_v27, %v7855_v54  ;;  %v7945_v41 = vmul.f32 %v639_v27, %v7857_v55  ;;  %s7046_s28 = spop %7045 }
  0xd6   : > { %v7947_v49 = vadd.f32 %v617_v23, %v588_v62  ;;  %v7950_v46 = vmul.f32 %v639_v27, %v7859_v56  ;;  %v657_v57 = vrot.slane %v641_v38, 5  ;;  %v658_v59 = vrot.slane %v642_v26, 5  ;;  %v7958_v27 = vpop.permute.xlu1 %7428  ;;  %s7048_s29 = spop %7047 }
  0xd7   : > { %10604 = vst [vmem:[#allocation6_spill] sm:$0xff] %v7945_v41  ;;  %v659_v60 = vrot.slane %v643_v39, 5  ;;  %v660_v61 = vrot.slane %v644_v7, 5  ;;  %v661_v33 = vrot.slane %v645_v43, 5  ;;  %v686_v62 = vmul.f32 %v7917_v48, %v7844_v45  ;;  %s7050_s13 = spop %7049 }
  0xd8   : > { %v673_v63 = vadd.f32 %v657_v57, %v628_v8  ;;  %v674_v0 = vadd.f32 %v658_v59, %v629_v31  ;;  %v687_v15 = vmul.f32 %v7917_v48, %v7847_v50  ;;  %v688_v18 = vmul.f32 %v7917_v48, %v7849_v51 }
  0xd9   : > { %v675_v3 = vadd.f32 %v659_v60, %v630_v40  ;;  %v676_v5 = vadd.f32 %v660_v61, %v631_v35  ;;  %v7964_v19 = vadd.f32 %v661_v33, %v632_v37  ;;  %v689_v6 = vmul.f32 %v7917_v48, %v7851_v52  ;;  %s7052_s14 = spop %7051 }
  0xda   : > { %v7970_v22 = vmul.f32 %v7917_v48, %v7853_v53  ;;  %v7974_v23 = vmul.f32 %v7917_v48, %v7855_v54  ;;  %v7978_v8 = vmul.f32 %v7917_v48, %v7857_v55  ;;  %v702_v31 = vrot.slane %v686_v62, 6  ;;  %s7054_s15 = spop %7053 }
  0xdb   : > { %v703_v40 = vrot.slane %v687_v15, 6  ;;  %v7425_v35 = vunpack.i.l.bf16 %v7954_v2  ;;  %v704_v37 = vrot.slane %v688_v18, 6  ;;  %v705_v38 = vrot.slane %v689_v6, 6 }
  0xdc   : > { %10605 = vst [vmem:[#allocation7_spill] sm:$0xff] %v7974_v23  ;;  %v7430_v39 = vunpack.i.l.bf16 %v7958_v27  ;;  %v718_v43 = vadd.f32 %v702_v31, %v673_v63  ;;  %v7984_v59 = vstv %s7022_s16  ;;  %v843_v18 = vstv %s7024_s17  ;;  %s7056_s16 = spop %7055 }
  0xdd   : > { %v719_v57 = vadd.f32 %v703_v40, %v674_v0  ;;  %7111 = vpush %v7425_v35  ;;  %v720_v60 = vadd.f32 %v704_v37, %v675_v3  ;;  %v731_v61 = vmul.f32 %v7984_v59, %v7844_v45  ;;  %v732_v33 = vmul.f32 %v7984_v59, %v7847_v50  ;;  %s7058_s17 = spop %7057 }
  0xde   : > { %10606 = vst [vmem:[#allocation8_spill] sm:$0xff] %v7984_v59  ;;  %v733_v62 = vmul.f32 %v7984_v59, %v7849_v51  ;;  %v721_v15 = vadd.f32 %v705_v38, %v676_v5  ;;  %v734_v63 = vmul.f32 %v7984_v59, %v7851_v52  ;;  %v7998_v0 = vmul.f32 %v7984_v59, %v7853_v53 }
  0xdf   : > { %7113 = vpush %v7430_v39  ;;  %v8002_v3 = vmul.f32 %v7984_v59, %v7855_v54  ;;  %v747_v6 = vrot.slane %v731_v61, 7  ;;  %v748_v31 = vrot.slane %v732_v33, 7  ;;  %v845_v5 = vmul.f32 %v843_v18, %v7844_v45 }
  0xe0   : > { %10607 = vst [vmem:[#allocation9_spill] sm:$0xff] %v7998_v0  ;;  %v749_v40 = vrot.slane %v733_v62, 7  ;;  %v750_v35 = vrot.slane %v734_v63, 7  ;;  %v846_v38 = vmul.f32 %v843_v18, %v7847_v50  ;;  %v847_v17 = vmul.f32 %v843_v18, %v7849_v51 }
  0xe1   : > { %10608 = vst [vmem:[#allocation10_spill] sm:$0xff] %v8002_v3  ;;  %v763_v39 = vadd.f32 %v747_v6, %v718_v43  ;;  %v764_v21 = vadd.f32 %v748_v31, %v719_v57  ;;  %v848_v61 = vmul.f32 %v843_v18, %v7851_v52  ;;  %v849_v33 = vmul.f32 %v843_v18, %v7853_v53 }
  0xe2   : > { %v765_v20 = vadd.f32 %v749_v40, %v720_v60  ;;  %v8008_v7 = vadd.f32 %v750_v35, %v721_v15  ;;  %v850_v62 = vmul.f32 %v843_v18, %v7855_v54  ;;  %v851_v30 = vmul.f32 %v843_v18, %v7857_v55 }
  0xe3   : > { %v771_v63 = vpack.c.bf16 %v763_v39, %v763_v39  ;;  %v772_v37 = vpack.c.bf16 %v764_v21, %v764_v21  ;;  %v852_v43 = vmul.f32 %v843_v18, %v7859_v56  ;;  %v856_v57 = vstv %s7986_s18  ;;  %s7060_s18 = spop %7059 }
  0xe4   : > { %10609 = vst [vmem:[#allocation11_spill] sm:$0xff] %v8008_v7  ;;  %v773_v10 = vpack.c.bf16 %v765_v20, %v765_v20  ;;  %v901_v60 = vstv %s7028_s19  ;;  %v946_v6 = vstv %s7030_s20  ;;  %v858_v40 = vmul.f32 %v856_v57, %v7844_v45  ;;  %s7062_s19 = spop %7061 }
  0xe5   : > { %v8016_v31 = vunpack.c.l.b16 %v771_v63  ;;  %v8018_v15 = vunpack.c.l.b16 %v772_v37  ;;  %v8021_v35 = vstv %s7032_s21  ;;  %v859_v26 = vmul.f32 %v856_v57, %v7847_v50  ;;  %s7064_s20 = spop %7063 }
  0xe6   : > { %v860_v21 = vmul.f32 %v856_v57, %v7849_v51  ;;  %v861_v20 = vmul.f32 %v856_v57, %v7851_v52  ;;  %v862_v39 = vmul.f32 %v856_v57, %v7853_v53  ;;  %v8027_v18 = vunpack.c.l.b16 %v773_v10  ;;  %s7066_s21 = spop %7065 }
  0xe7   : > { %10610 = vst [vmem:[#allocation12_spill] sm:$0xff] %v8016_v31  ;;  %v863_v47 = vmul.f32 %v856_v57, %v7855_v54  ;;  %v864_v63 = vmul.f32 %v856_v57, %v7857_v55  ;;  %v865_v37 = vmul.f32 %v856_v57, %v7859_v56  ;;  %v874_v25 = vrot.slane %v858_v40, 1 }
  0xe8   : > { %10611 = vst [vmem:[#allocation13_spill] sm:$0xff] %v8027_v18  ;;  %v875_v58 = vrot.slane %v859_v26, 1  ;;  %v876_v16 = vrot.slane %v860_v21, 1  ;;  %v877_v14 = vrot.slane %v861_v20, 1  ;;  %v878_v29 = vrot.slane %v862_v39, 1 }
  0xe9   : > { %v879_v28 = vrot.slane %v863_v47, 1  ;;  %v880_v31 = vrot.slane %v864_v63, 1  ;;  %v881_v7 = vrot.slane %v865_v37, 1  ;;  %v890_v0 = vadd.f32 %v874_v25, %v845_v5 }
  0xea   : > { %v891_v3 = vadd.f32 %v875_v58, %v846_v38  ;;  %v892_v10 = vadd.f32 %v876_v16, %v847_v17  ;;  %v893_v18 = vadd.f32 %v877_v14, %v848_v61  ;;  %v894_v23 = vadd.f32 %v878_v29, %v849_v33 }
  0xeb   : > { %v895_v41 = vadd.f32 %v879_v28, %v850_v62  ;;  %v896_v12 = vadd.f32 %v880_v31, %v851_v30  ;;  %v903_v59 = vmul.f32 %v901_v60, %v7844_v45  ;;  %v904_v57 = vmul.f32 %v901_v60, %v7847_v50 }
  0xec   : > { %v905_v26 = vmul.f32 %v901_v60, %v7849_v51  ;;  %v906_v40 = vmul.f32 %v901_v60, %v7851_v52  ;;  %v907_v21 = vmul.f32 %v901_v60, %v7853_v53  ;;  %v908_v47 = vmul.f32 %v901_v60, %v7855_v54 }
  0xed   : > { %v909_v25 = vmul.f32 %v901_v60, %v7857_v55  ;;  %v910_v16 = vmul.f32 %v901_v60, %v7859_v56  ;;  %v897_v14 = vadd.f32 %v881_v7, %v852_v43  ;;  %v919_v17 = vrot.slane %v903_v59, 2 }
  0xee   : > { %v920_v28 = vrot.slane %v904_v57, 2  ;;  %v921_v29 = vrot.slane %v905_v26, 2  ;;  %v922_v58 = vrot.slane %v906_v40, 2  ;;  %v923_v30 = vrot.slane %v907_v21, 2 }
  0xef   : > { %v924_v5 = vrot.slane %v908_v47, 2  ;;  %v925_v38 = vrot.slane %v909_v25, 2  ;;  %v926_v61 = vrot.slane %v910_v16, 2  ;;  %v935_v33 = vadd.f32 %v919_v17, %v890_v0 }
  0xf0   : > { %v936_v62 = vadd.f32 %v920_v28, %v891_v3  ;;  %v937_v31 = vadd.f32 %v921_v29, %v892_v10  ;;  %v938_v20 = vadd.f32 %v922_v58, %v893_v18  ;;  %v939_v39 = vadd.f32 %v923_v30, %v894_v23 }
  0xf1   : > { %v940_v63 = vadd.f32 %v924_v5, %v895_v41  ;;  %v941_v37 = vadd.f32 %v925_v38, %v896_v12  ;;  %v948_v11 = vmul.f32 %v946_v6, %v7844_v45  ;;  %v949_v60 = vmul.f32 %v946_v6, %v7847_v50 }
  0xf2   : > { %v950_v7 = vmul.f32 %v946_v6, %v7849_v51  ;;  %v951_v59 = vmul.f32 %v946_v6, %v7851_v52  ;;  %v952_v43 = vmul.f32 %v946_v6, %v7853_v53  ;;  %v953_v57 = vmul.f32 %v946_v6, %v7855_v54 }
  0xf3   : > { %v954_v0 = vmul.f32 %v946_v6, %v7857_v55  ;;  %v8049_v3 = vmul.f32 %v946_v6, %v7859_v56  ;;  %v8051_v23 = vadd.f32 %v926_v61, %v897_v14  ;;  %v964_v12 = vrot.slane %v948_v11, 3 }
  0xf4   : > { %v965_v41 = vrot.slane %v949_v60, 3  ;;  %v966_v18 = vrot.slane %v950_v7, 3  ;;  %v967_v10 = vrot.slane %v951_v59, 3  ;;  %v968_v26 = vrot.slane %v952_v43, 3 }
  0xf5   : > { %v969_v40 = vrot.slane %v953_v57, 3  ;;  %v970_v21 = vrot.slane %v954_v0, 3  ;;  %v980_v25 = vadd.f32 %v964_v12, %v935_v33  ;;  %v993_v6 = vmul.f32 %v8021_v35, %v7844_v45 }
  0xf6   : > { %v981_v16 = vadd.f32 %v965_v41, %v936_v62  ;;  %v982_v17 = vadd.f32 %v966_v18, %v937_v31  ;;  %v983_v28 = vadd.f32 %v967_v10, %v938_v20  ;;  %v984_v29 = vadd.f32 %v968_v26, %v939_v39 }
  0xf7   : > { %v985_v58 = vadd.f32 %v969_v40, %v940_v63  ;;  %v994_v11 = vmul.f32 %v8021_v35, %v7847_v50  ;;  %v995_v14 = vmul.f32 %v8021_v35, %v7849_v51  ;;  %v996_v30 = vmul.f32 %v8021_v35, %v7851_v52 }
  0xf8   : > { %v997_v5 = vmul.f32 %v8021_v35, %v7853_v53  ;;  %v8064_v38 = vadd.f32 %v970_v21, %v941_v37  ;;  %v998_v61 = vmul.f32 %v8021_v35, %v7855_v54  ;;  %v8070_v33 = vmul.f32 %v8021_v35, %v7857_v55 }
  0xf9   : > { %v8074_v62 = vmul.f32 %v8021_v35, %v7859_v56  ;;  %v1009_v31 = vrot.slane %v993_v6, 4  ;;  %v1010_v20 = vrot.slane %v994_v11, 4  ;;  %v1011_v39 = vrot.slane %v995_v14, 4 }
  0xfa   : > { %10612 = vst [vmem:[#allocation14_spill] sm:$0xff] %v8064_v38  ;;  %v1012_v63 = vrot.slane %v996_v30, 4  ;;  %v1013_v60 = vrot.slane %v997_v5, 4  ;;  %v1014_v7 = vrot.slane %v998_v61, 4  ;;  %v1036_v35 = vstv %s7034_s22  ;;  %s7068_s22 = spop %7067 }
  0xfb   : > { %10613 = vst [vmem:[#allocation15_spill] sm:$0xff] %v8070_v33  ;;  %v1025_v43 = vadd.f32 %v1009_v31, %v980_v25  ;;  %v1026_v57 = vadd.f32 %v1010_v20, %v981_v16  ;;  %v1027_v0 = vadd.f32 %v1011_v39, %v982_v17  ;;  %v8080_v10 = vstv %s7036_s23  ;;  %s7070_s23 = spop %7069 }
  0xfc   : > { %10614 = vst [vmem:[#allocation16_spill] sm:$0xff] %v8074_v62  ;;  %v1028_v12 = vadd.f32 %v1012_v63, %v983_v28  ;;  %v1029_v41 = vadd.f32 %v1013_v60, %v984_v29  ;;  %v8078_v18 = vadd.f32 %v1014_v7, %v985_v58  ;;  %v1038_v26 = vmul.f32 %v1036_v35, %v7844_v45  ;;  %v8165_v62 = vpop.permute.xlu0 %7438 }
  0xfd   : > { %10616 = vst [vmem:[#allocation18_spill] sm:$0xff] %v8080_v10  ;;  %v1039_v40 = vmul.f32 %v1036_v35, %v7847_v50  ;;  %v1040_v21 = vmul.f32 %v1036_v35, %v7849_v51  ;;  %v1041_v6 = vmul.f32 %v1036_v35, %v7851_v52  ;;  %v1042_v25 = vmul.f32 %v1036_v35, %v7853_v53 }
  0xfe   : > { %10615 = vst [vmem:[#allocation17_spill] sm:$0xff] %v8078_v18  ;;  %v8088_v16 = vmul.f32 %v1036_v35, %v7855_v54  ;;  %v8091_v17 = vmul.f32 %v1036_v35, %v7857_v55  ;;  %v8093_v28 = vstv %s7038_s24  ;;  %v8096_v29 = vmul.f32 %v1036_v35, %v7859_v56  ;;  %s7072_s24 = spop %7071 }
  0xff   : > { %10619 = vst [vmem:[#allocation21_spill] sm:$0xff] %v8093_v28  ;;  %v1054_v58 = vrot.slane %v1038_v26, 5  ;;  %v1055_v11 = vrot.slane %v1039_v40, 5  ;;  %v1056_v14 = vrot.slane %v1040_v21, 5  ;;  %v1057_v30 = vrot.slane %v1041_v6, 5 }
 0x100   : > { %10617 = vst [vmem:[#allocation19_spill] sm:$0xff] %v8088_v16  ;;  %v1058_v5 = vrot.slane %v1042_v25, 5  ;;  %v1083_v31 = vmul.f32 %v8080_v10, %v7844_v45  ;;  %v1084_v35 = vmul.f32 %v8080_v10, %v7847_v50  ;;  %v1085_v26 = vmul.f32 %v8080_v10, %v7849_v51 }
 0x101   : > { %10618 = vst [vmem:[#allocation20_spill] sm:$0xff] %v8091_v17  ;;  %v1070_v39 = vadd.f32 %v1054_v58, %v1025_v43  ;;  %v1071_v63 = vadd.f32 %v1055_v11, %v1026_v57  ;;  %v1072_v60 = vadd.f32 %v1056_v14, %v1027_v0  ;;  %v1073_v7 = vadd.f32 %v1057_v30, %v1028_v12 }
 0x102   : > { %10620 = vst [vmem:[#allocation22_spill] sm:$0xff] %v8096_v29  ;;  %v1086_v40 = vmul.f32 %v8080_v10, %v7851_v52  ;;  %v8108_v21 = vadd.f32 %v1058_v5, %v1029_v41  ;;  %v8112_v6 = vmul.f32 %v8080_v10, %v7853_v53  ;;  %v8116_v43 = vmul.f32 %v8080_v10, %v7855_v54 }
 0x103   : > { %v1099_v57 = vrot.slane %v1083_v31, 6  ;;  %v8120_v0 = vmul.f32 %v8080_v10, %v7857_v55  ;;  %v1100_v12 = vrot.slane %v1084_v35, 6  ;;  %v1101_v25 = vrot.slane %v1085_v26, 6 }
 0x104   : > { %10621 = vst [vmem:[#allocation23_spill] sm:$0xff] %v8108_v21  ;;  %v1128_v58 = vmul.f32 %v8093_v28, %v7844_v45  ;;  %v1102_v41 = vrot.slane %v1086_v40, 6  ;;  %v1129_v30 = vmul.f32 %v8093_v28, %v7847_v50  ;;  %v1130_v59 = vmul.f32 %v8093_v28, %v7849_v51 }
 0x105   : > { %10622 = vst [vmem:[#allocation24_spill] sm:$0xff] %v8112_v6  ;;  %v1115_v14 = vadd.f32 %v1099_v57, %v1070_v39  ;;  %v1116_v31 = vadd.f32 %v1100_v12, %v1071_v63  ;;  %v1117_v20 = vadd.f32 %v1101_v25, %v1072_v60  ;;  %v1131_v26 = vmul.f32 %v8093_v28, %v7851_v52 }
 0x106   : > { %10623 = vst [vmem:[#allocation25_spill] sm:$0xff] %v8116_v43  ;;  %v1118_v35 = vadd.f32 %v1102_v41, %v1073_v7  ;;  %v8134_v40 = vmul.f32 %v8093_v28, %v7853_v53  ;;  %v1144_v39 = vrot.slane %v1128_v58, 7  ;;  %v8138_v57 = vmul.f32 %v8093_v28, %v7855_v54 }
 0x107   : > { %10624 = vst [vmem:[#allocation26_spill] sm:$0xff] %v8120_v0  ;;  %v1145_v5 = vrot.slane %v1129_v30, 7  ;;  %v1146_v63 = vrot.slane %v1130_v59, 7  ;;  %v1232_v60 = vstv %s7040_s25  ;;  %v1147_v12 = vrot.slane %v1131_v26, 7  ;;  %v8167_v0 = vpop.permute.xlu2 %7433  ;;  %s7074_s25 = spop %7073 }
 0x108   : > { %10625 = vst [vmem:[#allocation27_spill] sm:$0xff] %v8134_v40  ;;  %v1160_v11 = vadd.f32 %v1144_v39, %v1115_v14  ;;  %v1245_v7 = vstv %s7042_s26  ;;  %v1234_v37 = vmul.f32 %v1232_v60, %v7844_v45  ;;  %v1235_v47 = vmul.f32 %v1232_v60, %v7847_v50 }
 0x109   : > { %10626 = vst [vmem:[#allocation28_spill] sm:$0xff] %v8138_v57  ;;  %v1161_v41 = vadd.f32 %v1145_v5, %v1116_v31  ;;  %v1162_v61 = vadd.f32 %v1146_v63, %v1117_v20  ;;  %v8143_v43 = vadd.f32 %v1147_v12, %v1118_v35  ;;  %v1236_v28 = vmul.f32 %v1232_v60, %v7849_v51 }
 0x10a   : > { %v1168_v58 = vpack.c.bf16 %v1160_v11, %v1160_v11  ;;  %v1237_v30 = vmul.f32 %v1232_v60, %v7851_v52  ;;  %v1238_v26 = vmul.f32 %v1232_v60, %v7853_v53  ;;  %v1239_v14 = vmul.f32 %v1232_v60, %v7855_v54 }
 0x10b   : > { %10627 = vst [vmem:[#allocation29_spill] sm:$0xff] %v8143_v43  ;;  %v1169_v59 = vpack.c.bf16 %v1161_v41, %v1161_v41  ;;  %v1170_v57 = vpack.c.bf16 %v1162_v61, %v1162_v61  ;;  %v1240_v20 = vmul.f32 %v1232_v60, %v7857_v55  ;;  %v1247_v5 = vmul.f32 %v1245_v7, %v7844_v45 }
 0x10c   : > { %v8149_v39 = vunpack.c.l.b16 %v1168_v58  ;;  %v1248_v31 = vmul.f32 %v1245_v7, %v7847_v50  ;;  %v1241_v11 = vmul.f32 %v1232_v60, %v7859_v56  ;;  %v1249_v63 = vmul.f32 %v1245_v7, %v7849_v51 }
 0x10d   : > { %v8154_v35 = vunpack.c.l.b16 %v1169_v59  ;;  %v1250_v61 = vmul.f32 %v1245_v7, %v7851_v52  ;;  %v1251_v12 = vmul.f32 %v1245_v7, %v7853_v53  ;;  %v1252_v41 = vmul.f32 %v1245_v7, %v7855_v54 }
 0x10e   : > { %10628 = vst [vmem:[#allocation30_spill] sm:$0xff] %v8149_v39  ;;  %v1253_v58 = vmul.f32 %v1245_v7, %v7857_v55  ;;  %v1254_v25 = vmul.f32 %v1245_v7, %v7859_v56  ;;  %v8163_v39 = vunpack.c.l.b16 %v1170_v57  ;;  %v1263_v43 = vrot.slane %v1247_v5, 1 }
 0x10f   : > { %v1264_v40 = vrot.slane %v1248_v31, 1  ;;  %v1265_v59 = vrot.slane %v1249_v63, 1  ;;  %v1266_v6 = vrot.slane %v1250_v61, 1  ;;  %v1267_v21 = vrot.slane %v1251_v12, 1 }
 0x110   : > { %10629 = vst [vmem:[#allocation31_spill] sm:$0xff] %v8163_v39  ;;  %v1268_v60 = vrot.slane %v1252_v41, 1  ;;  %v1269_v17 = vrot.slane %v1253_v58, 1  ;;  %v1270_v10 = vrot.slane %v1254_v25, 1  ;;  %v1279_v16 = vadd.f32 %v1263_v43, %v1234_v37 }
 0x111   : > { %v1280_v18 = vadd.f32 %v1264_v40, %v1235_v47  ;;  %v1281_v29 = vadd.f32 %v1265_v59, %v1236_v28  ;;  %v1282_v33 = vadd.f32 %v1266_v6, %v1237_v30  ;;  %v1283_v7 = vadd.f32 %v1267_v21, %v1238_v26 }
 0x112   : > { %v1284_v57 = vadd.f32 %v1268_v60, %v1239_v14  ;;  %v1285_v39 = vadd.f32 %v1269_v17, %v1240_v20  ;;  %v1286_v5 = vadd.f32 %v1270_v10, %v1241_v11  ;;  %v1290_v31 = vstv %s7044_s27 }
 0x113   : > { %v7435_v63 = vunpack.i.l.bf16 %v8167_v0  ;;  %v7440_v61 = vunpack.i.l.bf16 %v8165_v62  ;;  %v1292_v12 = vmul.f32 %v1290_v31, %v7844_v45  ;;  %v1293_v41 = vmul.f32 %v1290_v31, %v7847_v50 }
 0x114   : > { %v1294_v58 = vmul.f32 %v1290_v31, %v7849_v51  ;;  %v1295_v37 = vmul.f32 %v1290_v31, %v7851_v52  ;;  %v1296_v47 = vmul.f32 %v1290_v31, %v7853_v53  ;;  %v1297_v28 = vmul.f32 %v1290_v31, %v7855_v54 }
 0x115   : > { %v1298_v17 = vmul.f32 %v1290_v31, %v7857_v55  ;;  %v1299_v10 = vmul.f32 %v1290_v31, %v7859_v56  ;;  %7115 = vpush %v7435_v63  ;;  %v1308_v21 = vrot.slane %v1292_v12, 2  ;;  %v1309_v6 = vrot.slane %v1293_v41, 2 }
 0x116   : > { %v1310_v43 = vrot.slane %v1294_v58, 2  ;;  %v1311_v40 = vrot.slane %v1295_v37, 2  ;;  %7117 = vpush %v7440_v61  ;;  %v1312_v25 = vrot.slane %v1296_v47, 2  ;;  %v1313_v30 = vrot.slane %v1297_v28, 2  ;;  %v8182_v58 = vpop.permute.xlu1 %7443  ;;  %v8189_v28 = vpop.permute.xlu2 %7448 }
 0x117   : > { %v1314_v26 = vrot.slane %v1298_v17, 2  ;;  %v1315_v14 = vrot.slane %v1299_v10, 2  ;;  %v10630_v20 = vrot.slane %v7684_v1, 7  ;;  %v1324_v59 = vadd.f32 %v1308_v21, %v1279_v16 }
 0x118   : > { %v1325_v60 = vadd.f32 %v1309_v6, %v1280_v18  ;;  %v1326_v38 = vadd.f32 %v1310_v43, %v1281_v29  ;;  %v1327_v31 = vadd.f32 %v1311_v40, %v1282_v33  ;;  %v1328_v63 = vadd.f32 %v1312_v25, %v1283_v7 }
 0x119   : > { %7119 = vpush %v10630_v20  ;;  %v1329_v12 = vadd.f32 %v1313_v30, %v1284_v57  ;;  %v1330_v41 = vadd.f32 %v1314_v26, %v1285_v39  ;;  %v8184_v61 = vadd.f32 %v1315_v14, %v1286_v5  ;;  %v7411_v37 = vunpack.i.h.bf16 %v7882_v34 }
 0x11a   : > { %v7416_v1 = vunpack.i.h.bf16 %v7880_v32  ;;  %v7421_v47 = vunpack.i.h.bf16 %v7885_v36  ;;  %v7426_v18 = vunpack.i.h.bf16 %v7954_v2  ;;  %v7431_v33 = vunpack.i.h.bf16 %v7958_v27 }
 0x11b   : > { %v7436_v16 = vunpack.i.h.bf16 %v8167_v0  ;;  %v7441_v29 = vunpack.i.h.bf16 %v8165_v62  ;;  %7121 = vpush %v7411_v37  ;;  %v7445_v39 = vunpack.i.l.bf16 %v8182_v58  ;;  %v1335_v7 = vstv %s7046_s28  ;;  %s7076_s28 = spop %7075 }
 0x11c   : > { %v1380_v57 = vstv %s7048_s29  ;;  %v7450_v34 = vunpack.i.l.bf16 %v8189_v28  ;;  %7123 = vpush %v7416_v1  ;;  %v1337_v32 = vmul.f32 %v1335_v7, %v7844_v45  ;;  %v1338_v36 = vmul.f32 %v1335_v7, %v7847_v50  ;;  %s7078_s29 = spop %7077 }
 0x11d   : > { %v1339_v2 = vmul.f32 %v1335_v7, %v7849_v51  ;;  %v1340_v27 = vmul.f32 %v1335_v7, %v7851_v52  ;;  %7125 = vpush %v7421_v47  ;;  %v1341_v62 = vmul.f32 %v1335_v7, %v7853_v53  ;;  %v1342_v0 = vmul.f32 %v1335_v7, %v7855_v54 }
 0x11e   : > { %v1343_v5 = vmul.f32 %v1335_v7, %v7857_v55  ;;  %v8205_v17 = vmul.f32 %v1335_v7, %v7859_v56  ;;  %7127 = vpush %v7426_v18  ;;  %v1353_v10 = vrot.slane %v1337_v32, 3  ;;  %v1354_v21 = vrot.slane %v1338_v36, 3 }
 0x11f   : > { %v1355_v6 = vrot.slane %v1339_v2, 3  ;;  %v1356_v43 = vrot.slane %v1340_v27, 3  ;;  %7129 = vpush %v7431_v33  ;;  %v1357_v40 = vrot.slane %v1341_v62, 3  ;;  %v1358_v25 = vrot.slane %v1342_v0, 3 }
 0x120   : > { %10631 = vst [vmem:[#allocation32_spill] sm:$0xff] %v8205_v17  ;;  %v1359_v30 = vrot.slane %v1343_v5, 3  ;;  %v1425_v26 = vstv %s7050_s13  ;;  %v1369_v20 = vadd.f32 %v1353_v10, %v1324_v59  ;;  %v1370_v37 = vadd.f32 %v1354_v21, %v1325_v60  ;;  %s7080_s13 = spop %7079 }
 0x121   : > { %7131 = vpush %v7436_v16  ;;  %v1371_v1 = vadd.f32 %v1355_v6, %v1326_v38  ;;  %v1372_v47 = vadd.f32 %v1356_v43, %v1327_v31  ;;  %v1373_v7 = vadd.f32 %v1357_v40, %v1328_v63  ;;  %v1374_v11 = vadd.f32 %v1358_v25, %v1329_v12  ;;  %v8228_v25 = vpop.permute.xlu0 %7453 }
 0x122   : > { %7133 = vpush %v7441_v29  ;;  %v1382_v18 = vmul.f32 %v1380_v57, %v7844_v45  ;;  %v1383_v33 = vmul.f32 %v1380_v57, %v7847_v50  ;;  %v1384_v32 = vmul.f32 %v1380_v57, %v7849_v51  ;;  %v1385_v36 = vmul.f32 %v1380_v57, %v7851_v52 }
 0x123   : > { %7135 = vpush %v7733_v13  ;;  %v1386_v16 = vmul.f32 %v1380_v57, %v7853_v53  ;;  %v8214_v59 = vadd.f32 %v1359_v30, %v1330_v41  ;;  %v1387_v38 = vmul.f32 %v1380_v57, %v7855_v54  ;;  %v8218_v60 = vmul.f32 %v1380_v57, %v7857_v55 }
 0x124   : > { %7137 = vpush %v7445_v39  ;;  %v8221_v31 = vmul.f32 %v1380_v57, %v7859_v56  ;;  %v1398_v63 = vrot.slane %v1382_v18, 4  ;;  %v1399_v12 = vrot.slane %v1383_v33, 4  ;;  %v1400_v29 = vrot.slane %v1384_v32, 4 }
 0x125   : > { %10632 = vst [vmem:[#allocation33_spill] sm:$0xff] %v8214_v59  ;;  %v1401_v2 = vrot.slane %v1385_v36, 4  ;;  %v1402_v27 = vrot.slane %v1386_v16, 4  ;;  %v1403_v62 = vrot.slane %v1387_v38, 4  ;;  %v1427_v43 = vmul.f32 %v1425_v26, %v7844_v45 }
 0x126   : > { %10633 = vst [vmem:[#allocation34_spill] sm:$0xff] %v8218_v60  ;;  %v1414_v39 = vadd.f32 %v1398_v63, %v1369_v20  ;;  %v1415_v5 = vadd.f32 %v1399_v12, %v1370_v37  ;;  %v1416_v10 = vadd.f32 %v1400_v29, %v1371_v1  ;;  %v1428_v57 = vmul.f32 %v1425_v26, %v7847_v50  ;;  %v8240_v1 = vpop.permute.xlu1 %7458 }
 0x127   : > { %10634 = vst [vmem:[#allocation35_spill] sm:$0xff] %v8221_v31  ;;  %v1417_v21 = vadd.f32 %v1401_v2, %v1372_v47  ;;  %v1418_v6 = vadd.f32 %v1402_v27, %v1373_v7  ;;  %v1429_v40 = vmul.f32 %v1425_v26, %v7849_v51  ;;  %v1431_v30 = vmul.f32 %v1425_v26, %v7853_v53 }
 0x128   : > { %7139 = vpush %v7450_v34  ;;  %v1430_v34 = vmul.f32 %v1425_v26, %v7851_v52  ;;  %v8233_v18 = vmul.f32 %v1425_v26, %v7855_v54  ;;  %v8236_v20 = vmul.f32 %v1425_v26, %v7857_v55  ;;  %v8238_v37 = vadd.f32 %v1403_v62, %v1374_v11 }
 0x129   : > { %v1443_v47 = vrot.slane %v1427_v43, 5  ;;  %v1444_v7 = vrot.slane %v1428_v57, 5  ;;  %v1445_v33 = vrot.slane %v1429_v40, 5  ;;  %v8243_v32 = vmul.f32 %v1425_v26, %v7859_v56 }
 0x12a   : > { %10635 = vst [vmem:[#allocation36_spill] sm:$0xff] %v8233_v18  ;;  %v1446_v36 = vrot.slane %v1430_v34, 5  ;;  %v1447_v16 = vrot.slane %v1431_v30, 5  ;;  %v7455_v11 = vunpack.i.l.bf16 %v8228_v25  ;;  %v7460_v62 = vunpack.i.l.bf16 %v8240_v1 }
 0x12b   : > { %10636 = vst [vmem:[#allocation37_spill] sm:$0xff] %v8236_v20  ;;  %v1459_v12 = vadd.f32 %v1443_v47, %v1414_v39  ;;  %v1460_v29 = vadd.f32 %v1444_v7, %v1415_v5  ;;  %v1461_v2 = vadd.f32 %v1445_v33, %v1416_v10  ;;  %v8249_v43 = vstv %s7052_s14  ;;  %s7082_s14 = spop %7081 }
 0x12c   : > { %10637 = vst [vmem:[#allocation38_spill] sm:$0xff] %v8238_v37  ;;  %v1462_v27 = vadd.f32 %v1446_v36, %v1417_v21  ;;  %v1472_v26 = vmul.f32 %v8249_v43, %v7844_v45  ;;  %v1473_v57 = vmul.f32 %v8249_v43, %v7847_v50  ;;  %v1474_v39 = vmul.f32 %v8249_v43, %v7849_v51 }
 0x12d   : > { %10638 = vst [vmem:[#allocation39_spill] sm:$0xff] %v8243_v32  ;;  %v1475_v5 = vmul.f32 %v8249_v43, %v7851_v52  ;;  %v8259_v40 = vadd.f32 %v1447_v16, %v1418_v6  ;;  %v8263_v10 = vmul.f32 %v8249_v43, %v7853_v53  ;;  %v8267_v21 = vmul.f32 %v8249_v43, %v7855_v54 }
 0x12e   : > { %10639 = vst [vmem:[#allocation40_spill] sm:$0xff] %v8249_v43  ;;  %v8269_v34 = vstv %s7054_s15  ;;  %v1488_v30 = vrot.slane %v1472_v26, 6  ;;  %v1489_v47 = vrot.slane %v1473_v57, 6  ;;  %v1490_v7 = vrot.slane %v1474_v39, 6  ;;  %s7084_s15 = spop %7083 }
 0x12f   : > { %7141 = vpush %v7455_v11  ;;  %v1491_v33 = vrot.slane %v1475_v5, 6  ;;  %v8273_v6 = vmul.f32 %v8249_v43, %v7857_v55  ;;  %v1517_v16 = vmul.f32 %v8269_v34, %v7844_v45  ;;  %v1518_v11 = vmul.f32 %v8269_v34, %v7847_v50 }
 0x130   : > { %10640 = vst [vmem:[#allocation41_spill] sm:$0xff] %v8259_v40  ;;  %v1504_v63 = vadd.f32 %v1488_v30, %v1459_v12  ;;  %v1505_v26 = vadd.f32 %v1489_v47, %v1460_v29  ;;  %v1506_v57 = vadd.f32 %v1490_v7, %v1461_v2  ;;  %v1519_v5 = vmul.f32 %v8269_v34, %v7849_v51 }
 0x131   : > { %7143 = vpush %v7460_v62  ;;  %v1507_v39 = vadd.f32 %v1491_v33, %v1462_v27  ;;  %v1520_v38 = vmul.f32 %v8269_v34, %v7851_v52  ;;  %v8287_v36 = vmul.f32 %v8269_v34, %v7853_v53  ;;  %v8291_v41 = vmul.f32 %v8269_v34, %v7855_v54 }
 0x132   : > { %10641 = vst [vmem:[#allocation42_spill] sm:$0xff] %v8263_v10  ;;  %v1533_v62 = vrot.slane %v1517_v16, 7  ;;  %v1534_v12 = vrot.slane %v1518_v11, 7  ;;  %v1621_v29 = vstv %s7056_s16  ;;  %v1535_v2 = vrot.slane %v1519_v5, 7  ;;  %s7086_s16 = spop %7085 }
 0x133   : > { %10642 = vst [vmem:[#allocation43_spill] sm:$0xff] %v8267_v21  ;;  %v1536_v30 = vrot.slane %v1520_v38, 7  ;;  %v1634_v47 = vstv %s7058_s17  ;;  %v1623_v0 = vmul.f32 %v1621_v29, %v7844_v45  ;;  %v1624_v14 = vmul.f32 %v1621_v29, %v7847_v50  ;;  %s7088_s17 = spop %7087 }
 0x134   : > { %10643 = vst [vmem:[#allocation44_spill] sm:$0xff] %v8269_v34  ;;  %v1549_v7 = vadd.f32 %v1533_v62, %v1504_v63  ;;  %v1550_v33 = vadd.f32 %v1534_v12, %v1505_v26  ;;  %v1551_v21 = vadd.f32 %v1535_v2, %v1506_v57  ;;  %v1625_v34 = vmul.f32 %v1621_v29, %v7849_v51 }
 0x135   : > { %10644 = vst [vmem:[#allocation45_spill] sm:$0xff] %v8273_v6  ;;  %v8296_v10 = vadd.f32 %v1536_v30, %v1507_v39  ;;  %v1626_v16 = vmul.f32 %v1621_v29, %v7851_v52  ;;  %v1627_v38 = vmul.f32 %v1621_v29, %v7853_v53  ;;  %v1628_v5 = vmul.f32 %v1621_v29, %v7855_v54 }
 0x136   : > { %10645 = vst [vmem:[#allocation46_spill] sm:$0xff] %v8287_v36  ;;  %v1557_v11 = vpack.c.bf16 %v1549_v7, %v1549_v7  ;;  %v1559_v27 = vpack.c.bf16 %v1551_v21, %v1551_v21  ;;  %v1629_v63 = vmul.f32 %v1621_v29, %v7857_v55  ;;  %v1636_v62 = vmul.f32 %v1634_v47, %v7844_v45 }
 0x137   : > { %10646 = vst [vmem:[#allocation47_spill] sm:$0xff] %v8291_v41  ;;  %v1558_v41 = vpack.c.bf16 %v1550_v33, %v1550_v33  ;;  %v1637_v26 = vmul.f32 %v1634_v47, %v7847_v50  ;;  %v1630_v39 = vmul.f32 %v1621_v29, %v7859_v56  ;;  %v1638_v12 = vmul.f32 %v1634_v47, %v7849_v51 }
 0x138   : > { %10647 = vst [vmem:[#allocation48_spill] sm:$0xff] %v8296_v10  ;;  %v1639_v2 = vmul.f32 %v1634_v47, %v7851_v52  ;;  %v8310_v30 = vunpack.c.l.b16 %v1557_v11  ;;  %v1640_v7 = vmul.f32 %v1634_v47, %v7853_v53  ;;  %v1641_v21 = vmul.f32 %v1634_v47, %v7855_v54 }
 0x139   : > { %v8305_v57 = vunpack.c.l.b16 %v1558_v41  ;;  %v1642_v33 = vmul.f32 %v1634_v47, %v7857_v55  ;;  %v8315_v10 = vunpack.c.l.b16 %v1559_v27  ;;  %v1643_v36 = vmul.f32 %v1634_v47, %v7859_v56 }
 0x13a   : > { %10648 = vst [vmem:[#allocation49_spill] sm:$0xff] %v8310_v30  ;;  %v1652_v41 = vrot.slane %v1636_v62, 1  ;;  %v1653_v40 = vrot.slane %v1637_v26, 1  ;;  %v1654_v6 = vrot.slane %v1638_v12, 1  ;;  %v1655_v29 = vrot.slane %v1639_v2, 1 }
 0x13b   : > { %10649 = vst [vmem:[#allocation50_spill] sm:$0xff] %v8315_v10  ;;  %v1656_v43 = vrot.slane %v1640_v7, 1  ;;  %v1657_v20 = vrot.slane %v1641_v21, 1  ;;  %v1658_v30 = vrot.slane %v1642_v33, 1  ;;  %v1659_v18 = vrot.slane %v1643_v36, 1 }
 0x13c   : > { %v1668_v37 = vadd.f32 %v1652_v41, %v1623_v0  ;;  %v1669_v32 = vadd.f32 %v1653_v40, %v1624_v14  ;;  %v1670_v31 = vadd.f32 %v1654_v6, %v1625_v34  ;;  %v1671_v60 = vadd.f32 %v1655_v29, %v1626_v16 }
 0x13d   : > { %v1672_v59 = vadd.f32 %v1656_v43, %v1627_v38  ;;  %v1673_v27 = vadd.f32 %v1657_v20, %v1628_v5  ;;  %v1674_v10 = vadd.f32 %v1658_v30, %v1629_v63  ;;  %v1675_v17 = vadd.f32 %v1659_v18, %v1630_v39 }
 0x13e   : > { %v1679_v47 = vstv %s7060_s18  ;;  %v1724_v34 = vstv %s7062_s19  ;;  %s8638_s18 = spop %7089 }
 0x13f   : > { %v1681_v62 = vmul.f32 %v1679_v47, %v7844_v45  ;;  %v1682_v26 = vmul.f32 %v1679_v47, %v7847_v50  ;;  %v1683_v12 = vmul.f32 %v1679_v47, %v7849_v51  ;;  %v1684_v2 = vmul.f32 %v1679_v47, %v7851_v52  ;;  %s7092_s19 = spop %7091 }
 0x140   : > { %v1685_v36 = vmul.f32 %v1679_v47, %v7853_v53  ;;  %v1686_v14 = vmul.f32 %v1679_v47, %v7855_v54  ;;  %v1687_v0 = vmul.f32 %v1679_v47, %v7857_v55  ;;  %v1688_v20 = vmul.f32 %v1679_v47, %v7859_v56 }
 0x141   : > { %v1697_v43 = vrot.slane %v1681_v62, 2  ;;  %v1698_v18 = vrot.slane %v1682_v26, 2  ;;  %v1699_v40 = vrot.slane %v1683_v12, 2  ;;  %v1700_v6 = vrot.slane %v1684_v2, 2 }
 0x142   : > { %v1701_v16 = vrot.slane %v1685_v36, 2  ;;  %v1702_v38 = vrot.slane %v1686_v14, 2  ;;  %v1703_v5 = vrot.slane %v1687_v0, 2  ;;  %v1704_v63 = vrot.slane %v1688_v20, 2 }
 0x143   : > { %v1713_v39 = vadd.f32 %v1697_v43, %v1668_v37  ;;  %v1714_v30 = vadd.f32 %v1698_v18, %v1669_v32  ;;  %v1715_v7 = vadd.f32 %v1699_v40, %v1670_v31  ;;  %v1716_v21 = vadd.f32 %v1700_v6, %v1671_v60 }
 0x144   : > { %v1717_v33 = vadd.f32 %v1701_v16, %v1672_v59  ;;  %v1718_v41 = vadd.f32 %v1702_v38, %v1673_v27  ;;  %v1719_v29 = vadd.f32 %v1703_v5, %v1674_v10  ;;  %v1726_v11 = vmul.f32 %v1724_v34, %v7844_v45 }
 0x145   : > { %v1727_v47 = vmul.f32 %v1724_v34, %v7847_v50  ;;  %v1728_v62 = vmul.f32 %v1724_v34, %v7849_v51  ;;  %v1729_v26 = vmul.f32 %v1724_v34, %v7851_v52  ;;  %v1730_v12 = vmul.f32 %v1724_v34, %v7853_v53 }
 0x146   : > { %v1731_v2 = vmul.f32 %v1724_v34, %v7855_v54  ;;  %v1732_v37 = vmul.f32 %v1724_v34, %v7857_v55  ;;  %v8335_v31 = vmul.f32 %v1724_v34, %v7859_v56  ;;  %v8337_v59 = vadd.f32 %v1704_v63, %v1675_v17 }
 0x147   : > { %v1742_v60 = vrot.slane %v1726_v11, 3  ;;  %v1743_v32 = vrot.slane %v1727_v47, 3  ;;  %v1744_v10 = vrot.slane %v1728_v62, 3  ;;  %v1745_v27 = vrot.slane %v1729_v26, 3 }
 0x148   : > { %10650 = vst [vmem:[#allocation51_spill] sm:$0xff] %v8335_v31  ;;  %v1746_v36 = vrot.slane %v1730_v12, 3  ;;  %v1747_v14 = vrot.slane %v1731_v2, 3  ;;  %v1748_v0 = vrot.slane %v1732_v37, 3  ;;  %v1769_v34 = vstv %s7064_s20  ;;  %s7094_s20 = spop %7093 }
 0x149   : > { %10651 = vst [vmem:[#allocation52_spill] sm:$0xff] %v8337_v59  ;;  %v1758_v43 = vadd.f32 %v1742_v60, %v1713_v39  ;;  %v1759_v18 = vadd.f32 %v1743_v32, %v1714_v30  ;;  %v1760_v40 = vadd.f32 %v1744_v10, %v1715_v7  ;;  %v1761_v6 = vadd.f32 %v1745_v27, %v1716_v21 }
 0x14a   : > { %v1762_v16 = vadd.f32 %v1746_v36, %v1717_v33  ;;  %v1763_v38 = vadd.f32 %v1747_v14, %v1718_v41  ;;  %v1771_v17 = vmul.f32 %v1769_v34, %v7844_v45  ;;  %v1772_v11 = vmul.f32 %v1769_v34, %v7847_v50 }
 0x14b   : > { %v1773_v5 = vmul.f32 %v1769_v34, %v7849_v51  ;;  %v1774_v63 = vmul.f32 %v1769_v34, %v7851_v52  ;;  %v1775_v47 = vmul.f32 %v1769_v34, %v7853_v53  ;;  %v1776_v62 = vmul.f32 %v1769_v34, %v7855_v54 }
 0x14c   : > { %v8347_v39 = vmul.f32 %v1769_v34, %v7857_v55  ;;  %v8350_v30 = vmul.f32 %v1769_v34, %v7859_v56  ;;  %v8352_v7 = vadd.f32 %v1748_v0, %v1719_v29  ;;  %v1787_v21 = vrot.slane %v1771_v17, 4 }
 0x14d   : > { %v1788_v33 = vrot.slane %v1772_v11, 4  ;;  %v1789_v41 = vrot.slane %v1773_v5, 4  ;;  %v1790_v26 = vrot.slane %v1774_v63, 4  ;;  %v1791_v12 = vrot.slane %v1775_v47, 4 }
 0x14e   : > { %10652 = vst [vmem:[#allocation53_spill] sm:$0xff] %v8347_v39  ;;  %v1792_v2 = vrot.slane %v1776_v62, 4  ;;  %v1803_v32 = vadd.f32 %v1787_v21, %v1758_v43  ;;  %v1814_v34 = vstv %s7066_s21  ;;  %v8356_v20 = vstv %s7068_s22  ;;  %s7096_s21 = spop %7095 }
 0x14f   : > { %10653 = vst [vmem:[#allocation54_spill] sm:$0xff] %v8350_v30  ;;  %v1804_v10 = vadd.f32 %v1788_v33, %v1759_v18  ;;  %v1805_v27 = vadd.f32 %v1789_v41, %v1760_v40  ;;  %v1806_v36 = vadd.f32 %v1790_v26, %v1761_v6  ;;  %v1807_v14 = vadd.f32 %v1791_v12, %v1762_v16  ;;  %s7098_s22 = spop %7097 }
 0x150   : > { %10654 = vst [vmem:[#allocation55_spill] sm:$0xff] %v8352_v7  ;;  %v1816_v29 = vmul.f32 %v1814_v34, %v7844_v45  ;;  %v1817_v0 = vmul.f32 %v1814_v34, %v7847_v50  ;;  %v1818_v17 = vmul.f32 %v1814_v34, %v7849_v51  ;;  %v1819_v11 = vmul.f32 %v1814_v34, %v7851_v52 }
 0x151   : > { %10655 = vst [vmem:[#allocation56_spill] sm:$0xff] %v8356_v20  ;;  %v8362_v5 = vadd.f32 %v1792_v2, %v1763_v38  ;;  %v1820_v63 = vmul.f32 %v1814_v34, %v7853_v53  ;;  %v8366_v43 = vmul.f32 %v1814_v34, %v7855_v54  ;;  %v8369_v18 = vmul.f32 %v1814_v34, %v7857_v55 }
 0x152   : > { %v8372_v40 = vmul.f32 %v1814_v34, %v7859_v56  ;;  %v1832_v6 = vrot.slane %v1816_v29, 5  ;;  %v1833_v16 = vrot.slane %v1817_v0, 5  ;;  %v1834_v47 = vrot.slane %v1818_v17, 5 }
 0x153   : > { %10656 = vst [vmem:[#allocation57_spill] sm:$0xff] %v8362_v5  ;;  %v1835_v62 = vrot.slane %v1819_v11, 5  ;;  %v1836_v21 = vrot.slane %v1820_v63, 5  ;;  %v1861_v38 = vmul.f32 %v8356_v20, %v7844_v45  ;;  %v1862_v34 = vmul.f32 %v8356_v20, %v7847_v50 }
 0x154   : > { %10657 = vst [vmem:[#allocation58_spill] sm:$0xff] %v8366_v43  ;;  %v1848_v26 = vadd.f32 %v1832_v6, %v1803_v32  ;;  %v1849_v12 = vadd.f32 %v1833_v16, %v1804_v10  ;;  %v1850_v2 = vadd.f32 %v1834_v47, %v1805_v27  ;;  %v1863_v29 = vmul.f32 %v8356_v20, %v7849_v51  ;;  %v8448_v43 = vpop.permute.xlu0 %7468 }
 0x155   : > { %10658 = vst [vmem:[#allocation59_spill] sm:$0xff] %v8369_v18  ;;  %v1851_v60 = vadd.f32 %v1835_v62, %v1806_v36  ;;  %v1864_v0 = vmul.f32 %v8356_v20, %v7851_v52  ;;  %v8384_v17 = vadd.f32 %v1836_v21, %v1807_v14  ;;  %v8388_v11 = vmul.f32 %v8356_v20, %v7853_v53 }
 0x156   : > { %10659 = vst [vmem:[#allocation60_spill] sm:$0xff] %v8372_v40  ;;  %v8392_v32 = vmul.f32 %v8356_v20, %v7855_v54  ;;  %v8396_v10 = vmul.f32 %v8356_v20, %v7857_v55  ;;  %v1877_v27 = vrot.slane %v1861_v38, 6  ;;  %v1878_v36 = vrot.slane %v1862_v34, 6 }
 0x157   : > { %10660 = vst [vmem:[#allocation61_spill] sm:$0xff] %v8384_v17  ;;  %v1879_v63 = vrot.slane %v1863_v29, 6  ;;  %v8398_v6 = vstv %s7070_s23  ;;  %v1880_v16 = vrot.slane %v1864_v0, 6  ;;  %v8406_v17 = vpop.permute.xlu2 %7463  ;;  %s7100_s23 = spop %7099 }
 0x158   : > { %10661 = vst [vmem:[#allocation62_spill] sm:$0xff] %v8388_v11  ;;  %v1906_v62 = vmul.f32 %v8398_v6, %v7844_v45  ;;  %v1893_v21 = vadd.f32 %v1877_v27, %v1848_v26  ;;  %v1894_v41 = vadd.f32 %v1878_v36, %v1849_v12  ;;  %v1907_v37 = vmul.f32 %v8398_v6, %v7847_v50 }
 0x159   : > { %10662 = vst [vmem:[#allocation63_spill] sm:$0xff] %v8392_v32  ;;  %v1895_v33 = vadd.f32 %v1879_v63, %v1850_v2  ;;  %v1896_v38 = vadd.f32 %v1880_v16, %v1851_v60  ;;  %v1908_v34 = vmul.f32 %v8398_v6, %v7849_v51  ;;  %v1909_v29 = vmul.f32 %v8398_v6, %v7851_v52 }
 0x15a   : > { %10663 = vst [vmem:[#allocation64_spill] sm:$0xff] %v8396_v10  ;;  %v8414_v0 = vmul.f32 %v8398_v6, %v7853_v53  ;;  %v1922_v26 = vrot.slane %v1906_v62, 7  ;;  %v1923_v12 = vrot.slane %v1907_v37, 7  ;;  %v7465_v2 = vunpack.i.l.bf16 %v8406_v17 }
 0x15b   : > { %10664 = vst [vmem:[#allocation65_spill] sm:$0xff] %v8398_v6  ;;  %v2010_v27 = vstv %s7072_s24  ;;  %v8419_v36 = vmul.f32 %v8398_v6, %v7855_v54  ;;  %v1924_v60 = vrot.slane %v1908_v34, 7  ;;  %v1925_v63 = vrot.slane %v1909_v29, 7  ;;  %s7102_s24 = spop %7101 }
 0x15c   : > { %10665 = vst [vmem:[#allocation66_spill] sm:$0xff] %v8414_v0  ;;  %v1938_v47 = vadd.f32 %v1922_v26, %v1893_v21  ;;  %v1939_v14 = vadd.f32 %v1923_v12, %v1894_v41  ;;  %v2012_v32 = vmul.f32 %v2010_v27, %v7844_v45  ;;  %v2013_v11 = vmul.f32 %v2010_v27, %v7847_v50 }
 0x15d   : > { %10666 = vst [vmem:[#allocation67_spill] sm:$0xff] %v8419_v36  ;;  %v1940_v37 = vadd.f32 %v1924_v60, %v1895_v33  ;;  %v8424_v62 = vadd.f32 %v1925_v63, %v1896_v38  ;;  %v2014_v10 = vmul.f32 %v2010_v27, %v7849_v51  ;;  %v2015_v6 = vmul.f32 %v2010_v27, %v7851_v52 }
 0x15e   : > { %7145 = vpush %v7465_v2  ;;  %v1946_v36 = vpack.c.bf16 %v1938_v47, %v1938_v47  ;;  %v1947_v34 = vpack.c.bf16 %v1939_v14, %v1939_v14  ;;  %v2016_v29 = vmul.f32 %v2010_v27, %v7853_v53  ;;  %v2017_v21 = vmul.f32 %v2010_v27, %v7855_v54 }
 0x15f   : > { %10667 = vst [vmem:[#allocation68_spill] sm:$0xff] %v8424_v62  ;;  %v1948_v41 = vpack.c.bf16 %v1940_v37, %v1940_v37  ;;  %v2018_v26 = vmul.f32 %v2010_v27, %v7857_v55  ;;  %v2019_v12 = vmul.f32 %v2010_v27, %v7859_v56  ;;  %v2023_v2 = vstv %s7074_s25  ;;  %s7104_s25 = spop %7103 }
 0x160   : > { %v8432_v16 = vunpack.c.l.b16 %v1946_v36  ;;  %v2025_v33 = vmul.f32 %v2023_v2, %v7844_v45  ;;  %v2026_v38 = vmul.f32 %v2023_v2, %v7847_v50  ;;  %v8436_v60 = vunpack.c.l.b16 %v1947_v34  ;;  %v8446_v34 = vpop.permute.xlu1 %7473  ;;  %s7106_s26 = spop %7105 }
 0x161   : > { %v2027_v14 = vmul.f32 %v2023_v2, %v7849_v51  ;;  %v2028_v47 = vmul.f32 %v2023_v2, %v7851_v52  ;;  %v2029_v63 = vmul.f32 %v2023_v2, %v7853_v53  ;;  %v8441_v37 = vunpack.c.l.b16 %v1948_v41  ;;  %v435_v41 = vld [vmem:[%s10499_s2] sm:$0xf]  ;;  %s7108_s27 = spop %7107 }
 0x162   : > { %10668 = vst [vmem:[#allocation69_spill] sm:$0xff] %v8432_v16  ;;  %v2030_v27 = vmul.f32 %v2023_v2, %v7855_v54  ;;  %v2031_v36 = vmul.f32 %v2023_v2, %v7857_v55  ;;  %v2032_v16 = vmul.f32 %v2023_v2, %v7859_v56  ;;  %v2041_v62 = vrot.slane %v2025_v33, 1 }
 0x163   : > { %10669 = vst [vmem:[#allocation70_spill] sm:$0xff] %v8441_v37  ;;  %v2042_v0 = vrot.slane %v2026_v38, 1  ;;  %v2043_v18 = vrot.slane %v2027_v14, 1  ;;  %v2044_v20 = vrot.slane %v2028_v47, 1  ;;  %v2045_v5 = vrot.slane %v2029_v63, 1 }
 0x164   : > { %v2046_v40 = vrot.slane %v2030_v27, 1  ;;  %v2047_v30 = vrot.slane %v2031_v36, 1  ;;  %v2048_v39 = vrot.slane %v2032_v16, 1  ;;  %v2057_v7 = vadd.f32 %v2041_v62, %v2012_v32 }
 0x165   : > { %v2058_v2 = vadd.f32 %v2042_v0, %v2013_v11  ;;  %v2059_v33 = vadd.f32 %v2043_v18, %v2014_v10  ;;  %v2060_v38 = vadd.f32 %v2044_v20, %v2015_v6  ;;  %v2061_v14 = vadd.f32 %v2045_v5, %v2016_v29 }
 0x166   : > { %v2062_v47 = vadd.f32 %v2046_v40, %v2017_v21  ;;  %v2063_v31 = vadd.f32 %v2047_v30, %v2018_v26  ;;  %v8454_v59 = vadd.f32 %v2048_v39, %v2019_v12  ;;  %v8457_v63 = vsel %vm821_vm0, %v435_v41, 0 }
 0x167   : > { %v7470_v16 = vunpack.i.l.bf16 %v8448_v43  ;;  %v7475_v27 = vunpack.i.l.bf16 %v8446_v34  ;;  %832 = vmatpush.bf16.msra.mxu0 %v8457_v63  ;;  %v7446_v32 = vunpack.i.h.bf16 %v8182_v58  ;;  %v7451_v18 = vunpack.i.h.bf16 %v8189_v28  ;;  %1217 = vmatpush.bf16.msra.mxu1 %v8457_v63 }
 0x168   : > { %v7456_v20 = vunpack.i.h.bf16 %v8228_v25  ;;  %v7461_v30 = vunpack.i.h.bf16 %v8240_v1  ;;  %v7466_v39 = vunpack.i.h.bf16 %v8406_v17  ;;  %v7471_v5 = vunpack.i.h.bf16 %v8448_v43  ;;  %1606 = vmatpush.bf16.msra.mxu2 %v8457_v63  ;;  %1995 = vmatpush.bf16.msra.mxu3 %v8457_v63 }
 0x169   : > { %7147 = vpush %v7470_v16  ;;  %v7476_v40 = vunpack.i.h.bf16 %v8446_v34  ;;  %v2068_v11 = vstv %s7076_s28  ;;  %v10670_v17 = vrot.slane %v7733_v13, 1  ;;  %v2113_v41 = vstv %s7078_s29  ;;  %s7110_s28 = spop %7109 }
 0x16a   : > { %7149 = vpush %v7475_v27  ;;  %v2070_v58 = vmul.f32 %v2068_v11, %v7844_v45  ;;  %v2071_v28 = vmul.f32 %v2068_v11, %v7847_v50  ;;  %v2072_v25 = vmul.f32 %v2068_v11, %v7849_v51  ;;  %v2073_v1 = vmul.f32 %v2068_v11, %v7851_v52  ;;  %s7112_s29 = spop %7111 }
 0x16b   : > { %7151 = vpush %v10670_v17  ;;  %v2074_v43 = vmul.f32 %v2068_v11, %v7853_v53  ;;  %v2075_v10 = vmul.f32 %v2068_v11, %v7855_v54  ;;  %v2076_v6 = vmul.f32 %v2068_v11, %v7857_v55  ;;  %v2077_v0 = vmul.f32 %v2068_v11, %v7859_v56 }
 0x16c   : > { %7153 = vpush %v7446_v32  ;;  %v2086_v62 = vrot.slane %v2070_v58, 2  ;;  %v2087_v29 = vrot.slane %v2071_v28, 2  ;;  %v2088_v21 = vrot.slane %v2072_v25, 2  ;;  %v2089_v26 = vrot.slane %v2073_v1, 2  ;;  %2384 = vmatpush.bf16.msrb.mxu0 %v8457_v63  ;;  %2773 = vmatpush.bf16.msrb.mxu1 %v8457_v63 }
 0x16d   : > { %7155 = vpush %v7451_v18  ;;  %v2090_v12 = vrot.slane %v2074_v43, 2  ;;  %v2091_v36 = vrot.slane %v2075_v10, 2  ;;  %v2092_v34 = vrot.slane %v2076_v6, 2  ;;  %3162 = vmatpush.bf16.msrb.mxu2 %v8457_v63  ;;  %3551 = vmatpush.bf16.msrb.mxu3 %v8457_v63  ;;  %v2093_v16 = vrot.slane %v2077_v0, 2 }
 0x16e   : > { %7157 = vpush %v7456_v20  ;;  %v2102_v27 = vadd.f32 %v2086_v62, %v2057_v7  ;;  %v2103_v32 = vadd.f32 %v2087_v29, %v2058_v2  ;;  %v2104_v11 = vadd.f32 %v2088_v21, %v2059_v33  ;;  %v2105_v58 = vadd.f32 %v2089_v26, %v2060_v38 }
 0x16f   : > { %7159 = vpush %v7461_v30  ;;  %v2106_v28 = vadd.f32 %v2090_v12, %v2061_v14  ;;  %v2107_v25 = vadd.f32 %v2091_v36, %v2062_v47  ;;  %v2108_v1 = vadd.f32 %v2092_v34, %v2063_v31  ;;  %v2115_v18 = vmul.f32 %v2113_v41, %v7844_v45 }
 0x170   : > { %7161 = vpush %v7466_v39  ;;  %v2116_v17 = vmul.f32 %v2113_v41, %v7847_v50  ;;  %v2117_v43 = vmul.f32 %v2113_v41, %v7849_v51  ;;  %v2118_v10 = vmul.f32 %v2113_v41, %v7851_v52  ;;  %v2119_v20 = vmul.f32 %v2113_v41, %v7853_v53 }
 0x171   : > { %7163 = vpush %v7471_v5  ;;  %v2120_v7 = vmul.f32 %v2113_v41, %v7855_v54  ;;  %v2121_v2 = vmul.f32 %v2113_v41, %v7857_v55  ;;  %v8494_v33 = vmul.f32 %v2113_v41, %v7859_v56  ;;  %v8497_v31 = vadd.f32 %v2093_v16, %v8454_v59 }
 0x172   : > { %7165 = vpush %v7476_v40  ;;  %v2131_v38 = vrot.slane %v2115_v18, 3  ;;  %v2132_v14 = vrot.slane %v2116_v17, 3  ;;  %v2133_v47 = vrot.slane %v2117_v43, 3  ;;  %v2134_v30 = vrot.slane %v2118_v10, 3 }
 0x173   : > { %v2135_v39 = vrot.slane %v2119_v20, 3  ;;  %v2136_v6 = vrot.slane %v2120_v7, 3  ;;  %v2137_v5 = vrot.slane %v2121_v2, 3  ;;  %v10671_v0 = vrot.slane %v7733_v13, 2  ;;  %v10683_v7 = vld [vmem:[#allocation10_spill] sm:$0xff] }
 0x174   : > { %v2138_v62 = vrot.slane %v8494_v33, 3  ;;  %v8502_v29 = vadd.f32 %v2131_v38, %v2102_v27  ;;  %v8504_v21 = vadd.f32 %v2132_v14, %v2103_v32  ;;  %v8506_v40 = vadd.f32 %v2133_v47, %v2104_v11 }
 0x175   : > { %7167 = vpush %v10671_v0  ;;  %v8508_v59 = vadd.f32 %v2134_v30, %v2105_v58  ;;  %v8510_v26 = vadd.f32 %v2135_v39, %v2106_v28  ;;  %v8512_v12 = vadd.f32 %v2136_v6, %v2107_v25  ;;  %v8514_v36 = vadd.f32 %v2137_v5, %v2108_v1  ;;  %v10686_v6 = vld [vmem:[#allocation11_spill] sm:$0xff] }
 0x176   : > { %v10672_v34 = vrot.slane %v7915_v42, 3  ;;  %v10673_v16 = vrot.slane %v7929_v9, 4  ;;  %v664_v32 = vrot.slane %v7950_v46, 5  ;;  %v10674_v11 = vrot.slane %v7942_v44, 5  ;;  %v10677_v9 = vld [vmem:[#allocation5_spill] sm:$0xff]  ;;  %v10679_v46 = vld [vmem:[#allocation6_spill] sm:$0xff] }
 0x177   : > { %v693_v28 = vmul.f32 %v7917_v48, %v7859_v56  ;;  %v708_v25 = vrot.slane %v7978_v8, 6  ;;  %v10675_v1 = vrot.slane %v7970_v22, 6  ;;  %v10680_v43 = vrot.slane %v10679_v46, 5  ;;  %v10681_v44 = vld [vmem:[#allocation7_spill] sm:$0xff] }
 0x178   : > { %v590_v41 = vadd.f32 %v10672_v34, %v7904_v24  ;;  %v634_v27 = vadd.f32 %v10673_v16, %v7925_v4  ;;  %v678_v58 = vadd.f32 %v10674_v11, %v7947_v49  ;;  %v10676_v24 = vld [vmem:[#allocation8_spill] sm:$0xff]  ;;  %v10678_v4 = vrot.slane %v10677_v9, 4 }
 0x179   : > { %v722_v42 = vadd.f32 %v10675_v1, %v7964_v19  ;;  %v737_v18 = vmul.f32 %v10676_v24, %v7857_v55  ;;  %v10682_v49 = vrot.slane %v10681_v44, 6  ;;  %v738_v48 = vmul.f32 %v10676_v24, %v7859_v56  ;;  %v10684_v19 = vld [vmem:[#allocation9_spill] sm:$0xff]  ;;  %v8554_v44 = vpop.permute.xlu2 %7478 }
 0x17a   : > { %v635_v17 = vadd.f32 %v10678_v4, %v590_v41  ;;  %v679_v10 = vadd.f32 %v10680_v43, %v634_v27  ;;  %v709_v8 = vrot.slane %v693_v28, 6  ;;  %v752_v2 = vrot.slane %v10683_v7, 7  ;;  %v10687_v41 = vld [vmem:[#allocation13_spill] sm:$0xff]  ;;  %v10688_v28 = vld [vmem:[#allocation12_spill] sm:$0xff] }
 0x17b   : > { %v723_v20 = vadd.f32 %v10682_v49, %v678_v58  ;;  %v753_v22 = vrot.slane %v737_v18, 7  ;;  %v10685_v38 = vrot.slane %v10684_v19, 7  ;;  %v754_v39 = vrot.slane %v738_v48, 7 }
 0x17c   : > { %v680_v47 = vadd.f32 %v664_v32, %v635_v17  ;;  %v724_v30 = vadd.f32 %v708_v25, %v679_v10  ;;  %v774_v5 = vpack.c.bf16 %v10686_v6, %v10686_v6  ;;  %v798_v16 = vrot.slane %v10687_v41, 6 }
 0x17d   : > { %v767_v14 = vadd.f32 %v10685_v38, %v722_v42  ;;  %v768_v0 = vadd.f32 %v752_v2, %v723_v20  ;;  %v10689_v1 = vrot.slane %v8018_v15, 7  ;;  %v7480_v7 = vunpack.i.l.bf16 %v8554_v44 }
 0x17e   : > { %v725_v27 = vadd.f32 %v709_v8, %v680_v47  ;;  %v769_v11 = vadd.f32 %v753_v22, %v724_v30  ;;  %v790_v58 = vunpack.c.l.b16 %v774_v5  ;;  %v2158_v2 = vstv %s7080_s13  ;;  %s7114_s13 = spop %7113 }
 0x17f   : > { %v775_v34 = vpack.c.bf16 %v767_v14, %v767_v14  ;;  %v797_v24 = vsel %vm796_vm1, %v10689_v1, %v10688_v28  ;;  %v776_v42 = vpack.c.bf16 %v768_v0, %v768_v0  ;;  %v2160_v19 = vmul.f32 %v2158_v2, %v7844_v45  ;;  %7169 = vpush %v7480_v7  ;;  %v8569_v1 = vpop.permute.xlu1 %7488 }
 0x180   : > { %v770_v25 = vadd.f32 %v754_v39, %v725_v27  ;;  %v777_v18 = vpack.c.bf16 %v769_v11, %v769_v11  ;;  %v800_v9 = vsel %vm799_vm2, %v798_v16, %v797_v24  ;;  %v801_v4 = vrot.slane %v790_v58, 5  ;;  %v8571_v24 = vpop.permute.xlu0 %7483 }
 0x181   : > { %v791_v32 = vunpack.c.l.b16 %v775_v34  ;;  %v792_v17 = vunpack.c.l.b16 %v776_v42  ;;  %v2161_v38 = vmul.f32 %v2158_v2, %v7847_v50  ;;  %v2162_v14 = vmul.f32 %v2158_v2, %v7849_v51 }
 0x182   : > { %v778_v43 = vpack.c.bf16 %v770_v25, %v770_v25  ;;  %v793_v10 = vunpack.c.l.b16 %v777_v18  ;;  %v803_v15 = vsel %vm802_vm3, %v801_v4, %v800_v9  ;;  %v2163_v39 = vmul.f32 %v2158_v2, %v7851_v52 }
 0x183   : > { %v804_v46 = vrot.slane %v791_v32, 4  ;;  %v807_v20 = vrot.slane %v792_v17, 3  ;;  %v2164_v6 = vmul.f32 %v2158_v2, %v7853_v53  ;;  %v2165_v5 = vmul.f32 %v2158_v2, %v7855_v54 }
 0x184   : > { %v794_v48 = vunpack.c.l.b16 %v778_v43  ;;  %v810_v8 = vrot.slane %v793_v10, 2  ;;  %v2166_v0 = vmul.f32 %v2158_v2, %v7857_v55  ;;  %v2167_v34 = vmul.f32 %v2158_v2, %v7859_v56 }
 0x185   : > { %v806_v49 = vsel %vm805_vm4, %v804_v46, %v803_v15  ;;  %v2176_v41 = vrot.slane %v2160_v19, 4  ;;  %v2177_v27 = vrot.slane %v2161_v38, 4  ;;  %v2178_v11 = vrot.slane %v2162_v14, 4 }
 0x186   : > { %v809_v22 = vsel %vm808_vm5, %v807_v20, %v806_v49  ;;  %v813_v30 = vrot.slane %v794_v48, 1  ;;  %v2179_v58 = vrot.slane %v2163_v39, 4  ;;  %v2180_v42 = vrot.slane %v2164_v6, 4 }
 0x187   : > { %v812_v47 = vsel %vm811_vm6, %v810_v8, %v809_v22  ;;  %v2181_v32 = vrot.slane %v2165_v5, 4  ;;  %v2182_v25 = vrot.slane %v2166_v0, 4  ;;  %v2154_v18 = vadd.f32 %v2138_v62, %v8497_v31 }
 0x188   : > { %v815_v16 = vsel %vm814_vm7, %v813_v30, %v812_v47  ;;  %v2183_v9 = vrot.slane %v2167_v34, 4  ;;  %v2192_v4 = vadd.f32 %v2176_v41, %v8502_v29  ;;  %v2193_v17 = vadd.f32 %v2177_v27, %v8504_v21 }
 0x189   : > { %v816_v28 = vpack.c.b16 %v815_v16, %v815_v16  ;;  %v2194_v46 = vadd.f32 %v2178_v11, %v8506_v40  ;;  %v2195_v43 = vadd.f32 %v2179_v58, %v8508_v59  ;;  %v2196_v10 = vadd.f32 %v2180_v42, %v8510_v26 }
 0x18a   : > { %v2197_v15 = vadd.f32 %v2181_v32, %v8512_v12  ;;  %v2198_v49 = vadd.f32 %v2182_v25, %v8514_v36  ;;  %v7485_v33 = vunpack.i.l.bf16 %v8571_v24  ;;  %v7490_v31 = vunpack.i.l.bf16 %v8569_v1 }
 0x18b   : > { %6974 = vmatmul.msk.bf16.vlgmr.msra.gmra.mxu0 %vm817_vm8, %v816_v28  ;;  %v2203_v62 = vstv %s7082_s14  ;;  %v8597_v22 = vadd.f32 %v2183_v9, %v2154_v18  ;;  %v2248_v41 = vstv %s7084_s15  ;;  %s7116_s14 = spop %7115 }
 0x18c   : > { %3940 = vmatpush.bf16.msra.mxu0 %v8457_v63  ;;  %v2205_v29 = vmul.f32 %v2203_v62, %v7844_v45  ;;  %v2206_v21 = vmul.f32 %v2203_v62, %v7847_v50  ;;  %v2207_v40 = vmul.f32 %v2203_v62, %v7849_v51  ;;  %v2208_v59 = vmul.f32 %v2203_v62, %v7851_v52  ;;  %s7118_s15 = spop %7117 }
 0x18d   : > { %7171 = vpush %v7485_v33  ;;  %v2209_v26 = vmul.f32 %v2203_v62, %v7853_v53  ;;  %v2210_v12 = vmul.f32 %v2203_v62, %v7855_v54  ;;  %v2211_v36 = vmul.f32 %v2203_v62, %v7857_v55  ;;  %v8595_v20 = vmul.f32 %v2203_v62, %v7859_v56 }
 0x18e   : > { %7173 = vpush %v7490_v31  ;;  %v2221_v48 = vrot.slane %v2205_v29, 5  ;;  %v2222_v8 = vrot.slane %v2206_v21, 5  ;;  %v2223_v7 = vrot.slane %v2207_v40, 5  ;;  %v2224_v2 = vrot.slane %v2208_v59, 5 }
 0x18f   : > { %v2225_v19 = vrot.slane %v2209_v26, 5  ;;  %v2226_v38 = vrot.slane %v2210_v12, 5  ;;  %v2227_v14 = vrot.slane %v2211_v36, 5  ;;  %v2250_v16 = vmul.f32 %v2248_v41, %v7844_v45 }
 0x190   : > { %v2237_v30 = vadd.f32 %v2221_v48, %v2192_v4  ;;  %v2238_v39 = vadd.f32 %v2222_v8, %v2193_v17  ;;  %v2239_v6 = vadd.f32 %v2223_v7, %v2194_v46  ;;  %v2240_v5 = vadd.f32 %v2224_v2, %v2195_v43 }
 0x191   : > { %v2241_v0 = vadd.f32 %v2225_v19, %v2196_v10  ;;  %v2242_v34 = vadd.f32 %v2226_v38, %v2197_v15  ;;  %v2251_v27 = vmul.f32 %v2248_v41, %v7847_v50  ;;  %v2252_v11 = vmul.f32 %v2248_v41, %v7849_v51 }
 0x192   : > { %v2253_v58 = vmul.f32 %v2248_v41, %v7851_v52  ;;  %v2254_v28 = vmul.f32 %v2248_v41, %v7853_v53  ;;  %v2255_v42 = vmul.f32 %v2248_v41, %v7855_v54  ;;  %v8607_v32 = vmul.f32 %v2248_v41, %v7857_v55 }
 0x193   : > { %v8610_v25 = vmul.f32 %v2248_v41, %v7859_v56  ;;  %v8612_v18 = vadd.f32 %v2227_v14, %v2198_v49  ;;  %v2266_v9 = vrot.slane %v2250_v16, 6  ;;  %v2267_v4 = vrot.slane %v2251_v27, 6 }
 0x194   : > { %v2268_v17 = vrot.slane %v2252_v11, 6  ;;  %v2269_v46 = vrot.slane %v2253_v58, 6  ;;  %v2270_v43 = vrot.slane %v2254_v28, 6  ;;  %v2271_v10 = vrot.slane %v2255_v42, 6 }
 0x195   : > { %v2282_v31 = vadd.f32 %v2266_v9, %v2237_v30  ;;  %v2283_v62 = vadd.f32 %v2267_v4, %v2238_v39  ;;  %v8616_v59 = vstv %s7086_s16  ;;  %v2399_v49 = vstv %s7088_s17  ;;  %s7120_s16 = spop %7119 }
 0x196   : > { %v2284_v29 = vadd.f32 %v2268_v17, %v2239_v6  ;;  %v2285_v21 = vadd.f32 %v2269_v46, %v2240_v5  ;;  %v2286_v40 = vadd.f32 %v2270_v43, %v2241_v0  ;;  %v2295_v26 = vmul.f32 %v8616_v59, %v7844_v45  ;;  %s7122_s17 = spop %7121 }
 0x197   : > { %v2296_v12 = vmul.f32 %v8616_v59, %v7847_v50  ;;  %v2297_v36 = vmul.f32 %v8616_v59, %v7849_v51  ;;  %v2298_v48 = vmul.f32 %v8616_v59, %v7851_v52  ;;  %v8626_v8 = vadd.f32 %v2271_v10, %v2242_v34 }
 0x198   : > { %v2299_v7 = vmul.f32 %v8616_v59, %v7853_v53  ;;  %v8632_v2 = vmul.f32 %v8616_v59, %v7855_v54  ;;  %v8636_v19 = vmul.f32 %v8616_v59, %v7857_v55  ;;  %v2311_v38 = vrot.slane %v2295_v26, 7 }
 0x199   : > { %v2312_v14 = vrot.slane %v2296_v12, 7  ;;  %v2313_v30 = vrot.slane %v2297_v36, 7  ;;  %v2314_v39 = vrot.slane %v2298_v48, 7  ;;  %v2401_v34 = vmul.f32 %v2399_v49, %v7844_v45 }
 0x19a   : > { %10690 = vst [vmem:[#allocation8_spill] sm:$0xff] %v8632_v2  ;;  %v2315_v6 = vrot.slane %v2299_v7, 7  ;;  %v2327_v41 = vadd.f32 %v2311_v38, %v2282_v31  ;;  %v2402_v28 = vmul.f32 %v2399_v49, %v7847_v50  ;;  %v2403_v42 = vmul.f32 %v2399_v49, %v7849_v51 }
 0x19b   : > { %10691 = vst [vmem:[#allocation5_spill] sm:$0xff] %v8636_v19  ;;  %v2328_v16 = vadd.f32 %v2312_v14, %v2283_v62  ;;  %v2329_v27 = vadd.f32 %v2313_v30, %v2284_v29  ;;  %v2330_v11 = vadd.f32 %v2314_v39, %v2285_v21  ;;  %v2404_v9 = vmul.f32 %v2399_v49, %v7851_v52 }
 0x19c   : > { %v8643_v58 = vadd.f32 %v2315_v6, %v2286_v40  ;;  %v2335_v4 = vpack.c.bf16 %v2327_v41, %v2327_v41  ;;  %v2405_v31 = vmul.f32 %v2399_v49, %v7853_v53  ;;  %v2406_v62 = vmul.f32 %v2399_v49, %v7855_v54 }
 0x19d   : > { %v2336_v17 = vpack.c.bf16 %v2328_v16, %v2328_v16  ;;  %v2337_v46 = vpack.c.bf16 %v2329_v27, %v2329_v27  ;;  %v2338_v43 = vpack.c.bf16 %v2330_v11, %v2330_v11  ;;  %v2407_v29 = vmul.f32 %v2399_v49, %v7857_v55 }
 0x19e   : > { %10692 = vst [vmem:[#allocation6_spill] sm:$0xff] %v8643_v58  ;;  %v8653_v21 = vunpack.c.l.b16 %v2335_v4  ;;  %v2408_v12 = vmul.f32 %v2399_v49, %v7859_v56  ;;  %v2412_v48 = vstv %s8638_s18  ;;  %v2457_v7 = vstv %s7092_s19  ;;  %s7124_s18 = spop %7123 }
 0x19f   : > { %v8655_v40 = vunpack.c.l.b16 %v2336_v17  ;;  %v8657_v26 = vunpack.c.l.b16 %v2337_v46  ;;  %v8660_v36 = vunpack.c.l.b16 %v2338_v43  ;;  %v2502_v38 = vstv %s7094_s20  ;;  %s7126_s19 = spop %7125 }
 0x1a0   : > { %10693 = vst [vmem:[#allocation7_spill] sm:$0xff] %v8653_v21  ;;  %v2414_v39 = vmul.f32 %v2412_v48, %v7844_v45  ;;  %v8666_v6 = vstv %s7096_s21  ;;  %v2415_v41 = vmul.f32 %v2412_v48, %v7847_v50  ;;  %v2416_v16 = vmul.f32 %v2412_v48, %v7849_v51  ;;  %s7128_s20 = spop %7127 }
 0x1a1   : > { %10694 = vst [vmem:[#allocation10_spill] sm:$0xff] %v8655_v40  ;;  %v2417_v27 = vmul.f32 %v2412_v48, %v7851_v52  ;;  %v2418_v49 = vmul.f32 %v2412_v48, %v7853_v53  ;;  %v2419_v11 = vmul.f32 %v2412_v48, %v7855_v54  ;;  %v2420_v4 = vmul.f32 %v2412_v48, %v7857_v55  ;;  %s7130_s21 = spop %7129 }
 0x1a2   : > { %10695 = vst [vmem:[#allocation9_spill] sm:$0xff] %v8657_v26  ;;  %v2421_v17 = vmul.f32 %v2412_v48, %v7859_v56  ;;  %v2430_v46 = vrot.slane %v2414_v39, 1  ;;  %v2431_v43 = vrot.slane %v2415_v41, 1  ;;  %v2432_v30 = vrot.slane %v2416_v16, 1 }
 0x1a3   : > { %v2433_v14 = vrot.slane %v2417_v27, 1  ;;  %v2434_v0 = vrot.slane %v2418_v49, 1  ;;  %v2435_v5 = vrot.slane %v2419_v11, 1  ;;  %v2436_v33 = vrot.slane %v2420_v4, 1 }
 0x1a4   : > { %v2437_v15 = vrot.slane %v2421_v17, 1  ;;  %v2446_v47 = vadd.f32 %v2430_v46, %v2401_v34  ;;  %v2447_v37 = vadd.f32 %v2431_v43, %v2402_v28  ;;  %v2448_v26 = vadd.f32 %v2432_v30, %v2403_v42 }
 0x1a5   : > { %v2449_v40 = vadd.f32 %v2433_v14, %v2404_v9  ;;  %v2450_v21 = vadd.f32 %v2434_v0, %v2405_v31  ;;  %v2451_v19 = vadd.f32 %v2435_v5, %v2406_v62  ;;  %v2452_v58 = vadd.f32 %v2436_v33, %v2407_v29 }
 0x1a6   : > { %v2459_v2 = vmul.f32 %v2457_v7, %v7844_v45  ;;  %v2460_v48 = vmul.f32 %v2457_v7, %v7847_v50  ;;  %v2461_v39 = vmul.f32 %v2457_v7, %v7849_v51  ;;  %v2462_v41 = vmul.f32 %v2457_v7, %v7851_v52 }
 0x1a7   : > { %v2463_v16 = vmul.f32 %v2457_v7, %v7853_v53  ;;  %v2453_v27 = vadd.f32 %v2437_v15, %v2408_v12  ;;  %v2464_v49 = vmul.f32 %v2457_v7, %v7855_v54  ;;  %v2465_v34 = vmul.f32 %v2457_v7, %v7857_v55 }
 0x1a8   : > { %v2466_v28 = vmul.f32 %v2457_v7, %v7859_v56  ;;  %v2475_v0 = vrot.slane %v2459_v2, 2  ;;  %v2476_v5 = vrot.slane %v2460_v48, 2  ;;  %v2477_v33 = vrot.slane %v2461_v39, 2 }
 0x1a9   : > { %v2478_v42 = vrot.slane %v2462_v41, 2  ;;  %v2479_v9 = vrot.slane %v2463_v16, 2  ;;  %v2480_v31 = vrot.slane %v2464_v49, 2  ;;  %v2481_v62 = vrot.slane %v2465_v34, 2 }
 0x1aa   : > { %v2482_v29 = vrot.slane %v2466_v28, 2  ;;  %v2491_v14 = vadd.f32 %v2475_v0, %v2446_v47  ;;  %v2492_v30 = vadd.f32 %v2476_v5, %v2447_v37  ;;  %v2493_v11 = vadd.f32 %v2477_v33, %v2448_v26 }
 0x1ab   : > { %v2494_v4 = vadd.f32 %v2478_v42, %v2449_v40  ;;  %v2495_v17 = vadd.f32 %v2479_v9, %v2450_v21  ;;  %v2496_v15 = vadd.f32 %v2480_v31, %v2451_v19  ;;  %v2497_v12 = vadd.f32 %v2481_v62, %v2452_v58 }
 0x1ac   : > { %v2504_v46 = vmul.f32 %v2502_v38, %v7844_v45  ;;  %v2505_v43 = vmul.f32 %v2502_v38, %v7847_v50  ;;  %v2506_v2 = vmul.f32 %v2502_v38, %v7849_v51  ;;  %v2507_v7 = vmul.f32 %v2502_v38, %v7851_v52 }
 0x1ad   : > { %v2508_v48 = vmul.f32 %v2502_v38, %v7853_v53  ;;  %v2498_v39 = vadd.f32 %v2482_v29, %v2453_v27  ;;  %v2509_v41 = vmul.f32 %v2502_v38, %v7855_v54  ;;  %v2510_v37 = vmul.f32 %v2502_v38, %v7857_v55 }
 0x1ae   : > { %v2511_v47 = vmul.f32 %v2502_v38, %v7859_v56  ;;  %v2520_v21 = vrot.slane %v2504_v46, 3  ;;  %v2521_v19 = vrot.slane %v2505_v43, 3  ;;  %v2522_v58 = vrot.slane %v2506_v2, 3 }
 0x1af   : > { %v2523_v40 = vrot.slane %v2507_v7, 3  ;;  %v2524_v26 = vrot.slane %v2508_v48, 3  ;;  %v2525_v16 = vrot.slane %v2509_v41, 3  ;;  %v2526_v49 = vrot.slane %v2510_v37, 3 }
 0x1b0   : > { %v2527_v34 = vrot.slane %v2511_v47, 3  ;;  %v2536_v28 = vadd.f32 %v2520_v21, %v2491_v14  ;;  %v2537_v0 = vadd.f32 %v2521_v19, %v2492_v30  ;;  %v2538_v5 = vadd.f32 %v2522_v58, %v2493_v11 }
 0x1b1   : > { %v2539_v33 = vadd.f32 %v2523_v40, %v2494_v4  ;;  %v2540_v42 = vadd.f32 %v2524_v26, %v2495_v17  ;;  %v2541_v27 = vadd.f32 %v2525_v16, %v2496_v15  ;;  %v2542_v9 = vadd.f32 %v2526_v49, %v2497_v12 }
 0x1b2   : > { %v2549_v31 = vmul.f32 %v8666_v6, %v7844_v45  ;;  %v2550_v38 = vmul.f32 %v8666_v6, %v7847_v50  ;;  %v2551_v62 = vmul.f32 %v8666_v6, %v7849_v51  ;;  %v2552_v29 = vmul.f32 %v8666_v6, %v7851_v52 }
 0x1b3   : > { %v2553_v14 = vmul.f32 %v8666_v6, %v7853_v53  ;;  %v2543_v30 = vadd.f32 %v2527_v34, %v2498_v39  ;;  %v2554_v11 = vmul.f32 %v8666_v6, %v7855_v54  ;;  %v2555_v4 = vmul.f32 %v8666_v6, %v7857_v55 }
 0x1b4   : > { %v2556_v17 = vmul.f32 %v8666_v6, %v7859_v56  ;;  %v2565_v15 = vrot.slane %v2549_v31, 4  ;;  %v2566_v12 = vrot.slane %v2550_v38, 4  ;;  %v2567_v46 = vrot.slane %v2551_v62, 4 }
 0x1b5   : > { %v2568_v43 = vrot.slane %v2552_v29, 4  ;;  %v2569_v2 = vrot.slane %v2553_v14, 4  ;;  %v2570_v7 = vrot.slane %v2554_v11, 4  ;;  %v2571_v48 = vrot.slane %v2555_v4, 4  ;;  %v10721_v11 = vld [vmem:[#allocation30_spill] sm:$0xff] }
 0x1b6   : > { %v2572_v41 = vrot.slane %v2556_v17, 4  ;;  %v2581_v37 = vadd.f32 %v2565_v15, %v2536_v28  ;;  %v2582_v39 = vadd.f32 %v2566_v12, %v2537_v0  ;;  %v2583_v47 = vadd.f32 %v2567_v46, %v2538_v5 }
 0x1b7   : > { %v2584_v21 = vadd.f32 %v2568_v43, %v2539_v33  ;;  %v2585_v19 = vadd.f32 %v2569_v2, %v2540_v42  ;;  %v2586_v58 = vadd.f32 %v2570_v7, %v2541_v27  ;;  %v2587_v40 = vadd.f32 %v2571_v48, %v2542_v9 }
 0x1b8   : > { %v2592_v26 = vstv %s7098_s22  ;;  %v8718_v5 = vadd.f32 %v2572_v41, %v2543_v30  ;;  %v2637_v2 = vstv %s7100_s23  ;;  %s7132_s22 = spop %7131 }
 0x1b9   : > { %v2594_v16 = vmul.f32 %v2592_v26, %v7844_v45  ;;  %v2595_v6 = vmul.f32 %v2592_v26, %v7847_v50  ;;  %v2596_v49 = vmul.f32 %v2592_v26, %v7849_v51  ;;  %v2597_v34 = vmul.f32 %v2592_v26, %v7851_v52  ;;  %s7134_s23 = spop %7133 }
 0x1ba   : > { %v2598_v31 = vmul.f32 %v2592_v26, %v7853_v53  ;;  %v2599_v38 = vmul.f32 %v2592_v26, %v7855_v54  ;;  %v2600_v28 = vmul.f32 %v2592_v26, %v7857_v55  ;;  %v8716_v0 = vmul.f32 %v2592_v26, %v7859_v56 }
 0x1bb   : > { %v2610_v33 = vrot.slane %v2594_v16, 5  ;;  %v2611_v42 = vrot.slane %v2595_v6, 5  ;;  %v2612_v27 = vrot.slane %v2596_v49, 5  ;;  %v2613_v9 = vrot.slane %v2597_v34, 5 }
 0x1bc   : > { %v2614_v62 = vrot.slane %v2598_v31, 5  ;;  %v2615_v29 = vrot.slane %v2599_v38, 5  ;;  %v2616_v14 = vrot.slane %v2600_v28, 5  ;;  %v2639_v30 = vmul.f32 %v2637_v2, %v7844_v45 }
 0x1bd   : > { %v2626_v4 = vadd.f32 %v2610_v33, %v2581_v37  ;;  %v2627_v17 = vadd.f32 %v2611_v42, %v2582_v39  ;;  %v2628_v15 = vadd.f32 %v2612_v27, %v2583_v47  ;;  %v2629_v12 = vadd.f32 %v2613_v9, %v2584_v21 }
 0x1be   : > { %v2630_v46 = vadd.f32 %v2614_v62, %v2585_v19  ;;  %v8721_v43 = vadd.f32 %v2615_v29, %v2586_v58  ;;  %v2640_v7 = vmul.f32 %v2637_v2, %v7847_v50  ;;  %v2641_v48 = vmul.f32 %v2637_v2, %v7849_v51  ;;  %v10698_v29 = vld [vmem:[#allocation14_spill] sm:$0xff] }
 0x1bf   : > { %v2642_v41 = vmul.f32 %v2637_v2, %v7851_v52  ;;  %v2643_v26 = vmul.f32 %v2637_v2, %v7853_v53  ;;  %v8729_v16 = vmul.f32 %v2637_v2, %v7855_v54  ;;  %v8732_v37 = vmul.f32 %v2637_v2, %v7857_v55 }
 0x1c0   : > { %v8735_v39 = vmul.f32 %v2637_v2, %v7859_v56  ;;  %v8737_v47 = vadd.f32 %v2616_v14, %v2587_v40  ;;  %v2655_v21 = vrot.slane %v2639_v30, 6  ;;  %v2656_v19 = vrot.slane %v2640_v7, 6  ;;  %v10699_v14 = vld [vmem:[#allocation15_spill] sm:$0xff]  ;;  %v10701_v7 = vld [vmem:[#allocation22_spill] sm:$0xff] }
 0x1c1   : > { %v2657_v58 = vrot.slane %v2641_v48, 6  ;;  %v2658_v6 = vrot.slane %v2642_v41, 6  ;;  %v2659_v49 = vrot.slane %v2643_v26, 6  ;;  %v2660_v34 = vrot.slane %v8729_v16, 6  ;;  %v10703_v41 = vld [vmem:[#allocation19_spill] sm:$0xff]  ;;  %v10706_v16 = vld [vmem:[#allocation26_spill] sm:$0xff] }
 0x1c2   : > { %10696 = vst [vmem:[#allocation11_spill] sm:$0xff] %v8735_v39  ;;  %v8742_v28 = vadd.f32 %v2655_v21, %v2626_v4  ;;  %v8744_v33 = vadd.f32 %v2656_v19, %v2627_v17  ;;  %v10697_v9 = vrot.slane %v8049_v3, 3  ;;  %v10700_v2 = vrot.slane %v10699_v14, 4  ;;  %v10702_v4 = vld [vmem:[#allocation17_spill] sm:$0xff]  ;;  %v10707_v21 = vld [vmem:[#allocation16_spill] sm:$0xff] }
 0x1c3   : > { %v8746_v42 = vadd.f32 %v2657_v58, %v2628_v15  ;;  %v8748_v27 = vadd.f32 %v2658_v6, %v2629_v12  ;;  %v8750_v40 = vadd.f32 %v2659_v49, %v2630_v46  ;;  %v1061_v48 = vrot.slane %v10701_v7, 5  ;;  %v10705_v15 = vld [vmem:[#allocation18_spill] sm:$0xff]  ;;  %v10709_v3 = vld [vmem:[#allocation20_spill] sm:$0xff]  ;;  %v10711_v49 = vld [vmem:[#allocation23_spill] sm:$0xff] }
 0x1c4   : > { %v987_v62 = vadd.f32 %v10697_v9, %v8051_v23  ;;  %v1031_v30 = vadd.f32 %v10700_v2, %v10698_v29  ;;  %v10704_v17 = vrot.slane %v10703_v41, 5  ;;  %v1090_v12 = vmul.f32 %v10705_v15, %v7859_v56  ;;  %v10712_v9 = vld [vmem:[#allocation24_spill] sm:$0xff]  ;;  %v10714_v2 = vld [vmem:[#allocation21_spill] sm:$0xff] }
 0x1c5   : > { %v1105_v46 = vrot.slane %v10706_v16, 6  ;;  %v10708_v19 = vrot.slane %v10707_v21, 4  ;;  %v10710_v23 = vrot.slane %v10709_v3, 5  ;;  %v10713_v29 = vrot.slane %v10712_v9, 6  ;;  %v10717_v16 = vld [vmem:[#allocation28_spill] sm:$0xff] }
 0x1c6   : > { %v1075_v26 = vadd.f32 %v10704_v17, %v10702_v4  ;;  %v1134_v7 = vmul.f32 %v10714_v2, %v7857_v55  ;;  %v1106_v41 = vrot.slane %v1090_v12, 6  ;;  %v10715_v4 = vld [vmem:[#allocation25_spill] sm:$0xff]  ;;  %v1135_v15 = vmul.f32 %v10714_v2, %v7859_v56  ;;  %v8787_v2 = vpop.permute.xlu2 %7493 }
 0x1c7   : > { %v1032_v58 = vadd.f32 %v10708_v19, %v987_v62  ;;  %v1076_v6 = vadd.f32 %v10710_v23, %v1031_v30  ;;  %v1119_v14 = vadd.f32 %v10713_v29, %v10711_v49  ;;  %v10716_v17 = vrot.slane %v10715_v4, 6  ;;  %v10718_v30 = vld [vmem:[#allocation27_spill] sm:$0xff]  ;;  %v10720_v29 = vld [vmem:[#allocation29_spill] sm:$0xff] }
 0x1c8   : > { %v1149_v21 = vrot.slane %v10717_v16, 7  ;;  %v1150_v3 = vrot.slane %v1134_v7, 7  ;;  %v10719_v23 = vrot.slane %v10718_v30, 7  ;;  %v1151_v49 = vrot.slane %v1135_v15, 7 }
 0x1c9   : > { %v1120_v38 = vadd.f32 %v10716_v17, %v1075_v26  ;;  %v1077_v62 = vadd.f32 %v1061_v48, %v1032_v58  ;;  %v1121_v19 = vadd.f32 %v1105_v46, %v1076_v6  ;;  %v1171_v12 = vpack.c.bf16 %v10720_v29, %v10720_v29  ;;  %v10723_v58 = vld [vmem:[#allocation31_spill] sm:$0xff] }
 0x1ca   : > { %v1164_v31 = vadd.f32 %v10719_v23, %v1119_v14  ;;  %v10722_v26 = vrot.slane %v8154_v35, 7  ;;  %v1194_v6 = vrot.slane %v10723_v58, 6  ;;  %v7495_v15 = vunpack.i.l.bf16 %v8787_v2 }
 0x1cb   : > { %v1165_v9 = vadd.f32 %v1149_v21, %v1120_v38  ;;  %v1122_v17 = vadd.f32 %v1106_v41, %v1077_v62  ;;  %v1166_v48 = vadd.f32 %v1150_v3, %v1121_v19  ;;  %v1187_v14 = vunpack.c.l.b16 %v1171_v12 }
 0x1cc   : > { %v1193_v4 = vsel %vm796_vm1, %v10722_v26, %v10721_v11  ;;  %v1172_v46 = vpack.c.bf16 %v1164_v31, %v1164_v31  ;;  %v8791_v38 = vstv %s7102_s24  ;;  %7175 = vpush %v7495_v15  ;;  %v8811_v58 = vadd.f32 %v2660_v34, %v8721_v43  ;;  %s7136_s24 = spop %7135 }
 0x1cd   : > { %v1173_v7 = vpack.c.bf16 %v1165_v9, %v1165_v9  ;;  %10724 = vst [vmem:[#allocation13_spill] sm:$0xff] %v8791_v38  ;;  %v1167_v16 = vadd.f32 %v1151_v49, %v1122_v17  ;;  %v1174_v21 = vpack.c.bf16 %v1166_v48, %v1166_v48  ;;  %v1195_v35 = vsel %vm799_vm2, %v1194_v6, %v1193_v4 }
 0x1ce   : > { %v1188_v30 = vunpack.c.l.b16 %v1172_v46  ;;  %v1196_v11 = vrot.slane %v1187_v14, 5  ;;  %v2684_v41 = vmul.f32 %v8791_v38, %v7844_v45  ;;  %v2685_v31 = vmul.f32 %v8791_v38, %v7847_v50  ;;  %10726 = vst [vmem:[#allocation14_spill] sm:$0xff] %v8811_v58 }
 0x1cf   : > { %v1189_v23 = vunpack.c.l.b16 %v1173_v7  ;;  %v1175_v62 = vpack.c.bf16 %v1167_v16, %v1167_v16  ;;  %v1190_v19 = vunpack.c.l.b16 %v1174_v21  ;;  %v2686_v9 = vmul.f32 %v8791_v38, %v7849_v51  ;;  %v8815_v21 = vpop.permute.xlu0 %7498 }
 0x1d0   : > { %v1198_v3 = vrot.slane %v1188_v30, 4  ;;  %v1197_v49 = vsel %vm802_vm3, %v1196_v11, %v1195_v35  ;;  %v2687_v12 = vmul.f32 %v8791_v38, %v7851_v52  ;;  %v2688_v26 = vmul.f32 %v8791_v38, %v7853_v53 }
 0x1d1   : > { %v1200_v29 = vrot.slane %v1189_v23, 3  ;;  %v1191_v4 = vunpack.c.l.b16 %v1175_v62  ;;  %v1202_v48 = vrot.slane %v1190_v19, 2  ;;  %v8808_v46 = vmul.f32 %v8791_v38, %v7855_v54  ;;  %v8817_v23 = vpop.permute.xlu1 %7503 }
 0x1d2   : > { %v1199_v17 = vsel %vm805_vm4, %v1198_v3, %v1197_v49  ;;  %v2700_v7 = vrot.slane %v2684_v41, 7  ;;  %v2701_v14 = vrot.slane %v2685_v31, 7  ;;  %v2702_v30 = vrot.slane %v2686_v9, 7  ;;  %v8826_v31 = vpop.permute.xlu2 %7508 }
 0x1d3   : > { %10725 = vst [vmem:[#allocation12_spill] sm:$0xff] %v8808_v46  ;;  %v1201_v6 = vsel %vm808_vm5, %v1200_v29, %v1199_v17  ;;  %v1204_v16 = vrot.slane %v1191_v4, 1  ;;  %v2703_v35 = vrot.slane %v2687_v12, 7  ;;  %v8821_v11 = vmul.f32 %v8791_v38, %v7857_v55 }
 0x1d4   : > { %v1203_v15 = vsel %vm811_vm6, %v1202_v48, %v1201_v6  ;;  %v2704_v62 = vrot.slane %v2688_v26, 7  ;;  %v2716_v34 = vadd.f32 %v2700_v7, %v8742_v28  ;;  %v2717_v19 = vadd.f32 %v2701_v14, %v8744_v33 }
 0x1d5   : > { %10727 = vst [vmem:[#allocation15_spill] sm:$0xff] %v8821_v11  ;;  %v1205_v41 = vsel %vm814_vm7, %v1204_v16, %v1203_v15  ;;  %v2718_v3 = vadd.f32 %v2702_v30, %v8746_v42  ;;  %v2719_v9 = vadd.f32 %v2703_v35, %v8748_v27  ;;  %v7500_v26 = vunpack.i.l.bf16 %v8815_v21 }
 0x1d6   : > { %v1206_v49 = vpack.c.b16 %v1205_v41, %v1205_v41  ;;  %v8832_v29 = vadd.f32 %v2704_v62, %v8750_v40  ;;  %v2724_v12 = vpack.c.bf16 %v2716_v34, %v2716_v34  ;;  %v2725_v4 = vpack.c.bf16 %v2717_v19, %v2717_v19 }
 0x1d7   : > { %v2726_v17 = vpack.c.bf16 %v2718_v3, %v2718_v3  ;;  %v2727_v28 = vpack.c.bf16 %v2719_v9, %v2719_v9  ;;  %v7505_v48 = vunpack.i.l.bf16 %v8817_v23  ;;  %7177 = vpush %v7500_v26  ;;  %v7510_v40 = vunpack.i.l.bf16 %v8826_v31 }
 0x1d8   : > { %10728 = vst [vmem:[#allocation22_spill] sm:$0xff] %v8832_v29  ;;  %6975 = vmatmul.msk.bf16.vlgmr.msra.gmra.mxu1 %vm817_vm8, %v1206_v49  ;;  %v8840_v27 = vunpack.c.l.b16 %v2724_v12  ;;  %v8843_v6 = vunpack.c.l.b16 %v2725_v4  ;;  %v7481_v15 = vunpack.i.h.bf16 %v8554_v44  ;;  %v7486_v16 = vunpack.i.h.bf16 %v8571_v24 }
 0x1d9   : > { %v8845_v7 = vunpack.c.l.b16 %v2726_v17  ;;  %v8847_v14 = vunpack.c.l.b16 %v2727_v28  ;;  %7179 = vpush %v7505_v48  ;;  %4324 = vmatpush.bf16.msra.mxu1 %v8457_v63  ;;  %v7491_v30 = vunpack.i.h.bf16 %v8569_v1  ;;  %v7496_v35 = vunpack.i.h.bf16 %v8787_v2  ;;  %v10734_v17 = vld [vmem:[#allocation32_spill] sm:$0xff] }
 0x1da   : > { %10729 = vst [vmem:[#allocation17_spill] sm:$0xff] %v8840_v27  ;;  %v7501_v62 = vunpack.i.h.bf16 %v8815_v21  ;;  %v10733_v19 = vrot.slane %v7733_v13, 3  ;;  %v7506_v44 = vunpack.i.h.bf16 %v8817_v23  ;;  %v2788_v3 = vstv %s7104_s25  ;;  %s7138_s25 = spop %7137 }
 0x1db   : > { %10730 = vst [vmem:[#allocation19_spill] sm:$0xff] %v8843_v6  ;;  %v2790_v24 = vmul.f32 %v2788_v3, %v7844_v45  ;;  %v2791_v1 = vmul.f32 %v2788_v3, %v7847_v50  ;;  %v2792_v2 = vmul.f32 %v2788_v3, %v7849_v51  ;;  %v2793_v21 = vmul.f32 %v2788_v3, %v7851_v52 }
 0x1dc   : > { %10731 = vst [vmem:[#allocation18_spill] sm:$0xff] %v8845_v7  ;;  %v2794_v9 = vmul.f32 %v2788_v3, %v7853_v53  ;;  %v2795_v49 = vmul.f32 %v2788_v3, %v7855_v54  ;;  %v2796_v12 = vmul.f32 %v2788_v3, %v7857_v55  ;;  %v2797_v23 = vmul.f32 %v2788_v3, %v7859_v56 }
 0x1dd   : > { %10732 = vst [vmem:[#allocation26_spill] sm:$0xff] %v8847_v14  ;;  %v2801_v26 = vstv %s7106_s26  ;;  %v2846_v4 = vstv %s7108_s27  ;;  %v10735_v28 = vrot.slane %v10734_v17, 3  ;;  %s7140_s26 = spop %7139 }
 0x1de   : > { %7181 = vpush %v7510_v40  ;;  %v10736_v40 = vld [vmem:[#allocation33_spill] sm:$0xff]  ;;  %v2804_v33 = vmul.f32 %v2801_v26, %v7847_v50  ;;  %v2805_v34 = vmul.f32 %v2801_v26, %v7849_v51  ;;  %v2806_v3 = vmul.f32 %v2801_v26, %v7851_v52  ;;  %v2808_v42 = vmul.f32 %v2801_v26, %v7855_v54  ;;  %s7142_s27 = spop %7141 }
 0x1df   : > { %7183 = vpush %v10733_v19  ;;  %v1376_v48 = vadd.f32 %v10735_v28, %v8184_v61  ;;  %v2809_v61 = vmul.f32 %v2801_v26, %v7857_v55  ;;  %v2810_v17 = vmul.f32 %v2801_v26, %v7859_v56  ;;  %v2848_v38 = vmul.f32 %v2846_v4, %v7844_v45 }
 0x1e0   : > { %7185 = vpush %v7481_v15  ;;  %v10737_v15 = vld [vmem:[#allocation34_spill] sm:$0xff]  ;;  %v2824_v43 = vrot.slane %v2808_v42, 1  ;;  %v2852_v42 = vmul.f32 %v2846_v4, %v7853_v53 }
 0x1e1   : > { %7187 = vpush %v7486_v16  ;;  %v10738_v19 = vrot.slane %v10737_v15, 4  ;;  %v2803_v16 = vmul.f32 %v2801_v26, %v7844_v45  ;;  %v2822_v15 = vrot.slane %v2806_v3, 1  ;;  %v2825_v10 = vrot.slane %v2809_v61, 1 }
 0x1e2   : > { %7189 = vpush %v7491_v30  ;;  %v2807_v30 = vmul.f32 %v2801_v26, %v7853_v53  ;;  %v2826_v7 = vrot.slane %v2810_v17, 1  ;;  %v2840_v29 = vadd.f32 %v2824_v43, %v2795_v49  ;;  %v2853_v26 = vmul.f32 %v2846_v4, %v7855_v54 }
 0x1e3   : > { %v1420_v41 = vadd.f32 %v10738_v19, %v10736_v40  ;;  %7191 = vpush %v7496_v35  ;;  %v2819_v28 = vrot.slane %v2803_v16, 1  ;;  %v2820_v35 = vrot.slane %v2804_v33, 1  ;;  %v2821_v40 = vrot.slane %v2805_v34, 1 }
 0x1e4   : > { %7193 = vpush %v7501_v62  ;;  %v2823_v19 = vrot.slane %v2807_v30, 1  ;;  %v2838_v6 = vadd.f32 %v2822_v15, %v2793_v21  ;;  %v2841_v46 = vadd.f32 %v2825_v10, %v2796_v12  ;;  %v2842_v58 = vadd.f32 %v2826_v7, %v2797_v23  ;;  %v10741_v15 = vld [vmem:[#allocation39_spill] sm:$0xff] }
 0x1e5   : > { %7195 = vpush %v7506_v44  ;;  %v2835_v11 = vadd.f32 %v2819_v28, %v2790_v24  ;;  %v2836_v39 = vadd.f32 %v2820_v35, %v2791_v1  ;;  %v2837_v62 = vadd.f32 %v2821_v40, %v2792_v2  ;;  %v2849_v44 = vmul.f32 %v2846_v4, %v7847_v50  ;;  %v10739_v28 = vld [vmem:[#allocation35_spill] sm:$0xff] }
 0x1e6   : > { %v2839_v27 = vadd.f32 %v2823_v19, %v2794_v9  ;;  %v2850_v33 = vmul.f32 %v2846_v4, %v7849_v51  ;;  %v2851_v34 = vmul.f32 %v2846_v4, %v7851_v52  ;;  %v2854_v24 = vmul.f32 %v2846_v4, %v7857_v55  ;;  %v10742_v19 = vld [vmem:[#allocation38_spill] sm:$0xff] }
 0x1e7   : > { %v2855_v1 = vmul.f32 %v2846_v4, %v7859_v56  ;;  %v2864_v2 = vrot.slane %v2848_v38, 2  ;;  %v2865_v43 = vrot.slane %v2849_v44, 2  ;;  %v2868_v21 = vrot.slane %v2852_v42, 2  ;;  %v10748_v42 = vld [vmem:[#allocation45_spill] sm:$0xff] }
 0x1e8   : > { %v2866_v10 = vrot.slane %v2850_v33, 2  ;;  %v2867_v7 = vrot.slane %v2851_v34, 2  ;;  %v2869_v9 = vrot.slane %v2853_v26, 2  ;;  %v2870_v49 = vrot.slane %v2854_v24, 2  ;;  %v10745_v33 = vld [vmem:[#allocation37_spill] sm:$0xff] }
 0x1e9   : > { %v2871_v12 = vrot.slane %v2855_v1, 2  ;;  %v8890_v23 = vadd.f32 %v2864_v2, %v2835_v11  ;;  %v8892_v16 = vadd.f32 %v2865_v43, %v2836_v39  ;;  %v8898_v61 = vadd.f32 %v2868_v21, %v2839_v27  ;;  %v10743_v39 = vld [vmem:[#allocation36_spill] sm:$0xff]  ;;  %v10749_v26 = vld [vmem:[#allocation41_spill] sm:$0xff] }
 0x1ea   : > { %v8894_v3 = vadd.f32 %v2866_v10, %v2837_v62  ;;  %v8896_v30 = vadd.f32 %v2867_v7, %v2838_v6  ;;  %v8900_v17 = vadd.f32 %v2869_v9, %v2840_v29  ;;  %v8902_v38 = vadd.f32 %v2870_v49, %v2841_v46  ;;  %v10747_v27 = vld [vmem:[#allocation40_spill] sm:$0xff]  ;;  %v10753_v10 = vld [vmem:[#allocation43_spill] sm:$0xff] }
 0x1eb   : > { %v8904_v4 = vadd.f32 %v2871_v12, %v2842_v58  ;;  %v10740_v35 = vrot.slane %v10739_v28, 4  ;;  %v1450_v11 = vrot.slane %v10741_v15, 5  ;;  %v10744_v44 = vrot.slane %v10743_v39, 5  ;;  %v10750_v58 = vld [vmem:[#allocation42_spill] sm:$0xff] }
 0x1ec   : > { %v10746_v6 = vrot.slane %v10745_v33, 5  ;;  %v1479_v29 = vmul.f32 %v10747_v27, %v7859_v56  ;;  %v1494_v46 = vrot.slane %v10748_v42, 6  ;;  %v10751_v24 = vrot.slane %v10750_v58, 6  ;;  %v10756_v15 = vld [vmem:[#allocation46_spill] sm:$0xff] }
 0x1ed   : > { %v1421_v40 = vadd.f32 %v10740_v35, %v1376_v48  ;;  %v1464_v62 = vadd.f32 %v10744_v44, %v10742_v19  ;;  %v10752_v48 = vld [vmem:[#allocation44_spill] sm:$0xff]  ;;  %v10754_v7 = vrot.slane %v10753_v10, 6  ;;  %v10757_v19 = vrot.slane %v10756_v15, 7 }
 0x1ee   : > { %v1465_v34 = vadd.f32 %v10746_v6, %v1420_v41  ;;  %v1508_v1 = vadd.f32 %v10751_v24, %v10749_v26  ;;  %v1523_v2 = vmul.f32 %v10752_v48, %v7857_v55  ;;  %v1524_v9 = vmul.f32 %v10752_v48, %v7859_v56  ;;  %v10755_v41 = vld [vmem:[#allocation47_spill] sm:$0xff]  ;;  %v10758_v6 = vld [vmem:[#allocation48_spill] sm:$0xff] }
 0x1ef   : > { %v1466_v43 = vadd.f32 %v1450_v11, %v1421_v40  ;;  %v1509_v21 = vadd.f32 %v10754_v7, %v1464_v62  ;;  %v1538_v49 = vrot.slane %v10755_v41, 7  ;;  %v1495_v12 = vrot.slane %v1479_v29, 6  ;;  %v10759_v11 = vld [vmem:[#allocation49_spill] sm:$0xff]  ;;  %v10761_v29 = vld [vmem:[#allocation50_spill] sm:$0xff] }
 0x1f0   : > { %v1510_v28 = vadd.f32 %v1494_v46, %v1465_v34  ;;  %v1539_v35 = vrot.slane %v1523_v2, 7  ;;  %v1553_v39 = vadd.f32 %v10757_v19, %v1508_v1  ;;  %v1540_v44 = vrot.slane %v1524_v9, 7 }
 0x1f1   : > { %v1554_v33 = vadd.f32 %v1538_v49, %v1509_v21  ;;  %v1560_v40 = vpack.c.bf16 %v10758_v6, %v10758_v6  ;;  %v10760_v62 = vrot.slane %v8305_v57, 7  ;;  %v1511_v42 = vadd.f32 %v1495_v12, %v1466_v43 }
 0x1f2   : > { %v1555_v26 = vadd.f32 %v1539_v35, %v1510_v28  ;;  %v1561_v58 = vpack.c.bf16 %v1553_v39, %v1553_v39  ;;  %v1583_v34 = vrot.slane %v10761_v29, 6  ;;  %v7511_v1 = vunpack.i.h.bf16 %v8826_v31 }
 0x1f3   : > { %v1582_v27 = vsel %vm796_vm1, %v10760_v62, %v10759_v11  ;;  %v1562_v46 = vpack.c.bf16 %v1554_v33, %v1554_v33  ;;  %v1576_v24 = vunpack.c.l.b16 %v1560_v40  ;;  %v2891_v48 = vstv %s7110_s28  ;;  %s7144_s28 = spop %7143 }
 0x1f4   : > { %v1556_v2 = vadd.f32 %v1540_v44, %v1511_v42  ;;  %v1563_v10 = vpack.c.bf16 %v1555_v26, %v1555_v26  ;;  %v1577_v7 = vunpack.c.l.b16 %v1561_v58  ;;  %v1584_v21 = vsel %vm799_vm2, %v1583_v34, %v1582_v27  ;;  %7197 = vpush %v7511_v1 }
 0x1f5   : > { %v1578_v9 = vunpack.c.l.b16 %v1562_v46  ;;  %v1585_v41 = vrot.slane %v1576_v24, 5  ;;  %v2893_v57 = vmul.f32 %v2891_v48, %v7844_v45  ;;  %v2894_v43 = vmul.f32 %v2891_v48, %v7847_v50  ;;  %v8952_v24 = vpop.permute.xlu0 %7513 }
 0x1f6   : > { %v1564_v49 = vpack.c.bf16 %v1556_v2, %v1556_v2  ;;  %v1579_v12 = vunpack.c.l.b16 %v1563_v10  ;;  %v1587_v28 = vrot.slane %v1577_v7, 4  ;;  %v2895_v35 = vmul.f32 %v2891_v48, %v7849_v51 }
 0x1f7   : > { %v10762_v31 = vrot.slane %v7733_v13, 4  ;;  %v1586_v15 = vsel %vm802_vm3, %v1585_v41, %v1584_v21  ;;  %v1589_v19 = vrot.slane %v1578_v9, 3  ;;  %v2896_v39 = vmul.f32 %v2891_v48, %v7851_v52  ;;  %v8956_v41 = vpop.permute.xlu1 %7518 }
 0x1f8   : > { %v2897_v44 = vmul.f32 %v2891_v48, %v7853_v53  ;;  %v1580_v33 = vunpack.c.l.b16 %v1564_v49  ;;  %v1588_v6 = vsel %vm805_vm4, %v1587_v28, %v1586_v15  ;;  %v1591_v40 = vrot.slane %v1579_v12, 2 }
 0x1f9   : > { %7199 = vpush %v10762_v31  ;;  %v2898_v11 = vmul.f32 %v2891_v48, %v7855_v54  ;;  %v1590_v62 = vsel %vm808_vm5, %v1589_v19, %v1588_v6  ;;  %v2899_v27 = vmul.f32 %v2891_v48, %v7857_v55  ;;  %v2900_v42 = vmul.f32 %v2891_v48, %v7859_v56 }
 0x1fa   : > { %v2909_v26 = vrot.slane %v2893_v57, 3  ;;  %v1592_v58 = vsel %vm811_vm6, %v1591_v40, %v1590_v62  ;;  %v1593_v29 = vrot.slane %v1580_v33, 1  ;;  %v2910_v34 = vrot.slane %v2894_v43, 3 }
 0x1fb   : > { %v2911_v46 = vrot.slane %v2895_v35, 3  ;;  %v2912_v1 = vrot.slane %v2896_v39, 3  ;;  %v2913_v2 = vrot.slane %v2897_v44, 3  ;;  %v2914_v10 = vrot.slane %v2898_v11, 3 }
 0x1fc   : > { %v2915_v7 = vrot.slane %v2899_v27, 3  ;;  %v1594_v9 = vsel %vm814_vm7, %v1593_v29, %v1592_v58  ;;  %v2916_v48 = vrot.slane %v2900_v42, 3  ;;  %v2925_v57 = vadd.f32 %v2909_v26, %v8890_v23  ;;  %v10763_v29 = vld [vmem:[#allocation52_spill] sm:$0xff] }
 0x1fd   : > { %v1595_v49 = vpack.c.b16 %v1594_v9, %v1594_v9  ;;  %v2926_v43 = vadd.f32 %v2910_v34, %v8892_v16  ;;  %v2927_v12 = vadd.f32 %v2911_v46, %v8894_v3  ;;  %v2928_v28 = vadd.f32 %v2912_v1, %v8896_v30  ;;  %v10764_v34 = vld [vmem:[#allocation51_spill] sm:$0xff] }
 0x1fe   : > { %v2929_v35 = vadd.f32 %v2913_v2, %v8898_v61  ;;  %v2930_v31 = vadd.f32 %v2914_v10, %v8900_v17  ;;  %v2931_v15 = vadd.f32 %v2915_v7, %v8902_v38  ;;  %v7515_v19 = vunpack.i.l.bf16 %v8952_v24 }
 0x1ff   : > { %6976 = vmatmul.msk.bf16.vlgmr.msra.gmra.mxu2 %vm817_vm8, %v1595_v49  ;;  %v2932_v23 = vadd.f32 %v2916_v48, %v8904_v4  ;;  %v7520_v39 = vunpack.i.l.bf16 %v8956_v41  ;;  %v2936_v44 = vstv %s7112_s29  ;;  %v2981_v16 = vstv %s7114_s13  ;;  %s7146_s29 = spop %7145 }
 0x200   : > { %7201 = vpush %v7515_v19  ;;  %v2938_v3 = vmul.f32 %v2936_v44, %v7844_v45  ;;  %v2939_v30 = vmul.f32 %v2936_v44, %v7847_v50  ;;  %v2940_v61 = vmul.f32 %v2936_v44, %v7849_v51  ;;  %v2941_v17 = vmul.f32 %v2936_v44, %v7851_v52  ;;  %s7148_s13 = spop %7147 }
 0x201   : > { %7203 = vpush %v7520_v39  ;;  %v2942_v38 = vmul.f32 %v2936_v44, %v7853_v53  ;;  %v2943_v33 = vmul.f32 %v2936_v44, %v7855_v54  ;;  %v2944_v4 = vmul.f32 %v2936_v44, %v7857_v55  ;;  %v2945_v6 = vmul.f32 %v2936_v44, %v7859_v56 }
 0x202   : > { %v2954_v40 = vrot.slane %v2938_v3, 4  ;;  %v2955_v11 = vrot.slane %v2939_v30, 4  ;;  %v2956_v62 = vrot.slane %v2940_v61, 4  ;;  %v2957_v27 = vrot.slane %v2941_v17, 4  ;;  %4712 = vmatpush.bf16.msra.mxu2 %v8457_v63 }
 0x203   : > { %v2958_v42 = vrot.slane %v2942_v38, 4  ;;  %v2959_v26 = vrot.slane %v2943_v33, 4  ;;  %v2960_v58 = vrot.slane %v2944_v4, 4  ;;  %v10765_v46 = vrot.slane %v10764_v34, 3 }
 0x204   : > { %v2961_v2 = vrot.slane %v2945_v6, 4  ;;  %v2970_v10 = vadd.f32 %v2954_v40, %v2925_v57  ;;  %v2971_v7 = vadd.f32 %v2955_v11, %v2926_v43  ;;  %v2972_v9 = vadd.f32 %v2956_v62, %v2927_v12 }
 0x205   : > { %v1765_v1 = vadd.f32 %v10765_v46, %v10763_v29  ;;  %v2973_v48 = vadd.f32 %v2957_v27, %v2928_v28  ;;  %v2974_v49 = vadd.f32 %v2958_v42, %v2929_v35  ;;  %v2975_v19 = vadd.f32 %v2959_v26, %v2930_v31  ;;  %v10768_v26 = vld [vmem:[#allocation55_spill] sm:$0xff]  ;;  %v10771_v46 = vld [vmem:[#allocation54_spill] sm:$0xff] }
 0x206   : > { %v8981_v39 = vadd.f32 %v2960_v58, %v2931_v15  ;;  %v2983_v44 = vmul.f32 %v2981_v16, %v7844_v45  ;;  %v2984_v3 = vmul.f32 %v2981_v16, %v7847_v50  ;;  %v2985_v30 = vmul.f32 %v2981_v16, %v7849_v51  ;;  %v10769_v58 = vld [vmem:[#allocation53_spill] sm:$0xff] }
 0x207   : > { %v2986_v61 = vmul.f32 %v2981_v16, %v7851_v52  ;;  %v2987_v17 = vmul.f32 %v2981_v16, %v7853_v53  ;;  %v2988_v38 = vmul.f32 %v2981_v16, %v7855_v54  ;;  %v8990_v57 = vmul.f32 %v2981_v16, %v7857_v55 }
 0x208   : > { %v8993_v43 = vmul.f32 %v2981_v16, %v7859_v56  ;;  %v8995_v12 = vadd.f32 %v2961_v2, %v2932_v23  ;;  %v2999_v28 = vrot.slane %v2983_v44, 5  ;;  %v3000_v35 = vrot.slane %v2984_v3, 5  ;;  %v10773_v3 = vld [vmem:[#allocation60_spill] sm:$0xff] }
 0x209   : > { %v3001_v31 = vrot.slane %v2985_v30, 5  ;;  %v3002_v15 = vrot.slane %v2986_v61, 5  ;;  %v3003_v33 = vrot.slane %v2987_v17, 5  ;;  %v3004_v4 = vrot.slane %v2988_v38, 5  ;;  %v10774_v30 = vld [vmem:[#allocation57_spill] sm:$0xff] }
 0x20a   : > { %10766 = vst [vmem:[#allocation16_spill] sm:$0xff] %v8993_v43  ;;  %v3005_v6 = vrot.slane %v8990_v57, 5  ;;  %v8999_v11 = vadd.f32 %v2999_v28, %v2970_v10  ;;  %v9001_v62 = vadd.f32 %v3000_v35, %v2971_v7  ;;  %v10770_v29 = vrot.slane %v10769_v58, 4  ;;  %v10775_v7 = vld [vmem:[#allocation58_spill] sm:$0xff]  ;;  %v10780_v28 = vld [vmem:[#allocation64_spill] sm:$0xff] }
 0x20b   : > { %10767 = vst [vmem:[#allocation20_spill] sm:$0xff] %v8995_v12  ;;  %v9003_v27 = vadd.f32 %v3001_v31, %v2972_v9  ;;  %v9005_v16 = vadd.f32 %v3002_v15, %v2973_v48  ;;  %v9007_v23 = vadd.f32 %v3003_v33, %v2974_v49  ;;  %v9009_v42 = vadd.f32 %v3004_v4, %v2975_v19  ;;  %v10777_v48 = vld [vmem:[#allocation56_spill] sm:$0xff]  ;;  %v10778_v49 = vld [vmem:[#allocation59_spill] sm:$0xff]  ;;  %v10781_v31 = vld [vmem:[#allocation61_spill] sm:$0xff] }
 0x20c   : > { %v1809_v34 = vadd.f32 %v10770_v29, %v10768_v26  ;;  %v10772_v2 = vrot.slane %v10771_v46, 4  ;;  %v1839_v10 = vrot.slane %v10773_v3, 5  ;;  %v10776_v61 = vrot.slane %v10775_v7, 5  ;;  %v10782_v15 = vld [vmem:[#allocation62_spill] sm:$0xff]  ;;  %v10785_v46 = vld [vmem:[#allocation63_spill] sm:$0xff] }
 0x20d   : > { %v1868_v17 = vmul.f32 %v10777_v48, %v7859_v56  ;;  %v10779_v38 = vrot.slane %v10778_v49, 5  ;;  %v1883_v35 = vrot.slane %v10780_v28, 6  ;;  %v10783_v33 = vrot.slane %v10782_v15, 6  ;;  %v10788_v49 = vld [vmem:[#allocation66_spill] sm:$0xff] }
 0x20e   : > { %v1810_v44 = vadd.f32 %v10772_v2, %v1765_v1  ;;  %v1853_v9 = vadd.f32 %v10776_v61, %v10774_v30  ;;  %v10784_v1 = vld [vmem:[#allocation65_spill] sm:$0xff]  ;;  %v10786_v2 = vrot.slane %v10785_v46, 6  ;;  %v10787_v61 = vld [vmem:[#allocation67_spill] sm:$0xff]  ;;  %v9043_v46 = vpop.permute.xlu2 %7523 }
 0x20f   : > { %v1854_v19 = vadd.f32 %v10779_v38, %v1809_v34  ;;  %v1897_v4 = vadd.f32 %v10783_v33, %v10781_v31  ;;  %v1912_v26 = vmul.f32 %v10784_v1, %v7857_v55  ;;  %v1884_v29 = vrot.slane %v1868_v17, 6  ;;  %v10790_v33 = vld [vmem:[#allocation68_spill] sm:$0xff] }
 0x210   : > { %v1855_v58 = vadd.f32 %v1839_v10, %v1810_v44  ;;  %v1898_v3 = vadd.f32 %v10786_v2, %v1853_v9  ;;  %v1913_v30 = vmul.f32 %v10784_v1, %v7859_v56  ;;  %v1927_v34 = vrot.slane %v10787_v61, 7  ;;  %v10791_v10 = vld [vmem:[#allocation69_spill] sm:$0xff] }
 0x211   : > { %v1899_v7 = vadd.f32 %v1883_v35, %v1854_v19  ;;  %v1928_v48 = vrot.slane %v1912_v26, 7  ;;  %v10789_v38 = vrot.slane %v10788_v49, 7  ;;  %v1949_v44 = vpack.c.bf16 %v10790_v33, %v10790_v33  ;;  %v10793_v26 = vld [vmem:[#allocation70_spill] sm:$0xff] }
 0x212   : > { %v1900_v31 = vadd.f32 %v1884_v29, %v1855_v58  ;;  %v1929_v15 = vrot.slane %v1913_v30, 7  ;;  %v10792_v17 = vrot.slane %v8436_v60, 7  ;;  %v1943_v19 = vadd.f32 %v1927_v34, %v1898_v3 }
 0x213   : > { %v1942_v28 = vadd.f32 %v10789_v38, %v1897_v4  ;;  %v1944_v35 = vadd.f32 %v1928_v48, %v1899_v7  ;;  %v1972_v2 = vrot.slane %v10793_v26, 6  ;;  %v1965_v4 = vunpack.c.l.b16 %v1949_v44 }
 0x214   : > { %v1971_v9 = vsel %vm796_vm1, %v10792_v17, %v10791_v10  ;;  %v1945_v61 = vadd.f32 %v1929_v15, %v1900_v31  ;;  %v7525_v58 = vunpack.i.l.bf16 %v9043_v46  ;;  %v3026_v29 = vstv %s7116_s14  ;;  %s7150_s14 = spop %7149 }
 0x215   : > { %v1950_v1 = vpack.c.bf16 %v1942_v28, %v1942_v28  ;;  %v1951_v30 = vpack.c.bf16 %v1943_v19, %v1943_v19  ;;  %v1952_v49 = vpack.c.bf16 %v1944_v35, %v1944_v35  ;;  %v1973_v33 = vsel %vm799_vm2, %v1972_v2, %v1971_v9 }
 0x216   : > { %v1953_v60 = vpack.c.bf16 %v1945_v61, %v1945_v61  ;;  %v1974_v40 = vrot.slane %v1965_v4, 5  ;;  %7205 = vpush %v7525_v58  ;;  %v3028_v10 = vmul.f32 %v3026_v29, %v7844_v45  ;;  %v3029_v3 = vmul.f32 %v3026_v29, %v7847_v50 }
 0x217   : > { %v1966_v38 = vunpack.c.l.b16 %v1950_v1  ;;  %v1967_v7 = vunpack.c.l.b16 %v1951_v30  ;;  %v1968_v34 = vunpack.c.l.b16 %v1952_v49  ;;  %v3030_v28 = vmul.f32 %v3026_v29, %v7849_v51 }
 0x218   : > { %v1969_v31 = vunpack.c.l.b16 %v1953_v60  ;;  %v1975_v15 = vsel %vm802_vm3, %v1974_v40, %v1973_v33  ;;  %v3031_v44 = vmul.f32 %v3026_v29, %v7851_v52  ;;  %v3032_v17 = vmul.f32 %v3026_v29, %v7853_v53  ;;  %v9069_v60 = vpop.permute.xlu1 %7533 }
 0x219   : > { %v1976_v48 = vrot.slane %v1966_v38, 4  ;;  %v1978_v19 = vrot.slane %v1967_v7, 3  ;;  %v1980_v35 = vrot.slane %v1968_v34, 2  ;;  %v3033_v1 = vmul.f32 %v3026_v29, %v7855_v54  ;;  %v9071_v7 = vpop.permute.xlu0 %7528 }
 0x21a   : > { %v1982_v26 = vrot.slane %v1969_v31, 1  ;;  %v9057_v2 = vmul.f32 %v3026_v29, %v7857_v55  ;;  %v9060_v61 = vmul.f32 %v3026_v29, %v7859_v56  ;;  %v3044_v4 = vrot.slane %v3028_v10, 6 }
 0x21b   : > { %v1977_v9 = vsel %vm805_vm4, %v1976_v48, %v1975_v15  ;;  %v3045_v58 = vrot.slane %v3029_v3, 6  ;;  %v3046_v30 = vrot.slane %v3030_v28, 6  ;;  %v3047_v49 = vrot.slane %v3031_v44, 6 }
 0x21c   : > { %10794 = vst [vmem:[#allocation23_spill] sm:$0xff] %v9057_v2  ;;  %v1979_v40 = vsel %vm808_vm5, %v1978_v19, %v1977_v9  ;;  %v9066_v38 = vadd.f32 %v3005_v6, %v8981_v39  ;;  %v3048_v34 = vrot.slane %v3032_v17, 6  ;;  %v3049_v29 = vrot.slane %v3033_v1, 6 }
 0x21d   : > { %10795 = vst [vmem:[#allocation24_spill] sm:$0xff] %v9060_v61  ;;  %v1981_v33 = vsel %vm811_vm6, %v1980_v35, %v1979_v40  ;;  %v3060_v28 = vadd.f32 %v3044_v4, %v8999_v11  ;;  %v3061_v39 = vadd.f32 %v3045_v58, %v9001_v62  ;;  %v3062_v6 = vadd.f32 %v3046_v30, %v9003_v27 }
 0x21e   : > { %10796 = vst [vmem:[#allocation21_spill] sm:$0xff] %v9066_v38  ;;  %v1983_v10 = vsel %vm814_vm7, %v1982_v26, %v1981_v33  ;;  %v3063_v31 = vadd.f32 %v3047_v49, %v9005_v16  ;;  %v3064_v15 = vadd.f32 %v3048_v34, %v9007_v23  ;;  %v7530_v44 = vunpack.i.l.bf16 %v9071_v7 }
 0x21f   : > { %v1984_v57 = vpack.c.b16 %v1983_v10, %v1983_v10  ;;  %v7535_v17 = vunpack.i.l.bf16 %v9069_v60  ;;  %v9083_v9 = vstv %s7118_s15  ;;  %v3177_v1 = vstv %s7120_s16  ;;  %s7152_s15 = spop %7151 }
 0x220   : > { %10797 = vst [vmem:[#allocation25_spill] sm:$0xff] %v9083_v9  ;;  %v3073_v11 = vmul.f32 %v9083_v9, %v7844_v45  ;;  %v3074_v62 = vmul.f32 %v9083_v9, %v7847_v50  ;;  %v3075_v27 = vmul.f32 %v9083_v9, %v7849_v51  ;;  %v3076_v16 = vmul.f32 %v9083_v9, %v7851_v52  ;;  %s7154_s16 = spop %7153 }
 0x221   : > { %6977 = vmatmul.msk.bf16.vlgmr.msra.gmra.mxu3 %vm817_vm8, %v1984_v57  ;;  %7207 = vpush %v7530_v44  ;;  %v3077_v23 = vmul.f32 %v9083_v9, %v7853_v53  ;;  %v9098_v19 = vmul.f32 %v9083_v9, %v7855_v54  ;;  %v9102_v35 = vmul.f32 %v9083_v9, %v7857_v55 }
 0x222   : > { %5100 = vmatpush.bf16.msra.mxu3 %v8457_v63  ;;  %7209 = vpush %v7535_v17  ;;  %v3089_v26 = vrot.slane %v3073_v11, 7  ;;  %v3090_v4 = vrot.slane %v3074_v62, 7  ;;  %v3091_v40 = vrot.slane %v3075_v27, 7  ;;  %v3092_v58 = vrot.slane %v3076_v16, 7 }
 0x223   : > { %10798 = vst [vmem:[#allocation28_spill] sm:$0xff] %v9098_v19  ;;  %v9106_v30 = vadd.f32 %v3049_v29, %v9009_v42  ;;  %v3093_v49 = vrot.slane %v3077_v23, 7  ;;  %v3179_v17 = vmul.f32 %v3177_v1, %v7844_v45  ;;  %v3180_v11 = vmul.f32 %v3177_v1, %v7847_v50 }
 0x224   : > { %10799 = vst [vmem:[#allocation27_spill] sm:$0xff] %v9102_v35  ;;  %v3105_v10 = vadd.f32 %v3089_v26, %v3060_v28  ;;  %v3106_v57 = vadd.f32 %v3090_v4, %v3061_v39  ;;  %v3107_v44 = vadd.f32 %v3091_v40, %v3062_v6  ;;  %v3108_v48 = vadd.f32 %v3092_v58, %v3063_v31 }
 0x225   : > { %10800 = vst [vmem:[#allocation29_spill] sm:$0xff] %v9106_v30  ;;  %v9110_v3 = vadd.f32 %v3093_v49, %v3064_v15  ;;  %v3181_v62 = vmul.f32 %v3177_v1, %v7849_v51  ;;  %v3182_v28 = vmul.f32 %v3177_v1, %v7851_v52  ;;  %v3183_v39 = vmul.f32 %v3177_v1, %v7853_v53 }
 0x226   : > { %v3113_v42 = vpack.c.bf16 %v3105_v10, %v3105_v10  ;;  %v3114_v29 = vpack.c.bf16 %v3106_v57, %v3106_v57  ;;  %v3115_v27 = vpack.c.bf16 %v3107_v44, %v3107_v44  ;;  %v3116_v16 = vpack.c.bf16 %v3108_v48, %v3108_v48 }
 0x227   : > { %10801 = vst [vmem:[#allocation30_spill] sm:$0xff] %v9110_v3  ;;  %v3184_v6 = vmul.f32 %v3177_v1, %v7855_v54  ;;  %v3185_v4 = vmul.f32 %v3177_v1, %v7857_v55  ;;  %v3186_v48 = vmul.f32 %v3177_v1, %v7859_v56  ;;  %v3190_v58 = vstv %s7122_s17  ;;  %s7156_s17 = spop %7155 }
 0x228   : > { %v9120_v31 = vunpack.c.l.b16 %v3113_v42  ;;  %v9122_v15 = vunpack.c.l.b16 %v3114_v29  ;;  %v9124_v26 = vunpack.c.l.b16 %v3115_v27  ;;  %v9127_v40 = vunpack.c.l.b16 %v3116_v16 }
 0x229   : > { %v3235_v49 = vstv %s7124_s18  ;;  %v3192_v44 = vmul.f32 %v3190_v58, %v7844_v45  ;;  %v3280_v42 = vstv %s7126_s19  ;;  %v3193_v29 = vmul.f32 %v3190_v58, %v7847_v50  ;;  %s7158_s18 = spop %7157 }
 0x22a   : > { %10802 = vst [vmem:[#allocation31_spill] sm:$0xff] %v9120_v31  ;;  %v3194_v27 = vmul.f32 %v3190_v58, %v7849_v51  ;;  %v3195_v34 = vmul.f32 %v3190_v58, %v7851_v52  ;;  %v3196_v16 = vmul.f32 %v3190_v58, %v7853_v53  ;;  %v3197_v23 = vmul.f32 %v3190_v58, %v7855_v54  ;;  %s7160_s19 = spop %7159 }
 0x22b   : > { %10803 = vst [vmem:[#allocation32_spill] sm:$0xff] %v9122_v15  ;;  %v3198_v1 = vmul.f32 %v3190_v58, %v7857_v55  ;;  %v3199_v33 = vmul.f32 %v3190_v58, %v7859_v56  ;;  %v3208_v10 = vrot.slane %v3192_v44, 1  ;;  %v3209_v21 = vrot.slane %v3193_v29, 1 }
 0x22c   : > { %10804 = vst [vmem:[#allocation33_spill] sm:$0xff] %v9124_v26  ;;  %v3210_v57 = vrot.slane %v3194_v27, 1  ;;  %v3211_v26 = vrot.slane %v3195_v34, 1  ;;  %v3212_v35 = vrot.slane %v3196_v16, 1  ;;  %v3213_v15 = vrot.slane %v3197_v23, 1 }
 0x22d   : > { %v3214_v31 = vrot.slane %v3198_v1, 1  ;;  %v3215_v3 = vrot.slane %v3199_v33, 1  ;;  %v3224_v19 = vadd.f32 %v3208_v10, %v3179_v17  ;;  %v3225_v30 = vadd.f32 %v3209_v21, %v3180_v11 }
 0x22e   : > { %v3226_v9 = vadd.f32 %v3210_v57, %v3181_v62  ;;  %v3227_v2 = vadd.f32 %v3211_v26, %v3182_v28  ;;  %v3228_v38 = vadd.f32 %v3212_v35, %v3183_v39  ;;  %v3229_v43 = vadd.f32 %v3213_v15, %v3184_v6 }
 0x22f   : > { %v3230_v12 = vadd.f32 %v3214_v31, %v3185_v4  ;;  %v3237_v14 = vmul.f32 %v3235_v49, %v7844_v45  ;;  %v3238_v58 = vmul.f32 %v3235_v49, %v7847_v50  ;;  %v3239_v44 = vmul.f32 %v3235_v49, %v7849_v51 }
 0x230   : > { %v3240_v34 = vmul.f32 %v3235_v49, %v7851_v52  ;;  %v3241_v29 = vmul.f32 %v3235_v49, %v7853_v53  ;;  %v3231_v23 = vadd.f32 %v3215_v3, %v3186_v48  ;;  %v3242_v33 = vmul.f32 %v3235_v49, %v7855_v54 }
 0x231   : > { %v3243_v21 = vmul.f32 %v3235_v49, %v7857_v55  ;;  %v3244_v17 = vmul.f32 %v3235_v49, %v7859_v56  ;;  %v3253_v35 = vrot.slane %v3237_v14, 2  ;;  %v3254_v11 = vrot.slane %v3238_v58, 2 }
 0x232   : > { %v3255_v62 = vrot.slane %v3239_v44, 2  ;;  %v3256_v28 = vrot.slane %v3240_v34, 2  ;;  %v3257_v39 = vrot.slane %v3241_v29, 2  ;;  %v3258_v6 = vrot.slane %v3242_v33, 2 }
 0x233   : > { %v3259_v31 = vrot.slane %v3243_v21, 2  ;;  %v3260_v15 = vrot.slane %v3244_v17, 2  ;;  %v3269_v26 = vadd.f32 %v3253_v35, %v3224_v19  ;;  %v3270_v4 = vadd.f32 %v3254_v11, %v3225_v30 }
 0x234   : > { %v3271_v10 = vadd.f32 %v3255_v62, %v3226_v9  ;;  %v3272_v57 = vadd.f32 %v3256_v28, %v3227_v2  ;;  %v3273_v27 = vadd.f32 %v3257_v39, %v3228_v38  ;;  %v3274_v3 = vadd.f32 %v3258_v6, %v3229_v43 }
 0x235   : > { %v3275_v48 = vadd.f32 %v3259_v31, %v3230_v12  ;;  %v3282_v16 = vmul.f32 %v3280_v42, %v7844_v45  ;;  %v3283_v1 = vmul.f32 %v3280_v42, %v7847_v50  ;;  %v3284_v14 = vmul.f32 %v3280_v42, %v7849_v51 }
 0x236   : > { %v3285_v49 = vmul.f32 %v3280_v42, %v7851_v52  ;;  %v3286_v58 = vmul.f32 %v3280_v42, %v7853_v53  ;;  %v3276_v44 = vadd.f32 %v3260_v15, %v3231_v23  ;;  %v3287_v34 = vmul.f32 %v3280_v42, %v7855_v54 }
 0x237   : > { %v3288_v19 = vmul.f32 %v3280_v42, %v7857_v55  ;;  %v3289_v2 = vmul.f32 %v3280_v42, %v7859_v56  ;;  %v3298_v38 = vrot.slane %v3282_v16, 3  ;;  %v3299_v43 = vrot.slane %v3283_v1, 3 }
 0x238   : > { %v3300_v12 = vrot.slane %v3284_v14, 3  ;;  %v3301_v9 = vrot.slane %v3285_v49, 3  ;;  %v3302_v30 = vrot.slane %v3286_v58, 3  ;;  %v3303_v29 = vrot.slane %v3287_v34, 3 }
 0x239   : > { %v3304_v33 = vrot.slane %v3288_v19, 3  ;;  %v3305_v21 = vrot.slane %v3289_v2, 3  ;;  %v3314_v17 = vadd.f32 %v3298_v38, %v3269_v26  ;;  %v3315_v35 = vadd.f32 %v3299_v43, %v3270_v4 }
 0x23a   : > { %v3316_v11 = vadd.f32 %v3300_v12, %v3271_v10  ;;  %v3317_v62 = vadd.f32 %v3301_v9, %v3272_v57  ;;  %v3318_v23 = vadd.f32 %v3302_v30, %v3273_v27  ;;  %v3319_v28 = vadd.f32 %v3303_v29, %v3274_v3 }
 0x23b   : > { %v3320_v39 = vadd.f32 %v3304_v33, %v3275_v48  ;;  %v3325_v6 = vstv %s7128_s20  ;;  %v3321_v57 = vadd.f32 %v3305_v21, %v3276_v44  ;;  %v3415_v44 = vstv %s7132_s22  ;;  %s7162_s20 = spop %7161 }
 0x23c   : > { %v3327_v42 = vmul.f32 %v3325_v6, %v7844_v45  ;;  %v3328_v31 = vmul.f32 %v3325_v6, %v7847_v50  ;;  %v3329_v15 = vmul.f32 %v3325_v6, %v7849_v51  ;;  %v3330_v16 = vmul.f32 %v3325_v6, %v7851_v52 }
 0x23d   : > { %v3331_v1 = vmul.f32 %v3325_v6, %v7853_v53  ;;  %v3332_v26 = vmul.f32 %v3325_v6, %v7855_v54  ;;  %v3333_v4 = vmul.f32 %v3325_v6, %v7857_v55  ;;  %v3334_v10 = vmul.f32 %v3325_v6, %v7859_v56 }
 0x23e   : > { %v3343_v27 = vrot.slane %v3327_v42, 4  ;;  %v3344_v3 = vrot.slane %v3328_v31, 4  ;;  %v3345_v48 = vrot.slane %v3329_v15, 4  ;;  %v3346_v14 = vrot.slane %v3330_v16, 4 }
 0x23f   : > { %v3347_v49 = vrot.slane %v3331_v1, 4  ;;  %v3348_v58 = vrot.slane %v3332_v26, 4  ;;  %v3349_v34 = vrot.slane %v3333_v4, 4  ;;  %v3350_v19 = vrot.slane %v3334_v10, 4 }
 0x240   : > { %v3359_v2 = vadd.f32 %v3343_v27, %v3314_v17  ;;  %v3360_v38 = vadd.f32 %v3344_v3, %v3315_v35  ;;  %v3361_v43 = vadd.f32 %v3345_v48, %v3316_v11  ;;  %v3362_v12 = vadd.f32 %v3346_v14, %v3317_v62 }
 0x241   : > { %v3363_v9 = vadd.f32 %v3347_v49, %v3318_v23  ;;  %v3364_v30 = vadd.f32 %v3348_v58, %v3319_v28  ;;  %v3365_v29 = vadd.f32 %v3349_v34, %v3320_v39  ;;  %v9165_v33 = vadd.f32 %v3350_v19, %v3321_v57 }
 0x242   : > { %v3370_v6 = vstv %s7130_s21  ;;  %v9167_v21 = vstv %s7134_s23  ;;  %v9179_v1 = vstv %s7136_s24  ;;  %v3417_v19 = vmul.f32 %v3415_v44, %v7844_v45  ;;  %s7164_s21 = spop %7163 }
 0x243   : > { %10805 = vst [vmem:[#allocation34_spill] sm:$0xff] %v9167_v21  ;;  %v3372_v42 = vmul.f32 %v3370_v6, %v7844_v45  ;;  %v3373_v31 = vmul.f32 %v3370_v6, %v7847_v50  ;;  %v3374_v15 = vmul.f32 %v3370_v6, %v7849_v51  ;;  %v3375_v17 = vmul.f32 %v3370_v6, %v7851_v52  ;;  %s7166_s22 = spop %7165 }
 0x244   : > { %v3376_v35 = vmul.f32 %v3370_v6, %v7853_v53  ;;  %v3377_v11 = vmul.f32 %v3370_v6, %v7855_v54  ;;  %v3378_v62 = vmul.f32 %v3370_v6, %v7857_v55  ;;  %v9177_v23 = vmul.f32 %v3370_v6, %v7859_v56  ;;  %s7168_s23 = spop %7167 }
 0x245   : > { %v3388_v28 = vrot.slane %v3372_v42, 5  ;;  %v3389_v39 = vrot.slane %v3373_v31, 5  ;;  %v3390_v16 = vrot.slane %v3374_v15, 5  ;;  %v3391_v26 = vrot.slane %v3375_v17, 5  ;;  %s7170_s24 = spop %7169 }
 0x246   : > { %10806 = vst [vmem:[#allocation35_spill] sm:$0xff] %v9177_v23  ;;  %v3392_v4 = vrot.slane %v3376_v35, 5  ;;  %v3393_v10 = vrot.slane %v3377_v11, 5  ;;  %v3394_v57 = vrot.slane %v3378_v62, 5  ;;  %v3418_v6 = vmul.f32 %v3415_v44, %v7847_v50 }
 0x247   : > { %v3404_v3 = vadd.f32 %v3388_v28, %v3359_v2  ;;  %v3405_v48 = vadd.f32 %v3389_v39, %v3360_v38  ;;  %v3406_v14 = vadd.f32 %v3390_v16, %v3361_v43  ;;  %v3407_v49 = vadd.f32 %v3391_v26, %v3362_v12 }
 0x248   : > { %v3408_v58 = vadd.f32 %v3392_v4, %v3363_v9  ;;  %v3409_v34 = vadd.f32 %v3393_v10, %v3364_v30  ;;  %v3419_v42 = vmul.f32 %v3415_v44, %v7849_v51  ;;  %v3420_v31 = vmul.f32 %v3415_v44, %v7851_v52 }
 0x249   : > { %v3421_v15 = vmul.f32 %v3415_v44, %v7853_v53  ;;  %v9187_v17 = vadd.f32 %v3394_v57, %v3365_v29  ;;  %v3422_v35 = vmul.f32 %v3415_v44, %v7855_v54  ;;  %v9191_v2 = vmul.f32 %v3415_v44, %v7857_v55 }
 0x24a   : > { %v9194_v38 = vmul.f32 %v3415_v44, %v7859_v56  ;;  %v3433_v43 = vrot.slane %v3417_v19, 6  ;;  %v3434_v12 = vrot.slane %v3418_v6, 6  ;;  %v3435_v9 = vrot.slane %v3419_v42, 6 }
 0x24b   : > { %10807 = vst [vmem:[#allocation39_spill] sm:$0xff] %v9187_v17  ;;  %v3436_v30 = vrot.slane %v3420_v31, 6  ;;  %v3437_v11 = vrot.slane %v3421_v15, 6  ;;  %v3438_v62 = vrot.slane %v3422_v35, 6  ;;  %v3462_v57 = vmul.f32 %v9167_v21, %v7844_v45 }
 0x24c   : > { %10808 = vst [vmem:[#allocation38_spill] sm:$0xff] %v9191_v2  ;;  %v3449_v29 = vadd.f32 %v3433_v43, %v3404_v3  ;;  %v3450_v16 = vadd.f32 %v3434_v12, %v3405_v48  ;;  %v3451_v26 = vadd.f32 %v3435_v9, %v3406_v14  ;;  %v3463_v44 = vmul.f32 %v9167_v21, %v7847_v50 }
 0x24d   : > { %10809 = vst [vmem:[#allocation36_spill] sm:$0xff] %v9194_v38  ;;  %v3452_v4 = vadd.f32 %v3436_v30, %v3407_v49  ;;  %v3453_v10 = vadd.f32 %v3437_v11, %v3408_v58  ;;  %v3464_v19 = vmul.f32 %v9167_v21, %v7849_v51  ;;  %v3465_v6 = vmul.f32 %v9167_v21, %v7851_v52 }
 0x24e   : > { %v3466_v42 = vmul.f32 %v9167_v21, %v7853_v53  ;;  %v9210_v3 = vmul.f32 %v9167_v21, %v7855_v54  ;;  %v9214_v48 = vmul.f32 %v9167_v21, %v7857_v55  ;;  %v9216_v14 = vadd.f32 %v3438_v62, %v3409_v34 }
 0x24f   : > { %v3478_v49 = vrot.slane %v3462_v57, 7  ;;  %v3479_v58 = vrot.slane %v3463_v44, 7  ;;  %v3480_v31 = vrot.slane %v3464_v19, 7  ;;  %v3481_v15 = vrot.slane %v3465_v6, 7 }
 0x250   : > { %10810 = vst [vmem:[#allocation37_spill] sm:$0xff] %v9210_v3  ;;  %v3482_v35 = vrot.slane %v3466_v42, 7  ;;  %v3568_v12 = vmul.f32 %v9179_v1, %v7844_v45  ;;  %v3569_v34 = vmul.f32 %v9179_v1, %v7847_v50  ;;  %v3570_v62 = vmul.f32 %v9179_v1, %v7849_v51 }
 0x251   : > { %10811 = vst [vmem:[#allocation40_spill] sm:$0xff] %v9214_v48  ;;  %v3494_v30 = vadd.f32 %v3478_v49, %v3449_v29  ;;  %v3495_v11 = vadd.f32 %v3479_v58, %v3450_v16  ;;  %v3496_v39 = vadd.f32 %v3480_v31, %v3451_v26  ;;  %v3497_v28 = vadd.f32 %v3481_v15, %v3452_v4 }
 0x252   : > { %10812 = vst [vmem:[#allocation45_spill] sm:$0xff] %v9216_v14  ;;  %v9222_v27 = vadd.f32 %v3482_v35, %v3453_v10  ;;  %v3571_v6 = vmul.f32 %v9179_v1, %v7851_v52  ;;  %v3572_v26 = vmul.f32 %v9179_v1, %v7853_v53  ;;  %v3573_v4 = vmul.f32 %v9179_v1, %v7855_v54 }
 0x253   : > { %v3502_v57 = vpack.c.bf16 %v3494_v30, %v3494_v30  ;;  %v3503_v44 = vpack.c.bf16 %v3495_v11, %v3495_v11  ;;  %v3504_v19 = vpack.c.bf16 %v3496_v39, %v3496_v39  ;;  %v3505_v29 = vpack.c.bf16 %v3497_v28, %v3497_v28 }
 0x254   : > { %10813 = vst [vmem:[#allocation41_spill] sm:$0xff] %v9222_v27  ;;  %v3574_v39 = vmul.f32 %v9179_v1, %v7857_v55  ;;  %v3575_v28 = vmul.f32 %v9179_v1, %v7859_v56  ;;  %v3579_v31 = vstv %s7138_s25  ;;  %v3624_v15 = vstv %s7140_s26  ;;  %s7172_s25 = spop %7171 }
 0x255   : > { %v9236_v10 = vunpack.c.l.b16 %v3502_v57  ;;  %v9238_v42 = vunpack.c.l.b16 %v3503_v44  ;;  %v9240_v49 = vunpack.c.l.b16 %v3504_v19  ;;  %v9244_v58 = vunpack.c.l.b16 %v3505_v29  ;;  %s7174_s26 = spop %7173 }
 0x256   : > { %v3581_v30 = vmul.f32 %v3579_v31, %v7844_v45  ;;  %v3582_v11 = vmul.f32 %v3579_v31, %v7847_v50  ;;  %v10817_v57 = vrot.slane %v8595_v20, 5  ;;  %v3583_v29 = vmul.f32 %v3579_v31, %v7849_v51 }
 0x257   : > { %10814 = vst [vmem:[#allocation42_spill] sm:$0xff] %v9236_v10  ;;  %v3584_v9 = vmul.f32 %v3579_v31, %v7851_v52  ;;  %v3585_v1 = vmul.f32 %v3579_v31, %v7853_v53  ;;  %v3586_v16 = vmul.f32 %v3579_v31, %v7855_v54  ;;  %v3587_v35 = vmul.f32 %v3579_v31, %v7857_v55 }
 0x258   : > { %10815 = vst [vmem:[#allocation44_spill] sm:$0xff] %v9238_v42  ;;  %v2244_v44 = vadd.f32 %v10817_v57, %v8597_v22  ;;  %v3588_v43 = vmul.f32 %v3579_v31, %v7859_v56  ;;  %v3597_v61 = vrot.slane %v3581_v30, 1  ;;  %v3598_v48 = vrot.slane %v3582_v11, 1  ;;  %v9263_v31 = vpop.permute.xlu2 %7538 }
 0x259   : > { %10816 = vst [vmem:[#allocation43_spill] sm:$0xff] %v9240_v49  ;;  %v3599_v38 = vrot.slane %v3583_v29, 1  ;;  %v3600_v42 = vrot.slane %v3584_v9, 1  ;;  %v3601_v20 = vrot.slane %v3585_v1, 1  ;;  %v3602_v57 = vrot.slane %v3586_v16, 1 }
 0x25a   : > { %v3603_v19 = vrot.slane %v3587_v35, 1  ;;  %v3604_v49 = vrot.slane %v3588_v43, 1  ;;  %v3613_v10 = vadd.f32 %v3597_v61, %v3568_v12  ;;  %v3614_v27 = vadd.f32 %v3598_v48, %v3569_v34 }
 0x25b   : > { %v3615_v3 = vadd.f32 %v3599_v38, %v3570_v62  ;;  %v3616_v14 = vadd.f32 %v3600_v42, %v3571_v6  ;;  %v3617_v21 = vadd.f32 %v3601_v20, %v3572_v26  ;;  %v3618_v2 = vadd.f32 %v3602_v57, %v3573_v4 }
 0x25c   : > { %v3619_v17 = vadd.f32 %v3603_v19, %v3574_v39  ;;  %v3626_v23 = vmul.f32 %v3624_v15, %v7844_v45  ;;  %v3627_v30 = vmul.f32 %v3624_v15, %v7847_v50  ;;  %v3628_v9 = vmul.f32 %v3624_v15, %v7849_v51 }
 0x25d   : > { %v3629_v11 = vmul.f32 %v3624_v15, %v7851_v52  ;;  %v3630_v16 = vmul.f32 %v3624_v15, %v7853_v53  ;;  %v3631_v61 = vmul.f32 %v3624_v15, %v7855_v54  ;;  %v3632_v38 = vmul.f32 %v3624_v15, %v7857_v55 }
 0x25e   : > { %v9272_v48 = vmul.f32 %v3624_v15, %v7859_v56  ;;  %v3642_v43 = vrot.slane %v3626_v23, 2  ;;  %v3643_v12 = vrot.slane %v3627_v30, 2  ;;  %v3644_v34 = vrot.slane %v3628_v9, 2  ;;  %v9285_v15 = vpop.permute.xlu0 %7543 }
 0x25f   : > { %v3645_v62 = vrot.slane %v3629_v11, 2  ;;  %v3646_v6 = vrot.slane %v3630_v16, 2  ;;  %v9274_v26 = vadd.f32 %v3604_v49, %v3575_v28  ;;  %v3647_v4 = vrot.slane %v3631_v61, 2 }
 0x260   : > { %v3648_v42 = vrot.slane %v3632_v38, 2  ;;  %v3649_v39 = vrot.slane %v9272_v48, 2  ;;  %v9277_v35 = vadd.f32 %v3642_v43, %v3613_v10  ;;  %v9279_v19 = vadd.f32 %v3643_v12, %v3614_v27  ;;  %v10826_v38 = vld [vmem:[#allocation7_spill] sm:$0xff] }
 0x261   : > { %v9281_v29 = vadd.f32 %v3644_v34, %v3615_v3  ;;  %v9283_v1 = vadd.f32 %v3645_v62, %v3616_v14  ;;  %v9287_v23 = vadd.f32 %v3646_v6, %v3617_v21  ;;  %v9289_v20 = vadd.f32 %v3647_v4, %v3618_v2  ;;  %v10820_v14 = vld [vmem:[#allocation8_spill] sm:$0xff]  ;;  %v10822_v21 = vld [vmem:[#allocation6_spill] sm:$0xff]  ;;  %v10829_v34 = vld [vmem:[#allocation9_spill] sm:$0xff] }
 0x262   : > { %v9291_v49 = vadd.f32 %v3648_v42, %v3619_v17  ;;  %v10818_v28 = vrot.slane %v8607_v32, 6  ;;  %v10819_v10 = vrot.slane %v8610_v25, 6  ;;  %v2302_v3 = vmul.f32 %v8616_v59, %v7859_v56  ;;  %v10824_v17 = vld [vmem:[#allocation5_spill] sm:$0xff]  ;;  %v10827_v32 = vld [vmem:[#allocation10_spill] sm:$0xff] }
 0x263   : > { %v10821_v30 = vrot.slane %v10820_v14, 7  ;;  %v10823_v2 = vpack.c.bf16 %v10822_v21, %v10822_v21  ;;  %v10825_v16 = vrot.slane %v10824_v17, 7  ;;  %v7545_v59 = vunpack.i.l.bf16 %v9285_v15  ;;  %v9325_v21 = vpop.permute.xlu2 %7553 }
 0x264   : > { %v2288_v57 = vadd.f32 %v10818_v28, %v8612_v18  ;;  %v2289_v27 = vadd.f32 %v10819_v10, %v2244_v44  ;;  %v10828_v18 = vrot.slane %v10827_v32, 7  ;;  %v7540_v44 = vunpack.i.l.bf16 %v9263_v31 }
 0x265   : > { %v2332_v9 = vadd.f32 %v10821_v30, %v8626_v8  ;;  %v2355_v11 = vunpack.c.l.b16 %v10823_v2  ;;  %v2318_v43 = vrot.slane %v2302_v3, 7  ;;  %v10830_v8 = vrot.slane %v10829_v34, 6 }
 0x266   : > { %v2333_v61 = vadd.f32 %v10825_v16, %v2288_v57  ;;  %v2360_v25 = vsel %vm796_vm1, %v10828_v18, %v10826_v38  ;;  %v10831_v42 = vrot.slane %v8660_v36, 5  ;;  %7211 = vpush %v7540_v44  ;;  %v9320_v57 = vpop.permute.xlu1 %7548  ;;  %v7516_v10 = vunpack.i.h.bf16 %v8952_v24 }
 0x267   : > { %v2340_v12 = vpack.c.bf16 %v2332_v9, %v2332_v9  ;;  %v2362_v62 = vsel %vm799_vm2, %v10830_v8, %v2360_v25  ;;  %v2365_v6 = vrot.slane %v2355_v11, 4  ;;  %v7521_v14 = vunpack.i.h.bf16 %v8956_v41  ;;  %7213 = vpush %v7545_v59 }
 0x268   : > { %v2341_v4 = vpack.c.bf16 %v2333_v61, %v2333_v61  ;;  %v2364_v28 = vsel %vm802_vm3, %v10831_v42, %v2362_v62  ;;  %v2334_v3 = vadd.f32 %v2318_v43, %v2289_v27  ;;  %v7526_v2 = vunpack.i.h.bf16 %v9043_v46 }
 0x269   : > { %v2356_v30 = vunpack.c.l.b16 %v2340_v12  ;;  %v2366_v9 = vsel %vm805_vm4, %v2365_v6, %v2364_v28  ;;  %v10832_v11 = vrot.slane %v7733_v13, 5  ;;  %v7531_v17 = vunpack.i.h.bf16 %v9071_v7 }
 0x26a   : > { %v2357_v36 = vunpack.c.l.b16 %v2341_v4  ;;  %v7536_v24 = vunpack.i.h.bf16 %v9069_v60  ;;  %v7541_v41 = vunpack.i.h.bf16 %v9263_v31  ;;  %v2342_v27 = vpack.c.bf16 %v2334_v3, %v2334_v3 }
 0x26b   : > { %7215 = vpush %v10832_v11  ;;  %v2367_v16 = vrot.slane %v2356_v30, 3  ;;  %v7546_v61 = vunpack.i.h.bf16 %v9285_v15  ;;  %v7550_v38 = vunpack.i.l.bf16 %v9320_v57  ;;  %v3669_v46 = vstv %s7142_s27  ;;  %s7176_s27 = spop %7175 }
 0x26c   : > { %7217 = vpush %v7516_v10  ;;  %v2369_v32 = vrot.slane %v2357_v36, 2  ;;  %v3714_v18 = vstv %s7144_s28  ;;  %v7555_v13 = vunpack.i.l.bf16 %v9325_v21  ;;  %v2358_v25 = vunpack.c.l.b16 %v2342_v27  ;;  %v10833_v36 = vld [vmem:[#allocation3_spill] sm:$0xff]  ;;  %s7178_s28 = spop %7177 }
 0x26d   : > { %7219 = vpush %v7521_v14  ;;  %v2368_v7 = vsel %vm808_vm5, %v2367_v16, %v2366_v9  ;;  %v3671_v60 = vmul.f32 %v3669_v46, %v7844_v45  ;;  %v3672_v31 = vmul.f32 %v3669_v46, %v7847_v50  ;;  %v3673_v15 = vmul.f32 %v3669_v46, %v7849_v51 }
 0x26e   : > { %7221 = vpush %v7526_v2  ;;  %v2370_v44 = vsel %vm811_vm6, %v2369_v32, %v2368_v7  ;;  %v3674_v59 = vmul.f32 %v3669_v46, %v7851_v52  ;;  %v3675_v43 = vmul.f32 %v3669_v46, %v7853_v53  ;;  %v2371_v12 = vrot.slane %v2358_v25, 1 }
 0x26f   : > { %7223 = vpush %v7531_v17  ;;  %v3676_v34 = vmul.f32 %v3669_v46, %v7855_v54  ;;  %v3677_v8 = vmul.f32 %v3669_v46, %v7857_v55  ;;  %v3678_v62 = vmul.f32 %v3669_v46, %v7859_v56  ;;  %v3687_v6 = vrot.slane %v3671_v60, 3 }
 0x270   : > { %7225 = vpush %v7536_v24  ;;  %v3688_v4 = vrot.slane %v3672_v31, 3  ;;  %v3689_v42 = vrot.slane %v3673_v15, 3  ;;  %v3690_v28 = vrot.slane %v3674_v59, 3  ;;  %v2372_v10 = vsel %vm814_vm7, %v2371_v12, %v2370_v44 }
 0x271   : > { %7227 = vpush %v7541_v41  ;;  %v3691_v14 = vrot.slane %v3675_v43, 3  ;;  %v3692_v3 = vrot.slane %v3676_v34, 3  ;;  %v3693_v30 = vrot.slane %v3677_v8, 3  ;;  %v3665_v9 = vadd.f32 %v3649_v39, %v9274_v26 }
 0x272   : > { %7229 = vpush %v7546_v61  ;;  %v2373_v2 = vpack.c.b16 %v2372_v10, %v2372_v10  ;;  %v3694_v11 = vrot.slane %v3678_v62, 3  ;;  %v3703_v17 = vadd.f32 %v3687_v6, %v9277_v35  ;;  %v3704_v24 = vadd.f32 %v3688_v4, %v9279_v19  ;;  %v10837_v10 = vld [vmem:[#allocation14_spill] sm:$0xff] }
 0x273   : > { %7231 = vpush %v10833_v36  ;;  %v3705_v41 = vadd.f32 %v3689_v42, %v9281_v29  ;;  %v3706_v27 = vadd.f32 %v3690_v28, %v9283_v1  ;;  %v3707_v16 = vadd.f32 %v3691_v14, %v9287_v23  ;;  %v3708_v48 = vadd.f32 %v3692_v3, %v9289_v20  ;;  %v10836_v42 = vld [vmem:[#allocation13_spill] sm:$0xff]  ;;  %v10838_v14 = vld [vmem:[#allocation12_spill] sm:$0xff] }
 0x274   : > { %7233 = vpush %v7550_v38  ;;  %6978 = vmatmul.msk.bf16.vlgmr.msrb.gmra.mxu0 %vm817_vm8, %v2373_v2  ;;  %v3709_v26 = vadd.f32 %v3693_v30, %v9291_v49  ;;  %v3716_v39 = vmul.f32 %v3714_v18, %v7844_v45  ;;  %v3717_v61 = vmul.f32 %v3714_v18, %v7847_v50  ;;  %v10835_v6 = vrot.slane %v8732_v37, 6 }
 0x275   : > { %v3718_v35 = vmul.f32 %v3714_v18, %v7849_v51  ;;  %v3719_v19 = vmul.f32 %v3714_v18, %v7851_v52  ;;  %v3720_v29 = vmul.f32 %v3714_v18, %v7853_v53  ;;  %v3721_v1 = vmul.f32 %v3714_v18, %v7855_v54  ;;  %7235 = vpush %v7555_v13 }
 0x276   : > { %v3710_v23 = vadd.f32 %v3694_v11, %v3665_v9  ;;  %v3722_v38 = vmul.f32 %v3714_v18, %v7857_v55  ;;  %v3723_v20 = vmul.f32 %v3714_v18, %v7859_v56  ;;  %v3732_v32 = vrot.slane %v3716_v39, 4  ;;  %5488 = vmatpush.bf16.msrb.mxu0 %v8457_v63  ;;  %v10840_v9 = vld [vmem:[#allocation22_spill] sm:$0xff]  ;;  %v10842_v11 = vld [vmem:[#allocation17_spill] sm:$0xff] }
 0x277   : > { %v3733_v49 = vrot.slane %v3717_v61, 4  ;;  %v3734_v46 = vrot.slane %v3718_v35, 4  ;;  %v3735_v25 = vrot.slane %v3719_v19, 4  ;;  %v3736_v7 = vrot.slane %v3720_v29, 4  ;;  %v10851_v29 = vld [vmem:[#allocation26_spill] sm:$0xff] }
 0x278   : > { %v3737_v60 = vrot.slane %v3721_v1, 4  ;;  %v3738_v31 = vrot.slane %v3722_v38, 4  ;;  %v3739_v44 = vrot.slane %v3723_v20, 4  ;;  %v3748_v15 = vadd.f32 %v3732_v32, %v3703_v17  ;;  %v10843_v17 = vld [vmem:[#allocation19_spill] sm:$0xff] }
 0x279   : > { %v3749_v59 = vadd.f32 %v3733_v49, %v3704_v24  ;;  %v3750_v43 = vadd.f32 %v3734_v46, %v3705_v41  ;;  %v3751_v12 = vadd.f32 %v3735_v25, %v3706_v27  ;;  %v3752_v13 = vadd.f32 %v3736_v7, %v3707_v16 }
 0x27a   : > { %v3753_v34 = vadd.f32 %v3737_v60, %v3708_v48  ;;  %v3754_v8 = vadd.f32 %v3738_v31, %v3709_v26  ;;  %v10834_v18 = vrot.slane %v8716_v0, 5  ;;  %v2677_v4 = vadd.f32 %v10835_v6, %v8737_v47  ;;  %v10847_v47 = vld [vmem:[#allocation15_spill] sm:$0xff]  ;;  %v10849_v48 = vld [vmem:[#allocation18_spill] sm:$0xff] }
 0x27b   : > { %v2691_v28 = vmul.f32 %v10836_v42, %v7859_v56  ;;  %v10839_v3 = vrot.slane %v10838_v14, 7  ;;  %v10841_v2 = vpack.c.bf16 %v10840_v9, %v10840_v9  ;;  %v10844_v24 = vrot.slane %v10843_v17, 7 }
 0x27c   : > { %v2633_v62 = vadd.f32 %v10834_v18, %v8718_v5  ;;  %v10845_v5 = vld [vmem:[#allocation11_spill] sm:$0xff]  ;;  %v10848_v27 = vrot.slane %v10847_v47, 7  ;;  %v10850_v26 = vrot.slane %v10849_v48, 6  ;;  %v3759_v61 = vstv %s7146_s29  ;;  %s7180_s29 = spop %7179 }
 0x27d   : > { %v2721_v30 = vadd.f32 %v10839_v3, %v10837_v10  ;;  %v2744_v36 = vunpack.c.l.b16 %v10841_v2  ;;  %v2749_v0 = vsel %vm796_vm1, %v10844_v24, %v10842_v11  ;;  %v10846_v41 = vrot.slane %v10845_v5, 6 }
 0x27e   : > { %v2722_v16 = vadd.f32 %v10848_v27, %v2677_v4  ;;  %v2751_v39 = vsel %vm799_vm2, %v10850_v26, %v2749_v0  ;;  %v2707_v35 = vrot.slane %v2691_v28, 7  ;;  %v10852_v1 = vrot.slane %v10851_v29, 5 }
 0x27f   : > { %v2678_v37 = vadd.f32 %v10846_v41, %v2633_v62  ;;  %v2729_v19 = vpack.c.bf16 %v2721_v30, %v2721_v30  ;;  %v2754_v20 = vrot.slane %v2744_v36, 4  ;;  %v3761_v49 = vmul.f32 %v3759_v61, %v7844_v45 }
 0x280   : > { %v2753_v38 = vsel %vm802_vm3, %v10852_v1, %v2751_v39  ;;  %v2730_v32 = vpack.c.bf16 %v2722_v16, %v2722_v16  ;;  %v3762_v46 = vmul.f32 %v3759_v61, %v7847_v50  ;;  %v3763_v25 = vmul.f32 %v3759_v61, %v7849_v51 }
 0x281   : > { %v2723_v7 = vadd.f32 %v2707_v35, %v2678_v37  ;;  %v2745_v60 = vunpack.c.l.b16 %v2729_v19  ;;  %v2755_v31 = vsel %vm805_vm4, %v2754_v20, %v2753_v38  ;;  %v3764_v18 = vmul.f32 %v3759_v61, %v7851_v52  ;;  %v9407_v37 = vpop.permute.xlu0 %7558 }
 0x282   : > { %v2746_v62 = vunpack.c.l.b16 %v2730_v32  ;;  %v3765_v6 = vmul.f32 %v3759_v61, %v7853_v53  ;;  %v3766_v4 = vmul.f32 %v3759_v61, %v7855_v54  ;;  %v3767_v42 = vmul.f32 %v3759_v61, %v7857_v55  ;;  %v6081_v32 = vpop.permute.xlu2 %6080 }
 0x283   : > { %v2731_v28 = vpack.c.bf16 %v2723_v7, %v2723_v7  ;;  %v2756_v10 = vrot.slane %v2745_v60, 3  ;;  %v3768_v14 = vmul.f32 %v3759_v61, %v7859_v56  ;;  %v3777_v3 = vrot.slane %v3761_v49, 5 }
 0x284   : > { %v2758_v30 = vrot.slane %v2746_v62, 2  ;;  %v3778_v9 = vrot.slane %v3762_v46, 5  ;;  %v3779_v2 = vrot.slane %v3763_v25, 5  ;;  %v3780_v36 = vrot.slane %v3764_v18, 5 }
 0x285   : > { %v2747_v11 = vunpack.c.l.b16 %v2731_v28  ;;  %v2757_v17 = vsel %vm808_vm5, %v2756_v10, %v2755_v31  ;;  %v3781_v24 = vrot.slane %v3765_v6, 5  ;;  %v3782_v0 = vrot.slane %v3766_v4, 5 }
 0x286   : > { %v3755_v5 = vadd.f32 %v3739_v44, %v3710_v23  ;;  %v2759_v41 = vsel %vm811_vm6, %v2758_v30, %v2757_v17  ;;  %v3783_v47 = vrot.slane %v3767_v42, 5  ;;  %v3784_v27 = vrot.slane %v3768_v14, 5 }
 0x287   : > { %v2760_v16 = vrot.slane %v2747_v11, 1  ;;  %v3793_v48 = vadd.f32 %v3777_v3, %v3748_v15  ;;  %v3794_v26 = vadd.f32 %v3778_v9, %v3749_v59  ;;  %v3795_v39 = vadd.f32 %v3779_v2, %v3750_v43  ;;  %v6036_v59 = vpop.permute.xlu1 %6035 }
 0x288   : > { %v3796_v61 = vadd.f32 %v3780_v36, %v3751_v12  ;;  %v3797_v35 = vadd.f32 %v3781_v24, %v3752_v13  ;;  %v3798_v19 = vadd.f32 %v3782_v0, %v3753_v34  ;;  %v3799_v29 = vadd.f32 %v3783_v47, %v3754_v8 }
 0x289   : > { %v2761_v1 = vsel %vm814_vm7, %v2760_v16, %v2759_v41  ;;  %v7560_v38 = vunpack.i.l.bf16 %v9407_v37  ;;  %v3804_v23 = vstv %s7148_s13  ;;  %v3849_v44 = vstv %s7150_s14  ;;  %s7182_s13 = spop %7181 }
 0x28a   : > { %v2762_v20 = vpack.c.b16 %v2761_v1, %v2761_v1  ;;  %v3806_v49 = vmul.f32 %v3804_v23, %v7844_v45  ;;  %v3807_v46 = vmul.f32 %v3804_v23, %v7847_v50  ;;  %v3808_v15 = vmul.f32 %v3804_v23, %v7849_v51  ;;  %s7184_s14 = spop %7183 }
 0x28b   : > { %7237 = vpush %v7560_v38  ;;  %v3809_v43 = vmul.f32 %v3804_v23, %v7851_v52  ;;  %v3810_v12 = vmul.f32 %v3804_v23, %v7853_v53  ;;  %v3811_v13 = vmul.f32 %v3804_v23, %v7855_v54  ;;  %v3812_v34 = vmul.f32 %v3804_v23, %v7857_v55 }
 0x28c   : > { %6979 = vmatmul.msk.bf16.vlgmr.msrb.gmra.mxu1 %vm817_vm8, %v2762_v20  ;;  %7239 = vpush %v6036_v59  ;;  %v3813_v8 = vmul.f32 %v3804_v23, %v7859_v56  ;;  %v3822_v25 = vrot.slane %v3806_v49, 6  ;;  %v3823_v7 = vrot.slane %v3807_v46, 6  ;;  %v3824_v60 = vrot.slane %v3808_v15, 6 }
 0x28d   : > { %v3825_v31 = vrot.slane %v3809_v43, 6  ;;  %v3826_v18 = vrot.slane %v3810_v12, 6  ;;  %v3827_v62 = vrot.slane %v3811_v13, 6  ;;  %v3828_v6 = vrot.slane %v3812_v34, 6  ;;  %7241 = vpush %v6081_v32  ;;  %5876 = vmatpush.bf16.msrb.mxu1 %v8457_v63 }
 0x28e   : > { %v3800_v4 = vadd.f32 %v3784_v27, %v3755_v5  ;;  %v3829_v42 = vrot.slane %v3813_v8, 6  ;;  %v3838_v28 = vadd.f32 %v3822_v25, %v3793_v48  ;;  %v3839_v10 = vadd.f32 %v3823_v7, %v3794_v26 }
 0x28f   : > { %v3840_v14 = vadd.f32 %v3824_v60, %v3795_v39  ;;  %v3841_v3 = vadd.f32 %v3825_v31, %v3796_v61  ;;  %v3842_v30 = vadd.f32 %v3826_v18, %v3797_v35  ;;  %v3843_v9 = vadd.f32 %v3827_v62, %v3798_v19 }
 0x290   : > { %v3844_v2 = vadd.f32 %v3828_v6, %v3799_v29  ;;  %v3851_v36 = vmul.f32 %v3849_v44, %v7844_v45  ;;  %v3852_v11 = vmul.f32 %v3849_v44, %v7847_v50  ;;  %v3853_v17 = vmul.f32 %v3849_v44, %v7849_v51 }
 0x291   : > { %v3854_v24 = vmul.f32 %v3849_v44, %v7851_v52  ;;  %v3855_v0 = vmul.f32 %v3849_v44, %v7853_v53  ;;  %v3856_v5 = vmul.f32 %v3849_v44, %v7855_v54  ;;  %v3857_v41 = vmul.f32 %v3849_v44, %v7857_v55 }
 0x292   : > { %v9429_v47 = vmul.f32 %v3849_v44, %v7859_v56  ;;  %v3867_v27 = vrot.slane %v3851_v36, 7  ;;  %v3868_v16 = vrot.slane %v3852_v11, 7  ;;  %v3869_v48 = vrot.slane %v3853_v17, 7 }
 0x293   : > { %v3870_v26 = vrot.slane %v3854_v24, 7  ;;  %v3871_v39 = vrot.slane %v3855_v0, 7  ;;  %v3872_v61 = vrot.slane %v3856_v5, 7  ;;  %v3873_v35 = vrot.slane %v3857_v41, 7 }
 0x294   : > { %v9431_v19 = vadd.f32 %v3829_v42, %v3800_v4  ;;  %v3883_v29 = vadd.f32 %v3867_v27, %v3838_v28  ;;  %v3884_v1 = vadd.f32 %v3868_v16, %v3839_v10  ;;  %v3885_v38 = vadd.f32 %v3869_v48, %v3840_v14  ;;  %v10873_v42 = vld [vmem:[#allocation33_spill] sm:$0xff] }
 0x295   : > { %v3886_v23 = vadd.f32 %v3870_v26, %v3841_v3  ;;  %v3887_v20 = vadd.f32 %v3871_v39, %v3842_v30  ;;  %v3888_v32 = vadd.f32 %v3872_v61, %v3843_v9  ;;  %v9433_v49 = vadd.f32 %v3873_v35, %v3844_v2 }
 0x296   : > { %v3891_v44 = vpack.c.bf16 %v3883_v29, %v3883_v29  ;;  %v3892_v46 = vpack.c.bf16 %v3884_v1, %v3884_v1  ;;  %v3893_v15 = vpack.c.bf16 %v3885_v38, %v3885_v38  ;;  %v3950_v59 = vstv %s7152_s15  ;;  %s7186_s15 = spop %7185 }
 0x297   : > { %v3894_v12 = vpack.c.bf16 %v3886_v23, %v3886_v23  ;;  %v3895_v13 = vpack.c.bf16 %v3887_v20, %v3887_v20  ;;  %v3896_v34 = vpack.c.bf16 %v3888_v32, %v3888_v32  ;;  %v3952_v6 = vmul.f32 %v3950_v59, %v7844_v45 }
 0x298   : > { %v3907_v25 = vunpack.c.l.b16 %v3891_v44  ;;  %v3908_v7 = vunpack.c.l.b16 %v3892_v46  ;;  %v9438_v60 = vunpack.c.l.b16 %v3893_v15  ;;  %v3953_v28 = vmul.f32 %v3950_v59, %v7847_v50 }
 0x299   : > { %v9440_v31 = vunpack.c.l.b16 %v3894_v12  ;;  %v9442_v18 = vunpack.c.l.b16 %v3895_v13  ;;  %v9444_v62 = vunpack.c.l.b16 %v3896_v34  ;;  %v3954_v10 = vmul.f32 %v3950_v59, %v7849_v51 }
 0x29a   : > { %v3915_v4 = vrot.slane %v3908_v7, 7  ;;  %v3955_v9 = vmul.f32 %v3950_v59, %v7851_v52  ;;  %v3956_v36 = vmul.f32 %v3950_v59, %v7853_v53  ;;  %v3957_v11 = vmul.f32 %v3950_v59, %v7855_v54 }
 0x29b   : > { %v3958_v17 = vmul.f32 %v3950_v59, %v7857_v55  ;;  %v3959_v24 = vmul.f32 %v3950_v59, %v7859_v56  ;;  %v3963_v0 = vstv %s7154_s16  ;;  %v4008_v5 = vstv %s7156_s17  ;;  %s7188_s16 = spop %7187 }
 0x29c   : > { %v9455_v2 = vsel %vm796_vm1, %v3915_v4, %v3907_v25  ;;  %v4053_v41 = vstv %s7158_s18  ;;  %v3965_v27 = vmul.f32 %v3963_v0, %v7844_v45  ;;  %v3966_v16 = vmul.f32 %v3963_v0, %v7847_v50  ;;  %s7190_s17 = spop %7189 }
 0x29d   : > { %v3967_v48 = vmul.f32 %v3963_v0, %v7849_v51  ;;  %v3968_v26 = vmul.f32 %v3963_v0, %v7851_v52  ;;  %v3969_v39 = vmul.f32 %v3963_v0, %v7853_v53  ;;  %v3970_v61 = vmul.f32 %v3963_v0, %v7855_v54  ;;  %s7192_s18 = spop %7191 }
 0x29e   : > { %v3971_v35 = vmul.f32 %v3963_v0, %v7857_v55  ;;  %v3972_v29 = vmul.f32 %v3963_v0, %v7859_v56  ;;  %v3981_v1 = vrot.slane %v3965_v27, 1  ;;  %v3982_v38 = vrot.slane %v3966_v16, 1 }
 0x29f   : > { %v3983_v23 = vrot.slane %v3967_v48, 1  ;;  %v3984_v20 = vrot.slane %v3968_v26, 1  ;;  %v3985_v32 = vrot.slane %v3969_v39, 1  ;;  %v3986_v44 = vrot.slane %v3970_v61, 1  ;;  %v6126_v39 = vpop.permute.xlu0 %6125 }
 0x2a0   : > { %v3987_v46 = vrot.slane %v3971_v35, 1  ;;  %v9469_v15 = vstv %s7160_s19  ;;  %v3988_v59 = vrot.slane %v3972_v29, 1  ;;  %v3997_v12 = vadd.f32 %v3981_v1, %v3952_v6  ;;  %7243 = vpush %v6126_v39  ;;  %s7194_s19 = spop %7193 }
 0x2a1   : > { %v3998_v13 = vadd.f32 %v3982_v38, %v3953_v28  ;;  %v3999_v34 = vadd.f32 %v3983_v23, %v3954_v10  ;;  %v4000_v25 = vadd.f32 %v3984_v20, %v3955_v9  ;;  %v4001_v7 = vadd.f32 %v3985_v32, %v3956_v36 }
 0x2a2   : > { %v4002_v4 = vadd.f32 %v3986_v44, %v3957_v11  ;;  %v4003_v30 = vadd.f32 %v3987_v46, %v3958_v17  ;;  %v4010_v3 = vmul.f32 %v4008_v5, %v7844_v45  ;;  %v4011_v0 = vmul.f32 %v4008_v5, %v7847_v50  ;;  %v6171_v17 = vpop.permute.xlu1 %6170 }
 0x2a3   : > { %v4012_v27 = vmul.f32 %v4008_v5, %v7849_v51  ;;  %v4013_v16 = vmul.f32 %v4008_v5, %v7851_v52  ;;  %v4014_v48 = vmul.f32 %v4008_v5, %v7853_v53  ;;  %v4015_v26 = vmul.f32 %v4008_v5, %v7855_v54  ;;  %7245 = vpush %v6171_v17 }
 0x2a4   : > { %v4016_v6 = vmul.f32 %v4008_v5, %v7857_v55  ;;  %v4017_v28 = vmul.f32 %v4008_v5, %v7859_v56  ;;  %v4004_v10 = vadd.f32 %v3988_v59, %v3959_v24  ;;  %v4026_v9 = vrot.slane %v4010_v3, 2  ;;  %v10853_v24 = vld [vmem:[#allocation4_spill] sm:$0xff] }
 0x2a5   : > { %v4027_v36 = vrot.slane %v4011_v0, 2  ;;  %v4028_v11 = vrot.slane %v4012_v27, 2  ;;  %v4029_v61 = vrot.slane %v4013_v16, 2  ;;  %v4030_v35 = vrot.slane %v4014_v48, 2  ;;  %7247 = vpush %v10853_v24 }
 0x2a6   : > { %v4031_v29 = vrot.slane %v4015_v26, 2  ;;  %v4032_v1 = vrot.slane %v4016_v6, 2  ;;  %v4033_v38 = vrot.slane %v4017_v28, 2  ;;  %v4042_v23 = vadd.f32 %v4026_v9, %v3997_v12 }
 0x2a7   : > { %v4043_v20 = vadd.f32 %v4027_v36, %v3998_v13  ;;  %v4044_v32 = vadd.f32 %v4028_v11, %v3999_v34  ;;  %v4045_v44 = vadd.f32 %v4029_v61, %v4000_v25  ;;  %v4046_v46 = vadd.f32 %v4030_v35, %v4001_v7 }
 0x2a8   : > { %v4047_v14 = vadd.f32 %v4031_v29, %v4002_v4  ;;  %v4048_v5 = vadd.f32 %v4032_v1, %v4003_v30  ;;  %v4055_v3 = vmul.f32 %v4053_v41, %v7844_v45  ;;  %v4056_v59 = vmul.f32 %v4053_v41, %v7847_v50 }
 0x2a9   : > { %v4057_v0 = vmul.f32 %v4053_v41, %v7849_v51  ;;  %v4058_v27 = vmul.f32 %v4053_v41, %v7851_v52  ;;  %v4059_v16 = vmul.f32 %v4053_v41, %v7853_v53  ;;  %v4060_v12 = vmul.f32 %v4053_v41, %v7855_v54 }
 0x2aa   : > { %v4061_v13 = vmul.f32 %v4053_v41, %v7857_v55  ;;  %v4062_v34 = vmul.f32 %v4053_v41, %v7859_v56  ;;  %v4049_v25 = vadd.f32 %v4033_v38, %v4004_v10  ;;  %v4071_v30 = vrot.slane %v4055_v3, 3 }
 0x2ab   : > { %v4072_v7 = vrot.slane %v4056_v59, 3  ;;  %v4073_v4 = vrot.slane %v4057_v0, 3  ;;  %v4074_v48 = vrot.slane %v4058_v27, 3  ;;  %v4075_v26 = vrot.slane %v4059_v16, 3 }
 0x2ac   : > { %v4076_v6 = vrot.slane %v4060_v12, 3  ;;  %v4077_v28 = vrot.slane %v4061_v13, 3  ;;  %v4078_v9 = vrot.slane %v4062_v34, 3  ;;  %v4087_v36 = vadd.f32 %v4071_v30, %v4042_v23 }
 0x2ad   : > { %v4088_v11 = vadd.f32 %v4072_v7, %v4043_v20  ;;  %v4089_v17 = vadd.f32 %v4073_v4, %v4044_v32  ;;  %v4090_v39 = vadd.f32 %v4074_v48, %v4045_v44  ;;  %v4091_v61 = vadd.f32 %v4075_v26, %v4046_v46 }
 0x2ae   : > { %v4092_v35 = vadd.f32 %v4076_v6, %v4047_v14  ;;  %v4093_v29 = vadd.f32 %v4077_v28, %v4048_v5  ;;  %v4100_v41 = vmul.f32 %v9469_v15, %v7844_v45  ;;  %v4101_v10 = vmul.f32 %v9469_v15, %v7847_v50 }
 0x2af   : > { %v4102_v1 = vmul.f32 %v9469_v15, %v7849_v51  ;;  %v4103_v38 = vmul.f32 %v9469_v15, %v7851_v52  ;;  %v4104_v23 = vmul.f32 %v9469_v15, %v7853_v53  ;;  %v4105_v14 = vmul.f32 %v9469_v15, %v7855_v54 }
 0x2b0   : > { %v4106_v20 = vmul.f32 %v9469_v15, %v7857_v55  ;;  %v4107_v32 = vmul.f32 %v9469_v15, %v7859_v56  ;;  %v4094_v44 = vadd.f32 %v4078_v9, %v4049_v25  ;;  %v4116_v46 = vrot.slane %v4100_v41, 4 }
 0x2b1   : > { %v4117_v5 = vrot.slane %v4101_v10, 4  ;;  %v4118_v24 = vrot.slane %v4102_v1, 4  ;;  %v4119_v3 = vrot.slane %v4103_v38, 4  ;;  %v4120_v59 = vrot.slane %v4104_v23, 4 }
 0x2b2   : > { %v4121_v0 = vrot.slane %v4105_v14, 4  ;;  %v4122_v27 = vrot.slane %v4106_v20, 4  ;;  %v4123_v16 = vrot.slane %v4107_v32, 4  ;;  %v4132_v12 = vadd.f32 %v4116_v46, %v4087_v36 }
 0x2b3   : > { %v4133_v13 = vadd.f32 %v4117_v5, %v4088_v11  ;;  %v4134_v34 = vadd.f32 %v4118_v24, %v4089_v17  ;;  %v4135_v30 = vadd.f32 %v4119_v3, %v4090_v39  ;;  %v4136_v7 = vadd.f32 %v4120_v59, %v4091_v61 }
 0x2b4   : > { %v4137_v4 = vadd.f32 %v4121_v0, %v4092_v35  ;;  %v4138_v48 = vadd.f32 %v4122_v27, %v4093_v29  ;;  %v4139_v26 = vadd.f32 %v4123_v16, %v4094_v44  ;;  %v4143_v15 = vstv %s7162_s20  ;;  %s7196_s20 = spop %7195 }
 0x2b5   : > { %v4188_v6 = vstv %s7164_s21  ;;  %v4233_v25 = vstv %s7166_s22  ;;  %v4145_v28 = vmul.f32 %v4143_v15, %v7844_v45  ;;  %v4146_v9 = vmul.f32 %v4143_v15, %v7847_v50  ;;  %s7198_s21 = spop %7197 }
 0x2b6   : > { %v4147_v41 = vmul.f32 %v4143_v15, %v7849_v51  ;;  %v4148_v10 = vmul.f32 %v4143_v15, %v7851_v52  ;;  %v4149_v36 = vmul.f32 %v4143_v15, %v7853_v53  ;;  %v4150_v11 = vmul.f32 %v4143_v15, %v7855_v54  ;;  %s7200_s22 = spop %7199 }
 0x2b7   : > { %v4151_v17 = vmul.f32 %v4143_v15, %v7857_v55  ;;  %v4152_v39 = vmul.f32 %v4143_v15, %v7859_v56  ;;  %v4161_v61 = vrot.slane %v4145_v28, 5  ;;  %v4162_v35 = vrot.slane %v4146_v9, 5 }
 0x2b8   : > { %v4163_v29 = vrot.slane %v4147_v41, 5  ;;  %v9512_v1 = vstv %s7168_s23  ;;  %v4164_v38 = vrot.slane %v4148_v10, 5  ;;  %v4165_v23 = vrot.slane %v4149_v36, 5  ;;  %s7202_s23 = spop %7201 }
 0x2b9   : > { %v4166_v14 = vrot.slane %v4150_v11, 5  ;;  %v4167_v20 = vrot.slane %v4151_v17, 5  ;;  %v4168_v32 = vrot.slane %v4152_v39, 5  ;;  %v4177_v44 = vadd.f32 %v4161_v61, %v4132_v12 }
 0x2ba   : > { %v4178_v46 = vadd.f32 %v4162_v35, %v4133_v13  ;;  %v4179_v5 = vadd.f32 %v4163_v29, %v4134_v34  ;;  %v4180_v24 = vadd.f32 %v4164_v38, %v4135_v30  ;;  %v4181_v3 = vadd.f32 %v4165_v23, %v4136_v7 }
 0x2bb   : > { %v4182_v59 = vadd.f32 %v4166_v14, %v4137_v4  ;;  %v4183_v0 = vadd.f32 %v4167_v20, %v4138_v48  ;;  %v4190_v27 = vmul.f32 %v4188_v6, %v7844_v45  ;;  %v4191_v16 = vmul.f32 %v4188_v6, %v7847_v50 }
 0x2bc   : > { %v4192_v15 = vmul.f32 %v4188_v6, %v7849_v51  ;;  %v4193_v28 = vmul.f32 %v4188_v6, %v7851_v52  ;;  %v4194_v9 = vmul.f32 %v4188_v6, %v7853_v53  ;;  %v4195_v41 = vmul.f32 %v4188_v6, %v7855_v54 }
 0x2bd   : > { %v4196_v12 = vmul.f32 %v4188_v6, %v7857_v55  ;;  %v4197_v13 = vmul.f32 %v4188_v6, %v7859_v56  ;;  %v4184_v34 = vadd.f32 %v4168_v32, %v4139_v26  ;;  %v4206_v30 = vrot.slane %v4190_v27, 6 }
 0x2be   : > { %v4207_v7 = vrot.slane %v4191_v16, 6  ;;  %v4208_v4 = vrot.slane %v4192_v15, 6  ;;  %v4209_v48 = vrot.slane %v4193_v28, 6  ;;  %v4210_v10 = vrot.slane %v4194_v9, 6 }
 0x2bf   : > { %v4211_v36 = vrot.slane %v4195_v41, 6  ;;  %v4212_v11 = vrot.slane %v4196_v12, 6  ;;  %v4213_v17 = vrot.slane %v4197_v13, 6  ;;  %v4222_v39 = vadd.f32 %v4206_v30, %v4177_v44 }
 0x2c0   : > { %v4223_v61 = vadd.f32 %v4207_v7, %v4178_v46  ;;  %v4224_v35 = vadd.f32 %v4208_v4, %v4179_v5  ;;  %v4225_v29 = vadd.f32 %v4209_v48, %v4180_v24  ;;  %v4226_v38 = vadd.f32 %v4210_v10, %v4181_v3 }
 0x2c1   : > { %v4227_v23 = vadd.f32 %v4211_v36, %v4182_v59  ;;  %v4228_v14 = vadd.f32 %v4212_v11, %v4183_v0  ;;  %v4235_v20 = vmul.f32 %v4233_v25, %v7844_v45  ;;  %v4236_v6 = vmul.f32 %v4233_v25, %v7847_v50 }
 0x2c2   : > { %v4237_v26 = vmul.f32 %v4233_v25, %v7849_v51  ;;  %v4238_v32 = vmul.f32 %v4233_v25, %v7851_v52  ;;  %v4239_v27 = vmul.f32 %v4233_v25, %v7853_v53  ;;  %v4240_v16 = vmul.f32 %v4233_v25, %v7855_v54 }
 0x2c3   : > { %v4241_v44 = vmul.f32 %v4233_v25, %v7857_v55  ;;  %v9530_v46 = vmul.f32 %v4233_v25, %v7859_v56  ;;  %v4251_v5 = vrot.slane %v4235_v20, 7  ;;  %v4252_v24 = vrot.slane %v4236_v6, 7 }
 0x2c4   : > { %v4253_v3 = vrot.slane %v4237_v26, 7  ;;  %v4254_v59 = vrot.slane %v4238_v32, 7  ;;  %v9532_v0 = vadd.f32 %v4213_v17, %v4184_v34  ;;  %v4255_v15 = vrot.slane %v4239_v27, 7 }
 0x2c5   : > { %v4256_v28 = vrot.slane %v4240_v16, 7  ;;  %v4257_v9 = vrot.slane %v4241_v44, 7  ;;  %v4267_v41 = vadd.f32 %v4251_v5, %v4222_v39  ;;  %v4268_v12 = vadd.f32 %v4252_v24, %v4223_v61 }
 0x2c6   : > { %v4269_v13 = vadd.f32 %v4253_v3, %v4224_v35  ;;  %v4270_v30 = vadd.f32 %v4254_v59, %v4225_v29  ;;  %v4271_v4 = vadd.f32 %v4255_v15, %v4226_v38  ;;  %v4340_v39 = vmul.f32 %v9512_v1, %v7844_v45 }
 0x2c7   : > { %v4272_v48 = vadd.f32 %v4256_v28, %v4227_v23  ;;  %v9535_v10 = vadd.f32 %v4257_v9, %v4228_v14  ;;  %v4275_v25 = vpack.c.bf16 %v4267_v41, %v4267_v41  ;;  %v4276_v36 = vpack.c.bf16 %v4268_v12, %v4268_v12 }
 0x2c8   : > { %v4277_v11 = vpack.c.bf16 %v4269_v13, %v4269_v13  ;;  %v4278_v20 = vpack.c.bf16 %v4270_v30, %v4270_v30  ;;  %v4279_v6 = vpack.c.bf16 %v4271_v4, %v4271_v4  ;;  %v4341_v38 = vmul.f32 %v9512_v1, %v7847_v50 }
 0x2c9   : > { %v4280_v34 = vpack.c.bf16 %v4272_v48, %v4272_v48  ;;  %v4292_v61 = vunpack.c.l.b16 %v4276_v36  ;;  %v4291_v23 = vunpack.c.l.b16 %v4275_v25  ;;  %v4342_v32 = vmul.f32 %v9512_v1, %v7849_v51  ;;  %v6424_v25 = vpop.permute.xlu2 %6423 }
 0x2ca   : > { %v9541_v35 = vunpack.c.l.b16 %v4277_v11  ;;  %v9543_v29 = vunpack.c.l.b16 %v4278_v20  ;;  %v9547_v14 = vunpack.c.l.b16 %v4279_v6  ;;  %v4343_v5 = vmul.f32 %v9512_v1, %v7851_v52 }
 0x2cb   : > { %v9549_v26 = vunpack.c.l.b16 %v4280_v34  ;;  %v4299_v27 = vrot.slane %v4292_v61, 7  ;;  %v4344_v59 = vmul.f32 %v9512_v1, %v7853_v53  ;;  %v4345_v15 = vmul.f32 %v9512_v1, %v7855_v54 }
 0x2cc   : > { %v4346_v9 = vmul.f32 %v9512_v1, %v7857_v55  ;;  %v4351_v41 = vstv %s7170_s24  ;;  %v7551_v12 = vunpack.i.h.bf16 %v9320_v57  ;;  %v10874_v8 = vrot.slane %v10873_v42, 6  ;;  %s7204_s24 = spop %7203 }
 0x2cd   : > { %v9564_v28 = vsel %vm796_vm1, %v4299_v27, %v4291_v23  ;;  %v4353_v13 = vmul.f32 %v4351_v41, %v7844_v45  ;;  %v4354_v30 = vmul.f32 %v4351_v41, %v7847_v50  ;;  %v4355_v4 = vmul.f32 %v4351_v41, %v7849_v51 }
 0x2ce   : > { %v4356_v48 = vmul.f32 %v4351_v41, %v7851_v52  ;;  %v4357_v36 = vmul.f32 %v4351_v41, %v7853_v53  ;;  %v4358_v11 = vmul.f32 %v4351_v41, %v7855_v54  ;;  %v4359_v20 = vmul.f32 %v4351_v41, %v7857_v55  ;;  %7249 = vpush %v7551_v12 }
 0x2cf   : > { %v9577_v6 = vmul.f32 %v4351_v41, %v7859_v56  ;;  %v4369_v57 = vrot.slane %v4353_v13, 1  ;;  %v4370_v34 = vrot.slane %v4354_v30, 1  ;;  %v4371_v61 = vrot.slane %v4355_v4, 1 }
 0x2d0   : > { %v4372_v23 = vrot.slane %v4356_v48, 1  ;;  %v9581_v27 = vmul.f32 %v9512_v1, %v7859_v56  ;;  %v4373_v3 = vrot.slane %v4357_v36, 1  ;;  %v4374_v24 = vrot.slane %v4358_v11, 1  ;;  %v10854_v36 = vld [vmem:[#allocation20_spill] sm:$0xff] }
 0x2d1   : > { %v4375_v44 = vrot.slane %v4359_v20, 1  ;;  %v4376_v16 = vrot.slane %v9577_v6, 1  ;;  %v9584_v17 = vadd.f32 %v4369_v57, %v4340_v39  ;;  %v9586_v7 = vadd.f32 %v4370_v34, %v4341_v38  ;;  %v10855_v39 = vld [vmem:[#allocation16_spill] sm:$0xff]  ;;  %v10857_v20 = vld [vmem:[#allocation21_spill] sm:$0xff]  ;;  %v10864_v57 = vld [vmem:[#allocation30_spill] sm:$0xff] }
 0x2d2   : > { %v9588_v41 = vadd.f32 %v4371_v61, %v4342_v32  ;;  %v9590_v12 = vadd.f32 %v4372_v23, %v4343_v5  ;;  %v9592_v13 = vadd.f32 %v4373_v3, %v4344_v59  ;;  %v9594_v30 = vadd.f32 %v4374_v24, %v4345_v15  ;;  %v10858_v32 = vld [vmem:[#allocation23_spill] sm:$0xff]  ;;  %v10860_v3 = vld [vmem:[#allocation25_spill] sm:$0xff]  ;;  %v10862_v15 = vld [vmem:[#allocation28_spill] sm:$0xff] }
 0x2d3   : > { %v9596_v4 = vadd.f32 %v4375_v44, %v4346_v9  ;;  %v7556_v1 = vunpack.i.h.bf16 %v9325_v21  ;;  %v7561_v48 = vunpack.i.h.bf16 %v9407_v37  ;;  %v10856_v11 = vrot.slane %v10855_v39, 5  ;;  %v10861_v24 = vld [vmem:[#allocation29_spill] sm:$0xff]  ;;  %v10866_v37 = vld [vmem:[#allocation31_spill] sm:$0xff]  ;;  %v10867_v61 = vld [vmem:[#allocation32_spill] sm:$0xff] }
 0x2d4   : > { %v10859_v6 = vrot.slane %v10858_v32, 6  ;;  %v3080_v59 = vmul.f32 %v10860_v3, %v7859_v56  ;;  %v10863_v44 = vrot.slane %v10862_v15, 7  ;;  %v10865_v21 = vpack.c.bf16 %v10864_v57, %v10864_v57  ;;  %v10869_v39 = vld [vmem:[#allocation24_spill] sm:$0xff]  ;;  %v10871_v32 = vld [vmem:[#allocation27_spill] sm:$0xff] }
 0x2d5   : > { %v3022_v38 = vadd.f32 %v10856_v11, %v10854_v36  ;;  %v10868_v23 = vrot.slane %v10867_v61, 7  ;;  %7251 = vpush %v7556_v1  ;;  %v10870_v11 = vrot.slane %v10869_v39, 6  ;;  %v4396_v15 = vstv %s7172_s25  ;;  %s7206_s25 = spop %7205 }
 0x2d6   : > { %v3066_v5 = vadd.f32 %v10859_v6, %v10857_v20  ;;  %v3110_v9 = vadd.f32 %v10863_v44, %v10861_v24  ;;  %v3133_v34 = vunpack.c.l.b16 %v10865_v21  ;;  %v10872_v6 = vrot.slane %v10871_v32, 7  ;;  %v6469_v44 = vpop.permute.xlu0 %6468  ;;  %7253 = vpush %v7561_v48 }
 0x2d7   : > { %v3138_v36 = vsel %vm796_vm1, %v10868_v23, %v10866_v37  ;;  %v3067_v20 = vadd.f32 %v10870_v11, %v3022_v38  ;;  %v3096_v57 = vrot.slane %v3080_v59, 7  ;;  %v10875_v61 = vrot.slane %v9127_v40, 5  ;;  %v6514_v23 = vpop.permute.xlu1 %6513  ;;  %7255 = vpush %v6424_v25 }
 0x2d8   : > { %v3111_v3 = vadd.f32 %v10872_v6, %v3066_v5  ;;  %v3140_v24 = vsel %vm799_vm2, %v10874_v8, %v3138_v36  ;;  %v3118_v21 = vpack.c.bf16 %v3110_v9, %v3110_v9  ;;  %v3143_v1 = vrot.slane %v3133_v34, 4  ;;  %v6559_v8 = vpop.permute.xlu2 %6558  ;;  %7257 = vpush %v6469_v44 }
 0x2d9   : > { %v3142_v37 = vsel %vm802_vm3, %v10875_v61, %v3140_v24  ;;  %v4398_v38 = vmul.f32 %v4396_v15, %v7844_v45  ;;  %v4399_v5 = vmul.f32 %v4396_v15, %v7847_v50  ;;  %v4400_v42 = vmul.f32 %v4396_v15, %v7849_v51  ;;  %7259 = vpush %v6514_v23 }
 0x2da   : > { %v3119_v39 = vpack.c.bf16 %v3111_v3, %v3111_v3  ;;  %v3112_v36 = vadd.f32 %v3096_v57, %v3067_v20  ;;  %v3134_v11 = vunpack.c.l.b16 %v3118_v21  ;;  %v3144_v48 = vsel %vm805_vm4, %v3143_v1, %v3142_v37  ;;  %7261 = vpush %v6559_v8 }
 0x2db   : > { %v4401_v59 = vmul.f32 %v4396_v15, %v7851_v52  ;;  %v4402_v9 = vmul.f32 %v4396_v15, %v7853_v53  ;;  %v4403_v34 = vmul.f32 %v4396_v15, %v7855_v54  ;;  %v4404_v32 = vmul.f32 %v4396_v15, %v7857_v55 }
 0x2dc   : > { %v3135_v40 = vunpack.c.l.b16 %v3119_v39  ;;  %v3120_v6 = vpack.c.bf16 %v3112_v36, %v3112_v36  ;;  %v3145_v3 = vrot.slane %v3134_v11, 3  ;;  %v4405_v25 = vmul.f32 %v4396_v15, %v7859_v56 }
 0x2dd   : > { %v4414_v24 = vrot.slane %v4398_v38, 2  ;;  %v4415_v57 = vrot.slane %v4399_v5, 2  ;;  %v4416_v21 = vrot.slane %v4400_v42, 2  ;;  %v4417_v61 = vrot.slane %v4401_v59, 2 }
 0x2de   : > { %v3147_v20 = vrot.slane %v3135_v40, 2  ;;  %v3136_v37 = vunpack.c.l.b16 %v3120_v6  ;;  %v3146_v44 = vsel %vm808_vm5, %v3145_v3, %v3144_v48  ;;  %v4418_v1 = vrot.slane %v4402_v9, 2 }
 0x2df   : > { %v4419_v39 = vrot.slane %v4403_v34, 2  ;;  %v4392_v43 = vadd.f32 %v4376_v16, %v9581_v27  ;;  %v4420_v36 = vrot.slane %v4404_v32, 2  ;;  %v4421_v11 = vrot.slane %v4405_v25, 2 }
 0x2e0   : > { %v3148_v23 = vsel %vm811_vm6, %v3147_v20, %v3146_v44  ;;  %v3149_v15 = vrot.slane %v3136_v37, 1  ;;  %v4430_v38 = vadd.f32 %v4414_v24, %v9584_v17  ;;  %v4431_v5 = vadd.f32 %v4415_v57, %v9586_v7 }
 0x2e1   : > { %v4432_v42 = vadd.f32 %v4416_v21, %v9588_v41  ;;  %v4433_v8 = vadd.f32 %v4417_v61, %v9590_v12  ;;  %v4434_v48 = vadd.f32 %v4418_v1, %v9592_v13  ;;  %v4435_v59 = vadd.f32 %v4419_v39, %v9594_v30 }
 0x2e2   : > { %v4436_v16 = vadd.f32 %v4420_v36, %v9596_v4  ;;  %v3150_v27 = vsel %vm814_vm7, %v3149_v15, %v3148_v23  ;;  %v4437_v40 = vadd.f32 %v4421_v11, %v4392_v43  ;;  %v4441_v9 = vstv %s7174_s26  ;;  %s7208_s26 = spop %7207 }
 0x2e3   : > { %v4486_v34 = vstv %s7176_s27  ;;  %v3151_v32 = vpack.c.b16 %v3150_v27, %v3150_v27  ;;  %v4443_v17 = vmul.f32 %v4441_v9, %v7844_v45  ;;  %v4444_v7 = vmul.f32 %v4441_v9, %v7847_v50  ;;  %s7210_s27 = spop %7209 }
 0x2e4   : > { %v4445_v41 = vmul.f32 %v4441_v9, %v7849_v51  ;;  %v4446_v12 = vmul.f32 %v4441_v9, %v7851_v52  ;;  %v4447_v13 = vmul.f32 %v4441_v9, %v7853_v53  ;;  %v4448_v30 = vmul.f32 %v4441_v9, %v7855_v54 }
 0x2e5   : > { %v4449_v4 = vmul.f32 %v4441_v9, %v7857_v55  ;;  %6980 = vmatmul.msk.bf16.vlgmr.msrb.gmra.mxu2 %vm817_vm8, %v3151_v32  ;;  %v4450_v43 = vmul.f32 %v4441_v9, %v7859_v56  ;;  %v4459_v6 = vrot.slane %v4443_v17, 3  ;;  %v4460_v3 = vrot.slane %v4444_v7, 3 }
 0x2e6   : > { %v4531_v25 = vstv %s7178_s28  ;;  %v4461_v24 = vrot.slane %v4445_v41, 3  ;;  %v4462_v20 = vrot.slane %v4446_v12, 3  ;;  %v4463_v57 = vrot.slane %v4447_v13, 3  ;;  %6264 = vmatpush.bf16.msrb.mxu2 %v8457_v63  ;;  %s7212_s28 = spop %7211 }
 0x2e7   : > { %v4464_v21 = vrot.slane %v4448_v30, 3  ;;  %v4465_v61 = vrot.slane %v4449_v4, 3  ;;  %v4466_v37 = vrot.slane %v4450_v43, 3  ;;  %v4475_v44 = vadd.f32 %v4459_v6, %v4430_v38 }
 0x2e8   : > { %v4476_v1 = vadd.f32 %v4460_v3, %v4431_v5  ;;  %v4477_v39 = vadd.f32 %v4461_v24, %v4432_v42  ;;  %v4478_v23 = vadd.f32 %v4462_v20, %v4433_v8  ;;  %v4479_v36 = vadd.f32 %v4463_v57, %v4434_v48 }
 0x2e9   : > { %v4480_v11 = vadd.f32 %v4464_v21, %v4435_v59  ;;  %v4481_v15 = vadd.f32 %v4465_v61, %v4436_v16  ;;  %v4488_v27 = vmul.f32 %v4486_v34, %v7844_v45  ;;  %v4489_v9 = vmul.f32 %v4486_v34, %v7847_v50 }
 0x2ea   : > { %v4490_v32 = vmul.f32 %v4486_v34, %v7849_v51  ;;  %v4491_v17 = vmul.f32 %v4486_v34, %v7851_v52  ;;  %v4492_v7 = vmul.f32 %v4486_v34, %v7853_v53  ;;  %v4493_v41 = vmul.f32 %v4486_v34, %v7855_v54 }
 0x2eb   : > { %v4494_v38 = vmul.f32 %v4486_v34, %v7857_v55  ;;  %v4495_v5 = vmul.f32 %v4486_v34, %v7859_v56  ;;  %v4504_v42 = vrot.slane %v4488_v27, 4  ;;  %v4505_v8 = vrot.slane %v4489_v9, 4 }
 0x2ec   : > { %v4506_v48 = vrot.slane %v4490_v32, 4  ;;  %v4507_v59 = vrot.slane %v4491_v17, 4  ;;  %v4508_v16 = vrot.slane %v4492_v7, 4  ;;  %v4509_v12 = vrot.slane %v4493_v41, 4 }
 0x2ed   : > { %v4510_v13 = vrot.slane %v4494_v38, 4  ;;  %v4482_v30 = vadd.f32 %v4466_v37, %v4437_v40  ;;  %v4511_v4 = vrot.slane %v4495_v5, 4  ;;  %v4520_v43 = vadd.f32 %v4504_v42, %v4475_v44 }
 0x2ee   : > { %v4521_v6 = vadd.f32 %v4505_v8, %v4476_v1  ;;  %v4522_v3 = vadd.f32 %v4506_v48, %v4477_v39  ;;  %v4523_v24 = vadd.f32 %v4507_v59, %v4478_v23  ;;  %v4524_v20 = vadd.f32 %v4508_v16, %v4479_v36 }
 0x2ef   : > { %v4525_v57 = vadd.f32 %v4509_v12, %v4480_v11  ;;  %v4526_v21 = vadd.f32 %v4510_v13, %v4481_v15  ;;  %v4533_v61 = vmul.f32 %v4531_v25, %v7844_v45  ;;  %v4534_v34 = vmul.f32 %v4531_v25, %v7847_v50 }
 0x2f0   : > { %v4535_v27 = vmul.f32 %v4531_v25, %v7849_v51  ;;  %v4536_v9 = vmul.f32 %v4531_v25, %v7851_v52  ;;  %v4537_v32 = vmul.f32 %v4531_v25, %v7853_v53  ;;  %v4538_v40 = vmul.f32 %v4531_v25, %v7855_v54 }
 0x2f1   : > { %v4539_v37 = vmul.f32 %v4531_v25, %v7857_v55  ;;  %v4540_v44 = vmul.f32 %v4531_v25, %v7859_v56  ;;  %v4549_v1 = vrot.slane %v4533_v61, 5  ;;  %v4550_v39 = vrot.slane %v4534_v34, 5 }
 0x2f2   : > { %v4551_v23 = vrot.slane %v4535_v27, 5  ;;  %v4552_v36 = vrot.slane %v4536_v9, 5  ;;  %v4553_v11 = vrot.slane %v4537_v32, 5  ;;  %v4554_v15 = vrot.slane %v4538_v40, 5 }
 0x2f3   : > { %v4555_v17 = vrot.slane %v4539_v37, 5  ;;  %v4527_v7 = vadd.f32 %v4511_v4, %v4482_v30  ;;  %v4556_v41 = vrot.slane %v4540_v44, 5  ;;  %v4565_v38 = vadd.f32 %v4549_v1, %v4520_v43 }
 0x2f4   : > { %v4566_v5 = vadd.f32 %v4550_v39, %v4521_v6  ;;  %v4567_v42 = vadd.f32 %v4551_v23, %v4522_v3  ;;  %v4568_v8 = vadd.f32 %v4552_v36, %v4523_v24  ;;  %v4569_v48 = vadd.f32 %v4553_v11, %v4524_v20 }
 0x2f5   : > { %v4570_v59 = vadd.f32 %v4554_v15, %v4525_v57  ;;  %v4571_v16 = vadd.f32 %v4555_v17, %v4526_v21  ;;  %v4572_v12 = vadd.f32 %v4556_v41, %v4527_v7  ;;  %v4576_v25 = vstv %s7180_s29  ;;  %s7214_s29 = spop %7213 }
 0x2f6   : > { %v4621_v13 = vstv %s7182_s13  ;;  %v4578_v61 = vmul.f32 %v4576_v25, %v7844_v45  ;;  %v4579_v34 = vmul.f32 %v4576_v25, %v7847_v50  ;;  %v4580_v27 = vmul.f32 %v4576_v25, %v7849_v51  ;;  %s7216_s13 = spop %7215 }
 0x2f7   : > { %v4581_v30 = vmul.f32 %v4576_v25, %v7851_v52  ;;  %v4582_v4 = vmul.f32 %v4576_v25, %v7853_v53  ;;  %v4583_v43 = vmul.f32 %v4576_v25, %v7855_v54  ;;  %v4584_v6 = vmul.f32 %v4576_v25, %v7857_v55 }
 0x2f8   : > { %v4585_v3 = vmul.f32 %v4576_v25, %v7859_v56  ;;  %v4594_v24 = vrot.slane %v4578_v61, 6  ;;  %v4595_v20 = vrot.slane %v4579_v34, 6  ;;  %v4596_v57 = vrot.slane %v4580_v27, 6 }
 0x2f9   : > { %v9682_v21 = vstv %s7184_s14  ;;  %v4597_v9 = vrot.slane %v4581_v30, 6  ;;  %v4598_v32 = vrot.slane %v4582_v4, 6  ;;  %v4599_v40 = vrot.slane %v4583_v43, 6  ;;  %s7218_s14 = spop %7217 }
 0x2fa   : > { %v4600_v37 = vrot.slane %v4584_v6, 6  ;;  %v4601_v44 = vrot.slane %v4585_v3, 6  ;;  %v4610_v1 = vadd.f32 %v4594_v24, %v4565_v38  ;;  %v4611_v39 = vadd.f32 %v4595_v20, %v4566_v5 }
 0x2fb   : > { %v4612_v23 = vadd.f32 %v4596_v57, %v4567_v42  ;;  %v4613_v36 = vadd.f32 %v4597_v9, %v4568_v8  ;;  %v4614_v11 = vadd.f32 %v4598_v32, %v4569_v48  ;;  %v4615_v15 = vadd.f32 %v4599_v40, %v4570_v59 }
 0x2fc   : > { %v4616_v17 = vadd.f32 %v4600_v37, %v4571_v16  ;;  %v4623_v7 = vmul.f32 %v4621_v13, %v7844_v45  ;;  %v4624_v41 = vmul.f32 %v4621_v13, %v7847_v50  ;;  %v4625_v25 = vmul.f32 %v4621_v13, %v7849_v51 }
 0x2fd   : > { %v4626_v61 = vmul.f32 %v4621_v13, %v7851_v52  ;;  %v4627_v34 = vmul.f32 %v4621_v13, %v7853_v53  ;;  %v4628_v27 = vmul.f32 %v4621_v13, %v7855_v54  ;;  %v4629_v38 = vmul.f32 %v4621_v13, %v7857_v55 }
 0x2fe   : > { %v9692_v5 = vmul.f32 %v4621_v13, %v7859_v56  ;;  %v4639_v42 = vrot.slane %v4623_v7, 7  ;;  %v4640_v8 = vrot.slane %v4624_v41, 7  ;;  %v4641_v48 = vrot.slane %v4625_v25, 7 }
 0x2ff   : > { %v4642_v59 = vrot.slane %v4626_v61, 7  ;;  %v9694_v16 = vadd.f32 %v4601_v44, %v4572_v12  ;;  %v4643_v30 = vrot.slane %v4627_v34, 7  ;;  %v4644_v4 = vrot.slane %v4628_v27, 7 }
 0x300   : > { %10876 = vst [vmem:[#allocation47_spill] sm:$0xff] %v9692_v5  ;;  %v4645_v43 = vrot.slane %v4629_v38, 7  ;;  %v4655_v6 = vadd.f32 %v4639_v42, %v4610_v1  ;;  %v4656_v3 = vadd.f32 %v4640_v8, %v4611_v39  ;;  %v4657_v24 = vadd.f32 %v4641_v48, %v4612_v23 }
 0x301   : > { %10877 = vst [vmem:[#allocation46_spill] sm:$0xff] %v9694_v16  ;;  %v4658_v20 = vadd.f32 %v4642_v59, %v4613_v36  ;;  %v4659_v9 = vadd.f32 %v4643_v30, %v4614_v11  ;;  %v4660_v32 = vadd.f32 %v4644_v4, %v4615_v15  ;;  %v4728_v1 = vmul.f32 %v9682_v21, %v7844_v45 }
 0x302   : > { %v9697_v40 = vadd.f32 %v4645_v43, %v4616_v17  ;;  %v4663_v13 = vpack.c.bf16 %v4655_v6, %v4655_v6  ;;  %v4664_v37 = vpack.c.bf16 %v4656_v3, %v4656_v3  ;;  %v4665_v7 = vpack.c.bf16 %v4657_v24, %v4657_v24 }
 0x303   : > { %v4666_v41 = vpack.c.bf16 %v4658_v20, %v4658_v20  ;;  %v4667_v25 = vpack.c.bf16 %v4659_v9, %v4659_v9  ;;  %v4668_v12 = vpack.c.bf16 %v4660_v32, %v4660_v32  ;;  %v4729_v11 = vmul.f32 %v9682_v21, %v7847_v50 }
 0x304   : > { %10878 = vst [vmem:[#allocation48_spill] sm:$0xff] %v9697_v40  ;;  %v4680_v39 = vunpack.c.l.b16 %v4664_v37  ;;  %v9703_v23 = vunpack.c.l.b16 %v4665_v7  ;;  %v4679_v15 = vunpack.c.l.b16 %v4663_v13  ;;  %v4730_v34 = vmul.f32 %v9682_v21, %v7849_v51 }
 0x305   : > { %v9705_v36 = vunpack.c.l.b16 %v4666_v41  ;;  %v9709_v17 = vunpack.c.l.b16 %v4667_v25  ;;  %v9711_v61 = vunpack.c.l.b16 %v4668_v12  ;;  %v4731_v8 = vmul.f32 %v9682_v21, %v7851_v52 }
 0x306   : > { %10879 = vst [vmem:[#allocation49_spill] sm:$0xff] %v9703_v23  ;;  %v4687_v27 = vrot.slane %v4680_v39, 7  ;;  %v4732_v30 = vmul.f32 %v9682_v21, %v7853_v53  ;;  %v4733_v4 = vmul.f32 %v9682_v21, %v7855_v54  ;;  %v4734_v6 = vmul.f32 %v9682_v21, %v7857_v55 }
 0x307   : > { %10880 = vst [vmem:[#allocation50_spill] sm:$0xff] %v9705_v36  ;;  %v4735_v3 = vmul.f32 %v9682_v21, %v7859_v56  ;;  %v4739_v24 = vstv %s7186_s15  ;;  %v4784_v42 = vstv %s7188_s16  ;;  %v4874_v5 = vstv %s7192_s18  ;;  %s7220_s15 = spop %7219 }
 0x308   : > { %10881 = vst [vmem:[#allocation52_spill] sm:$0xff] %v9709_v17  ;;  %v9726_v43 = vsel %vm796_vm1, %v4687_v27, %v4679_v15  ;;  %v4741_v20 = vmul.f32 %v4739_v24, %v7844_v45  ;;  %v4742_v9 = vmul.f32 %v4739_v24, %v7847_v50  ;;  %v4743_v32 = vmul.f32 %v4739_v24, %v7849_v51  ;;  %s7222_s16 = spop %7221 }
 0x309   : > { %10882 = vst [vmem:[#allocation51_spill] sm:$0xff] %v9711_v61  ;;  %v4744_v13 = vmul.f32 %v4739_v24, %v7851_v52  ;;  %v4745_v37 = vmul.f32 %v4739_v24, %v7853_v53  ;;  %v4746_v7 = vmul.f32 %v4739_v24, %v7855_v54  ;;  %v4747_v41 = vmul.f32 %v4739_v24, %v7857_v55 }
 0x30a   : > { %10883 = vst [vmem:[#allocation55_spill] sm:$0xff] %v9726_v43  ;;  %v4748_v25 = vmul.f32 %v4739_v24, %v7859_v56  ;;  %v4757_v12 = vrot.slane %v4741_v20, 1  ;;  %v4758_v21 = vrot.slane %v4742_v9, 1  ;;  %v4759_v39 = vrot.slane %v4743_v32, 1 }
 0x30b   : > { %v4760_v15 = vrot.slane %v4744_v13, 1  ;;  %v4761_v27 = vrot.slane %v4745_v37, 1  ;;  %v4762_v59 = vrot.slane %v4746_v7, 1  ;;  %v4763_v48 = vrot.slane %v4747_v41, 1 }
 0x30c   : > { %v4764_v38 = vrot.slane %v4748_v25, 1  ;;  %v4773_v44 = vadd.f32 %v4757_v12, %v4728_v1  ;;  %v4774_v57 = vadd.f32 %v4758_v21, %v4729_v11  ;;  %v4775_v22 = vadd.f32 %v4759_v39, %v4730_v34 }
 0x30d   : > { %v4776_v61 = vadd.f32 %v4760_v15, %v4731_v8  ;;  %v4777_v17 = vadd.f32 %v4761_v27, %v4732_v30  ;;  %v4778_v36 = vadd.f32 %v4762_v59, %v4733_v4  ;;  %v4779_v23 = vadd.f32 %v4763_v48, %v4734_v6 }
 0x30e   : > { %v4786_v43 = vmul.f32 %v4784_v42, %v7844_v45  ;;  %v4787_v24 = vmul.f32 %v4784_v42, %v7847_v50  ;;  %v4788_v20 = vmul.f32 %v4784_v42, %v7849_v51  ;;  %v4789_v9 = vmul.f32 %v4784_v42, %v7851_v52 }
 0x30f   : > { %v4790_v32 = vmul.f32 %v4784_v42, %v7853_v53  ;;  %v4791_v13 = vmul.f32 %v4784_v42, %v7855_v54  ;;  %v4792_v1 = vmul.f32 %v4784_v42, %v7857_v55  ;;  %v4793_v11 = vmul.f32 %v4784_v42, %v7859_v56 }
 0x310   : > { %v4780_v34 = vadd.f32 %v4764_v38, %v4735_v3  ;;  %v4802_v8 = vrot.slane %v4786_v43, 2  ;;  %v4803_v48 = vrot.slane %v4787_v24, 2  ;;  %v4804_v59 = vrot.slane %v4788_v20, 2 }
 0x311   : > { %v4805_v30 = vrot.slane %v4789_v9, 2  ;;  %v4806_v4 = vrot.slane %v4790_v32, 2  ;;  %v4807_v6 = vrot.slane %v4791_v13, 2  ;;  %v4808_v37 = vrot.slane %v4792_v1, 2 }
 0x312   : > { %v4809_v7 = vrot.slane %v4793_v11, 2  ;;  %v4818_v41 = vadd.f32 %v4802_v8, %v4773_v44  ;;  %v4819_v25 = vadd.f32 %v4803_v48, %v4774_v57  ;;  %v4820_v12 = vadd.f32 %v4804_v59, %v4775_v22 }
 0x313   : > { %v4821_v21 = vadd.f32 %v4805_v30, %v4776_v61  ;;  %v4822_v39 = vadd.f32 %v4806_v4, %v4777_v17  ;;  %v4823_v15 = vadd.f32 %v4807_v6, %v4778_v36  ;;  %v4824_v27 = vadd.f32 %v4808_v37, %v4779_v23 }
 0x314   : > { %v4825_v40 = vadd.f32 %v4809_v7, %v4780_v34  ;;  %v4829_v42 = vstv %s7190_s17  ;;  %v4919_v38 = vstv %s7194_s19  ;;  %v9756_v9 = vstv %s7196_s20  ;;  %s7224_s17 = spop %7223 }
 0x315   : > { %v4831_v43 = vmul.f32 %v4829_v42, %v7844_v45  ;;  %v4832_v3 = vmul.f32 %v4829_v42, %v7847_v50  ;;  %v4833_v24 = vmul.f32 %v4829_v42, %v7849_v51  ;;  %v4834_v20 = vmul.f32 %v4829_v42, %v7851_v52  ;;  %s7226_s18 = spop %7225 }
 0x316   : > { %v4835_v57 = vmul.f32 %v4829_v42, %v7853_v53  ;;  %v4836_v22 = vmul.f32 %v4829_v42, %v7855_v54  ;;  %v4837_v44 = vmul.f32 %v4829_v42, %v7857_v55  ;;  %v4838_v23 = vmul.f32 %v4829_v42, %v7859_v56  ;;  %s7228_s19 = spop %7227 }
 0x317   : > { %v4847_v36 = vrot.slane %v4831_v43, 3  ;;  %v4848_v17 = vrot.slane %v4832_v3, 3  ;;  %v4849_v61 = vrot.slane %v4833_v24, 3  ;;  %v4850_v32 = vrot.slane %v4834_v20, 3  ;;  %s7230_s20 = spop %7229 }
 0x318   : > { %v4851_v13 = vrot.slane %v4835_v57, 3  ;;  %v4852_v1 = vrot.slane %v4836_v22, 3  ;;  %v4853_v11 = vrot.slane %v4837_v44, 3  ;;  %v4854_v34 = vrot.slane %v4838_v23, 3 }
 0x319   : > { %v4863_v8 = vadd.f32 %v4847_v36, %v4818_v41  ;;  %v4864_v48 = vadd.f32 %v4848_v17, %v4819_v25  ;;  %v4865_v59 = vadd.f32 %v4849_v61, %v4820_v12  ;;  %v4866_v30 = vadd.f32 %v4850_v32, %v4821_v21 }
 0x31a   : > { %v4867_v4 = vadd.f32 %v4851_v13, %v4822_v39  ;;  %v4868_v6 = vadd.f32 %v4852_v1, %v4823_v15  ;;  %v4869_v37 = vadd.f32 %v4853_v11, %v4824_v27  ;;  %v4876_v7 = vmul.f32 %v4874_v5, %v7844_v45 }
 0x31b   : > { %v4877_v42 = vmul.f32 %v4874_v5, %v7847_v50  ;;  %v4878_v43 = vmul.f32 %v4874_v5, %v7849_v51  ;;  %v4879_v3 = vmul.f32 %v4874_v5, %v7851_v52  ;;  %v4880_v24 = vmul.f32 %v4874_v5, %v7853_v53 }
 0x31c   : > { %v4881_v20 = vmul.f32 %v4874_v5, %v7855_v54  ;;  %v4882_v41 = vmul.f32 %v4874_v5, %v7857_v55  ;;  %v4883_v25 = vmul.f32 %v4874_v5, %v7859_v56  ;;  %v4870_v12 = vadd.f32 %v4854_v34, %v4825_v40 }
 0x31d   : > { %v4892_v21 = vrot.slane %v4876_v7, 4  ;;  %v4893_v39 = vrot.slane %v4877_v42, 4  ;;  %v4894_v15 = vrot.slane %v4878_v43, 4  ;;  %v4895_v27 = vrot.slane %v4879_v3, 4 }
 0x31e   : > { %v4896_v57 = vrot.slane %v4880_v24, 4  ;;  %v4897_v22 = vrot.slane %v4881_v20, 4  ;;  %v4898_v44 = vrot.slane %v4882_v41, 4  ;;  %v4899_v23 = vrot.slane %v4883_v25, 4 }
 0x31f   : > { %v4908_v36 = vadd.f32 %v4892_v21, %v4863_v8  ;;  %v4909_v17 = vadd.f32 %v4893_v39, %v4864_v48  ;;  %v4910_v61 = vadd.f32 %v4894_v15, %v4865_v59  ;;  %v4911_v32 = vadd.f32 %v4895_v27, %v4866_v30 }
 0x320   : > { %v4912_v13 = vadd.f32 %v4896_v57, %v4867_v4  ;;  %v4913_v1 = vadd.f32 %v4897_v22, %v4868_v6  ;;  %v4914_v11 = vadd.f32 %v4898_v44, %v4869_v37  ;;  %v4921_v16 = vmul.f32 %v4919_v38, %v7844_v45 }
 0x321   : > { %v4922_v5 = vmul.f32 %v4919_v38, %v7847_v50  ;;  %v4923_v40 = vmul.f32 %v4919_v38, %v7849_v51  ;;  %v4924_v34 = vmul.f32 %v4919_v38, %v7851_v52  ;;  %v4925_v7 = vmul.f32 %v4919_v38, %v7853_v53 }
 0x322   : > { %v4926_v42 = vmul.f32 %v4919_v38, %v7855_v54  ;;  %v4927_v8 = vmul.f32 %v4919_v38, %v7857_v55  ;;  %v4928_v48 = vmul.f32 %v4919_v38, %v7859_v56  ;;  %v4915_v59 = vadd.f32 %v4899_v23, %v4870_v12 }
 0x323   : > { %v4937_v30 = vrot.slane %v4921_v16, 5  ;;  %v4938_v4 = vrot.slane %v4922_v5, 5  ;;  %v4939_v6 = vrot.slane %v4923_v40, 5  ;;  %v4940_v37 = vrot.slane %v4924_v34, 5 }
 0x324   : > { %v4941_v43 = vrot.slane %v4925_v7, 5  ;;  %v4942_v3 = vrot.slane %v4926_v42, 5  ;;  %v4943_v24 = vrot.slane %v4927_v8, 5  ;;  %v4944_v20 = vrot.slane %v4928_v48, 5 }
 0x325   : > { %v4953_v41 = vadd.f32 %v4937_v30, %v4908_v36  ;;  %v4954_v25 = vadd.f32 %v4938_v4, %v4909_v17  ;;  %v4955_v21 = vadd.f32 %v4939_v6, %v4910_v61  ;;  %v4956_v39 = vadd.f32 %v4940_v37, %v4911_v32 }
 0x326   : > { %v4957_v15 = vadd.f32 %v4941_v43, %v4912_v13  ;;  %v4958_v27 = vadd.f32 %v4942_v3, %v4913_v1  ;;  %v4959_v57 = vadd.f32 %v4943_v24, %v4914_v11  ;;  %v4966_v22 = vmul.f32 %v9756_v9, %v7844_v45  ;;  %v10884_v43 = vld [vmem:[#allocation35_spill] sm:$0xff]  ;;  %v10887_v24 = vld [vmem:[#allocation38_spill] sm:$0xff] }
 0x327   : > { %v4967_v16 = vmul.f32 %v9756_v9, %v7847_v50  ;;  %v4968_v38 = vmul.f32 %v9756_v9, %v7849_v51  ;;  %v4969_v12 = vmul.f32 %v9756_v9, %v7851_v52  ;;  %v4970_v44 = vmul.f32 %v9756_v9, %v7853_v53  ;;  %v10886_v3 = vld [vmem:[#allocation39_spill] sm:$0xff] }
 0x328   : > { %v4971_v23 = vmul.f32 %v9756_v9, %v7855_v54  ;;  %v4972_v36 = vmul.f32 %v9756_v9, %v7857_v55  ;;  %v4973_v17 = vmul.f32 %v9756_v9, %v7859_v56  ;;  %v4960_v61 = vadd.f32 %v4944_v20, %v4915_v59 }
 0x329   : > { %v4982_v32 = vrot.slane %v4966_v22, 6  ;;  %v4983_v13 = vrot.slane %v4967_v16, 6  ;;  %v4984_v1 = vrot.slane %v4968_v38, 6  ;;  %v4985_v11 = vrot.slane %v4969_v12, 6  ;;  %v10889_v16 = vld [vmem:[#allocation34_spill] sm:$0xff]  ;;  %v10890_v12 = vld [vmem:[#allocation45_spill] sm:$0xff] }
 0x32a   : > { %v4986_v5 = vrot.slane %v4970_v44, 6  ;;  %v4987_v40 = vrot.slane %v4971_v23, 6  ;;  %v4988_v34 = vrot.slane %v4972_v36, 6  ;;  %v4989_v7 = vrot.slane %v4973_v17, 6  ;;  %v10896_v23 = vld [vmem:[#allocation44_spill] sm:$0xff] }
 0x32b   : > { %v4998_v42 = vadd.f32 %v4982_v32, %v4953_v41  ;;  %v4999_v8 = vadd.f32 %v4983_v13, %v4954_v25  ;;  %v5000_v48 = vadd.f32 %v4984_v1, %v4955_v21  ;;  %v5001_v30 = vadd.f32 %v4985_v11, %v4956_v39  ;;  %v10891_v41 = vld [vmem:[#allocation37_spill] sm:$0xff]  ;;  %v10898_v32 = vld [vmem:[#allocation36_spill] sm:$0xff] }
 0x32c   : > { %v5002_v4 = vadd.f32 %v4986_v5, %v4957_v15  ;;  %v5003_v6 = vadd.f32 %v4987_v40, %v4958_v27  ;;  %v5004_v37 = vadd.f32 %v4988_v34, %v4959_v57  ;;  %v10885_v9 = vrot.slane %v10884_v43, 5  ;;  %v10893_v39 = vld [vmem:[#allocation41_spill] sm:$0xff]  ;;  %v10895_v57 = vld [vmem:[#allocation42_spill] sm:$0xff]  ;;  %v10900_v5 = vld [vmem:[#allocation40_spill] sm:$0xff] }
 0x32d   : > { %v10888_v20 = vrot.slane %v10887_v24, 6  ;;  %v3469_v38 = vmul.f32 %v10889_v16, %v7859_v56  ;;  %v10892_v25 = vrot.slane %v10891_v41, 7  ;;  %v9801_v44 = vadd.f32 %v4989_v7, %v4960_v61  ;;  %v10902_v61 = vld [vmem:[#allocation43_spill] sm:$0xff] }
 0x32e   : > { %v3411_v59 = vadd.f32 %v10885_v9, %v9165_v33  ;;  %v10894_v15 = vpack.c.bf16 %v10893_v39, %v10893_v39  ;;  %v10897_v33 = vrot.slane %v10896_v23, 7  ;;  %v5009_v17 = vstv %s7198_s21  ;;  %s7232_s21 = spop %7231 }
 0x32f   : > { %v3455_v22 = vadd.f32 %v10888_v20, %v10886_v3  ;;  %v3499_v21 = vadd.f32 %v10892_v25, %v10890_v12  ;;  %v10899_v13 = vrot.slane %v10898_v32, 6  ;;  %v3485_v11 = vrot.slane %v3469_v38, 7 }
 0x330   : > { %v3522_v27 = vunpack.c.l.b16 %v10894_v15  ;;  %v3527_v36 = vsel %vm796_vm1, %v10897_v33, %v10895_v57  ;;  %v10901_v40 = vrot.slane %v10900_v5, 7  ;;  %v10903_v7 = vrot.slane %v10902_v61, 6 }
 0x331   : > { %v3456_v1 = vadd.f32 %v10899_v13, %v3411_v59  ;;  %v3507_v43 = vpack.c.bf16 %v3499_v21, %v3499_v21  ;;  %v5011_v24 = vmul.f32 %v5009_v17, %v7844_v45  ;;  %v5012_v20 = vmul.f32 %v5009_v17, %v7847_v50 }
 0x332   : > { %v3500_v34 = vadd.f32 %v10901_v40, %v3455_v22  ;;  %v3529_v9 = vsel %vm799_vm2, %v10903_v7, %v3527_v36  ;;  %v3532_v3 = vrot.slane %v3522_v27, 4  ;;  %v10904_v25 = vrot.slane %v9244_v58, 5 }
 0x333   : > { %v3501_v16 = vadd.f32 %v3485_v11, %v3456_v1  ;;  %v3523_v41 = vunpack.c.l.b16 %v3507_v43  ;;  %v5013_v22 = vmul.f32 %v5009_v17, %v7849_v51  ;;  %v5014_v21 = vmul.f32 %v5009_v17, %v7851_v52 }
 0x334   : > { %v3508_v12 = vpack.c.bf16 %v3500_v34, %v3500_v34  ;;  %v3531_v59 = vsel %vm802_vm3, %v10904_v25, %v3529_v9  ;;  %v5015_v39 = vmul.f32 %v5009_v17, %v7853_v53  ;;  %v5016_v23 = vmul.f32 %v5009_v17, %v7855_v54 }
 0x335   : > { %v3533_v38 = vsel %vm805_vm4, %v3532_v3, %v3531_v59  ;;  %v3509_v15 = vpack.c.bf16 %v3501_v16, %v3501_v16  ;;  %v3534_v57 = vrot.slane %v3523_v41, 3  ;;  %v5017_v33 = vmul.f32 %v5009_v17, %v7857_v55 }
 0x336   : > { %v3524_v27 = vunpack.c.l.b16 %v3508_v12  ;;  %v9829_v58 = vmul.f32 %v5009_v17, %v7859_v56  ;;  %v5027_v36 = vrot.slane %v5011_v24, 7  ;;  %v5114_v32 = vstv %s7200_s22  ;;  %s7234_s22 = spop %7233 }
 0x337   : > { %v3525_v13 = vunpack.c.l.b16 %v3509_v15  ;;  %v3535_v1 = vsel %vm808_vm5, %v3534_v57, %v3533_v38  ;;  %v5028_v5 = vrot.slane %v5012_v20, 7  ;;  %v5029_v40 = vrot.slane %v5013_v22, 7 }
 0x338   : > { %v3536_v11 = vrot.slane %v3524_v27, 2  ;;  %v5030_v34 = vrot.slane %v5014_v21, 7  ;;  %v5031_v43 = vrot.slane %v5015_v39, 7  ;;  %v5032_v61 = vrot.slane %v5016_v23, 7 }
 0x339   : > { %v3538_v9 = vrot.slane %v3525_v13, 1  ;;  %v5033_v3 = vrot.slane %v5017_v33, 7  ;;  %v5043_v16 = vadd.f32 %v5027_v36, %v4998_v42  ;;  %v5044_v12 = vadd.f32 %v5028_v5, %v4999_v8 }
 0x33a   : > { %v3537_v7 = vsel %vm811_vm6, %v3536_v11, %v3535_v1  ;;  %v5045_v41 = vadd.f32 %v5029_v40, %v5000_v48  ;;  %v5046_v17 = vadd.f32 %v5030_v34, %v5001_v30  ;;  %v5047_v25 = vadd.f32 %v5031_v43, %v5002_v4 }
 0x33b   : > { %v3539_v24 = vsel %vm814_vm7, %v3538_v9, %v3537_v7  ;;  %v5048_v59 = vadd.f32 %v5032_v61, %v5003_v6  ;;  %v9834_v15 = vadd.f32 %v5033_v3, %v5004_v37  ;;  %v5051_v38 = vpack.c.bf16 %v5043_v16, %v5043_v16 }
 0x33c   : > { %v3540_v20 = vpack.c.b16 %v3539_v24, %v3539_v24  ;;  %v5052_v22 = vpack.c.bf16 %v5044_v12, %v5044_v12  ;;  %v5053_v21 = vpack.c.bf16 %v5045_v41, %v5045_v41  ;;  %v5054_v39 = vpack.c.bf16 %v5046_v17, %v5046_v17 }
 0x33d   : > { %v5055_v57 = vpack.c.bf16 %v5047_v25, %v5047_v25  ;;  %v5056_v23 = vpack.c.bf16 %v5048_v59, %v5048_v59  ;;  %v5067_v8 = vunpack.c.l.b16 %v5051_v38  ;;  %v5116_v33 = vmul.f32 %v5114_v32, %v7844_v45 }
 0x33e   : > { %6981 = vmatmul.msk.bf16.vlgmr.msrb.gmra.mxu3 %vm817_vm8, %v3540_v20  ;;  %v5068_v48 = vunpack.c.l.b16 %v5052_v22  ;;  %v9840_v30 = vunpack.c.l.b16 %v5053_v21  ;;  %v9842_v4 = vunpack.c.l.b16 %v5054_v39  ;;  %v5117_v36 = vmul.f32 %v5114_v32, %v7847_v50 }
 0x33f   : > { %v9844_v6 = vunpack.c.l.b16 %v5055_v57  ;;  %v9846_v37 = vunpack.c.l.b16 %v5056_v23  ;;  %6652 = vmatpush.bf16.msrb.mxu3 %v8457_v63  ;;  %v5118_v5 = vmul.f32 %v5114_v32, %v7849_v51  ;;  %v5119_v43 = vmul.f32 %v5114_v32, %v7851_v52 }
 0x340   : > { %v5075_v13 = vrot.slane %v5068_v48, 7  ;;  %v5120_v61 = vmul.f32 %v5114_v32, %v7853_v53  ;;  %v5121_v7 = vmul.f32 %v5114_v32, %v7855_v54  ;;  %v5122_v9 = vmul.f32 %v5114_v32, %v7857_v55 }
 0x341   : > { %10905 = vst [vmem:[#allocation53_spill] sm:$0xff] %v9844_v6  ;;  %v5123_v63 = vmul.f32 %v5114_v32, %v7859_v56  ;;  %v5127_v3 = vstv %s7202_s23  ;;  %s7236_s23 = spop %7235 }
 0x342   : > { %10906 = vst [vmem:[#allocation54_spill] sm:$0xff] %v9846_v37  ;;  %v5129_v16 = vmul.f32 %v5127_v3, %v7844_v45  ;;  %v5130_v12 = vmul.f32 %v5127_v3, %v7847_v50  ;;  %v5131_v41 = vmul.f32 %v5127_v3, %v7849_v51  ;;  %v5132_v17 = vmul.f32 %v5127_v3, %v7851_v52 }
 0x343   : > { %v5133_v25 = vmul.f32 %v5127_v3, %v7853_v53  ;;  %v5134_v24 = vmul.f32 %v5127_v3, %v7855_v54  ;;  %v5135_v59 = vmul.f32 %v5127_v3, %v7857_v55  ;;  %v5136_v38 = vmul.f32 %v5127_v3, %v7859_v56 }
 0x344   : > { %v5145_v20 = vrot.slane %v5129_v16, 1  ;;  %v5146_v22 = vrot.slane %v5130_v12, 1  ;;  %v5147_v32 = vrot.slane %v5131_v41, 1  ;;  %v5148_v21 = vrot.slane %v5132_v17, 1 }
 0x345   : > { %v5149_v39 = vrot.slane %v5133_v25, 1  ;;  %v5150_v57 = vrot.slane %v5134_v24, 1  ;;  %v5151_v23 = vrot.slane %v5135_v59, 1  ;;  %v5152_v48 = vrot.slane %v5136_v38, 1 }
 0x346   : > { %v9870_v34 = vsel %vm796_vm1, %v5075_v13, %v5067_v8  ;;  %v5161_v40 = vadd.f32 %v5145_v20, %v5116_v33  ;;  %v5162_v11 = vadd.f32 %v5146_v22, %v5117_v36  ;;  %v5163_v1 = vadd.f32 %v5147_v32, %v5118_v5 }
 0x347   : > { %v5164_v42 = vadd.f32 %v5148_v21, %v5119_v43  ;;  %v5165_v27 = vadd.f32 %v5149_v39, %v5120_v61  ;;  %v5166_v37 = vadd.f32 %v5150_v57, %v5121_v7  ;;  %v5167_v6 = vadd.f32 %v5151_v23, %v5122_v9 }
 0x348   : > { %v5168_v3 = vadd.f32 %v5152_v48, %v5123_v63  ;;  %v5172_v16 = vstv %s7204_s24  ;;  %v10907_v12 = vrot.slane %v9429_v47, 7  ;;  %v10908_v17 = vpack.c.bf16 %v9433_v49, %v9433_v49  ;;  %s7238_s24 = spop %7237 }
 0x349   : > { %v5174_v8 = vmul.f32 %v5172_v16, %v7844_v45  ;;  %v5175_v33 = vmul.f32 %v5172_v16, %v7847_v50  ;;  %v5176_v36 = vmul.f32 %v5172_v16, %v7849_v51  ;;  %v5177_v13 = vmul.f32 %v5172_v16, %v7851_v52 }
 0x34a   : > { %v3890_v41 = vadd.f32 %v10907_v12, %v9431_v19  ;;  %v3913_v25 = vunpack.c.l.b16 %v10908_v17  ;;  %v5178_v5 = vmul.f32 %v5172_v16, %v7853_v53  ;;  %v5179_v43 = vmul.f32 %v5172_v16, %v7855_v54 }
 0x34b   : > { %v5180_v61 = vmul.f32 %v5172_v16, %v7857_v55  ;;  %v5181_v47 = vmul.f32 %v5172_v16, %v7859_v56  ;;  %v5190_v19 = vrot.slane %v5174_v8, 2  ;;  %v5191_v7 = vrot.slane %v5175_v33, 2 }
 0x34c   : > { %v5192_v49 = vrot.slane %v5176_v36, 2  ;;  %v10909_v9 = vrot.slane %v9438_v60, 6  ;;  %v5193_v24 = vrot.slane %v5177_v13, 2  ;;  %v5194_v59 = vrot.slane %v5178_v5, 2 }
 0x34d   : > { %v5195_v38 = vrot.slane %v5179_v43, 2  ;;  %v5196_v20 = vrot.slane %v5180_v61, 2  ;;  %v5197_v22 = vrot.slane %v5181_v47, 2  ;;  %v5206_v32 = vadd.f32 %v5190_v19, %v5161_v40 }
 0x34e   : > { %v3918_v63 = vsel %vm799_vm2, %v10909_v9, %v9455_v2  ;;  %v5207_v21 = vadd.f32 %v5191_v7, %v5162_v11  ;;  %v5208_v39 = vadd.f32 %v5192_v49, %v5163_v1  ;;  %v5209_v57 = vadd.f32 %v5193_v24, %v5164_v42 }
 0x34f   : > { %v5210_v23 = vadd.f32 %v5194_v59, %v5165_v27  ;;  %v5211_v48 = vadd.f32 %v5195_v38, %v5166_v37  ;;  %v5212_v16 = vadd.f32 %v5196_v20, %v5167_v6  ;;  %v3898_v12 = vpack.c.bf16 %v3890_v41, %v3890_v41 }
 0x350   : > { %v10910_v17 = vrot.slane %v9440_v31, 5  ;;  %v3925_v8 = vrot.slane %v3913_v25, 2  ;;  %v5217_v2 = vstv %s7206_s25  ;;  %v10911_v33 = vrot.slane %v9442_v18, 4  ;;  %s7240_s25 = spop %7239 }
 0x351   : > { %v5219_v13 = vmul.f32 %v5217_v2, %v7844_v45  ;;  %v5220_v11 = vmul.f32 %v5217_v2, %v7847_v50  ;;  %v5221_v42 = vmul.f32 %v5217_v2, %v7849_v51  ;;  %v3914_v27 = vunpack.c.l.b16 %v3898_v12 }
 0x352   : > { %v3920_v60 = vsel %vm802_vm3, %v10910_v17, %v3918_v63  ;;  %v10912_v6 = vrot.slane %v9444_v62, 3  ;;  %v5222_v31 = vmul.f32 %v5217_v2, %v7851_v52  ;;  %v5223_v1 = vmul.f32 %v5217_v2, %v7853_v53 }
 0x353   : > { %v3922_v36 = vsel %vm805_vm4, %v10911_v33, %v3920_v60  ;;  %v5224_v18 = vmul.f32 %v5217_v2, %v7855_v54  ;;  %v5225_v41 = vmul.f32 %v5217_v2, %v7857_v55  ;;  %v5226_v25 = vmul.f32 %v5217_v2, %v7859_v56 }
 0x354   : > { %v3924_v37 = vsel %vm808_vm5, %v10912_v6, %v3922_v36  ;;  %v3927_v5 = vrot.slane %v3914_v27, 1  ;;  %v5235_v43 = vrot.slane %v5219_v13, 3  ;;  %v5236_v61 = vrot.slane %v5220_v11, 3 }
 0x355   : > { %v3926_v40 = vsel %vm811_vm6, %v3925_v8, %v3924_v37  ;;  %v5237_v47 = vrot.slane %v5221_v42, 3  ;;  %v5238_v19 = vrot.slane %v5222_v31, 3  ;;  %v5239_v62 = vrot.slane %v5223_v1, 3 }
 0x356   : > { %v5240_v7 = vrot.slane %v5224_v18, 3  ;;  %v5241_v49 = vrot.slane %v5225_v41, 3  ;;  %v5213_v9 = vadd.f32 %v5197_v22, %v5168_v3  ;;  %v3928_v63 = vsel %vm814_vm7, %v3927_v5, %v3926_v40 }
 0x357   : > { %v5242_v24 = vrot.slane %v5226_v25, 3  ;;  %v5251_v59 = vadd.f32 %v5235_v43, %v5206_v32  ;;  %v3929_v38 = vpack.c.b16 %v3928_v63, %v3928_v63  ;;  %v5252_v20 = vadd.f32 %v5236_v61, %v5207_v21 }
 0x358   : > { %v5253_v12 = vadd.f32 %v5237_v47, %v5208_v39  ;;  %v5254_v17 = vadd.f32 %v5238_v19, %v5209_v57  ;;  %v5255_v60 = vadd.f32 %v5239_v62, %v5210_v23  ;;  %v5256_v8 = vadd.f32 %v5240_v7, %v5211_v48 }
 0x359   : > { %v5257_v2 = vadd.f32 %v5241_v49, %v5212_v16  ;;  %v5262_v33 = vstv %s7208_s26  ;;  %6982 = vmatmul.msk.bf16.vlgmr.msra.gmra.mxu0 %vm817_vm8, %v3929_v38  ;;  %v5258_v31 = vadd.f32 %v5242_v24, %v5213_v9  ;;  %v5307_v47 = vstv %s7210_s27  ;;  %s7242_s26 = spop %7241 }
 0x35a   : > { %v5264_v36 = vmul.f32 %v5262_v33, %v7844_v45  ;;  %v5265_v13 = vmul.f32 %v5262_v33, %v7847_v50  ;;  %v5266_v3 = vmul.f32 %v5262_v33, %v7849_v51  ;;  %v5267_v22 = vmul.f32 %v5262_v33, %v7851_v52  ;;  %s7244_s27 = spop %7243 }
 0x35b   : > { %v5268_v32 = vmul.f32 %v5262_v33, %v7853_v53  ;;  %v5269_v21 = vmul.f32 %v5262_v33, %v7855_v54  ;;  %v5270_v39 = vmul.f32 %v5262_v33, %v7857_v55  ;;  %v5271_v57 = vmul.f32 %v5262_v33, %v7859_v56 }
 0x35c   : > { %v5280_v23 = vrot.slane %v5264_v36, 4  ;;  %v5281_v48 = vrot.slane %v5265_v13, 4  ;;  %v5282_v16 = vrot.slane %v5266_v3, 4  ;;  %v5283_v11 = vrot.slane %v5267_v22, 4 }
 0x35d   : > { %v5284_v42 = vrot.slane %v5268_v32, 4  ;;  %v5285_v27 = vrot.slane %v5269_v21, 4  ;;  %v5286_v6 = vrot.slane %v5270_v39, 4  ;;  %v5287_v37 = vrot.slane %v5271_v57, 4 }
 0x35e   : > { %v5296_v1 = vadd.f32 %v5280_v23, %v5251_v59  ;;  %v5297_v40 = vadd.f32 %v5281_v48, %v5252_v20  ;;  %v5298_v18 = vadd.f32 %v5282_v16, %v5253_v12  ;;  %v5299_v41 = vadd.f32 %v5283_v11, %v5254_v17 }
 0x35f   : > { %v5300_v25 = vadd.f32 %v5284_v42, %v5255_v60  ;;  %v5301_v5 = vadd.f32 %v5285_v27, %v5256_v8  ;;  %v5302_v43 = vadd.f32 %v5286_v6, %v5257_v2  ;;  %v5303_v61 = vadd.f32 %v5287_v37, %v5258_v31 }
 0x360   : > { %v10913_v19 = vrot.slane %v9530_v46, 7  ;;  %v10914_v7 = vpack.c.bf16 %v9535_v10, %v9535_v10  ;;  %v5309_v63 = vmul.f32 %v5307_v47, %v7844_v45  ;;  %v5310_v9 = vmul.f32 %v5307_v47, %v7847_v50 }
 0x361   : > { %v5311_v24 = vmul.f32 %v5307_v47, %v7849_v51  ;;  %v5312_v59 = vmul.f32 %v5307_v47, %v7851_v52  ;;  %v5313_v38 = vmul.f32 %v5307_v47, %v7853_v53  ;;  %v5314_v20 = vmul.f32 %v5307_v47, %v7855_v54 }
 0x362   : > { %v4274_v62 = vadd.f32 %v10913_v19, %v9532_v0  ;;  %v4297_v49 = vunpack.c.l.b16 %v10914_v7  ;;  %v5315_v12 = vmul.f32 %v5307_v47, %v7857_v55  ;;  %v5316_v46 = vmul.f32 %v5307_v47, %v7859_v56 }
 0x363   : > { %v5325_v0 = vrot.slane %v5309_v63, 5  ;;  %v5326_v17 = vrot.slane %v5310_v9, 5  ;;  %v5327_v10 = vrot.slane %v5311_v24, 5  ;;  %v10915_v60 = vrot.slane %v9541_v35, 6 }
 0x364   : > { %v5328_v2 = vrot.slane %v5312_v59, 5  ;;  %v5329_v33 = vrot.slane %v5313_v38, 5  ;;  %v5330_v36 = vrot.slane %v5314_v20, 5  ;;  %v5331_v13 = vrot.slane %v5315_v12, 5 }
 0x365   : > { %v4302_v8 = vsel %vm799_vm2, %v10915_v60, %v9564_v28  ;;  %v5332_v3 = vrot.slane %v5316_v46, 5  ;;  %v5341_v22 = vadd.f32 %v5325_v0, %v5296_v1  ;;  %v5342_v32 = vadd.f32 %v5326_v17, %v5297_v40 }
 0x366   : > { %v5343_v21 = vadd.f32 %v5327_v10, %v5298_v18  ;;  %v5344_v39 = vadd.f32 %v5328_v2, %v5299_v41  ;;  %v5345_v57 = vadd.f32 %v5329_v33, %v5300_v25  ;;  %v5346_v23 = vadd.f32 %v5330_v36, %v5301_v5 }
 0x367   : > { %v5347_v48 = vadd.f32 %v5331_v13, %v5302_v43  ;;  %v4282_v16 = vpack.c.bf16 %v4274_v62, %v4274_v62  ;;  %v10916_v11 = vrot.slane %v9543_v29, 5  ;;  %v4309_v42 = vrot.slane %v4297_v49, 2 }
 0x368   : > { %v5352_v28 = vstv %s7212_s28  ;;  %v10917_v27 = vrot.slane %v9547_v14, 4  ;;  %v10918_v18 = vrot.slane %v9549_v26, 3  ;;  %v5348_v59 = vadd.f32 %v5332_v3, %v5303_v61  ;;  %s7246_s28 = spop %7245 }
 0x369   : > { %v4304_v35 = vsel %vm802_vm3, %v10916_v11, %v4302_v8  ;;  %v5354_v37 = vmul.f32 %v5352_v28, %v7844_v45  ;;  %v5355_v31 = vmul.f32 %v5352_v28, %v7847_v50  ;;  %v5356_v1 = vmul.f32 %v5352_v28, %v7849_v51 }
 0x36a   : > { %v4306_v6 = vsel %vm805_vm4, %v10917_v27, %v4304_v35  ;;  %v4298_v40 = vunpack.c.l.b16 %v4282_v16  ;;  %v5357_v29 = vmul.f32 %v5352_v28, %v7851_v52  ;;  %v5358_v25 = vmul.f32 %v5352_v28, %v7853_v53 }
 0x36b   : > { %v4308_v41 = vsel %vm808_vm5, %v10918_v18, %v4306_v6  ;;  %v5359_v14 = vmul.f32 %v5352_v28, %v7855_v54  ;;  %v5360_v43 = vmul.f32 %v5352_v28, %v7857_v55  ;;  %v5361_v47 = vmul.f32 %v5352_v28, %v7859_v56 }
 0x36c   : > { %v4310_v5 = vsel %vm811_vm6, %v4309_v42, %v4308_v41  ;;  %v4311_v19 = vrot.slane %v4298_v40, 1  ;;  %v5370_v62 = vrot.slane %v5354_v37, 6  ;;  %v5371_v7 = vrot.slane %v5355_v31, 6 }
 0x36d   : > { %v5372_v49 = vrot.slane %v5356_v1, 6  ;;  %v5373_v63 = vrot.slane %v5357_v29, 6  ;;  %v5374_v26 = vrot.slane %v5358_v25, 6  ;;  %v5375_v9 = vrot.slane %v5359_v14, 6 }
 0x36e   : > { %v5376_v24 = vrot.slane %v5360_v43, 6  ;;  %v4312_v38 = vsel %vm814_vm7, %v4311_v19, %v4310_v5  ;;  %v5377_v20 = vrot.slane %v5361_v47, 6  ;;  %v5386_v12 = vadd.f32 %v5370_v62, %v5341_v22 }
 0x36f   : > { %v4313_v46 = vpack.c.b16 %v4312_v38, %v4312_v38  ;;  %v5387_v0 = vadd.f32 %v5371_v7, %v5342_v32  ;;  %v5388_v17 = vadd.f32 %v5372_v49, %v5343_v21  ;;  %v5389_v10 = vadd.f32 %v5373_v63, %v5344_v39 }
 0x370   : > { %v5390_v60 = vadd.f32 %v5374_v26, %v5345_v57  ;;  %v5391_v8 = vadd.f32 %v5375_v9, %v5346_v23  ;;  %v5392_v2 = vadd.f32 %v5376_v24, %v5347_v48  ;;  %v5397_v33 = vstv %s7214_s29  ;;  %s7248_s29 = spop %7247 }
 0x371   : > { %6983 = vmatmul.msk.bf16.vlgmr.msra.gmra.mxu1 %vm817_vm8, %v4313_v46  ;;  %v5399_v36 = vmul.f32 %v5397_v33, %v7844_v45  ;;  %v5400_v13 = vmul.f32 %v5397_v33, %v7847_v50  ;;  %v5401_v61 = vmul.f32 %v5397_v33, %v7849_v51  ;;  %v5402_v3 = vmul.f32 %v5397_v33, %v7851_v52 }
 0x372   : > { %v9960_v16 = vadd.f32 %v5377_v20, %v5348_v59  ;;  %v5403_v22 = vmul.f32 %v5397_v33, %v7853_v53  ;;  %v5404_v32 = vmul.f32 %v5397_v33, %v7855_v54  ;;  %v5405_v21 = vmul.f32 %v5397_v33, %v7857_v55 }
 0x373   : > { %v5415_v39 = vrot.slane %v5399_v36, 7  ;;  %v5416_v57 = vrot.slane %v5400_v13, 7  ;;  %v5417_v23 = vrot.slane %v5401_v61, 7  ;;  %v5418_v48 = vrot.slane %v5402_v3, 7 }
 0x374   : > { %v9966_v11 = vmul.f32 %v5397_v33, %v7859_v56  ;;  %v5419_v35 = vrot.slane %v5403_v22, 7  ;;  %v5420_v42 = vrot.slane %v5404_v32, 7  ;;  %v5421_v28 = vrot.slane %v5405_v21, 7 }
 0x375   : > { %v5431_v27 = vadd.f32 %v5415_v39, %v5386_v12  ;;  %v5432_v6 = vadd.f32 %v5416_v57, %v5387_v0  ;;  %v5433_v37 = vadd.f32 %v5417_v23, %v5388_v17  ;;  %v5434_v31 = vadd.f32 %v5418_v48, %v5389_v10 }
 0x376   : > { %v5435_v1 = vadd.f32 %v5419_v35, %v5390_v60  ;;  %v5436_v40 = vadd.f32 %v5420_v42, %v5391_v8  ;;  %v9968_v18 = vadd.f32 %v5421_v28, %v5392_v2  ;;  %v5502_v41 = vstv %s7216_s13  ;;  %s7250_s13 = spop %7249 }
 0x377   : > { %v5439_v29 = vpack.c.bf16 %v5431_v27, %v5431_v27  ;;  %v5440_v25 = vpack.c.bf16 %v5432_v6, %v5432_v6  ;;  %v5441_v5 = vpack.c.bf16 %v5433_v37, %v5433_v37  ;;  %v5442_v14 = vpack.c.bf16 %v5434_v31, %v5434_v31 }
 0x378   : > { %v5443_v47 = vpack.c.bf16 %v5435_v1, %v5435_v1  ;;  %v5444_v19 = vpack.c.bf16 %v5436_v40, %v5436_v40  ;;  %v5504_v26 = vmul.f32 %v5502_v41, %v7844_v45  ;;  %v5505_v38 = vmul.f32 %v5502_v41, %v7847_v50 }
 0x379   : > { %v5456_v7 = vunpack.c.l.b16 %v5440_v25  ;;  %v9973_v49 = vunpack.c.l.b16 %v5441_v5  ;;  %v9975_v63 = vunpack.c.l.b16 %v5442_v14  ;;  %v5455_v9 = vunpack.c.l.b16 %v5439_v29 }
 0x37a   : > { %v9978_v24 = vunpack.c.l.b16 %v5443_v47  ;;  %v9980_v59 = vunpack.c.l.b16 %v5444_v19  ;;  %v5506_v0 = vmul.f32 %v5502_v41, %v7849_v51  ;;  %v5507_v60 = vmul.f32 %v5502_v41, %v7851_v52 }
 0x37b   : > { %v5463_v20 = vrot.slane %v5456_v7, 7  ;;  %v5508_v8 = vmul.f32 %v5502_v41, %v7853_v53  ;;  %v5509_v2 = vmul.f32 %v5502_v41, %v7855_v54  ;;  %v5510_v33 = vmul.f32 %v5502_v41, %v7857_v55 }
 0x37c   : > { %v5511_v36 = vmul.f32 %v5502_v41, %v7859_v56  ;;  %v5515_v13 = vstv %s7218_s14  ;;  %v5560_v7 = vstv %s7220_s15  ;;  %s7252_s14 = spop %7251 }
 0x37d   : > { %v5517_v61 = vmul.f32 %v5515_v13, %v7844_v45  ;;  %v5518_v3 = vmul.f32 %v5515_v13, %v7847_v50  ;;  %v5519_v22 = vmul.f32 %v5515_v13, %v7849_v51  ;;  %v5520_v32 = vmul.f32 %v5515_v13, %v7851_v52  ;;  %s7254_s15 = spop %7253 }
 0x37e   : > { %v5521_v21 = vmul.f32 %v5515_v13, %v7853_v53  ;;  %v5522_v39 = vmul.f32 %v5515_v13, %v7855_v54  ;;  %v5523_v57 = vmul.f32 %v5515_v13, %v7857_v55  ;;  %v5524_v23 = vmul.f32 %v5515_v13, %v7859_v56 }
 0x37f   : > { %v5533_v48 = vrot.slane %v5517_v61, 1  ;;  %v5534_v35 = vrot.slane %v5518_v3, 1  ;;  %v5535_v42 = vrot.slane %v5519_v22, 1  ;;  %v5536_v28 = vrot.slane %v5520_v32, 1 }
 0x380   : > { %v5537_v27 = vrot.slane %v5521_v21, 1  ;;  %v5538_v6 = vrot.slane %v5522_v39, 1  ;;  %v5539_v37 = vrot.slane %v5523_v57, 1  ;;  %v5540_v31 = vrot.slane %v5524_v23, 1 }
 0x381   : > { %v10002_v1 = vsel %vm796_vm1, %v5463_v20, %v5455_v9  ;;  %v5549_v40 = vadd.f32 %v5533_v48, %v5504_v26  ;;  %v5550_v41 = vadd.f32 %v5534_v35, %v5505_v38  ;;  %v5551_v29 = vadd.f32 %v5535_v42, %v5506_v0 }
 0x382   : > { %v5552_v25 = vadd.f32 %v5536_v28, %v5507_v60  ;;  %v5553_v5 = vadd.f32 %v5537_v27, %v5508_v8  ;;  %v5554_v14 = vadd.f32 %v5538_v6, %v5509_v2  ;;  %v5555_v47 = vadd.f32 %v5539_v37, %v5510_v33 }
 0x383   : > { %v5556_v19 = vadd.f32 %v5540_v31, %v5511_v36  ;;  %v5605_v13 = vstv %s7222_s16  ;;  %v5650_v61 = vstv %s7224_s17  ;;  %v5562_v3 = vmul.f32 %v5560_v7, %v7844_v45  ;;  %s7256_s16 = spop %7255 }
 0x384   : > { %v5563_v22 = vmul.f32 %v5560_v7, %v7847_v50  ;;  %v5564_v32 = vmul.f32 %v5560_v7, %v7849_v51  ;;  %v5565_v9 = vmul.f32 %v5560_v7, %v7851_v52  ;;  %v5566_v26 = vmul.f32 %v5560_v7, %v7853_v53  ;;  %s7258_s17 = spop %7257 }
 0x385   : > { %v5567_v38 = vmul.f32 %v5560_v7, %v7855_v54  ;;  %v5568_v20 = vmul.f32 %v5560_v7, %v7857_v55  ;;  %v5569_v0 = vmul.f32 %v5560_v7, %v7859_v56  ;;  %v5578_v60 = vrot.slane %v5562_v3, 2 }
 0x386   : > { %v5579_v8 = vrot.slane %v5563_v22, 2  ;;  %v5580_v2 = vrot.slane %v5564_v32, 2  ;;  %v10012_v33 = vstv %s7226_s18  ;;  %v5581_v36 = vrot.slane %v5565_v9, 2  ;;  %s7260_s18 = spop %7259 }
 0x387   : > { %v5582_v21 = vrot.slane %v5566_v26, 2  ;;  %v5583_v39 = vrot.slane %v5567_v38, 2  ;;  %v5584_v57 = vrot.slane %v5568_v20, 2  ;;  %v5585_v23 = vrot.slane %v5569_v0, 2 }
 0x388   : > { %v5594_v48 = vadd.f32 %v5578_v60, %v5549_v40  ;;  %v5595_v35 = vadd.f32 %v5579_v8, %v5550_v41  ;;  %v5596_v42 = vadd.f32 %v5580_v2, %v5551_v29  ;;  %v5597_v28 = vadd.f32 %v5581_v36, %v5552_v25 }
 0x389   : > { %v5598_v27 = vadd.f32 %v5582_v21, %v5553_v5  ;;  %v5599_v6 = vadd.f32 %v5583_v39, %v5554_v14  ;;  %v5600_v37 = vadd.f32 %v5584_v57, %v5555_v47  ;;  %v5607_v31 = vmul.f32 %v5605_v13, %v7844_v45 }
 0x38a   : > { %v5608_v7 = vmul.f32 %v5605_v13, %v7847_v50  ;;  %v5609_v3 = vmul.f32 %v5605_v13, %v7849_v51  ;;  %v5610_v22 = vmul.f32 %v5605_v13, %v7851_v52  ;;  %v5611_v32 = vmul.f32 %v5605_v13, %v7853_v53 }
 0x38b   : > { %v5612_v9 = vmul.f32 %v5605_v13, %v7855_v54  ;;  %v5613_v40 = vmul.f32 %v5605_v13, %v7857_v55  ;;  %v5614_v41 = vmul.f32 %v5605_v13, %v7859_v56  ;;  %v5601_v29 = vadd.f32 %v5585_v23, %v5556_v19 }
 0x38c   : > { %v5623_v25 = vrot.slane %v5607_v31, 3  ;;  %v5624_v5 = vrot.slane %v5608_v7, 3  ;;  %v5625_v14 = vrot.slane %v5609_v3, 3  ;;  %v5626_v47 = vrot.slane %v5610_v22, 3 }
 0x38d   : > { %v5627_v26 = vrot.slane %v5611_v32, 3  ;;  %v5628_v38 = vrot.slane %v5612_v9, 3  ;;  %v5629_v20 = vrot.slane %v5613_v40, 3  ;;  %v5630_v0 = vrot.slane %v5614_v41, 3 }
 0x38e   : > { %v5639_v60 = vadd.f32 %v5623_v25, %v5594_v48  ;;  %v5640_v8 = vadd.f32 %v5624_v5, %v5595_v35  ;;  %v5641_v2 = vadd.f32 %v5625_v14, %v5596_v42  ;;  %v5642_v36 = vadd.f32 %v5626_v47, %v5597_v28 }
 0x38f   : > { %v5643_v21 = vadd.f32 %v5627_v26, %v5598_v27  ;;  %v5644_v39 = vadd.f32 %v5628_v38, %v5599_v6  ;;  %v5645_v57 = vadd.f32 %v5629_v20, %v5600_v37  ;;  %v5652_v10 = vmul.f32 %v5650_v61, %v7844_v45 }
 0x390   : > { %v5653_v13 = vmul.f32 %v5650_v61, %v7847_v50  ;;  %v5654_v19 = vmul.f32 %v5650_v61, %v7849_v51  ;;  %v5655_v23 = vmul.f32 %v5650_v61, %v7851_v52  ;;  %v5656_v31 = vmul.f32 %v5650_v61, %v7853_v53 }
 0x391   : > { %v5657_v7 = vmul.f32 %v5650_v61, %v7855_v54  ;;  %v5658_v48 = vmul.f32 %v5650_v61, %v7857_v55  ;;  %v5659_v35 = vmul.f32 %v5650_v61, %v7859_v56  ;;  %v5646_v42 = vadd.f32 %v5630_v0, %v5601_v29 }
 0x392   : > { %v5668_v28 = vrot.slane %v5652_v10, 4  ;;  %v5669_v27 = vrot.slane %v5653_v13, 4  ;;  %v5670_v6 = vrot.slane %v5654_v19, 4  ;;  %v5671_v37 = vrot.slane %v5655_v23, 4 }
 0x393   : > { %v5672_v3 = vrot.slane %v5656_v31, 4  ;;  %v5673_v22 = vrot.slane %v5657_v7, 4  ;;  %v5674_v32 = vrot.slane %v5658_v48, 4  ;;  %v5675_v9 = vrot.slane %v5659_v35, 4 }
 0x394   : > { %v5684_v40 = vadd.f32 %v5668_v28, %v5639_v60  ;;  %v5685_v41 = vadd.f32 %v5669_v27, %v5640_v8  ;;  %v5686_v25 = vadd.f32 %v5670_v6, %v5641_v2  ;;  %v5687_v5 = vadd.f32 %v5671_v37, %v5642_v36 }
 0x395   : > { %v5688_v14 = vadd.f32 %v5672_v3, %v5643_v21  ;;  %v5689_v47 = vadd.f32 %v5673_v22, %v5644_v39  ;;  %v5690_v26 = vadd.f32 %v5674_v32, %v5645_v57  ;;  %v5697_v38 = vmul.f32 %v10012_v33, %v7844_v45 }
 0x396   : > { %v5698_v10 = vmul.f32 %v10012_v33, %v7847_v50  ;;  %v5699_v61 = vmul.f32 %v10012_v33, %v7849_v51  ;;  %v5700_v29 = vmul.f32 %v10012_v33, %v7851_v52  ;;  %v5701_v20 = vmul.f32 %v10012_v33, %v7853_v53 }
 0x397   : > { %v5702_v0 = vmul.f32 %v10012_v33, %v7855_v54  ;;  %v5703_v60 = vmul.f32 %v10012_v33, %v7857_v55  ;;  %v5704_v8 = vmul.f32 %v10012_v33, %v7859_v56  ;;  %v5691_v2 = vadd.f32 %v5675_v9, %v5646_v42 }
 0x398   : > { %v5713_v36 = vrot.slane %v5697_v38, 5  ;;  %v5714_v21 = vrot.slane %v5698_v10, 5  ;;  %v5715_v39 = vrot.slane %v5699_v61, 5  ;;  %v5716_v57 = vrot.slane %v5700_v29, 5 }
 0x399   : > { %v5717_v13 = vrot.slane %v5701_v20, 5  ;;  %v5718_v19 = vrot.slane %v5702_v0, 5  ;;  %v5719_v23 = vrot.slane %v5703_v60, 5  ;;  %v5720_v31 = vrot.slane %v5704_v8, 5 }
 0x39a   : > { %v5729_v7 = vadd.f32 %v5713_v36, %v5684_v40  ;;  %v5730_v48 = vadd.f32 %v5714_v21, %v5685_v41  ;;  %v5731_v35 = vadd.f32 %v5715_v39, %v5686_v25  ;;  %v5732_v28 = vadd.f32 %v5716_v57, %v5687_v5 }
 0x39b   : > { %v5733_v27 = vadd.f32 %v5717_v13, %v5688_v14  ;;  %v5734_v6 = vadd.f32 %v5718_v19, %v5689_v47  ;;  %v5735_v37 = vadd.f32 %v5719_v23, %v5690_v26  ;;  %v5736_v3 = vadd.f32 %v5720_v31, %v5691_v2 }
 0x39c   : > { %v5740_v33 = vstv %s7228_s19  ;;  %v5785_v42 = vstv %s7230_s20  ;;  %v10046_v22 = vstv %s7232_s21  ;;  %v10056_v61 = vstv %s7234_s22  ;;  %s7262_s19 = spop %7261  ;;  %s7603_s20 = smov 16  }
 0x39d   : > { %v5742_v32 = vmul.f32 %v5740_v33, %v7844_v45  ;;  %v5743_v9 = vmul.f32 %v5740_v33, %v7847_v50  ;;  %v5744_v38 = vmul.f32 %v5740_v33, %v7849_v51  ;;  %v5745_v40 = vmul.f32 %v5740_v33, %v7851_v52  ;;  %s7604_s21 = smov 32   ;;  %s7605_s22 = smov 48  }
 0x39e   : > { %v5746_v41 = vmul.f32 %v5740_v33, %v7853_v53  ;;  %v5747_v25 = vmul.f32 %v5740_v33, %v7855_v54  ;;  %v5748_v5 = vmul.f32 %v5740_v33, %v7857_v55  ;;  %v5749_v14 = vmul.f32 %v5740_v33, %v7859_v56 }
 0x39f   : > { %v5758_v47 = vrot.slane %v5742_v32, 6  ;;  %v5759_v26 = vrot.slane %v5743_v9, 6  ;;  %v5760_v10 = vrot.slane %v5744_v38, 6  ;;  %v5761_v29 = vrot.slane %v5745_v40, 6 }
 0x3a0   : > { %v5762_v20 = vrot.slane %v5746_v41, 6  ;;  %v5763_v0 = vrot.slane %v5747_v25, 6  ;;  %v5764_v60 = vrot.slane %v5748_v5, 6  ;;  %v5765_v8 = vrot.slane %v5749_v14, 6 }
 0x3a1   : > { %v5774_v2 = vadd.f32 %v5758_v47, %v5729_v7  ;;  %v5775_v36 = vadd.f32 %v5759_v26, %v5730_v48  ;;  %v5776_v21 = vadd.f32 %v5760_v10, %v5731_v35  ;;  %v5777_v39 = vadd.f32 %v5761_v29, %v5732_v28 }
 0x3a2   : > { %v5778_v57 = vadd.f32 %v5762_v20, %v5733_v27  ;;  %v5779_v13 = vadd.f32 %v5763_v0, %v5734_v6  ;;  %v5780_v19 = vadd.f32 %v5764_v60, %v5735_v37  ;;  %v5787_v23 = vmul.f32 %v5785_v42, %v7844_v45 }
 0x3a3   : > { %v5788_v31 = vmul.f32 %v5785_v42, %v7847_v50  ;;  %v5789_v33 = vmul.f32 %v5785_v42, %v7849_v51  ;;  %v5790_v32 = vmul.f32 %v5785_v42, %v7851_v52  ;;  %v5791_v9 = vmul.f32 %v5785_v42, %v7853_v53 }
 0x3a4   : > { %v5792_v38 = vmul.f32 %v5785_v42, %v7855_v54  ;;  %v5793_v7 = vmul.f32 %v5785_v42, %v7857_v55  ;;  %v10066_v48 = vmul.f32 %v5785_v42, %v7859_v56  ;;  %v5803_v35 = vrot.slane %v5787_v23, 7 }
 0x3a5   : > { %v5804_v28 = vrot.slane %v5788_v31, 7  ;;  %v5805_v27 = vrot.slane %v5789_v33, 7  ;;  %v5806_v6 = vrot.slane %v5790_v32, 7  ;;  %v10068_v37 = vadd.f32 %v5765_v8, %v5736_v3 }
 0x3a6   : > { %v5807_v40 = vrot.slane %v5791_v9, 7  ;;  %v5808_v41 = vrot.slane %v5792_v38, 7  ;;  %v5809_v25 = vrot.slane %v5793_v7, 7  ;;  %v5819_v5 = vadd.f32 %v5803_v35, %v5774_v2 }
 0x3a7   : > { %v5820_v14 = vadd.f32 %v5804_v28, %v5775_v36  ;;  %v5821_v47 = vadd.f32 %v5805_v27, %v5776_v21  ;;  %v5822_v26 = vadd.f32 %v5806_v6, %v5777_v39  ;;  %v5892_v2 = vmul.f32 %v10046_v22, %v7844_v45 }
 0x3a8   : > { %v5823_v29 = vadd.f32 %v5807_v40, %v5778_v57  ;;  %v5824_v20 = vadd.f32 %v5808_v41, %v5779_v13  ;;  %v10071_v0 = vadd.f32 %v5809_v25, %v5780_v19  ;;  %v5827_v42 = vpack.c.bf16 %v5819_v5, %v5819_v5 }
 0x3a9   : > { %v5828_v60 = vpack.c.bf16 %v5820_v14, %v5820_v14  ;;  %v5829_v23 = vpack.c.bf16 %v5821_v47, %v5821_v47  ;;  %v5830_v31 = vpack.c.bf16 %v5822_v26, %v5822_v26  ;;  %v5893_v57 = vmul.f32 %v10046_v22, %v7847_v50 }
 0x3aa   : > { %v5831_v33 = vpack.c.bf16 %v5823_v29, %v5823_v29  ;;  %v5832_v3 = vpack.c.bf16 %v5824_v20, %v5824_v20  ;;  %v10085_v13 = vunpack.c.l.b16 %v5827_v42  ;;  %v5894_v9 = vmul.f32 %v10046_v22, %v7849_v51 }
 0x3ab   : > { %v10077_v36 = vunpack.c.l.b16 %v5828_v60  ;;  %v10079_v21 = vunpack.c.l.b16 %v5829_v23  ;;  %v10081_v39 = vunpack.c.l.b16 %v5830_v31  ;;  %v5895_v28 = vmul.f32 %v10046_v22, %v7851_v52 }
 0x3ac   : > { %v10087_v19 = vunpack.c.l.b16 %v5831_v33  ;;  %v10089_v32 = vunpack.c.l.b16 %v5832_v3  ;;  %v5896_v40 = vmul.f32 %v10046_v22, %v7853_v53  ;;  %v5897_v41 = vmul.f32 %v10046_v22, %v7855_v54 }
 0x3ad   : > { %10919 = vst [vmem:[#allocation60_spill] sm:$0xff] %v10081_v39  ;;  %v5898_v25 = vmul.f32 %v10046_v22, %v7857_v55  ;;  %v5899_v5 = vmul.f32 %v10046_v22, %v7859_v56  ;;  %v5905_v14 = vmul.f32 %v10056_v61, %v7844_v45  ;;  %v5906_v47 = vmul.f32 %v10056_v61, %v7847_v50  ;;  %v10925_v39 = vld [vmem:[#allocation48_spill] sm:$0xff] }
 0x3ae   : > { %10920 = vst [vmem:[#allocation57_spill] sm:$0xff] %v10087_v19  ;;  %v5907_v26 = vmul.f32 %v10056_v61, %v7849_v51  ;;  %v5908_v29 = vmul.f32 %v10056_v61, %v7851_v52  ;;  %v5909_v20 = vmul.f32 %v10056_v61, %v7853_v53  ;;  %v5910_v42 = vmul.f32 %v10056_v61, %v7855_v54  ;;  %v10922_v19 = vld [vmem:[#allocation46_spill] sm:$0xff] }
 0x3af   : > { %10921 = vst [vmem:[#allocation58_spill] sm:$0xff] %v10089_v32  ;;  %v5911_v22 = vmul.f32 %v10056_v61, %v7857_v55  ;;  %v5912_v60 = vmul.f32 %v10056_v61, %v7859_v56  ;;  %v5921_v23 = vrot.slane %v5905_v14, 1  ;;  %v5922_v31 = vrot.slane %v5906_v47, 1  ;;  %v10923_v61 = vld [vmem:[#allocation47_spill] sm:$0xff] }
 0x3b0   : > { %v5923_v33 = vrot.slane %v5907_v26, 1  ;;  %v5924_v3 = vrot.slane %v5908_v29, 1  ;;  %v5925_v6 = vrot.slane %v5909_v20, 1  ;;  %v5926_v27 = vrot.slane %v5910_v42, 1 }
 0x3b1   : > { %v5927_v35 = vrot.slane %v5911_v22, 1  ;;  %v5928_v7 = vrot.slane %v5912_v60, 1  ;;  %v5937_v8 = vadd.f32 %v5921_v23, %v5892_v2  ;;  %v5938_v10 = vadd.f32 %v5922_v31, %v5893_v57 }
 0x3b2   : > { %v5939_v17 = vadd.f32 %v5923_v33, %v5894_v9  ;;  %v5940_v46 = vadd.f32 %v5924_v3, %v5895_v28  ;;  %v5941_v12 = vadd.f32 %v5925_v6, %v5896_v40  ;;  %v5942_v62 = vadd.f32 %v5926_v27, %v5897_v41 }
 0x3b3   : > { %v5943_v43 = vadd.f32 %v5927_v35, %v5898_v25  ;;  %v5944_v38 = vadd.f32 %v5928_v7, %v5899_v5  ;;  %v5948_v32 = vstv %s7236_s23  ;;  %v10924_v14 = vrot.slane %v10923_v61, 7  ;;  %s7606_s23 = smov 64  }
 0x3b4   : > { %v5950_v26 = vmul.f32 %v5948_v32, %v7844_v45  ;;  %v5951_v29 = vmul.f32 %v5948_v32, %v7847_v50  ;;  %v5952_v20 = vmul.f32 %v5948_v32, %v7849_v51  ;;  %v5953_v2 = vmul.f32 %v5948_v32, %v7851_v52 }
 0x3b5   : > { %v4662_v47 = vadd.f32 %v10924_v14, %v10922_v19  ;;  %v5954_v57 = vmul.f32 %v5948_v32, %v7853_v53  ;;  %v5955_v9 = vmul.f32 %v5948_v32, %v7855_v54  ;;  %v5956_v35 = vmul.f32 %v5948_v32, %v7857_v55 }
 0x3b6   : > { %v5957_v7 = vmul.f32 %v5948_v32, %v7859_v56  ;;  %v5966_v28 = vrot.slane %v5950_v26, 2  ;;  %v5967_v27 = vrot.slane %v5951_v29, 2  ;;  %v5968_v6 = vrot.slane %v5952_v20, 2  ;;  %v10927_v29 = vld [vmem:[#allocation55_spill] sm:$0xff]  ;;  %v10928_v20 = vld [vmem:[#allocation49_spill] sm:$0xff] }
 0x3b7   : > { %v5969_v19 = vrot.slane %v5953_v2, 2  ;;  %v5970_v40 = vrot.slane %v5954_v57, 2  ;;  %v5971_v41 = vrot.slane %v5955_v9, 2  ;;  %v5972_v25 = vrot.slane %v5956_v35, 2  ;;  %v10930_v35 = vld [vmem:[#allocation50_spill] sm:$0xff] }
 0x3b8   : > { %v5973_v5 = vrot.slane %v5957_v7, 2  ;;  %v5982_v42 = vadd.f32 %v5966_v28, %v5937_v8  ;;  %v5983_v22 = vadd.f32 %v5967_v27, %v5938_v10  ;;  %v5984_v60 = vadd.f32 %v5968_v6, %v5939_v17  ;;  %v10932_v10 = vld [vmem:[#allocation52_spill] sm:$0xff]  ;;  %v10934_v28 = vld [vmem:[#allocation51_spill] sm:$0xff] }
 0x3b9   : > { %v5985_v23 = vadd.f32 %v5969_v19, %v5940_v46  ;;  %v5986_v31 = vadd.f32 %v5970_v40, %v5941_v12  ;;  %v5987_v33 = vadd.f32 %v5971_v41, %v5942_v62  ;;  %v5988_v3 = vadd.f32 %v5972_v25, %v5943_v43 }
 0x3ba   : > { %v5989_v61 = vadd.f32 %v5973_v5, %v5944_v38  ;;  %v4670_v14 = vpack.c.bf16 %v4662_v47, %v4662_v47  ;;  %v10926_v32 = vpack.c.bf16 %v10925_v39, %v10925_v39  ;;  %v10929_v2 = vrot.slane %v10928_v20, 6 }
 0x3bb   : > { %v5993_v9 = vstv %s7238_s24  ;;  %v10931_v8 = vrot.slane %v10930_v35, 5  ;;  %v10933_v39 = vrot.slane %v10932_v10, 4  ;;  %v10935_v27 = vrot.slane %v10934_v28, 3  ;;  %s7607_s24 = smov 80  }
 0x3bc   : > { %v4685_v26 = vunpack.c.l.b16 %v10926_v32  ;;  %v4690_v57 = vsel %vm799_vm2, %v10929_v2, %v10927_v29  ;;  %v5995_v12 = vmul.f32 %v5993_v9, %v7844_v45  ;;  %v5996_v43 = vmul.f32 %v5993_v9, %v7847_v50 }
 0x3bd   : > { %v4692_v17 = vsel %vm802_vm3, %v10931_v8, %v4690_v57  ;;  %v5997_v62 = vmul.f32 %v5993_v9, %v7849_v51  ;;  %v4686_v46 = vunpack.c.l.b16 %v4670_v14  ;;  %v5998_v7 = vmul.f32 %v5993_v9, %v7851_v52 }
 0x3be   : > { %v4694_v38 = vsel %vm805_vm4, %v10933_v39, %v4692_v17  ;;  %v4697_v47 = vrot.slane %v4685_v26, 2  ;;  %v5999_v19 = vmul.f32 %v5993_v9, %v7853_v53  ;;  %v6000_v40 = vmul.f32 %v5993_v9, %v7855_v54 }
 0x3bf   : > { %v4696_v6 = vsel %vm808_vm5, %v10935_v27, %v4694_v38  ;;  %v6001_v41 = vmul.f32 %v5993_v9, %v7857_v55  ;;  %v4699_v5 = vrot.slane %v4686_v46, 1  ;;  %v6002_v14 = vmul.f32 %v5993_v9, %v7859_v56 }
 0x3c0   : > { %v4698_v25 = vsel %vm811_vm6, %v4697_v47, %v4696_v6  ;;  %v6011_v32 = vrot.slane %v5995_v12, 3  ;;  %v6012_v29 = vrot.slane %v5996_v43, 3  ;;  %v6013_v26 = vrot.slane %v5997_v62, 3 }
 0x3c1   : > { %v6014_v20 = vrot.slane %v5998_v7, 3  ;;  %v6015_v2 = vrot.slane %v5999_v19, 3  ;;  %v4700_v57 = vsel %vm814_vm7, %v4699_v5, %v4698_v25  ;;  %v6016_v35 = vrot.slane %v6000_v40, 3 }
 0x3c2   : > { %v6017_v8 = vrot.slane %v6001_v41, 3  ;;  %v6018_v17 = vrot.slane %v6002_v14, 3  ;;  %v4701_v10 = vpack.c.b16 %v4700_v57, %v4700_v57  ;;  %v6027_v39 = vadd.f32 %v6011_v32, %v5982_v42 }
 0x3c3   : > { %v6028_v38 = vadd.f32 %v6012_v29, %v5983_v22  ;;  %v6029_v28 = vadd.f32 %v6013_v26, %v5984_v60  ;;  %v6030_v47 = vadd.f32 %v6014_v20, %v5985_v23  ;;  %v6031_v46 = vadd.f32 %v6015_v2, %v5986_v31 }
 0x3c4   : > { %v6032_v27 = vadd.f32 %v6016_v35, %v5987_v33  ;;  %v6033_v9 = vadd.f32 %v6017_v8, %v5988_v3  ;;  %6984 = vmatmul.msk.bf16.vlgmr.msra.gmra.mxu2 %vm817_vm8, %v4701_v10  ;;  %v6034_v12 = vadd.f32 %v6018_v17, %v5989_v61  ;;  %v6038_v43 = vstv %s7240_s25  ;;  %s7608_s25 = smov 96  }
 0x3c5   : > { %v6083_v62 = vstv %s7242_s26  ;;  %v10936_v7 = vrot.slane %v9829_v58, 7  ;;  %v6040_v19 = vmul.f32 %v6038_v43, %v7844_v45  ;;  %v6041_v40 = vmul.f32 %v6038_v43, %v7847_v50  ;;  %s7609_s26 = smov 112  }
 0x3c6   : > { %v6042_v42 = vmul.f32 %v6038_v43, %v7849_v51  ;;  %v6043_v22 = vmul.f32 %v6038_v43, %v7851_v52  ;;  %v6044_v60 = vmul.f32 %v6038_v43, %v7853_v53  ;;  %v6045_v23 = vmul.f32 %v6038_v43, %v7855_v54 }
 0x3c7   : > { %v5050_v6 = vadd.f32 %v10936_v7, %v9801_v44  ;;  %v6046_v31 = vmul.f32 %v6038_v43, %v7857_v55  ;;  %v6047_v33 = vmul.f32 %v6038_v43, %v7859_v56  ;;  %v6056_v3 = vrot.slane %v6040_v19, 4 }
 0x3c8   : > { %v6057_v61 = vrot.slane %v6041_v40, 4  ;;  %v6058_v58 = vrot.slane %v6042_v42, 4  ;;  %v6059_v44 = vrot.slane %v6043_v22, 4  ;;  %v6060_v41 = vrot.slane %v6044_v60, 4 }
 0x3c9   : > { %v6061_v25 = vrot.slane %v6045_v23, 4  ;;  %v6062_v5 = vrot.slane %v6046_v31, 4  ;;  %v6063_v14 = vrot.slane %v6047_v33, 4  ;;  %v6072_v32 = vadd.f32 %v6056_v3, %v6027_v39 }
 0x3ca   : > { %v6073_v29 = vadd.f32 %v6057_v61, %v6028_v38  ;;  %v6074_v26 = vadd.f32 %v6058_v58, %v6029_v28  ;;  %v6075_v20 = vadd.f32 %v6059_v44, %v6030_v47  ;;  %v6076_v2 = vadd.f32 %v6060_v41, %v6031_v46 }
 0x3cb   : > { %v6077_v57 = vadd.f32 %v6061_v25, %v6032_v27  ;;  %v6078_v35 = vadd.f32 %v6062_v5, %v6033_v9  ;;  %v6079_v8 = vadd.f32 %v6063_v14, %v6034_v12  ;;  %v6085_v17 = vmul.f32 %v6083_v62, %v7844_v45 }
 0x3cc   : > { %v6086_v10 = vmul.f32 %v6083_v62, %v7847_v50  ;;  %v6087_v43 = vmul.f32 %v6083_v62, %v7849_v51  ;;  %v6088_v7 = vmul.f32 %v6083_v62, %v7851_v52  ;;  %v6089_v19 = vmul.f32 %v6083_v62, %v7853_v53 }
 0x3cd   : > { %v6090_v40 = vmul.f32 %v6083_v62, %v7855_v54  ;;  %v6091_v39 = vmul.f32 %v6083_v62, %v7857_v55  ;;  %v6092_v38 = vmul.f32 %v6083_v62, %v7859_v56  ;;  %v6101_v28 = vrot.slane %v6085_v17, 5 }
 0x3ce   : > { %v6102_v47 = vrot.slane %v6086_v10, 5  ;;  %v6103_v46 = vrot.slane %v6087_v43, 5  ;;  %v6104_v27 = vrot.slane %v6088_v7, 5  ;;  %v6105_v9 = vrot.slane %v6089_v19, 5 }
 0x3cf   : > { %v6106_v12 = vrot.slane %v6090_v40, 5  ;;  %v6107_v42 = vrot.slane %v6091_v39, 5  ;;  %v6108_v22 = vrot.slane %v6092_v38, 5  ;;  %v6117_v60 = vadd.f32 %v6101_v28, %v6072_v32 }
 0x3d0   : > { %v6118_v23 = vadd.f32 %v6102_v47, %v6073_v29  ;;  %v6119_v31 = vadd.f32 %v6103_v46, %v6074_v26  ;;  %v6120_v33 = vadd.f32 %v6104_v27, %v6075_v20  ;;  %v6121_v3 = vadd.f32 %v6105_v9, %v6076_v2 }
 0x3d1   : > { %v6122_v61 = vadd.f32 %v6106_v12, %v6077_v57  ;;  %v6123_v58 = vadd.f32 %v6107_v42, %v6078_v35  ;;  %v6124_v44 = vadd.f32 %v6108_v22, %v6079_v8  ;;  %v5058_v41 = vpack.c.bf16 %v5050_v6, %v5050_v6  ;;  %v10940_v57 = vld [vmem:[#allocation53_spill] sm:$0xff] }
 0x3d2   : > { %v10937_v62 = vpack.c.bf16 %v9834_v15, %v9834_v15  ;;  %v10938_v5 = vrot.slane %v9840_v30, 6  ;;  %v6128_v17 = vstv %s7244_s27  ;;  %v10939_v32 = vrot.slane %v9842_v4, 5  ;;  %s7001_s27 = sshll.u32 %s10974_s30, 3 }
 0x3d3   : > { %v6130_v26 = vmul.f32 %v6128_v17, %v7844_v45  ;;  %v6131_v20 = vmul.f32 %v6128_v17, %v7847_v50  ;;  %v6132_v6 = vmul.f32 %v6128_v17, %v7849_v51  ;;  %v5074_v2 = vunpack.c.l.b16 %v5058_v41 }
 0x3d4   : > { %v5073_v25 = vunpack.c.l.b16 %v10937_v62  ;;  %v5078_v14 = vsel %vm799_vm2, %v10938_v5, %v9870_v34  ;;  %v10941_v15 = vrot.slane %v10940_v57, 4  ;;  %v6133_v30 = vmul.f32 %v6128_v17, %v7851_v52  ;;  %v10942_v34 = vld [vmem:[#allocation54_spill] sm:$0xff] }
 0x3d5   : > { %v5080_v29 = vsel %vm802_vm3, %v10939_v32, %v5078_v14  ;;  %v10943_v10 = vrot.slane %v10942_v34, 3  ;;  %v6134_v43 = vmul.f32 %v6128_v17, %v7853_v53  ;;  %v6135_v7 = vmul.f32 %v6128_v17, %v7855_v54 }
 0x3d6   : > { %v5082_v35 = vsel %vm805_vm4, %v10941_v15, %v5080_v29  ;;  %v5085_v8 = vrot.slane %v5073_v25, 2  ;;  %v6136_v19 = vmul.f32 %v6128_v17, %v7857_v55  ;;  %v5087_v39 = vrot.slane %v5074_v2, 1 }
 0x3d7   : > { %v5084_v4 = vsel %vm808_vm5, %v10943_v10, %v5082_v35  ;;  %v6137_v38 = vmul.f32 %v6128_v17, %v7859_v56  ;;  %v6146_v28 = vrot.slane %v6130_v26, 6  ;;  %v6147_v47 = vrot.slane %v6131_v20, 6 }
 0x3d8   : > { %v5086_v40 = vsel %vm811_vm6, %v5085_v8, %v5084_v4  ;;  %v6148_v46 = vrot.slane %v6132_v6, 6  ;;  %v6149_v27 = vrot.slane %v6133_v30, 6  ;;  %v6150_v9 = vrot.slane %v6134_v43, 6 }
 0x3d9   : > { %v5088_v12 = vsel %vm814_vm7, %v5087_v39, %v5086_v40  ;;  %v6151_v42 = vrot.slane %v6135_v7, 6  ;;  %v6152_v22 = vrot.slane %v6136_v19, 6  ;;  %v6153_v41 = vrot.slane %v6137_v38, 6 }
 0x3da   : > { %v10944_v62 = vrot.slane %v10077_v36, 7  ;;  %v5089_v5 = vpack.c.b16 %v5088_v12, %v5088_v12  ;;  %v6162_v14 = vadd.f32 %v6146_v28, %v6117_v60  ;;  %v6163_v17 = vadd.f32 %v6147_v47, %v6118_v23 }
 0x3db   : > { %v6164_v32 = vadd.f32 %v6148_v46, %v6119_v31  ;;  %v6165_v29 = vadd.f32 %v6149_v27, %v6120_v33  ;;  %v6166_v26 = vadd.f32 %v6150_v9, %v6121_v3  ;;  %v6167_v20 = vadd.f32 %v6151_v42, %v6122_v61 }
 0x3dc   : > { %v10211_v25 = vsel %vm796_vm1, %v10944_v62, %v10085_v13  ;;  %6985 = vmatmul.msk.bf16.vlgmr.msra.gmra.mxu3 %vm817_vm8, %v5089_v5  ;;  %v6168_v6 = vadd.f32 %v6152_v22, %v6123_v58  ;;  %v10214_v2 = vadd.f32 %v6153_v41, %v6124_v44  ;;  %v6173_v57 = vstv %s7246_s28 }
 0x3dd   : > { %v6278_v15 = vstv %s7248_s29  ;;  %v6175_v35 = vmul.f32 %v6173_v57, %v7844_v45  ;;  %v6176_v36 = vmul.f32 %v6173_v57, %v7847_v50  ;;  %v6177_v13 = vmul.f32 %v6173_v57, %v7849_v51 }
 0x3de   : > { %v6178_v60 = vmul.f32 %v6173_v57, %v7851_v52  ;;  %v6179_v23 = vmul.f32 %v6173_v57, %v7853_v53  ;;  %v6180_v31 = vmul.f32 %v6173_v57, %v7855_v54  ;;  %v6181_v33 = vmul.f32 %v6173_v57, %v7857_v55 }
 0x3df   : > { %v10224_v3 = vmul.f32 %v6173_v57, %v7859_v56  ;;  %v6191_v61 = vrot.slane %v6175_v35, 7  ;;  %v6192_v58 = vrot.slane %v6176_v36, 7  ;;  %v6193_v44 = vrot.slane %v6177_v13, 7 }
 0x3e0   : > { %v6194_v8 = vrot.slane %v6178_v60, 7  ;;  %v6195_v30 = vrot.slane %v6179_v23, 7  ;;  %v6196_v34 = vrot.slane %v6180_v31, 7  ;;  %v6197_v10 = vrot.slane %v6181_v33, 7 }
 0x3e1   : > { %v6291_v4 = vstv %s7250_s13  ;;  %v6207_v43 = vadd.f32 %v6191_v61, %v6162_v14  ;;  %v6208_v7 = vadd.f32 %v6192_v58, %v6163_v17  ;;  %v6209_v19 = vadd.f32 %v6193_v44, %v6164_v32  ;;  %s402_s13 = scalar_lea.vmem %s10500_s3, %s7001_s27 }
 0x3e2   : > { %v6210_v40 = vadd.f32 %v6194_v8, %v6165_v29  ;;  %v6211_v38 = vadd.f32 %v6195_v30, %v6166_v26  ;;  %v6212_v28 = vadd.f32 %v6196_v34, %v6167_v20  ;;  %v10227_v47 = vadd.f32 %v6197_v10, %v6168_v6 }
 0x3e3   : > { %v6215_v46 = vpack.c.bf16 %v6207_v43, %v6207_v43  ;;  %v6216_v27 = vpack.c.bf16 %v6208_v7, %v6208_v7  ;;  %v6217_v9 = vpack.c.bf16 %v6209_v19, %v6209_v19  ;;  %v6280_v62 = vmul.f32 %v6278_v15, %v7844_v45 }
 0x3e4   : > { %v6218_v12 = vpack.c.bf16 %v6210_v40, %v6210_v40  ;;  %v6219_v42 = vpack.c.bf16 %v6211_v38, %v6211_v38  ;;  %v6220_v22 = vpack.c.bf16 %v6212_v28, %v6212_v28  ;;  %v6281_v32 = vmul.f32 %v6278_v15, %v7847_v50 }
 0x3e5   : > { %v10232_v5 = vunpack.c.l.b16 %v6216_v27  ;;  %v10234_v14 = vunpack.c.l.b16 %v6217_v9  ;;  %v10239_v29 = vunpack.c.l.b16 %v6215_v46  ;;  %v6282_v6 = vmul.f32 %v6278_v15, %v7849_v51 }
 0x3e6   : > { %v10236_v17 = vunpack.c.l.b16 %v6218_v12  ;;  %v10241_v26 = vunpack.c.l.b16 %v6219_v42  ;;  %v10243_v20 = vunpack.c.l.b16 %v6220_v22  ;;  %v6283_v13 = vmul.f32 %v6278_v15, %v7851_v52 }
 0x3e7   : > { %v6284_v31 = vmul.f32 %v6278_v15, %v7853_v53  ;;  %v6285_v33 = vmul.f32 %v6278_v15, %v7855_v54  ;;  %v6286_v61 = vmul.f32 %v6278_v15, %v7857_v55  ;;  %v6287_v58 = vmul.f32 %v6278_v15, %v7859_v56 }
 0x3e8   : > { %10945 = vst [vmem:[#allocation56_spill] sm:$0xff] %v10243_v20  ;;  %v6293_v44 = vmul.f32 %v6291_v4, %v7844_v45  ;;  %v6294_v8 = vmul.f32 %v6291_v4, %v7847_v50  ;;  %v6295_v30 = vmul.f32 %v6291_v4, %v7849_v51  ;;  %v6296_v34 = vmul.f32 %v6291_v4, %v7851_v52 }
 0x3e9   : > { %v6297_v10 = vmul.f32 %v6291_v4, %v7853_v53  ;;  %v6298_v43 = vmul.f32 %v6291_v4, %v7855_v54  ;;  %v6299_v7 = vmul.f32 %v6291_v4, %v7857_v55  ;;  %v6300_v19 = vmul.f32 %v6291_v4, %v7859_v56 }
 0x3ea   : > { %v6309_v40 = vrot.slane %v6293_v44, 1  ;;  %v6310_v38 = vrot.slane %v6294_v8, 1  ;;  %v6311_v15 = vrot.slane %v6295_v30, 1  ;;  %v6312_v28 = vrot.slane %v6296_v34, 1 }
 0x3eb   : > { %v6313_v46 = vrot.slane %v6297_v10, 1  ;;  %v6314_v27 = vrot.slane %v6298_v43, 1  ;;  %v6315_v9 = vrot.slane %v6299_v7, 1  ;;  %v6316_v12 = vrot.slane %v6300_v19, 1 }
 0x3ec   : > { %v6325_v42 = vadd.f32 %v6309_v40, %v6280_v62  ;;  %v6326_v22 = vadd.f32 %v6310_v38, %v6281_v32  ;;  %v6327_v23 = vadd.f32 %v6311_v15, %v6282_v6  ;;  %v6328_v60 = vadd.f32 %v6312_v28, %v6283_v13 }
 0x3ed   : > { %v6329_v36 = vadd.f32 %v6313_v46, %v6284_v31  ;;  %v6330_v35 = vadd.f32 %v6314_v27, %v6285_v33  ;;  %v6331_v41 = vadd.f32 %v6315_v9, %v6286_v61  ;;  %v6332_v39 = vadd.f32 %v6316_v12, %v6287_v58 }
 0x3ee   : > { %v6336_v57 = vstv %s7252_s14  ;;  %v6381_v20 = vstv %s7254_s15 }
 0x3ef   : > { %v6338_v4 = vmul.f32 %v6336_v57, %v7844_v45  ;;  %v6339_v44 = vmul.f32 %v6336_v57, %v7847_v50  ;;  %v6340_v8 = vmul.f32 %v6336_v57, %v7849_v51  ;;  %v6341_v30 = vmul.f32 %v6336_v57, %v7851_v52 }
 0x3f0   : > { %v6342_v34 = vmul.f32 %v6336_v57, %v7853_v53  ;;  %v6343_v62 = vmul.f32 %v6336_v57, %v7855_v54  ;;  %v6344_v32 = vmul.f32 %v6336_v57, %v7857_v55  ;;  %v6345_v6 = vmul.f32 %v6336_v57, %v7859_v56 }
 0x3f1   : > { %v6354_v13 = vrot.slane %v6338_v4, 2  ;;  %v6355_v31 = vrot.slane %v6339_v44, 2  ;;  %v6356_v33 = vrot.slane %v6340_v8, 2  ;;  %v6357_v61 = vrot.slane %v6341_v30, 2 }
 0x3f2   : > { %v6358_v58 = vrot.slane %v6342_v34, 2  ;;  %v6359_v10 = vrot.slane %v6343_v62, 2  ;;  %v6360_v43 = vrot.slane %v6344_v32, 2  ;;  %v6361_v7 = vrot.slane %v6345_v6, 2 }
 0x3f3   : > { %v6370_v19 = vadd.f32 %v6354_v13, %v6325_v42  ;;  %v6371_v40 = vadd.f32 %v6355_v31, %v6326_v22  ;;  %v6372_v38 = vadd.f32 %v6356_v33, %v6327_v23  ;;  %v6373_v15 = vadd.f32 %v6357_v61, %v6328_v60 }
 0x3f4   : > { %v6374_v28 = vadd.f32 %v6358_v58, %v6329_v36  ;;  %v6375_v46 = vadd.f32 %v6359_v10, %v6330_v35  ;;  %v6376_v27 = vadd.f32 %v6360_v43, %v6331_v41  ;;  %v6377_v9 = vadd.f32 %v6361_v7, %v6332_v39 }
 0x3f5   : > { %v6383_v12 = vmul.f32 %v6381_v20, %v7844_v45  ;;  %v6384_v57 = vmul.f32 %v6381_v20, %v7847_v50  ;;  %v6385_v4 = vmul.f32 %v6381_v20, %v7849_v51  ;;  %v6386_v44 = vmul.f32 %v6381_v20, %v7851_v52 }
 0x3f6   : > { %v6387_v8 = vmul.f32 %v6381_v20, %v7853_v53  ;;  %v6388_v30 = vmul.f32 %v6381_v20, %v7855_v54  ;;  %v6389_v42 = vmul.f32 %v6381_v20, %v7857_v55  ;;  %v6390_v60 = vmul.f32 %v6381_v20, %v7859_v56 }
 0x3f7   : > { %v6399_v36 = vrot.slane %v6383_v12, 3  ;;  %v6400_v35 = vrot.slane %v6384_v57, 3  ;;  %v6401_v41 = vrot.slane %v6385_v4, 3  ;;  %v6402_v39 = vrot.slane %v6386_v44, 3 }
 0x3f8   : > { %v6403_v23 = vrot.slane %v6387_v8, 3  ;;  %v6404_v22 = vrot.slane %v6388_v30, 3  ;;  %v6405_v34 = vrot.slane %v6389_v42, 3  ;;  %v6406_v62 = vrot.slane %v6390_v60, 3 }
 0x3f9   : > { %v6415_v32 = vadd.f32 %v6399_v36, %v6370_v19  ;;  %v6416_v6 = vadd.f32 %v6400_v35, %v6371_v40  ;;  %v6417_v13 = vadd.f32 %v6401_v41, %v6372_v38  ;;  %v6418_v31 = vadd.f32 %v6402_v39, %v6373_v15 }
 0x3fa   : > { %v6419_v33 = vadd.f32 %v6403_v23, %v6374_v28  ;;  %v6420_v61 = vadd.f32 %v6404_v22, %v6375_v46  ;;  %v6421_v58 = vadd.f32 %v6405_v34, %v6376_v27  ;;  %v6422_v10 = vadd.f32 %v6406_v62, %v6377_v9 }
 0x3fb   : > { %v6426_v43 = vstv %s7256_s16  ;;  %v6471_v20 = vstv %s7258_s17  ;;  %v10946_v7 = vrot.slane %v9966_v11, 7  ;;  %v10947_v57 = vpack.c.bf16 %v9968_v18, %v9968_v18 }
 0x3fc   : > { %v6428_v19 = vmul.f32 %v6426_v43, %v7844_v45  ;;  %v6429_v40 = vmul.f32 %v6426_v43, %v7847_v50  ;;  %v6430_v38 = vmul.f32 %v6426_v43, %v7849_v51  ;;  %v6431_v15 = vmul.f32 %v6426_v43, %v7851_v52 }
 0x3fd   : > { %v5438_v12 = vadd.f32 %v10946_v7, %v9960_v16  ;;  %v10286_v4 = vunpack.c.l.b16 %v10947_v57  ;;  %v6432_v28 = vmul.f32 %v6426_v43, %v7853_v53  ;;  %v6433_v46 = vmul.f32 %v6426_v43, %v7855_v54 }
 0x3fe   : > { %v6434_v11 = vmul.f32 %v6426_v43, %v7857_v55  ;;  %v6435_v16 = vmul.f32 %v6426_v43, %v7859_v56  ;;  %v6444_v27 = vrot.slane %v6428_v19, 4  ;;  %v6445_v18 = vrot.slane %v6429_v40, 4 }
 0x3ff   : > { %v6446_v9 = vrot.slane %v6430_v38, 4  ;;  %v6447_v44 = vrot.slane %v6431_v15, 4  ;;  %v6448_v8 = vrot.slane %v6432_v28, 4  ;;  %v6449_v30 = vrot.slane %v6433_v46, 4 }
 0x400   : > { %v6450_v42 = vrot.slane %v6434_v11, 4  ;;  %v6451_v60 = vrot.slane %v6435_v16, 4  ;;  %v6460_v36 = vadd.f32 %v6444_v27, %v6415_v32  ;;  %v6461_v35 = vadd.f32 %v6445_v18, %v6416_v6 }
 0x401   : > { %v6462_v41 = vadd.f32 %v6446_v9, %v6417_v13  ;;  %v6463_v39 = vadd.f32 %v6447_v44, %v6418_v31  ;;  %v6464_v23 = vadd.f32 %v6448_v8, %v6419_v33  ;;  %v6465_v22 = vadd.f32 %v6449_v30, %v6420_v61  ;;  %v10304_v13 = vpop.f32.mrf.mxu0 }
 0x402   : > { %v6466_v34 = vadd.f32 %v6450_v42, %v6421_v58  ;;  %v6467_v62 = vadd.f32 %v6451_v60, %v6422_v10  ;;  %v6473_v7 = vmul.f32 %v6471_v20, %v7844_v45  ;;  %v6474_v43 = vmul.f32 %v6471_v20, %v7847_v50 }
 0x403   : > { %v6475_v57 = vmul.f32 %v6471_v20, %v7849_v51  ;;  %v6476_v19 = vmul.f32 %v6471_v20, %v7851_v52  ;;  %v6477_v40 = vmul.f32 %v6471_v20, %v7853_v53  ;;  %v6478_v38 = vmul.f32 %v6471_v20, %v7855_v54 }
 0x404   : > { %v6479_v32 = vmul.f32 %v6471_v20, %v7857_v55  ;;  %v6480_v6 = vmul.f32 %v6471_v20, %v7859_v56  ;;  %v6489_v31 = vrot.slane %v6473_v7, 5  ;;  %v6490_v33 = vrot.slane %v6474_v43, 5 }
 0x405   : > { %v6491_v61 = vrot.slane %v6475_v57, 5  ;;  %v6492_v58 = vrot.slane %v6476_v19, 5  ;;  %v6493_v10 = vrot.slane %v6477_v40, 5  ;;  %v6494_v15 = vrot.slane %v6478_v38, 5 }
 0x406   : > { %v6495_v28 = vrot.slane %v6479_v32, 5  ;;  %v6496_v46 = vrot.slane %v6480_v6, 5  ;;  %v6505_v11 = vadd.f32 %v6489_v31, %v6460_v36  ;;  %v6506_v16 = vadd.f32 %v6490_v33, %v6461_v35 }
 0x407   : > { %v6507_v27 = vadd.f32 %v6491_v61, %v6462_v41  ;;  %v6508_v18 = vadd.f32 %v6492_v58, %v6463_v39  ;;  %v6509_v9 = vadd.f32 %v6493_v10, %v6464_v23  ;;  %v6510_v44 = vadd.f32 %v6494_v15, %v6465_v22  ;;  %v10322_v22 = vpop.f32.mrf.mxu1  ;;  %v10333_v61 = vpop.f32.mrf.mxu3 }
 0x408   : > { %v6511_v8 = vadd.f32 %v6495_v28, %v6466_v34  ;;  %v6512_v30 = vadd.f32 %v6496_v46, %v6467_v62  ;;  %v5446_v20 = vpack.c.bf16 %v5438_v12, %v5438_v12  ;;  %v10948_v42 = vrot.slane %v9973_v49, 6 }
 0x409   : > { %v5473_v7 = vrot.slane %v10286_v4, 2  ;;  %v6516_v43 = vstv %s7260_s18  ;;  %v10949_v57 = vrot.slane %v9975_v63, 5  ;;  %v10950_v12 = vrot.slane %v9978_v24, 4  ;;  %v836_v38 = vpop.f32.mrf.mxu0  ;;  %v10330_v24 = vpop.f32.mrf.mxu2  ;;  %s7002_s18 = sshll.u32 %s10974_s30, 4 }
 0x40a   : > { %v5466_v60 = vsel %vm799_vm2, %v10948_v42, %v10002_v1  ;;  %v6518_v35 = vmul.f32 %v6516_v43, %v7844_v45  ;;  %v6519_v41 = vmul.f32 %v6516_v43, %v7847_v50  ;;  %v6520_v39 = vmul.f32 %v6516_v43, %v7849_v51 }
 0x40b   : > { %v5468_v36 = vsel %vm802_vm3, %v10949_v57, %v5466_v60  ;;  %v5462_v23 = vunpack.c.l.b16 %v5446_v20  ;;  %v6521_v1 = vmul.f32 %v6516_v43, %v7851_v52  ;;  %v6522_v4 = vmul.f32 %v6516_v43, %v7853_v53 }
 0x40c   : > { %v5470_v49 = vsel %vm805_vm4, %v10950_v12, %v5468_v36  ;;  %v10951_v63 = vrot.slane %v9980_v59, 3  ;;  %v6523_v62 = vmul.f32 %v6516_v43, %v7855_v54  ;;  %v6524_v19 = vmul.f32 %v6516_v43, %v7857_v55 }
 0x40d   : > { %v6525_v40 = vmul.f32 %v6516_v43, %v7859_v56  ;;  %v5475_v6 = vrot.slane %v5462_v23, 1  ;;  %v6534_v31 = vrot.slane %v6518_v35, 6  ;;  %v6535_v33 = vrot.slane %v6519_v41, 6 }
 0x40e   : > { %v5472_v34 = vsel %vm808_vm5, %v10951_v63, %v5470_v49  ;;  %v6536_v58 = vrot.slane %v6520_v39, 6  ;;  %v6537_v59 = vrot.slane %v6521_v1, 6  ;;  %v6538_v10 = vrot.slane %v6522_v4, 6 }
 0x40f   : > { %v5474_v32 = vsel %vm811_vm6, %v5473_v7, %v5472_v34  ;;  %v6539_v15 = vrot.slane %v6523_v62, 6  ;;  %v10952_v28 = vrot.slane %v10232_v5, 7  ;;  %v6540_v42 = vrot.slane %v6524_v19, 6 }
 0x410   : > { %v5476_v20 = vsel %vm814_vm7, %v5475_v6, %v5474_v32  ;;  %v6541_v60 = vrot.slane %v6525_v40, 6  ;;  %v6550_v43 = vadd.f32 %v6534_v31, %v6505_v11  ;;  %v6551_v57 = vadd.f32 %v6535_v33, %v6506_v16 }
 0x411   : > { %v10339_v46 = vsel %vm796_vm1, %v10952_v28, %v10239_v29  ;;  %v5477_v7 = vpack.c.b16 %v5476_v20, %v5476_v20  ;;  %v6552_v36 = vadd.f32 %v6536_v58, %v6507_v27  ;;  %v6553_v35 = vadd.f32 %v6537_v59, %v6508_v18 }
 0x412   : > { %v6554_v41 = vadd.f32 %v6538_v10, %v6509_v9  ;;  %v6555_v39 = vadd.f32 %v6539_v15, %v6510_v44  ;;  %v6556_v23 = vadd.f32 %v6540_v42, %v6511_v8  ;;  %v10343_v12 = vadd.f32 %v6541_v60, %v6512_v30  ;;  %v1221_v9 = vpop.f32.mrf.mxu1  ;;  %v1610_v30 = vpop.f32.mrf.mxu2 }
 0x413   : > { %6986 = vmatmul.msk.bf16.vlgmr.msrb.gmra.mxu0 %vm817_vm8, %v5477_v7  ;;  %v6561_v5 = vstv %s7262_s19  ;;  %v10953_v29 = vrot.slane %v10066_v48, 7  ;;  %v10954_v1 = vpack.c.bf16 %v10071_v0, %v10071_v0 }
 0x414   : > { %v6563_v11 = vmul.f32 %v6561_v5, %v7844_v45  ;;  %v6564_v16 = vmul.f32 %v6561_v5, %v7847_v50  ;;  %v6565_v27 = vmul.f32 %v6561_v5, %v7849_v51  ;;  %v6566_v18 = vmul.f32 %v6561_v5, %v7851_v52  ;;  %v10364_v45 = vpop.f32.mrf.mxu0  ;;  %v1999_v52 = vpop.f32.mrf.mxu3 }
 0x415   : > { %v5826_v49 = vadd.f32 %v10953_v29, %v10068_v37  ;;  %v10351_v4 = vunpack.c.l.b16 %v10954_v1  ;;  %v6567_v44 = vmul.f32 %v6561_v5, %v7853_v53  ;;  %v6568_v8 = vmul.f32 %v6561_v5, %v7855_v54 }
 0x416   : > { %v6569_v48 = vmul.f32 %v6561_v5, %v7857_v55  ;;  %v10955_v37 = vrot.slane %v10079_v21, 6  ;;  %v6579_v50 = vrot.slane %v6563_v11, 7  ;;  %v6580_v63 = vrot.slane %v6564_v16, 7 }
 0x417   : > { %v6581_v51 = vrot.slane %v6565_v27, 7  ;;  %v6582_v34 = vrot.slane %v6566_v18, 7  ;;  %v6570_v62 = vmul.f32 %v6561_v5, %v7859_v56  ;;  %v6583_v53 = vrot.slane %v6567_v44, 7  ;;  %v10958_v27 = vld [vmem:[#allocation57_spill] sm:$0xff] }
 0x418   : > { %v5854_v0 = vsel %vm799_vm2, %v10955_v37, %v10211_v25  ;;  %v6584_v19 = vrot.slane %v6568_v8, 7  ;;  %v6585_v54 = vrot.slane %v6569_v48, 7  ;;  %v6595_v40 = vadd.f32 %v6579_v50, %v6550_v43  ;;  %v10960_v37 = vld [vmem:[#allocation58_spill] sm:$0xff] }
 0x419   : > { %v6596_v55 = vadd.f32 %v6580_v63, %v6551_v57  ;;  %v6597_v38 = vadd.f32 %v6581_v51, %v6552_v36  ;;  %v6598_v32 = vadd.f32 %v6582_v34, %v6553_v35  ;;  %v6599_v21 = vadd.f32 %v6583_v53, %v6554_v41  ;;  %v10956_v41 = vld [vmem:[#allocation60_spill] sm:$0xff] }
 0x41a   : > { %v6600_v6 = vadd.f32 %v6584_v19, %v6555_v39  ;;  %v6601_v25 = vadd.f32 %v6585_v54, %v6556_v23  ;;  %v5834_v31 = vpack.c.bf16 %v5826_v49, %v5826_v49  ;;  %v6603_v33 = vpack.c.bf16 %v6595_v40, %v6595_v40  ;;  %v10367_v43 = vpop.f32.mrf.mxu1  ;;  %v10372_v49 = vpop.f32.mrf.mxu2 }
 0x41b   : > { %v6604_v58 = vpack.c.bf16 %v6596_v55, %v6596_v55  ;;  %v6605_v59 = vpack.c.bf16 %v6597_v38, %v6597_v38  ;;  %v6606_v10 = vpack.c.bf16 %v6598_v32, %v6598_v32  ;;  %v6586_v15 = vrot.slane %v6570_v62, 7 }
 0x41c   : > { %v6607_v28 = vpack.c.bf16 %v6599_v21, %v6599_v21  ;;  %v6608_v20 = vpack.c.bf16 %v6600_v6, %v6600_v6  ;;  %v6609_v42 = vpack.c.bf16 %v6601_v25, %v6601_v25  ;;  %v5850_v5 = vunpack.c.l.b16 %v5834_v31  ;;  %v2388_v29 = vpop.f32.mrf.mxu0  ;;  %v10377_v44 = vpop.f32.mrf.mxu3  ;;  %v10967_v6 = vld [vmem:[#allocation56_spill] sm:$0xff] }
 0x41d   : > { %v6620_v56 = vunpack.c.l.b16 %v6604_v58  ;;  %v6621_v60 = vunpack.c.l.b16 %v6605_v59  ;;  %v6622_v7 = vunpack.c.l.b16 %v6606_v10  ;;  %v6619_v57 = vunpack.c.l.b16 %v6603_v33 }
 0x41e   : > { %v6623_v36 = vunpack.c.l.b16 %v6607_v28  ;;  %v6624_v35 = vunpack.c.l.b16 %v6608_v20  ;;  %v10957_v39 = vrot.slane %v10956_v41, 5  ;;  %v6625_v1 = vunpack.c.l.b16 %v6609_v42 }
 0x41f   : > { %v6627_v11 = vrot.slane %v6620_v56, 7  ;;  %v6629_v16 = vrot.slane %v6621_v60, 6  ;;  %v10959_v18 = vrot.slane %v10958_v27, 4  ;;  %v6631_v8 = vrot.slane %v6622_v7, 5 }
 0x420   : > { %v5856_v23 = vsel %vm802_vm3, %v10957_v39, %v5854_v0  ;;  %v6633_v48 = vrot.slane %v6623_v36, 4  ;;  %v10961_v30 = vrot.slane %v10960_v37, 3  ;;  %v5861_v0 = vrot.slane %v10351_v4, 2 }
 0x421   : > { %v5858_v9 = vsel %vm805_vm4, %v10959_v18, %v5856_v23  ;;  %v6628_v63 = vsel %vm796_vm1, %v6627_v11, %v6619_v57  ;;  %v5863_v51 = vrot.slane %v5850_v5, 1  ;;  %v838_v34 = vpack.c.bf16 %v10304_v13, %v10304_v13 }
 0x422   : > { %v5860_v50 = vsel %vm808_vm5, %v10961_v30, %v5858_v9  ;;  %v10962_v62 = vrot.slane %v10224_v3, 7  ;;  %v10963_v19 = vpack.c.bf16 %v10227_v47, %v10227_v47  ;;  %v10964_v4 = vrot.slane %v10234_v14, 6 }
 0x423   : > { %v5862_v52 = vsel %vm811_vm6, %v5861_v0, %v5860_v50  ;;  %840 = vst.msk [vmem:[#allocation2] sm:$0xf] %vm839_vm9, %v838_v34  ;;  %v10965_v13 = vrot.slane %v10236_v17, 5  ;;  %v6602_v3 = vadd.f32 %v6586_v15, %v10343_v12  ;;  %v6635_v47 = vrot.slane %v6624_v35, 3  ;;  %v3166_v15 = vpop.f32.mrf.mxu2 }
 0x424   : > { %v6214_v53 = vadd.f32 %v10962_v62, %v10214_v2  ;;  %v6237_v54 = vunpack.c.l.b16 %v10963_v19  ;;  %v6242_v40 = vsel %vm799_vm2, %v10964_v4, %v10339_v46  ;;  %v5864_v55 = vsel %vm814_vm7, %v5863_v51, %v5862_v52  ;;  %v3942_v28 = vpop.f32.mrf.mxu0  ;;  %v3555_v7 = vpop.f32.mrf.mxu3 }
 0x425   : > { %v6244_v38 = vsel %vm802_vm3, %v10965_v13, %v6242_v40  ;;  %v1223_v2 = vpack.c.bf16 %v10322_v22, %v10322_v22  ;;  %v5865_v32 = vpack.c.b16 %v5864_v55, %v5864_v55  ;;  %v10966_v14 = vrot.slane %v10241_v26, 4  ;;  %v2777_v22 = vpop.f32.mrf.mxu1 }
 0x426   : > { %v6222_v21 = vpack.c.bf16 %v6214_v53, %v6214_v53  ;;  %v10968_v25 = vrot.slane %v10967_v6, 3  ;;  %v6249_v33 = vrot.slane %v6237_v54, 2  ;;  %v6610_v17 = vpack.c.bf16 %v6602_v3, %v6602_v3  ;;  %v6675_v22 = vld [vmem:[%s10502_s5] sm:$0xf] }
 0x427   : > { %v6246_v46 = vsel %vm805_vm4, %v10966_v14, %v6244_v38  ;;  %v6630_v58 = vsel %vm799_vm2, %v6629_v16, %v6628_v63  ;;  %1225 = vrot.lane.b32.xlu0 %v1223_v2, %s7603_s20  ;;  %6987 = vmatmul.msk.bf16.vlgmr.msrb.gmra.mxu1 %vm817_vm8, %v5865_v32  ;;  %v6637_v26 = vrot.slane %v6625_v1, 2  ;;  %v1612_v10 = vpack.c.bf16 %v10330_v24, %v10330_v24 }
 0x428   : > { %v6248_v31 = vsel %vm808_vm5, %v10968_v25, %v6246_v46  ;;  %v6238_v12 = vunpack.c.l.b16 %v6222_v21  ;;  %v6632_v59 = vsel %vm802_vm3, %v6631_v8, %v6630_v58  ;;  %v6626_v42 = vunpack.c.l.b16 %v6610_v17  ;;  %v6665_v46 = vld [vmem:[%s402_s13] sm:$0xff] }
 0x429   : > { %v6250_v20 = vsel %vm811_vm6, %v6249_v33, %v6248_v31  ;;  %v6634_v56 = vsel %vm805_vm4, %v6633_v48, %v6632_v59  ;;  %v2001_v60 = vpack.c.bf16 %v10333_v61, %v10333_v61  ;;  %1614 = vrot.lane.b32.xlu2 %v1612_v10, %s7604_s21  ;;  %v2390_v24 = vpack.c.bf16 %v10364_v45, %v10364_v45 }
 0x42a   : > { %v6251_v5 = vrot.slane %v6238_v12, 1  ;;  %v6636_v57 = vsel %vm808_vm5, %v6635_v47, %v6634_v56  ;;  %v6639_v35 = vrot.slane %v6626_v42, 1  ;;  %v3946_v41 = vpack.c.bf16 %v3942_v28, %v3942_v28  ;;  %6667 = vst [vmem:[#allocation1] ss:$2 sm:$0xff] %v6665_v46  ;;  %v6753_v12 = vld [vmem:[%s10503_s6] sm:$0xff] }
 0x42b   : > { %v6638_v36 = vsel %vm811_vm6, %v6637_v26, %v6636_v57  ;;  %2003 = vrot.lane.b32.xlu1 %v2001_v60, %s7605_s22  ;;  %v2779_v1 = vpack.c.bf16 %v10367_v43, %v10367_v43  ;;  %v3168_v45 = vpack.c.bf16 %v10372_v49, %v10372_v49  ;;  %v3557_v55 = vpack.c.bf16 %v10377_v44, %v10377_v44 }
 0x42c   : > { %v6252_v39 = vsel %vm814_vm7, %v6251_v5, %v6250_v20  ;;  %v6640_v61 = vsel %vm814_vm7, %v6639_v35, %v6638_v36  ;;  %3947 = vst.msk [vmem:[#allocation2 + $0x4] sm:$0xf] %vm839_vm9, %v3946_v41  ;;  %v3944_v16 = vpop.f32.mrf.mxu0  ;;  %vm6680_vm1 = vcmask 1041408   ;;  %vm6676_vm2 = vcmask 31744   ;;  %v6674_v36 = vld [vmem:[%s10501_s4] sm:$0xf] }
 0x42d   : > { %v6253_v23 = vpack.c.b16 %v6252_v39, %v6252_v39  ;;  %v6641_v29 = vpack.c.b16 %v6640_v61, %v6640_v61  ;;  %v4326_v11 = vpop.f32.mrf.mxu1  ;;  %v7610_v26 = vmov 0   ;;  %vm3562_vm3 = vcmask 1044352  }
 0x42e   : > { %v4330_v27 = vpack.c.bf16 %v4326_v11, %v4326_v11  ;;  %7562 = vset.pattern.permute.xlu2 %v7610_v26  ;;  %7563 = vset.pattern.permute.xlu0 %v7610_v26 }
 0x42f   : > { %6988 = vmatmul.msk.bf16.vlgmr.msrb.gmra.mxu2 %vm817_vm8, %v6253_v23  ;;  %2392 = vrot.lane.b32.xlu0 %v2390_v24, %s7606_s23  ;;  %v6766_v23 = vld [vmem:[%s10505_s8] sm:$0xff] }
 0x430   : > { %6989 = vmatmul.msk.bf16.vlgmr.msrb.gmra.mxu3 %vm817_vm8, %v6641_v29 }
 0x431   : > { %2781 = vrot.lane.b32.xlu2 %v2779_v1, %s7607_s24  ;;  %v6668_v6 = vld.sshfl [vmem:[#allocation1] sm:$0xff pattern:$0x75316420]  ;;  %v6669_v25 = vld.sshfl [vmem:[#allocation1 + $0x8] sm:$0xff pattern:$0x75316420] }
 0x432   : > { %v6672_v31 = vpack.c.bf16 %v6668_v6, %v6668_v6  ;;  %v6673_v33 = vpack.c.bf16 %v6669_v25, %v6669_v25 }
 0x433   : > { %3170 = vrot.lane.b32.xlu1 %v3168_v45, %s7608_s25 }
 0x434   : > { %v6682_v17 = vsel %vm6680_vm1, %v6672_v31, 0  ;;  %v6685_v58 = vsel %vm6680_vm1, %v6673_v33, 0 }
 0x435   : > { %v4328_v18 = vpop.f32.mrf.mxu1  ;;  %6694 = vmatpush.bf16.msra.mxu0 %v6682_v17  ;;  %6707 = vmatpush.bf16.msra.mxu1 %v6685_v58 }
 0x438   : > { %6990 = vmatmul.msk.bf16.vlgmr.msra.gmra.mxu0 %vm6676_vm2, %v6675_v22  ;;  %6991 = vmatmul.msk.bf16.vlgmr.msra.gmra.mxu1 %vm6676_vm2, %v6675_v22 }
 0x43b   : > { %4332 = vrot.lane.b32.xlu1 %v4330_v27, %s7603_s20 }
 0x447   : > { %v4714_v43 = vpop.f32.mrf.mxu2 }
 0x448   : > { %v4718_v9 = vpack.c.bf16 %v4714_v43, %v4714_v43 }
 0x44a   : > { %4720 = vrot.lane.b32.xlu0 %v4718_v9, %s7604_s21  ;;  %s10467_s21 = scalar_lea.vmem %s10506_s9, %s7002_s18 }
 0x44f   : > { %v4716_v8 = vpop.f32.mrf.mxu2 }
 0x45f   : > { %v5102_v48 = vpop.f32.mrf.mxu3 }
 0x460   : > { %v5106_v49 = vpack.c.bf16 %v5102_v48, %v5102_v48 }
 0x462   : > { %5108 = vrot.lane.b32.xlu2 %v5106_v49, %s7605_s22 }
 0x467   : > { %v5104_v37 = vpop.f32.mrf.mxu3 }
 0x483   : > { %v1615_v63 = vpop.permute.xlu2 %1614 }
 0x48b   : > { %v2782_v62 = vpop.permute.xlu2 %2781 }
 0x490   : > { %v5490_v30 = vpop.f32.mrf.mxu0 }
 0x491   : > { %v5494_v50 = vpack.c.bf16 %v5490_v30, %v5490_v30 }
 0x493   : > { %5496 = vrot.lane.b32.xlu1 %v5494_v50, %s7606_s23  ;;  %v6763_v50 = vld [vmem:[%s10504_s7] sm:$0xf] }
 0x498   : > { %v5492_v51 = vpop.f32.mrf.mxu0 }
 0x499   : > { %v1226_v0 = vpop.permute.xlu0 %1225 }
 0x49a   : > { %1229 = vst.msk [vmem:[#allocation2] sm:$0xf] %vm1228_vm10, %v1226_v0 }
 0x49b   : > { %1618 = vst.msk [vmem:[#allocation2] sm:$0xf] %vm1617_vm11, %v1615_v63 }
 0x49d   : > { %v2004_v34 = vpop.permute.xlu1 %2003 }
 0x49e   : > { %2007 = vst.msk [vmem:[#allocation2] sm:$0xf] %vm2006_vm12, %v2004_v34 }
 0x4a1   : > { %v2393_v52 = vpop.permute.xlu0 %2392 }
 0x4a2   : > { %2396 = vst.msk [vmem:[#allocation2] sm:$0xf] %vm2395_vm13, %v2393_v52 }
 0x4a3   : > { %2785 = vst.msk [vmem:[#allocation2] sm:$0xf] %vm2784_vm14, %v2782_v62 }
 0x4a4   : > { %v5878_v53 = vpop.f32.mrf.mxu1 }
 0x4a5   : > { %v3171_v19 = vpop.permute.xlu1 %3170  ;;  %v5882_v54 = vpack.c.bf16 %v5878_v53, %v5878_v53 }
 0x4a6   : > { %3174 = vst.msk [vmem:[#allocation2] sm:$0xf] %vm3173_vm15, %v3171_v19 }
 0x4a7   : > { %5884 = vrot.lane.b32.xlu0 %v5882_v54, %s7607_s24 }
 0x4ac   : > { %v5880_v4 = vpop.f32.mrf.mxu1 }
 0x4ad   : > { %v4333_v40 = vpop.permute.xlu1 %4332 }
 0x4ae   : > { %4335 = vst.msk [vmem:[#allocation2 + $0x4] sm:$0xf] %vm1228_vm10, %v4333_v40 }
 0x4af   : > { %3559 = vrot.lane.b32.xlu0 %v3557_v55, %s7609_s26 }
 0x4b2   : > { %v6266_v13 = vpop.f32.mrf.mxu2 }
 0x4b3   : > { %v6270_v38 = vpack.c.bf16 %v6266_v13, %v6266_v13  ;;  %v6654_v2 = vpop.f32.mrf.mxu3 }
 0x4b4   : > { %v6658_v3 = vpack.c.bf16 %v6654_v2, %v6654_v2 }
 0x4b5   : > { %6272 = vrot.lane.b32.xlu2 %v6270_v38, %s7608_s25  ;;  %v6696_v35 = vpop.f32.mrf.mxu0  ;;  %v6709_v24 = vpop.f32.mrf.mxu1 }
 0x4b6   : > { %6660 = vrot.lane.b32.xlu1 %v6658_v3, %s7609_s26 }
 0x4b7   : > { %6769 = vperm.xlu0 %7563, %v6766_v23  }
 0x4ba   : > { %v6268_v47 = vpop.f32.mrf.mxu2 }
 0x4bb   : > { %v6656_v32 = vpop.f32.mrf.mxu3 }
 0x4bc   : > { %v4721_v21 = vpop.permute.xlu0 %4720  ;;  %v5109_v14 = vpop.permute.xlu2 %5108 }
 0x4bd   : > { %4723 = vst.msk [vmem:[#allocation2 + $0x4] sm:$0xf] %vm1617_vm11, %v4721_v21  ;;  %6756 = vperm.xlu2 %7562, %v6753_v12   ;;  %v6698_v41 = vpop.f32.mrf.mxu0  ;;  %v6711_v39 = vpop.f32.mrf.mxu1 }
 0x4be   : > { %5111 = vst.msk [vmem:[#allocation2 + $0x4] sm:$0xf] %vm2006_vm12, %v5109_v14 }
 0x505   : > { %v5497_v44 = vpop.permute.xlu1 %5496 }
 0x506   : > { %5499 = vst.msk [vmem:[#allocation2 + $0x4] sm:$0xf] %vm2395_vm13, %v5497_v44 }
 0x50f   : > { %v6273_v10 = vpop.permute.xlu2 %6272 }
 0x517   : > { %v6757_v61 = vpop.permute.xlu2 %6756 }
 0x519   : > { %v5885_v59 = vpop.permute.xlu0 %5884 }
 0x51a   : > { %5887 = vst.msk [vmem:[#allocation2 + $0x4] sm:$0xf] %vm2784_vm14, %v5885_v59 }
 0x51b   : > { %6275 = vst.msk [vmem:[#allocation2 + $0x4] sm:$0xf] %vm3173_vm15, %v6273_v10 }
 0x521   : > { %v3560_v15 = vpop.permute.xlu0 %3559 }
 0x522   : > { %3563 = vst.msk [vmem:[#allocation2] sm:$0xf] %vm3562_vm3, %v3560_v15 }
 0x528   : > { %v6661_v28 = vpop.permute.xlu1 %6660 }
 0x529   : > { %6663 = vst.msk [vmem:[#allocation2 + $0x4] sm:$0xf] %vm3562_vm3, %v6661_v28  ;;  %v6770_v0 = vpop.permute.xlu0 %6769 }
 0x530   : > { %v6664_v20 = vld [vmem:[#allocation2] sm:$0xff] }
 0x531   : > { %v6714_v42 = vunpack.c.l.b16 %v6664_v20  ;;  %6845 = vst [vmem:[%s10467_s21] sm:$0xff] %v6664_v20  ;;  %v6715_v56 = vunpack.c.h.b16 %v6664_v20 }
 0x533   : > { %v6716_v60 = vpack.c.b16 %v6714_v42, %v6714_v42  ;;  %v6717_v7 = vpack.c.b16 %v6715_v56, %v6715_v56 }
 0x535   : > { %v6722_v5 = vsel %vm821_vm0, %v6716_v60, 0  ;;  %v6725_v57 = vsel %vm821_vm0, %v6717_v7, 0 }
 0x536   : > { %6734 = vmatpush.bf16.msra.mxu2 %v6722_v5  ;;  %6747 = vmatpush.bf16.msra.mxu3 %v6725_v57 }
 0x539   : > { %6992 = vmatmul.msk.bf16.vlgmr.msra.gmra.mxu2 %vm817_vm8, %v6674_v36  ;;  %6993 = vmatmul.msk.bf16.vlgmr.msra.gmra.mxu3 %vm817_vm8, %v6674_v36 }
 0x5bc   : > { %v6736_v29 = vpop.f32.mrf.mxu2  ;;  %v6749_v1 = vpop.f32.mrf.mxu3 }
 0x5bd   : > { %v6737_v45 = vadd.f32 %v6736_v29, %v6696_v35  ;;  %v6750_v11 = vadd.f32 %v6749_v1, %v6709_v24 }
 0x5bf   : > { %v6759_v16 = vadd.f32 %v6757_v61, %v6737_v45  ;;  %v6760_v27 = vadd.f32 %v6757_v61, %v6750_v11 }
 0x5c1   : > { %v6761_v18 = vmax.f32 %v6759_v16, 0.0  ;;  %v6762_v43 = vmax.f32 %v6760_v27, 0.0 }
 0x5c3   : > { %v6764_v9 = vpack.c.bf16 %v6761_v18, %v6761_v18  ;;  %v6765_v8 = vpack.c.bf16 %v6762_v43, %v6762_v43 }
 0x5c4   : > { %v6738_v48 = vpop.f32.mrf.mxu2  ;;  %v6751_v49 = vpop.f32.mrf.mxu3 }
 0x5c5   : > { %v6776_v37 = vsel %vm821_vm0, %v6764_v9, 0  ;;  %v6779_v30 = vsel %vm821_vm0, %v6765_v8, 0 }
 0x5c6   : > { %6788 = vmatpush.bf16.msrb.mxu0 %v6776_v37  ;;  %6801 = vmatpush.bf16.msrb.mxu1 %v6779_v30 }
 0x5c9   : > { %6994 = vmatmul.msk.bf16.vlgmr.msrb.gmra.mxu0 %vm817_vm8, %v6763_v50  ;;  %6995 = vmatmul.msk.bf16.vlgmr.msrb.gmra.mxu1 %vm817_vm8, %v6763_v50 }
 0x646   : > { %v6790_v63 = vpop.f32.mrf.mxu0  ;;  %v6803_v51 = vpop.f32.mrf.mxu1 }
 0x647   : > { %v6791_v34 = vadd.f32 %v6790_v63, %v6770_v0  ;;  %v6804_v52 = vadd.f32 %v6803_v51, %v6770_v0 }
 0x649   : > { %v6996_v62 = vmul.f32 -1.442695, %v6791_v34  ;;  %v6997_v53 = vmul.f32 -1.442695, %v6804_v52 }
 0x64b   : > { %7564 = vpow2.f32 %v6996_v62 }
 0x64c   : > { %7566 = vpow2.f32 %v6997_v53 }
 0x64e   : > { %v6792_v19 = vpop.f32.mrf.mxu0  ;;  %v6805_v54 = vpop.f32.mrf.mxu1 }
 0x651   : > { %v7565_v4 = vpop.eup %7564 }
 0x652   : > { %v7567_v40 = vpop.eup %7566  ;;  %v6813_v55 = vadd.f32 1.0, %v7565_v4 }
 0x653   : > { %v6814_v13 = vadd.f32 1.0, %v7567_v40 }
 0x654   : > { %7568 = vrcp.f32 %v6813_v55  ;;  %v6826_v21 = vand.u32 2147483648, %v6813_v55  ;;  %v6824_v46 = vand.u32 2147483647, %v6813_v55  ;;  %vm6820_vm5 = vweird.f32 %v6813_v55 }
 0x655   : > { %7570 = vrcp.f32 %v6814_v13  ;;  %v6841_v6 = vand.u32 2147483648, %v6814_v13  ;;  %v6839_v31 = vand.u32 2147483647, %v6814_v13  ;;  %vm6835_vm7 = vweird.f32 %v6814_v13 }
 0x656   : > { %v6827_v17 = vor.u32 1.1754944e-38, %v6826_v21  ;;  %vm6825_vm8 = vcmp.eq.f32.partialorder %v6824_v46, 8.507059e+37 }
 0x657   : > { %v6842_v12 = vor.u32 1.1754944e-38, %v6841_v6  ;;  %vm6840_vm10 = vcmp.eq.f32.partialorder %v6839_v31, 8.507059e+37 }
 0x65a   : > { %v7569_v38 = vpop.eup %7568 }
 0x65b   : > { %v7571_v2 = vpop.eup %7570  ;;  %v6816_v3 = vmul.f32 %v7569_v38, %v6813_v55  ;;  %vm6821_vm0 = vweird.f32 %v7569_v38 }
 0x65c   : > { %v6831_v47 = vmul.f32 %v7571_v2, %v6814_v13  ;;  %vm6836_vm4 = vweird.f32 %v7571_v2  ;;  %vm6822_vm6 = vmor %vm6820_vm5, %vm6821_vm0 }
 0x65d   : > { %v6817_v32 = vsub.f32 1.0, %v6816_v3  ;;  %vm6837_vm9 = vmor %vm6835_vm7, %vm6836_vm4 }
 0x65e   : > { %v6832_v14 = vsub.f32 1.0, %v6831_v47 }
 0x65f   : > { %v6818_v44 = vmul.f32 %v7569_v38, %v6817_v32 }
 0x660   : > { %v6833_v25 = vmul.f32 %v7571_v2, %v6832_v14 }
 0x661   : > { %v6819_v33 = vadd.f32 %v7569_v38, %v6818_v44 }
 0x662   : > { %v6834_v58 = vadd.f32 %v7571_v2, %v6833_v25 }
 0x663   : > { %v6823_v22 = vsel %vm6822_vm6, %v7569_v38, %v6819_v33 }
 0x664   : > { %v6828_v59 = vsel %vm6825_vm8, %v6827_v17, %v6823_v22  ;;  %v6838_v26 = vsel %vm6837_vm9, %v7571_v2, %v6834_v58 }
 0x665   : > { %v6843_v10 = vsel %vm6840_vm10, %v6842_v12, %v6838_v26 }
 0x666   : > { %v6846_v15 = vpack.c.bf16 %v6843_v10, %v6828_v59 }
 0x668   : > { %6847 = vst [vmem:[%s10467_s21 + $0x8] sm:$0xff] %v6846_v15 }
 0x669 PF: > { %s19_s11 = sadd.s32 1, %s7594_s11   ;;  %s10969_s30 = smov %s7590_s10 }
 0x66a   : > { %p16_p5 = scmp.ge.s32.totalorder %s19_s11, 4   ;;  %s10970_s10 = smov %s10972_s12 }
 0x66c   :  { %18 = sbr.rel (!%p16_p5) target bundleno = 2 (0x2), region = 92 }

</bundles_post_ra>
